<compile_context>
chip_gen: v7x
topology: tpu7x:2x2x1
jax: 0.10.0
libtpu: 0.0.40
codegen_flags: <defaults>
</compile_context>

<pallas_src>
import functools

import jax
import jax.numpy as jnp
from jax.experimental import pallas as pl
from jax.experimental.pallas import tpu as pltpu

NUM_CHARS = 19          # -> num_chars + 1 = 20 output classes
HIDDEN = 32             # GRU hidden size
OUT_PAD = 128           # lane-dense padding of the output-linear N dimension


# --------------------- fused conv3x3 + bias + ReLU + 2x2 maxpool -------------
def _conv_pool_kernel(a0_ref, a1_ref, a2_ref, a3_ref, w_ref, b_ref, o_ref):
    w = w_ref[...]
    acc0 = jnp.dot(a0_ref[...], w, preferred_element_type=jnp.float32)
    acc1 = jnp.dot(a1_ref[...], w, preferred_element_type=jnp.float32)
    acc2 = jnp.dot(a2_ref[...], w, preferred_element_type=jnp.float32)
    acc3 = jnp.dot(a3_ref[...], w, preferred_element_type=jnp.float32)
    m = jnp.maximum(jnp.maximum(acc0, acc1), jnp.maximum(acc2, acc3))
    # max over the 2x2 window commutes with the shared bias add and with ReLU.
    o_ref[...] = jnp.maximum(m + b_ref[...], 0.0)


def _pick_row_tile(m):
    # Prefer two parallel grid steps (keeps both v7x TensorCores busy) when the
    # half-tile stays sublane aligned; otherwise use the whole slab as one block.
    half = m // 2
    if m % 2 == 0 and half % 8 == 0:
        return half
    return m


def conv3x3_relu_pool(x, w_torch, b):
    """maxpool2x2(relu(conv2d 3x3, pad=1)) without materializing the pre-pool activation.

    x: (B, H, W, Cin) NHWC; w_torch: (Cout, Cin, 3, 3); b: (Cout,)
    returns (B, H//2, W//2, Cout)
    """
    bsz, H, W, C = x.shape
    cout = w_torch.shape[0]
    ho, wo = H // 2, W // 2
    xp = jnp.pad(x, ((0, 0), (1, 1), (1, 1), (0, 0)))

    # One im2col slab per 2x2-pool quadrant; rows ordered (b, pooled_h, pooled_w).
    quads = []
    for dy0 in range(2):
        for dx0 in range(2):
            taps = [xp[:, dy0 + dy:dy0 + dy + H - 1:2, dx0 + dx:dx0 + dx + W - 1:2, :]
                    for dy in range(3) for dx in range(3)]
            quads.append(jnp.concatenate(taps, axis=-1).reshape(bsz * ho * wo, 9 * C))

    wm = jnp.transpose(w_torch, (2, 3, 1, 0)).reshape(9 * C, cout)   # (kh,kw,cin) order
    k = 9 * C
    kp = ((k + 31) // 32) * 32                                       # pad K (27 -> 32 for conv1)
    if kp != k:
        quads = [jnp.pad(q, ((0, 0), (0, kp - k))) for q in quads]
        wm = jnp.pad(wm, ((0, kp - k), (0, 0)))

    m = bsz * ho * wo
    tm = _pick_row_tile(m)
    out = pl.pallas_call(
        _conv_pool_kernel,
        out_shape=jax.ShapeDtypeStruct((m, cout), jnp.float32),
        grid=(m // tm,),
        in_specs=[pl.BlockSpec((tm, kp), lambda i: (i, 0)) for _ in range(4)]
        + [pl.BlockSpec((kp, cout), lambda i: (0, 0)),
           pl.BlockSpec((1, cout), lambda i: (0, 0))],
        out_specs=pl.BlockSpec((tm, cout), lambda i: (i, 0)),
        compiler_params=pltpu.CompilerParams(dimension_semantics=("parallel",)),
    )(*quads, wm, b.reshape(1, cout))
    return out.reshape(bsz, ho, wo, cout)


# --------------------- fused sequence head: linear_1 + biGRU x2 + output -----
def _gru_cell(gx, gh, h, H):
    # PyTorch GRU: r,z,n gate order; n uses r * (W_hn h + b_hn).
    r = jax.nn.sigmoid(gx[:, 0:H] + gh[:, 0:H])
    z = jax.nn.sigmoid(gx[:, H:2 * H] + gh[:, H:2 * H])
    n = jnp.tanh(gx[:, 2 * H:3 * H] + r * gh[:, 2 * H:3 * H])
    return (1.0 - z) * n + z * h


def _bigru_layer(x, wih, bih, whh_bd, bhh, *, T, B, H):
    """Bidirectional GRU layer on values. x: (T*B, F) rows in (t, b) order.

    wih: (F, 6H) = [fwd r|z|n | bwd r|z|n];  whh_bd: (2H, 6H) block-diagonal so a
    single dot per step produces both directions' recurrent gates.
    Returns (T*B, 2H) rows in (t, b) order.
    """
    gx = jnp.dot(x, wih, preferred_element_type=jnp.float32) + bih        # (T*B, 6H)
    hf = jnp.zeros((B, H), jnp.float32)
    hb = jnp.zeros((B, H), jnp.float32)
    fwd = [None] * T
    bwd = [None] * T
    for s in range(T):                      # fully unrolled: T is static
        tb = T - 1 - s
        h_cat = jnp.concatenate([hf, hb], axis=1)                         # (B, 2H)
        gh = jnp.dot(h_cat, whh_bd, preferred_element_type=jnp.float32) + bhh  # (B, 6H)
        gx_f = gx[s * B:(s + 1) * B, 0:3 * H]
        gx_b = gx[tb * B:(tb + 1) * B, 3 * H:6 * H]
        hf = _gru_cell(gx_f, gh[:, 0:3 * H], hf, H)
        hb = _gru_cell(gx_b, gh[:, 3 * H:6 * H], hb, H)
        fwd[s] = hf
        bwd[tb] = hb
    fwd_stack = jnp.concatenate(fwd, axis=0)                              # (T*B, H)
    bwd_stack = jnp.concatenate(bwd, axis=0)                              # (T*B, H)
    return jnp.concatenate([fwd_stack, bwd_stack], axis=1)                # (T*B, 2H)


def _seq_head_kernel(seq_ref, l1w_ref, l1b_ref,
                     wih0_ref, bih0_ref, whh0_ref, bhh0_ref,
                     wih1_ref, bih1_ref, whh1_ref, bhh1_ref,
                     ow_ref, ob_ref, o_ref, *, T, B, H):
    # linear_1 (1152 -> 64); drop_1 and GRU inter-layer dropout are identity at inference.
    x0 = jnp.dot(seq_ref[...], l1w_ref[...],
                 preferred_element_type=jnp.float32) + l1b_ref[...]
    y0 = _bigru_layer(x0, wih0_ref[...], bih0_ref[...], whh0_ref[...], bhh0_ref[...],
                      T=T, B=B, H=H)
    y1 = _bigru_layer(y0, wih1_ref[...], bih1_ref[...], whh1_ref[...], bhh1_ref[...],
                      T=T, B=B, H=H)
    # output linear, N padded to 128 lanes (sliced back in the wrapper).
    o_ref[...] = jnp.dot(y1, ow_ref[...],
                         preferred_element_type=jnp.float32) + ob_ref[...]


def _prep_bigru_params(p_fwd, p_bwd):
    w_ih_f, w_hh_f, b_ih_f, b_hh_f = p_fwd       # (3H, F), (3H, H), (3H,), (3H,)
    w_ih_b, w_hh_b, b_ih_b, b_hh_b = p_bwd
    h = w_hh_f.shape[1]
    wih = jnp.concatenate([w_ih_f.T, w_ih_b.T], axis=1)                   # (F, 6H)
    bih = jnp.concatenate([b_ih_f, b_ih_b]).reshape(1, -1)                # (1, 6H)
    z = jnp.zeros((h, 3 * h), jnp.float32)
    whh = jnp.concatenate(
        [jnp.concatenate([w_hh_f.T, z], axis=1),
         jnp.concatenate([z, w_hh_b.T], axis=1)], axis=0)                 # (2H, 6H) block-diag
    bhh = jnp.concatenate([b_hh_f, b_hh_b]).reshape(1, -1)                # (1, 6H)
    return wih, bih, whh, bhh


def seq_head(seq_tb, params, *, T, B):
    l1w = params["lin1_w"].T                                              # (1152, 64)
    l1b = params["lin1_b"].reshape(1, -1)
    wih0, bih0, whh0, bhh0 = _prep_bigru_params(params["gru0f"], params["gru0b"])
    wih1, bih1, whh1, bhh1 = _prep_bigru_params(params["gru1f"], params["gru1b"])
    ncls = params["out_w"].shape[0]
    ow = jnp.zeros((params["out_w"].shape[1], OUT_PAD), jnp.float32)
    ow = ow.at[:, :ncls].set(params["out_w"].T)
    ob = jnp.zeros((1, OUT_PAD), jnp.float32).at[:, :ncls].set(params["out_b"])

    return pl.pallas_call(
        functools.partial(_seq_head_kernel, T=T, B=B, H=HIDDEN),
        out_shape=jax.ShapeDtypeStruct((T * B, OUT_PAD), jnp.float32),
    )(seq_tb, l1w, l1b, wih0, bih0, whh0, bhh0, wih1, bih1, whh1, bhh1, ow, ob)


# ----------------------------- parameters ------------------------------------
def init_params(key):
    ks = jax.random.split(key, 24)

    def u(k, shape, fan_in):
        bound = 1.0 / (fan_in ** 0.5)
        return jax.random.uniform(k, shape, jnp.float32, -bound, bound)

    p = {}
    p["conv1_w"] = u(ks[0], (128, 3, 3, 3), 27)          # (Cout, Cin, kh, kw)
    p["conv1_b"] = u(ks[1], (128,), 27)
    p["conv2_w"] = u(ks[2], (64, 128, 3, 3), 1152)
    p["conv2_b"] = u(ks[3], (64,), 1152)
    p["lin1_w"] = u(ks[4], (64, 1152), 1152)             # (out, in)
    p["lin1_b"] = u(ks[5], (64,), 1152)
    i = 6
    for layer in (0, 1):
        for d in ("f", "b"):
            p[f"gru{layer}{d}"] = (
                u(ks[i + 0], (3 * HIDDEN, 64), HIDDEN),      # weight_ih (3H, in)
                u(ks[i + 1], (3 * HIDDEN, HIDDEN), HIDDEN),  # weight_hh (3H, H)
                u(ks[i + 2], (3 * HIDDEN,), HIDDEN),         # bias_ih
                u(ks[i + 3], (3 * HIDDEN,), HIDDEN),         # bias_hh
            )
            i += 4
    p["out_w"] = u(ks[i], (NUM_CHARS + 1, 64), 64)
    p["out_b"] = u(ks[i + 1], (NUM_CHARS + 1,), 64)
    return p


# ----------------------------- full forward ----------------------------------
@jax.jit
def captcha_forward(images, params):
    b, c, h, w = images.shape
    x = jnp.transpose(images, (0, 2, 3, 1)).astype(jnp.float32)          # NCHW -> NHWC

    y = conv3x3_relu_pool(x, params["conv1_w"], params["conv1_b"])       # (B, H/2, W/2, 128)
    y = conv3x3_relu_pool(y, params["conv2_w"], params["conv2_b"])       # (B, H/4, W/4, 64)

    hq, wq = h // 4, w // 4
    # torch: permute(0,3,1,2).view(B, W/4, 64*(H/4)) — features (channel, height);
    # rows are fed (t, b)-major to the fused sequence-head kernel.
    seq = jnp.transpose(y, (2, 0, 3, 1)).reshape(wq * b, 64 * hq)        # (T*B, 1152)

    logits = seq_head(seq, params, T=wq, B=b)                            # (T*B, 128)
    logits = logits.reshape(wq, b, OUT_PAD)[:, :, :NUM_CHARS + 1]        # (T, B, classes)
    # TODO(synk): CTC-loss branch (targets is not None) not implemented; inference path only.
    return logits, None


if __name__ == "__main__":
    key = jax.random.PRNGKey(0)
    k_img, k_par = jax.random.split(key)
    # H must be 72 so that 64*(H/4) == 1152 (linear_1 in_features); W=32 -> seq len 8.
    images = jax.random.uniform(k_img, (2, 3, 72, 32), jnp.float32)      # NCHW, like PyTorch
    params = init_params(k_par)

    logits, loss = captcha_forward(images, params)
    jax.block_until_ready(logits)

    assert logits.shape == (8, 2, NUM_CHARS + 1), logits.shape
    assert loss is None
    print("KERNEL_OK")
</pallas_src>

<mosaic_0001>
module attributes {stable_mosaic.version = 11 : i64} {
  func.func @_conv_pool_kernel(%arg0: i32, %arg1: memref<576x32xf32, #tpu.memory_space<vmem>>, %arg2: memref<576x32xf32, #tpu.memory_space<vmem>>, %arg3: memref<576x32xf32, #tpu.memory_space<vmem>>, %arg4: memref<576x32xf32, #tpu.memory_space<vmem>>, %arg5: memref<32x128xf32, #tpu.memory_space<vmem>>, %arg6: memref<1x128xf32, #tpu.memory_space<vmem>>, %arg7: memref<576x128xf32, #tpu.memory_space<vmem>>) attributes {dimension_semantics = [#tpu.dimension_semantics<parallel>], iteration_bounds = array<i64: 2>, scalar_prefetch = 0 : i64, scratch_operands = 0 : i64, tpu.core_type = #tpu.core_type<tc>, window_params = [{transform_indices = @transform_0, window_bounds = array<i64: 576, 32>}, {transform_indices = @transform_1, window_bounds = array<i64: 576, 32>}, {transform_indices = @transform_2, window_bounds = array<i64: 576, 32>}, {transform_indices = @transform_3, window_bounds = array<i64: 576, 32>}, {pipeline_mode = #tpu.pipeline_mode<synchronous>, transform_indices = @transform_4, window_bounds = array<i64: 32, 128>}, {pipeline_mode = #tpu.pipeline_mode<synchronous>, transform_indices = @transform_5, window_bounds = array<i64: 1, 128>}, {transform_indices = @transform_6, window_bounds = array<i64: 576, 128>}]} {
    %c0 = arith.constant 0 : index
    %c0_0 = arith.constant 0 : index
    %0 = vector.load %arg5[%c0, %c0_0] : memref<32x128xf32, #tpu.memory_space<vmem>>, vector<32x128xf32>
    %c0_1 = arith.constant 0 : index
    %c0_2 = arith.constant 0 : index
    %1 = vector.load %arg1[%c0_1, %c0_2] : memref<576x32xf32, #tpu.memory_space<vmem>>, vector<576x32xf32>
    %cst = arith.constant dense<0.000000e+00> : vector<576x128xf32>
    %2 = tpu.matmul %1, %0, %cst {dimension_numbers = #tpu.dot_dimension_numbers<[1], [0], [0], [1], [0, 0, 1, 1], [], []>} : vector<576x32xf32>, vector<32x128xf32>, vector<576x128xf32> -> vector<576x128xf32>
    %c0_3 = arith.constant 0 : index
    %c0_4 = arith.constant 0 : index
    %3 = vector.load %arg2[%c0_3, %c0_4] : memref<576x32xf32, #tpu.memory_space<vmem>>, vector<576x32xf32>
    %cst_5 = arith.constant dense<0.000000e+00> : vector<576x128xf32>
    %4 = tpu.matmul %3, %0, %cst_5 {dimension_numbers = #tpu.dot_dimension_numbers<[1], [0], [0], [1], [0, 0, 1, 1], [], []>} : vector<576x32xf32>, vector<32x128xf32>, vector<576x128xf32> -> vector<576x128xf32>
    %c0_6 = arith.constant 0 : index
    %c0_7 = arith.constant 0 : index
    %5 = vector.load %arg3[%c0_6, %c0_7] : memref<576x32xf32, #tpu.memory_space<vmem>>, vector<576x32xf32>
    %cst_8 = arith.constant dense<0.000000e+00> : vector<576x128xf32>
    %6 = tpu.matmul %5, %0, %cst_8 {dimension_numbers = #tpu.dot_dimension_numbers<[1], [0], [0], [1], [0, 0, 1, 1], [], []>} : vector<576x32xf32>, vector<32x128xf32>, vector<576x128xf32> -> vector<576x128xf32>
    %c0_9 = arith.constant 0 : index
    %c0_10 = arith.constant 0 : index
    %7 = vector.load %arg4[%c0_9, %c0_10] : memref<576x32xf32, #tpu.memory_space<vmem>>, vector<576x32xf32>
    %cst_11 = arith.constant dense<0.000000e+00> : vector<576x128xf32>
    %8 = tpu.matmul %7, %0, %cst_11 {dimension_numbers = #tpu.dot_dimension_numbers<[1], [0], [0], [1], [0, 0, 1, 1], [], []>} : vector<576x32xf32>, vector<32x128xf32>, vector<576x128xf32> -> vector<576x128xf32>
    %9 = arith.maximumf %2, %4 : vector<576x128xf32>
    %10 = arith.maximumf %6, %8 : vector<576x128xf32>
    %11 = arith.maximumf %9, %10 : vector<576x128xf32>
    %c0_12 = arith.constant 0 : index
    %c0_13 = arith.constant 0 : index
    %12 = vector.load %arg6[%c0_12, %c0_13] : memref<1x128xf32, #tpu.memory_space<vmem>>, vector<1x128xf32>
    %13 = vector.broadcast %12 : vector<1x128xf32> to vector<576x128xf32>
    %14 = arith.addf %11, %13 : vector<576x128xf32>
    %cst_14 = arith.constant 0.000000e+00 : f32
    %15 = vector.broadcast %cst_14 : f32 to vector<576x128xf32>
    %16 = arith.maximumf %14, %15 : vector<576x128xf32>
    %c0_15 = arith.constant 0 : index
    %c0_16 = arith.constant 0 : index
    %17 = vector.load %arg7[%c0_15, %c0_16] : memref<576x128xf32, #tpu.memory_space<vmem>>, vector<576x128xf32>
    tpu.vector_store %arg7[%c0_15, %c0_16], %16 {strides = array<i32>} : memref<576x128xf32, #tpu.memory_space<vmem>>, vector<576x128xf32>,
    return
  }
  func.func @transform_0(%arg0: i32) -> (i32, i32) {
    %c0_i32 = arith.constant 0 : i32
    %c0_i32_0 = arith.constant 0 : i32
    return %arg0, %c0_i32 : i32, i32
  }
  func.func @transform_1(%arg0: i32) -> (i32, i32) {
    %c0_i32 = arith.constant 0 : i32
    %c0_i32_0 = arith.constant 0 : i32
    return %arg0, %c0_i32 : i32, i32
  }
  func.func @transform_2(%arg0: i32) -> (i32, i32) {
    %c0_i32 = arith.constant 0 : i32
    %c0_i32_0 = arith.constant 0 : i32
    return %arg0, %c0_i32 : i32, i32
  }
  func.func @transform_3(%arg0: i32) -> (i32, i32) {
    %c0_i32 = arith.constant 0 : i32
    %c0_i32_0 = arith.constant 0 : i32
    return %arg0, %c0_i32 : i32, i32
  }
  func.func @transform_4(%arg0: i32) -> (i32, i32) {
    %c0_i32 = arith.constant 0 : i32
    %c0_i32_0 = arith.constant 0 : i32
    %c0_i32_1 = arith.constant 0 : i32
    return %c0_i32, %c0_i32_0 : i32, i32
  }
  func.func @transform_5(%arg0: i32) -> (i32, i32) {
    %c0_i32 = arith.constant 0 : i32
    %c0_i32_0 = arith.constant 0 : i32
    %c0_i32_1 = arith.constant 0 : i32
    return %c0_i32, %c0_i32_0 : i32, i32
  }
  func.func @transform_6(%arg0: i32) -> (i32, i32) {
    %c0_i32 = arith.constant 0 : i32
    %c0_i32_0 = arith.constant 0 : i32
    return %arg0, %c0_i32 : i32, i32
  }
}

module attributes {stable_mosaic.version = 11 : i64} {
  func.func @_conv_pool_kernel(%arg0: i32, %arg1: memref<144x1152xf32, #tpu.memory_space<vmem>>, %arg2: memref<144x1152xf32, #tpu.memory_space<vmem>>, %arg3: memref<144x1152xf32, #tpu.memory_space<vmem>>, %arg4: memref<144x1152xf32, #tpu.memory_space<vmem>>, %arg5: memref<1152x64xf32, #tpu.memory_space<vmem>>, %arg6: memref<1x64xf32, #tpu.memory_space<vmem>>, %arg7: memref<144x64xf32, #tpu.memory_space<vmem>>) attributes {dimension_semantics = [#tpu.dimension_semantics<parallel>], iteration_bounds = array<i64: 2>, scalar_prefetch = 0 : i64, scratch_operands = 0 : i64, tpu.core_type = #tpu.core_type<tc>, window_params = [{transform_indices = @transform_0, window_bounds = array<i64: 144, 1152>}, {transform_indices = @transform_1, window_bounds = array<i64: 144, 1152>}, {transform_indices = @transform_2, window_bounds = array<i64: 144, 1152>}, {transform_indices = @transform_3, window_bounds = array<i64: 144, 1152>}, {pipeline_mode = #tpu.pipeline_mode<synchronous>, transform_indices = @transform_4, window_bounds = array<i64: 1152, 64>}, {pipeline_mode = #tpu.pipeline_mode<synchronous>, transform_indices = @transform_5, window_bounds = array<i64: 1, 64>}, {transform_indices = @transform_6, window_bounds = array<i64: 144, 64>}]} {
    %c0 = arith.constant 0 : index
    %c0_0 = arith.constant 0 : index
    %0 = vector.load %arg5[%c0, %c0_0] : memref<1152x64xf32, #tpu.memory_space<vmem>>, vector<1152x64xf32>
    %c0_1 = arith.constant 0 : index
    %c0_2 = arith.constant 0 : index
    %1 = vector.load %arg1[%c0_1, %c0_2] : memref<144x1152xf32, #tpu.memory_space<vmem>>, vector<144x1152xf32>
    %cst = arith.constant dense<0.000000e+00> : vector<144x64xf32>
    %2 = tpu.matmul %1, %0, %cst {dimension_numbers = #tpu.dot_dimension_numbers<[1], [0], [0], [1], [0, 0, 1, 1], [], []>} : vector<144x1152xf32>, vector<1152x64xf32>, vector<144x64xf32> -> vector<144x64xf32>
    %c0_3 = arith.constant 0 : index
    %c0_4 = arith.constant 0 : index
    %3 = vector.load %arg2[%c0_3, %c0_4] : memref<144x1152xf32, #tpu.memory_space<vmem>>, vector<144x1152xf32>
    %cst_5 = arith.constant dense<0.000000e+00> : vector<144x64xf32>
    %4 = tpu.matmul %3, %0, %cst_5 {dimension_numbers = #tpu.dot_dimension_numbers<[1], [0], [0], [1], [0, 0, 1, 1], [], []>} : vector<144x1152xf32>, vector<1152x64xf32>, vector<144x64xf32> -> vector<144x64xf32>
    %c0_6 = arith.constant 0 : index
    %c0_7 = arith.constant 0 : index
    %5 = vector.load %arg3[%c0_6, %c0_7] : memref<144x1152xf32, #tpu.memory_space<vmem>>, vector<144x1152xf32>
    %cst_8 = arith.constant dense<0.000000e+00> : vector<144x64xf32>
    %6 = tpu.matmul %5, %0, %cst_8 {dimension_numbers = #tpu.dot_dimension_numbers<[1], [0], [0], [1], [0, 0, 1, 1], [], []>} : vector<144x1152xf32>, vector<1152x64xf32>, vector<144x64xf32> -> vector<144x64xf32>
    %c0_9 = arith.constant 0 : index
    %c0_10 = arith.constant 0 : index
    %7 = vector.load %arg4[%c0_9, %c0_10] : memref<144x1152xf32, #tpu.memory_space<vmem>>, vector<144x1152xf32>
    %cst_11 = arith.constant dense<0.000000e+00> : vector<144x64xf32>
    %8 = tpu.matmul %7, %0, %cst_11 {dimension_numbers = #tpu.dot_dimension_numbers<[1], [0], [0], [1], [0, 0, 1, 1], [], []>} : vector<144x1152xf32>, vector<1152x64xf32>, vector<144x64xf32> -> vector<144x64xf32>
    %9 = arith.maximumf %2, %4 : vector<144x64xf32>
    %10 = arith.maximumf %6, %8 : vector<144x64xf32>
    %11 = arith.maximumf %9, %10 : vector<144x64xf32>
    %c0_12 = arith.constant 0 : index
    %c0_13 = arith.constant 0 : index
    %12 = vector.load %arg6[%c0_12, %c0_13] : memref<1x64xf32, #tpu.memory_space<vmem>>, vector<1x64xf32>
    %13 = vector.broadcast %12 : vector<1x64xf32> to vector<144x64xf32>
    %14 = arith.addf %11, %13 : vector<144x64xf32>
    %cst_14 = arith.constant 0.000000e+00 : f32
    %15 = vector.broadcast %cst_14 : f32 to vector<144x64xf32>
    %16 = arith.maximumf %14, %15 : vector<144x64xf32>
    %c0_15 = arith.constant 0 : index
    %c0_16 = arith.constant 0 : index
    %17 = vector.load %arg7[%c0_15, %c0_16] : memref<144x64xf32, #tpu.memory_space<vmem>>, vector<144x64xf32>
    tpu.vector_store %arg7[%c0_15, %c0_16], %16 {strides = array<i32>} : memref<144x64xf32, #tpu.memory_space<vmem>>, vector<144x64xf32>,
    return
  }
  func.func @transform_0(%arg0: i32) -> (i32, i32) {
    %c0_i32 = arith.constant 0 : i32
    %c0_i32_0 = arith.constant 0 : i32
    return %arg0, %c0_i32 : i32, i32
  }
  func.func @transform_1(%arg0: i32) -> (i32, i32) {
    %c0_i32 = arith.constant 0 : i32
    %c0_i32_0 = arith.constant 0 : i32
    return %arg0, %c0_i32 : i32, i32
  }
  func.func @transform_2(%arg0: i32) -> (i32, i32) {
    %c0_i32 = arith.constant 0 : i32
    %c0_i32_0 = arith.constant 0 : i32
    return %arg0, %c0_i32 : i32, i32
  }
  func.func @transform_3(%arg0: i32) -> (i32, i32) {
    %c0_i32 = arith.constant 0 : i32
    %c0_i32_0 = arith.constant 0 : i32
    return %arg0, %c0_i32 : i32, i32
  }
  func.func @transform_4(%arg0: i32) -> (i32, i32) {
    %c0_i32 = arith.constant 0 : i32
    %c0_i32_0 = arith.constant 0 : i32
    %c0_i32_1 = arith.constant 0 : i32
    return %c0_i32, %c0_i32_0 : i32, i32
  }
  func.func @transform_5(%arg0: i32) -> (i32, i32) {
    %c0_i32 = arith.constant 0 : i32
    %c0_i32_0 = arith.constant 0 : i32
    %c0_i32_1 = arith.constant 0 : i32
    return %c0_i32, %c0_i32_0 : i32, i32
  }
  func.func @transform_6(%arg0: i32) -> (i32, i32) {
    %c0_i32 = arith.constant 0 : i32
    %c0_i32_0 = arith.constant 0 : i32
    return %arg0, %c0_i32 : i32, i32
  }
}

module attributes {stable_mosaic.version = 11 : i64} {
  func.func @_seq_head_kernel(%arg0: memref<16x1152xf32, #tpu.memory_space<vmem>>, %arg1: memref<1152x64xf32, #tpu.memory_space<vmem>>, %arg2: memref<1x64xf32, #tpu.memory_space<vmem>>, %arg3: memref<64x192xf32, #tpu.memory_space<vmem>>, %arg4: memref<1x192xf32, #tpu.memory_space<vmem>>, %arg5: memref<64x192xf32, #tpu.memory_space<vmem>>, %arg6: memref<1x192xf32, #tpu.memory_space<vmem>>, %arg7: memref<64x192xf32, #tpu.memory_space<vmem>>, %arg8: memref<1x192xf32, #tpu.memory_space<vmem>>, %arg9: memref<64x192xf32, #tpu.memory_space<vmem>>, %arg10: memref<1x192xf32, #tpu.memory_space<vmem>>, %arg11: memref<64x128xf32, #tpu.memory_space<vmem>>, %arg12: memref<1x128xf32, #tpu.memory_space<vmem>>, %arg13: memref<16x128xf32, #tpu.memory_space<vmem>>) attributes {dimension_semantics = [], scalar_prefetch = 0 : i64, scratch_operands = 0 : i64, tpu.core_type = #tpu.core_type<tc>} {
    %c0 = arith.constant 0 : index
    %c0_0 = arith.constant 0 : index
    %0 = vector.load %arg0[%c0, %c0_0] : memref<16x1152xf32, #tpu.memory_space<vmem>>, vector<16x1152xf32>
    %c0_1 = arith.constant 0 : index
    %c0_2 = arith.constant 0 : index
    %1 = vector.load %arg1[%c0_1, %c0_2] : memref<1152x64xf32, #tpu.memory_space<vmem>>, vector<1152x64xf32>
    %cst = arith.constant dense<0.000000e+00> : vector<16x64xf32>
    %2 = tpu.matmul %0, %1, %cst {dimension_numbers = #tpu.dot_dimension_numbers<[1], [0], [0], [1], [0, 0, 1, 1], [], []>} : vector<16x1152xf32>, vector<1152x64xf32>, vector<16x64xf32> -> vector<16x64xf32>
    %c0_3 = arith.constant 0 : index
    %c0_4 = arith.constant 0 : index
    %3 = vector.load %arg2[%c0_3, %c0_4] : memref<1x64xf32, #tpu.memory_space<vmem>>, vector<1x64xf32>
    %4 = vector.broadcast %3 : vector<1x64xf32> to vector<16x64xf32>
    %5 = arith.addf %2, %4 : vector<16x64xf32>
    %c0_5 = arith.constant 0 : index
    %c0_6 = arith.constant 0 : index
    %6 = vector.load %arg3[%c0_5, %c0_6] : memref<64x192xf32, #tpu.memory_space<vmem>>, vector<64x192xf32>
    %c0_7 = arith.constant 0 : index
    %c0_8 = arith.constant 0 : index
    %7 = vector.load %arg4[%c0_7, %c0_8] : memref<1x192xf32, #tpu.memory_space<vmem>>, vector<1x192xf32>
    %c0_9 = arith.constant 0 : index
    %c0_10 = arith.constant 0 : index
    %8 = vector.load %arg5[%c0_9, %c0_10] : memref<64x192xf32, #tpu.memory_space<vmem>>, vector<64x192xf32>
    %c0_11 = arith.constant 0 : index
    %c0_12 = arith.constant 0 : index
    %9 = vector.load %arg6[%c0_11, %c0_12] : memref<1x192xf32, #tpu.memory_space<vmem>>, vector<1x192xf32>
    %cst_13 = arith.constant dense<0.000000e+00> : vector<16x192xf32>
    %10 = tpu.matmul %5, %6, %cst_13 {dimension_numbers = #tpu.dot_dimension_numbers<[1], [0], [0], [1], [0, 0, 1, 1], [], []>} : vector<16x64xf32>, vector<64x192xf32>, vector<16x192xf32> -> vector<16x192xf32>
    %11 = vector.broadcast %7 : vector<1x192xf32> to vector<16x192xf32>
    %12 = arith.addf %10, %11 : vector<16x192xf32>
    %cst_14 = arith.constant 0.000000e+00 : f32
    %13 = vector.broadcast %cst_14 : f32 to vector<2x32xf32>
    %cst_15 = arith.constant 0.000000e+00 : f32
    %14 = vector.broadcast %cst_15 : f32 to vector<2x32xf32>
    %15 = tpu.concatenate %13, %14 in 1 : vector<2x32xf32>, vector<2x32xf32> -> vector<2x64xf32>
    %cst_16 = arith.constant dense<0.000000e+00> : vector<2x192xf32>
    %16 = tpu.matmul %15, %8, %cst_16 {dimension_numbers = #tpu.dot_dimension_numbers<[1], [0], [0], [1], [0, 0, 1, 1], [], []>} : vector<2x64xf32>, vector<64x192xf32>, vector<2x192xf32> -> vector<2x192xf32>
    %17 = vector.broadcast %9 : vector<1x192xf32> to vector<2x192xf32>
    %18 = arith.addf %16, %17 : vector<2x192xf32>
    %19 = vector.extract_strided_slice %12 {offsets = [0, 0], sizes = [2, 96], strides = [1, 1]} : vector<16x192xf32> to vector<2x96xf32>
    %20 = vector.extract_strided_slice %12 {offsets = [14, 96], sizes = [2, 96], strides = [1, 1]} : vector<16x192xf32> to vector<2x96xf32>
    %21 = vector.extract_strided_slice %18 {offsets = [0, 0], sizes = [2, 96], strides = [1, 1]} : vector<2x192xf32> to vector<2x96xf32>
    %22 = vector.extract_strided_slice %19 {offsets = [0, 0], sizes = [2, 32], strides = [1, 1]} : vector<2x96xf32> to vector<2x32xf32>
    %23 = vector.extract_strided_slice %21 {offsets = [0, 0], sizes = [2, 32], strides = [1, 1]} : vector<2x96xf32> to vector<2x32xf32>
    %24 = arith.addf %22, %23 : vector<2x32xf32>
    %25 = arith.negf %24 : vector<2x32xf32>
    %26 = math.exp %25 : vector<2x32xf32>
    %cst_17 = arith.constant 1.000000e+00 : f32
    %27 = vector.broadcast %cst_17 : f32 to vector<2x32xf32>
    %28 = arith.addf %27, %26 : vector<2x32xf32>
    %29 = arith.divf %27, %28 : vector<2x32xf32>
    %30 = vector.extract_strided_slice %19 {offsets = [0, 32], sizes = [2, 32], strides = [1, 1]} : vector<2x96xf32> to vector<2x32xf32>
    %31 = vector.extract_strided_slice %21 {offsets = [0, 32], sizes = [2, 32], strides = [1, 1]} : vector<2x96xf32> to vector<2x32xf32>
    %32 = arith.addf %30, %31 : vector<2x32xf32>
    %33 = arith.negf %32 : vector<2x32xf32>
    %34 = math.exp %33 : vector<2x32xf32>
    %cst_18 = arith.constant 1.000000e+00 : f32
    %35 = vector.broadcast %cst_18 : f32 to vector<2x32xf32>
    %36 = arith.addf %35, %34 : vector<2x32xf32>
    %37 = arith.divf %35, %36 : vector<2x32xf32>
    %38 = vector.extract_strided_slice %19 {offsets = [0, 64], sizes = [2, 32], strides = [1, 1]} : vector<2x96xf32> to vector<2x32xf32>
    %39 = vector.extract_strided_slice %21 {offsets = [0, 64], sizes = [2, 32], strides = [1, 1]} : vector<2x96xf32> to vector<2x32xf32>
    %40 = arith.mulf %29, %39 : vector<2x32xf32>
    %41 = arith.addf %38, %40 : vector<2x32xf32>
    %42 = math.tanh %41 : vector<2x32xf32>
    %cst_19 = arith.constant 1.000000e+00 : f32
    %43 = vector.broadcast %cst_19 : f32 to vector<2x32xf32>
    %44 = arith.subf %43, %37 : vector<2x32xf32>
    %45 = arith.mulf %44, %42 : vector<2x32xf32>
    %46 = arith.mulf %37, %13 : vector<2x32xf32>
    %47 = arith.addf %45, %46 : vector<2x32xf32>
    %48 = vector.extract_strided_slice %18 {offsets = [0, 96], sizes = [2, 96], strides = [1, 1]} : vector<2x192xf32> to vector<2x96xf32>
    %49 = vector.extract_strided_slice %20 {offsets = [0, 0], sizes = [2, 32], strides = [1, 1]} : vector<2x96xf32> to vector<2x32xf32>
    %50 = vector.extract_strided_slice %48 {offsets = [0, 0], sizes = [2, 32], strides = [1, 1]} : vector<2x96xf32> to vector<2x32xf32>
    %51 = arith.addf %49, %50 : vector<2x32xf32>
    %52 = arith.negf %51 : vector<2x32xf32>
    %53 = math.exp %52 : vector<2x32xf32>
    %cst_20 = arith.constant 1.000000e+00 : f32
    %54 = vector.broadcast %cst_20 : f32 to vector<2x32xf32>
    %55 = arith.addf %54, %53 : vector<2x32xf32>
    %56 = arith.divf %54, %55 : vector<2x32xf32>
    %57 = vector.extract_strided_slice %20 {offsets = [0, 32], sizes = [2, 32], strides = [1, 1]} : vector<2x96xf32> to vector<2x32xf32>
    %58 = vector.extract_strided_slice %48 {offsets = [0, 32], sizes = [2, 32], strides = [1, 1]} : vector<2x96xf32> to vector<2x32xf32>
    %59 = arith.addf %57, %58 : vector<2x32xf32>
    %60 = arith.negf %59 : vector<2x32xf32>
    %61 = math.exp %60 : vector<2x32xf32>
    %cst_21 = arith.constant 1.000000e+00 : f32
    %62 = vector.broadcast %cst_21 : f32 to vector<2x32xf32>
    %63 = arith.addf %62, %61 : vector<2x32xf32>
    %64 = arith.divf %62, %63 : vector<2x32xf32>
    %65 = vector.extract_strided_slice %20 {offsets = [0, 64], sizes = [2, 32], strides = [1, 1]} : vector<2x96xf32> to vector<2x32xf32>
    %66 = vector.extract_strided_slice %48 {offsets = [0, 64], sizes = [2, 32], strides = [1, 1]} : vector<2x96xf32> to vector<2x32xf32>
    %67 = arith.mulf %56, %66 : vector<2x32xf32>
    %68 = arith.addf %65, %67 : vector<2x32xf32>
    %69 = math.tanh %68 : vector<2x32xf32>
    %cst_22 = arith.constant 1.000000e+00 : f32
    %70 = vector.broadcast %cst_22 : f32 to vector<2x32xf32>
    %71 = arith.subf %70, %64 : vector<2x32xf32>
    %72 = arith.mulf %71, %69 : vector<2x32xf32>
    %73 = arith.mulf %64, %14 : vector<2x32xf32>
    %74 = arith.addf %72, %73 : vector<2x32xf32>
    %75 = tpu.concatenate %47, %74 in 1 : vector<2x32xf32>, vector<2x32xf32> -> vector<2x64xf32>
    %cst_23 = arith.constant dense<0.000000e+00> : vector<2x192xf32>
    %76 = tpu.matmul %75, %8, %cst_23 {dimension_numbers = #tpu.dot_dimension_numbers<[1], [0], [0], [1], [0, 0, 1, 1], [], []>} : vector<2x64xf32>, vector<64x192xf32>, vector<2x192xf32> -> vector<2x192xf32>
    %77 = vector.broadcast %9 : vector<1x192xf32> to vector<2x192xf32>
    %78 = arith.addf %76, %77 : vector<2x192xf32>
    %79 = vector.extract_strided_slice %12 {offsets = [2, 0], sizes = [2, 96], strides = [1, 1]} : vector<16x192xf32> to vector<2x96xf32>
    %80 = vector.extract_strided_slice %12 {offsets = [12, 96], sizes = [2, 96], strides = [1, 1]} : vector<16x192xf32> to vector<2x96xf32>
    %81 = vector.extract_strided_slice %78 {offsets = [0, 0], sizes = [2, 96], strides = [1, 1]} : vector<2x192xf32> to vector<2x96xf32>
    %82 = vector.extract_strided_slice %79 {offsets = [0, 0], sizes = [2, 32], strides = [1, 1]} : vector<2x96xf32> to vector<2x32xf32>
    %83 = vector.extract_strided_slice %81 {offsets = [0, 0], sizes = [2, 32], strides = [1, 1]} : vector<2x96xf32> to vector<2x32xf32>
    %84 = arith.addf %82, %83 : vector<2x32xf32>
    %85 = arith.negf %84 : vector<2x32xf32>
    %86 = math.exp %85 : vector<2x32xf32>
    %cst_24 = arith.constant 1.000000e+00 : f32
    %87 = vector.broadcast %cst_24 : f32 to vector<2x32xf32>
    %88 = arith.addf %87, %86 : vector<2x32xf32>
    %89 = arith.divf %87, %88 : vector<2x32xf32>
    %90 = vector.extract_strided_slice %79 {offsets = [0, 32], sizes = [2, 32], strides = [1, 1]} : vector<2x96xf32> to vector<2x32xf32>
    %91 = vector.extract_strided_slice %81 {offsets = [0, 32], sizes = [2, 32], strides = [1, 1]} : vector<2x96xf32> to vector<2x32xf32>
    %92 = arith.addf %90, %91 : vector<2x32xf32>
    %93 = arith.negf %92 : vector<2x32xf32>
    %94 = math.exp %93 : vector<2x32xf32>
    %cst_25 = arith.constant 1.000000e+00 : f32
    %95 = vector.broadcast %cst_25 : f32 to vector<2x32xf32>
    %96 = arith.addf %95, %94 : vector<2x32xf32>
    %97 = arith.divf %95, %96 : vector<2x32xf32>
    %98 = vector.extract_strided_slice %79 {offsets = [0, 64], sizes = [2, 32], strides = [1, 1]} : vector<2x96xf32> to vector<2x32xf32>
    %99 = vector.extract_strided_slice %81 {offsets = [0, 64], sizes = [2, 32], strides = [1, 1]} : vector<2x96xf32> to vector<2x32xf32>
    %100 = arith.mulf %89, %99 : vector<2x32xf32>
    %101 = arith.addf %98, %100 : vector<2x32xf32>
    %102 = math.tanh %101 : vector<2x32xf32>
    %cst_26 = arith.constant 1.000000e+00 : f32
    %103 = vector.broadcast %cst_26 : f32 to vector<2x32xf32>
    %104 = arith.subf %103, %97 : vector<2x32xf32>
    %105 = arith.mulf %104, %102 : vector<2x32xf32>
    %106 = arith.mulf %97, %47 : vector<2x32xf32>
    %107 = arith.addf %105, %106 : vector<2x32xf32>
    %108 = vector.extract_strided_slice %78 {offsets = [0, 96], sizes = [2, 96], strides = [1, 1]} : vector<2x192xf32> to vector<2x96xf32>
    %109 = vector.extract_strided_slice %80 {offsets = [0, 0], sizes = [2, 32], strides = [1, 1]} : vector<2x96xf32> to vector<2x32xf32>
    %110 = vector.extract_strided_slice %108 {offsets = [0, 0], sizes = [2, 32], strides = [1, 1]} : vector<2x96xf32> to vector<2x32xf32>
    %111 = arith.addf %109, %110 : vector<2x32xf32>
    %112 = arith.negf %111 : vector<2x32xf32>
    %113 = math.exp %112 : vector<2x32xf32>
    %cst_27 = arith.constant 1.000000e+00 : f32
    %114 = vector.broadcast %cst_27 : f32 to vector<2x32xf32>
    %115 = arith.addf %114, %113 : vector<2x32xf32>
    %116 = arith.divf %114, %115 : vector<2x32xf32>
    %117 = vector.extract_strided_slice %80 {offsets = [0, 32], sizes = [2, 32], strides = [1, 1]} : vector<2x96xf32> to vector<2x32xf32>
    %118 = vector.extract_strided_slice %108 {offsets = [0, 32], sizes = [2, 32], strides = [1, 1]} : vector<2x96xf32> to vector<2x32xf32>
    %119 = arith.addf %117, %118 : vector<2x32xf32>
    %120 = arith.negf %119 : vector<2x32xf32>
    %121 = math.exp %120 : vector<2x32xf32>
    %cst_28 = arith.constant 1.000000e+00 : f32
    %122 = vector.broadcast %cst_28 : f32 to vector<2x32xf32>
    %123 = arith.addf %122, %121 : vector<2x32xf32>
    %124 = arith.divf %122, %123 : vector<2x32xf32>
    %125 = vector.extract_strided_slice %80 {offsets = [0, 64], sizes = [2, 32], strides = [1, 1]} : vector<2x96xf32> to vector<2x32xf32>
    %126 = vector.extract_strided_slice %108 {offsets = [0, 64], sizes = [2, 32], strides = [1, 1]} : vector<2x96xf32> to vector<2x32xf32>
    %127 = arith.mulf %116, %126 : vector<2x32xf32>
    %128 = arith.addf %125, %127 : vector<2x32xf32>
    %129 = math.tanh %128 : vector<2x32xf32>
    %cst_29 = arith.constant 1.000000e+00 : f32
    %130 = vector.broadcast %cst_29 : f32 to vector<2x32xf32>
    %131 = arith.subf %130, %124 : vector<2x32xf32>
    %132 = arith.mulf %131, %129 : vector<2x32xf32>
    %133 = arith.mulf %124, %74 : vector<2x32xf32>
    %134 = arith.addf %132, %133 : vector<2x32xf32>
    %135 = tpu.concatenate %107, %134 in 1 : vector<2x32xf32>, vector<2x32xf32> -> vector<2x64xf32>
    %cst_30 = arith.constant dense<0.000000e+00> : vector<2x192xf32>
    %136 = tpu.matmul %135, %8, %cst_30 {dimension_numbers = #tpu.dot_dimension_numbers<[1], [0], [0], [1], [0, 0, 1, 1], [], []>} : vector<2x64xf32>, vector<64x192xf32>, vector<2x192xf32> -> vector<2x192xf32>
    %137 = vector.broadcast %9 : vector<1x192xf32> to vector<2x192xf32>
    %138 = arith.addf %136, %137 : vector<2x192xf32>
    %139 = vector.extract_strided_slice %12 {offsets = [4, 0], sizes = [2, 96], strides = [1, 1]} : vector<16x192xf32> to vector<2x96xf32>
    %140 = vector.extract_strided_slice %12 {offsets = [10, 96], sizes = [2, 96], strides = [1, 1]} : vector<16x192xf32> to vector<2x96xf32>
    %141 = vector.extract_strided_slice %138 {offsets = [0, 0], sizes = [2, 96], strides = [1, 1]} : vector<2x192xf32> to vector<2x96xf32>
    %142 = vector.extract_strided_slice %139 {offsets = [0, 0], sizes = [2, 32], strides = [1, 1]} : vector<2x96xf32> to vector<2x32xf32>
    %143 = vector.extract_strided_slice %141 {offsets = [0, 0], sizes = [2, 32], strides = [1, 1]} : vector<2x96xf32> to vector<2x32xf32>
    %144 = arith.addf %142, %143 : vector<2x32xf32>
    %145 = arith.negf %144 : vector<2x32xf32>
    %146 = math.exp %145 : vector<2x32xf32>
    %cst_31 = arith.constant 1.000000e+00 : f32
    %147 = vector.broadcast %cst_31 : f32 to vector<2x32xf32>
    %148 = arith.addf %147, %146 : vector<2x32xf32>
    %149 = arith.divf %147, %148 : vector<2x32xf32>
    %150 = vector.extract_strided_slice %139 {offsets = [0, 32], sizes = [2, 32], strides = [1, 1]} : vector<2x96xf32> to vector<2x32xf32>
    %151 = vector.extract_strided_slice %141 {offsets = [0, 32], sizes = [2, 32], strides = [1, 1]} : vector<2x96xf32> to vector<2x32xf32>
    %152 = arith.addf %150, %151 : vector<2x32xf32>
    %153 = arith.negf %152 : vector<2x32xf32>
    %154 = math.exp %153 : vector<2x32xf32>
    %cst_32 = arith.constant 1.000000e+00 : f32
    %155 = vector.broadcast %cst_32 : f32 to vector<2x32xf32>
    %156 = arith.addf %155, %154 : vector<2x32xf32>
    %157 = arith.divf %155, %156 : vector<2x32xf32>
    %158 = vector.extract_strided_slice %139 {offsets = [0, 64], sizes = [2, 32], strides = [1, 1]} : vector<2x96xf32> to vector<2x32xf32>
    %159 = vector.extract_strided_slice %141 {offsets = [0, 64], sizes = [2, 32], strides = [1, 1]} : vector<2x96xf32> to vector<2x32xf32>
    %160 = arith.mulf %149, %159 : vector<2x32xf32>
    %161 = arith.addf %158, %160 : vector<2x32xf32>
    %162 = math.tanh %161 : vector<2x32xf32>
    %cst_33 = arith.constant 1.000000e+00 : f32
    %163 = vector.broadcast %cst_33 : f32 to vector<2x32xf32>
    %164 = arith.subf %163, %157 : vector<2x32xf32>
    %165 = arith.mulf %164, %162 : vector<2x32xf32>
    %166 = arith.mulf %157, %107 : vector<2x32xf32>
    %167 = arith.addf %165, %166 : vector<2x32xf32>
    %168 = vector.extract_strided_slice %138 {offsets = [0, 96], sizes = [2, 96], strides = [1, 1]} : vector<2x192xf32> to vector<2x96xf32>
    %169 = vector.extract_strided_slice %140 {offsets = [0, 0], sizes = [2, 32], strides = [1, 1]} : vector<2x96xf32> to vector<2x32xf32>
    %170 = vector.extract_strided_slice %168 {offsets = [0, 0], sizes = [2, 32], strides = [1, 1]} : vector<2x96xf32> to vector<2x32xf32>
    %171 = arith.addf %169, %170 : vector<2x32xf32>
    %172 = arith.negf %171 : vector<2x32xf32>
    %173 = math.exp %172 : vector<2x32xf32>
    %cst_34 = arith.constant 1.000000e+00 : f32
    %174 = vector.broadcast %cst_34 : f32 to vector<2x32xf32>
    %175 = arith.addf %174, %173 : vector<2x32xf32>
    %176 = arith.divf %174, %175 : vector<2x32xf32>
    %177 = vector.extract_strided_slice %140 {offsets = [0, 32], sizes = [2, 32], strides = [1, 1]} : vector<2x96xf32> to vector<2x32xf32>
    %178 = vector.extract_strided_slice %168 {offsets = [0, 32], sizes = [2, 32], strides = [1, 1]} : vector<2x96xf32> to vector<2x32xf32>
    %179 = arith.addf %177, %178 : vector<2x32xf32>
    %180 = arith.negf %179 : vector<2x32xf32>
    %181 = math.exp %180 : vector<2x32xf32>
    %cst_35 = arith.constant 1.000000e+00 : f32
    %182 = vector.broadcast %cst_35 : f32 to vector<2x32xf32>
    %183 = arith.addf %182, %181 : vector<2x32xf32>
    %184 = arith.divf %182, %183 : vector<2x32xf32>
    %185 = vector.extract_strided_slice %140 {offsets = [0, 64], sizes = [2, 32], strides = [1, 1]} : vector<2x96xf32> to vector<2x32xf32>
    %186 = vector.extract_strided_slice %168 {offsets = [0, 64], sizes = [2, 32], strides = [1, 1]} : vector<2x96xf32> to vector<2x32xf32>
    %187 = arith.mulf %176, %186 : vector<2x32xf32>
    %188 = arith.addf %185, %187 : vector<2x32xf32>
    %189 = math.tanh %188 : vector<2x32xf32>
    %cst_36 = arith.constant 1.000000e+00 : f32
    %190 = vector.broadcast %cst_36 : f32 to vector<2x32xf32>
    %191 = arith.subf %190, %184 : vector<2x32xf32>
    %192 = arith.mulf %191, %189 : vector<2x32xf32>
    %193 = arith.mulf %184, %134 : vector<2x32xf32>
    %194 = arith.addf %192, %193 : vector<2x32xf32>
    %195 = tpu.concatenate %167, %194 in 1 : vector<2x32xf32>, vector<2x32xf32> -> vector<2x64xf32>
    %cst_37 = arith.constant dense<0.000000e+00> : vector<2x192xf32>
    %196 = tpu.matmul %195, %8, %cst_37 {dimension_numbers = #tpu.dot_dimension_numbers<[1], [0], [0], [1], [0, 0, 1, 1], [], []>} : vector<2x64xf32>, vector<64x192xf32>, vector<2x192xf32> -> vector<2x192xf32>
    %197 = vector.broadcast %9 : vector<1x192xf32> to vector<2x192xf32>
    %198 = arith.addf %196, %197 : vector<2x192xf32>
    %199 = vector.extract_strided_slice %12 {offsets = [6, 0], sizes = [2, 96], strides = [1, 1]} : vector<16x192xf32> to vector<2x96xf32>
    %200 = vector.extract_strided_slice %12 {offsets = [8, 96], sizes = [2, 96], strides = [1, 1]} : vector<16x192xf32> to vector<2x96xf32>
    %201 = vector.extract_strided_slice %198 {offsets = [0, 0], sizes = [2, 96], strides = [1, 1]} : vector<2x192xf32> to vector<2x96xf32>
    %202 = vector.extract_strided_slice %199 {offsets = [0, 0], sizes = [2, 32], strides = [1, 1]} : vector<2x96xf32> to vector<2x32xf32>
    %203 = vector.extract_strided_slice %201 {offsets = [0, 0], sizes = [2, 32], strides = [1, 1]} : vector<2x96xf32> to vector<2x32xf32>
    %204 = arith.addf %202, %203 : vector<2x32xf32>
    %205 = arith.negf %204 : vector<2x32xf32>
    %206 = math.exp %205 : vector<2x32xf32>
    %cst_38 = arith.constant 1.000000e+00 : f32
    %207 = vector.broadcast %cst_38 : f32 to vector<2x32xf32>
    %208 = arith.addf %207, %206 : vector<2x32xf32>
    %209 = arith.divf %207, %208 : vector<2x32xf32>
    %210 = vector.extract_strided_slice %199 {offsets = [0, 32], sizes = [2, 32], strides = [1, 1]} : vector<2x96xf32> to vector<2x32xf32>
    %211 = vector.extract_strided_slice %201 {offsets = [0, 32], sizes = [2, 32], strides = [1, 1]} : vector<2x96xf32> to vector<2x32xf32>
    %212 = arith.addf %210, %211 : vector<2x32xf32>
    %213 = arith.negf %212 : vector<2x32xf32>
    %214 = math.exp %213 : vector<2x32xf32>
    %cst_39 = arith.constant 1.000000e+00 : f32
    %215 = vector.broadcast %cst_39 : f32 to vector<2x32xf32>
    %216 = arith.addf %215, %214 : vector<2x32xf32>
    %217 = arith.divf %215, %216 : vector<2x32xf32>
    %218 = vector.extract_strided_slice %199 {offsets = [0, 64], sizes = [2, 32], strides = [1, 1]} : vector<2x96xf32> to vector<2x32xf32>
    %219 = vector.extract_strided_slice %201 {offsets = [0, 64], sizes = [2, 32], strides = [1, 1]} : vector<2x96xf32> to vector<2x32xf32>
    %220 = arith.mulf %209, %219 : vector<2x32xf32>
    %221 = arith.addf %218, %220 : vector<2x32xf32>
    %222 = math.tanh %221 : vector<2x32xf32>
    %cst_40 = arith.constant 1.000000e+00 : f32
    %223 = vector.broadcast %cst_40 : f32 to vector<2x32xf32>
    %224 = arith.subf %223, %217 : vector<2x32xf32>
    %225 = arith.mulf %224, %222 : vector<2x32xf32>
    %226 = arith.mulf %217, %167 : vector<2x32xf32>
    %227 = arith.addf %225, %226 : vector<2x32xf32>
    %228 = vector.extract_strided_slice %198 {offsets = [0, 96], sizes = [2, 96], strides = [1, 1]} : vector<2x192xf32> to vector<2x96xf32>
    %229 = vector.extract_strided_slice %200 {offsets = [0, 0], sizes = [2, 32], strides = [1, 1]} : vector<2x96xf32> to vector<2x32xf32>
    %230 = vector.extract_strided_slice %228 {offsets = [0, 0], sizes = [2, 32], strides = [1, 1]} : vector<2x96xf32> to vector<2x32xf32>
    %231 = arith.addf %229, %230 : vector<2x32xf32>
    %232 = arith.negf %231 : vector<2x32xf32>
    %233 = math.exp %232 : vector<2x32xf32>
    %cst_41 = arith.constant 1.000000e+00 : f32
    %234 = vector.broadcast %cst_41 : f32 to vector<2x32xf32>
    %235 = arith.addf %234, %233 : vector<2x32xf32>
    %236 = arith.divf %234, %235 : vector<2x32xf32>
    %237 = vector.extract_strided_slice %200 {offsets = [0, 32], sizes = [2, 32], strides = [1, 1]} : vector<2x96xf32> to vector<2x32xf32>
    %238 = vector.extract_strided_slice %228 {offsets = [0, 32], sizes = [2, 32], strides = [1, 1]} : vector<2x96xf32> to vector<2x32xf32>
    %239 = arith.addf %237, %238 : vector<2x32xf32>
    %240 = arith.negf %239 : vector<2x32xf32>
    %241 = math.exp %240 : vector<2x32xf32>
    %cst_42 = arith.constant 1.000000e+00 : f32
    %242 = vector.broadcast %cst_42 : f32 to vector<2x32xf32>
    %243 = arith.addf %242, %241 : vector<2x32xf32>
    %244 = arith.divf %242, %243 : vector<2x32xf32>
    %245 = vector.extract_strided_slice %200 {offsets = [0, 64], sizes = [2, 32], strides = [1, 1]} : vector<2x96xf32> to vector<2x32xf32>
    %246 = vector.extract_strided_slice %228 {offsets = [0, 64], sizes = [2, 32], strides = [1, 1]} : vector<2x96xf32> to vector<2x32xf32>
    %247 = arith.mulf %236, %246 : vector<2x32xf32>
    %248 = arith.addf %245, %247 : vector<2x32xf32>
    %249 = math.tanh %248 : vector<2x32xf32>
    %cst_43 = arith.constant 1.000000e+00 : f32
    %250 = vector.broadcast %cst_43 : f32 to vector<2x32xf32>
    %251 = arith.subf %250, %244 : vector<2x32xf32>
    %252 = arith.mulf %251, %249 : vector<2x32xf32>
    %253 = arith.mulf %244, %194 : vector<2x32xf32>
    %254 = arith.addf %252, %253 : vector<2x32xf32>
    %255 = tpu.concatenate %227, %254 in 1 : vector<2x32xf32>, vector<2x32xf32> -> vector<2x64xf32>
    %cst_44 = arith.constant dense<0.000000e+00> : vector<2x192xf32>
    %256 = tpu.matmul %255, %8, %cst_44 {dimension_numbers = #tpu.dot_dimension_numbers<[1], [0], [0], [1], [0, 0, 1, 1], [], []>} : vector<2x64xf32>, vector<64x192xf32>, vector<2x192xf32> -> vector<2x192xf32>
    %257 = vector.broadcast %9 : vector<1x192xf32> to vector<2x192xf32>
    %258 = arith.addf %256, %257 : vector<2x192xf32>
    %259 = vector.extract_strided_slice %12 {offsets = [8, 0], sizes = [2, 96], strides = [1, 1]} : vector<16x192xf32> to vector<2x96xf32>
    %260 = vector.extract_strided_slice %12 {offsets = [6, 96], sizes = [2, 96], strides = [1, 1]} : vector<16x192xf32> to vector<2x96xf32>
    %261 = vector.extract_strided_slice %258 {offsets = [0, 0], sizes = [2, 96], strides = [1, 1]} : vector<2x192xf32> to vector<2x96xf32>
    %262 = vector.extract_strided_slice %259 {offsets = [0, 0], sizes = [2, 32], strides = [1, 1]} : vector<2x96xf32> to vector<2x32xf32>
    %263 = vector.extract_strided_slice %261 {offsets = [0, 0], sizes = [2, 32], strides = [1, 1]} : vector<2x96xf32> to vector<2x32xf32>
    %264 = arith.addf %262, %263 : vector<2x32xf32>
    %265 = arith.negf %264 : vector<2x32xf32>
    %266 = math.exp %265 : vector<2x32xf32>
    %cst_45 = arith.constant 1.000000e+00 : f32
    %267 = vector.broadcast %cst_45 : f32 to vector<2x32xf32>
    %268 = arith.addf %267, %266 : vector<2x32xf32>
    %269 = arith.divf %267, %268 : vector<2x32xf32>
    %270 = vector.extract_strided_slice %259 {offsets = [0, 32], sizes = [2, 32], strides = [1, 1]} : vector<2x96xf32> to vector<2x32xf32>
    %271 = vector.extract_strided_slice %261 {offsets = [0, 32], sizes = [2, 32], strides = [1, 1]} : vector<2x96xf32> to vector<2x32xf32>
    %272 = arith.addf %270, %271 : vector<2x32xf32>
    %273 = arith.negf %272 : vector<2x32xf32>
    %274 = math.exp %273 : vector<2x32xf32>
    %cst_46 = arith.constant 1.000000e+00 : f32
    %275 = vector.broadcast %cst_46 : f32 to vector<2x32xf32>
    %276 = arith.addf %275, %274 : vector<2x32xf32>
    %277 = arith.divf %275, %276 : vector<2x32xf32>
    %278 = vector.extract_strided_slice %259 {offsets = [0, 64], sizes = [2, 32], strides = [1, 1]} : vector<2x96xf32> to vector<2x32xf32>
    %279 = vector.extract_strided_slice %261 {offsets = [0, 64], sizes = [2, 32], strides = [1, 1]} : vector<2x96xf32> to vector<2x32xf32>
    %280 = arith.mulf %269, %279 : vector<2x32xf32>
    %281 = arith.addf %278, %280 : vector<2x32xf32>
    %282 = math.tanh %281 : vector<2x32xf32>
    %cst_47 = arith.constant 1.000000e+00 : f32
    %283 = vector.broadcast %cst_47 : f32 to vector<2x32xf32>
    %284 = arith.subf %283, %277 : vector<2x32xf32>
    %285 = arith.mulf %284, %282 : vector<2x32xf32>
    %286 = arith.mulf %277, %227 : vector<2x32xf32>
    %287 = arith.addf %285, %286 : vector<2x32xf32>
    %288 = vector.extract_strided_slice %258 {offsets = [0, 96], sizes = [2, 96], strides = [1, 1]} : vector<2x192xf32> to vector<2x96xf32>
    %289 = vector.extract_strided_slice %260 {offsets = [0, 0], sizes = [2, 32], strides = [1, 1]} : vector<2x96xf32> to vector<2x32xf32>
    %290 = vector.extract_strided_slice %288 {offsets = [0, 0], sizes = [2, 32], strides = [1, 1]} : vector<2x96xf32> to vector<2x32xf32>
    %291 = arith.addf %289, %290 : vector<2x32xf32>
    %292 = arith.negf %291 : vector<2x32xf32>
    %293 = math.exp %292 : vector<2x32xf32>
    %cst_48 = arith.constant 1.000000e+00 : f32
    %294 = vector.broadcast %cst_48 : f32 to vector<2x32xf32>
    %295 = arith.addf %294, %293 : vector<2x32xf32>
    %296 = arith.divf %294, %295 : vector<2x32xf32>
    %297 = vector.extract_strided_slice %260 {offsets = [0, 32], sizes = [2, 32], strides = [1, 1]} : vector<2x96xf32> to vector<2x32xf32>
    %298 = vector.extract_strided_slice %288 {offsets = [0, 32], sizes = [2, 32], strides = [1, 1]} : vector<2x96xf32> to vector<2x32xf32>
    %299 = arith.addf %297, %298 : vector<2x32xf32>
    %300 = arith.negf %299 : vector<2x32xf32>
    %301 = math.exp %300 : vector<2x32xf32>
    %cst_49 = arith.constant 1.000000e+00 : f32
    %302 = vector.broadcast %cst_49 : f32 to vector<2x32xf32>
    %303 = arith.addf %302, %301 : vector<2x32xf32>
    %304 = arith.divf %302, %303 : vector<2x32xf32>
    %305 = vector.extract_strided_slice %260 {offsets = [0, 64], sizes = [2, 32], strides = [1, 1]} : vector<2x96xf32> to vector<2x32xf32>
    %306 = vector.extract_strided_slice %288 {offsets = [0, 64], sizes = [2, 32], strides = [1, 1]} : vector<2x96xf32> to vector<2x32xf32>
    %307 = arith.mulf %296, %306 : vector<2x32xf32>
    %308 = arith.addf %305, %307 : vector<2x32xf32>
    %309 = math.tanh %308 : vector<2x32xf32>
    %cst_50 = arith.constant 1.000000e+00 : f32
    %310 = vector.broadcast %cst_50 : f32 to vector<2x32xf32>
    %311 = arith.subf %310, %304 : vector<2x32xf32>
    %312 = arith.mulf %311, %309 : vector<2x32xf32>
    %313 = arith.mulf %304, %254 : vector<2x32xf32>
    %314 = arith.addf %312, %313 : vector<2x32xf32>
    %315 = tpu.concatenate %287, %314 in 1 : vector<2x32xf32>, vector<2x32xf32> -> vector<2x64xf32>
    %cst_51 = arith.constant dense<0.000000e+00> : vector<2x192xf32>
    %316 = tpu.matmul %315, %8, %cst_51 {dimension_numbers = #tpu.dot_dimension_numbers<[1], [0], [0], [1], [0, 0, 1, 1], [], []>} : vector<2x64xf32>, vector<64x192xf32>, vector<2x192xf32> -> vector<2x192xf32>
    %317 = vector.broadcast %9 : vector<1x192xf32> to vector<2x192xf32>
    %318 = arith.addf %316, %317 : vector<2x192xf32>
    %319 = vector.extract_strided_slice %12 {offsets = [10, 0], sizes = [2, 96], strides = [1, 1]} : vector<16x192xf32> to vector<2x96xf32>
    %320 = vector.extract_strided_slice %12 {offsets = [4, 96], sizes = [2, 96], strides = [1, 1]} : vector<16x192xf32> to vector<2x96xf32>
    %321 = vector.extract_strided_slice %318 {offsets = [0, 0], sizes = [2, 96], strides = [1, 1]} : vector<2x192xf32> to vector<2x96xf32>
    %322 = vector.extract_strided_slice %319 {offsets = [0, 0], sizes = [2, 32], strides = [1, 1]} : vector<2x96xf32> to vector<2x32xf32>
    %323 = vector.extract_strided_slice %321 {offsets = [0, 0], sizes = [2, 32], strides = [1, 1]} : vector<2x96xf32> to vector<2x32xf32>
    %324 = arith.addf %322, %323 : vector<2x32xf32>
    %325 = arith.negf %324 : vector<2x32xf32>
    %326 = math.exp %325 : vector<2x32xf32>
    %cst_52 = arith.constant 1.000000e+00 : f32
    %327 = vector.broadcast %cst_52 : f32 to vector<2x32xf32>
    %328 = arith.addf %327, %326 : vector<2x32xf32>
    %329 = arith.divf %327, %328 : vector<2x32xf32>
    %330 = vector.extract_strided_slice %319 {offsets = [0, 32], sizes = [2, 32], strides = [1, 1]} : vector<2x96xf32> to vector<2x32xf32>
    %331 = vector.extract_strided_slice %321 {offsets = [0, 32], sizes = [2, 32], strides = [1, 1]} : vector<2x96xf32> to vector<2x32xf32>
    %332 = arith.addf %330, %331 : vector<2x32xf32>
    %333 = arith.negf %332 : vector<2x32xf32>
    %334 = math.exp %333 : vector<2x32xf32>
    %cst_53 = arith.constant 1.000000e+00 : f32
    %335 = vector.broadcast %cst_53 : f32 to vector<2x32xf32>
    %336 = arith.addf %335, %334 : vector<2x32xf32>
    %337 = arith.divf %335, %336 : vector<2x32xf32>
    %338 = vector.extract_strided_slice %319 {offsets = [0, 64], sizes = [2, 32], strides = [1, 1]} : vector<2x96xf32> to vector<2x32xf32>
    %339 = vector.extract_strided_slice %321 {offsets = [0, 64], sizes = [2, 32], strides = [1, 1]} : vector<2x96xf32> to vector<2x32xf32>
    %340 = arith.mulf %329, %339 : vector<2x32xf32>
    %341 = arith.addf %338, %340 : vector<2x32xf32>
    %342 = math.tanh %341 : vector<2x32xf32>
    %cst_54 = arith.constant 1.000000e+00 : f32
    %343 = vector.broadcast %cst_54 : f32 to vector<2x32xf32>
    %344 = arith.subf %343, %337 : vector<2x32xf32>
    %345 = arith.mulf %344, %342 : vector<2x32xf32>
    %346 = arith.mulf %337, %287 : vector<2x32xf32>
    %347 = arith.addf %345, %346 : vector<2x32xf32>
    %348 = vector.extract_strided_slice %318 {offsets = [0, 96], sizes = [2, 96], strides = [1, 1]} : vector<2x192xf32> to vector<2x96xf32>
    %349 = vector.extract_strided_slice %320 {offsets = [0, 0], sizes = [2, 32], strides = [1, 1]} : vector<2x96xf32> to vector<2x32xf32>
    %350 = vector.extract_strided_slice %348 {offsets = [0, 0], sizes = [2, 32], strides = [1, 1]} : vector<2x96xf32> to vector<2x32xf32>
    %351 = arith.addf %349, %350 : vector<2x32xf32>
    %352 = arith.negf %351 : vector<2x32xf32>
    %353 = math.exp %352 : vector<2x32xf32>
    %cst_55 = arith.constant 1.000000e+00 : f32
    %354 = vector.broadcast %cst_55 : f32 to vector<2x32xf32>
    %355 = arith.addf %354, %353 : vector<2x32xf32>
    %356 = arith.divf %354, %355 : vector<2x32xf32>
    %357 = vector.extract_strided_slice %320 {offsets = [0, 32], sizes = [2, 32], strides = [1, 1]} : vector<2x96xf32> to vector<2x32xf32>
    %358 = vector.extract_strided_slice %348 {offsets = [0, 32], sizes = [2, 32], strides = [1, 1]} : vector<2x96xf32> to vector<2x32xf32>
    %359 = arith.addf %357, %358 : vector<2x32xf32>
    %360 = arith.negf %359 : vector<2x32xf32>
    %361 = math.exp %360 : vector<2x32xf32>
    %cst_56 = arith.constant 1.000000e+00 : f32
    %362 = vector.broadcast %cst_56 : f32 to vector<2x32xf32>
    %363 = arith.addf %362, %361 : vector<2x32xf32>
    %364 = arith.divf %362, %363 : vector<2x32xf32>
    %365 = vector.extract_strided_slice %320 {offsets = [0, 64], sizes = [2, 32], strides = [1, 1]} : vector<2x96xf32> to vector<2x32xf32>
    %366 = vector.extract_strided_slice %348 {offsets = [0, 64], sizes = [2, 32], strides = [1, 1]} : vector<2x96xf32> to vector<2x32xf32>
    %367 = arith.mulf %356, %366 : vector<2x32xf32>
    %368 = arith.addf %365, %367 : vector<2x32xf32>
    %369 = math.tanh %368 : vector<2x32xf32>
    %cst_57 = arith.constant 1.000000e+00 : f32
    %370 = vector.broadcast %cst_57 : f32 to vector<2x32xf32>
    %371 = arith.subf %370, %364 : vector<2x32xf32>
    %372 = arith.mulf %371, %369 : vector<2x32xf32>
    %373 = arith.mulf %364, %314 : vector<2x32xf32>
    %374 = arith.addf %372, %373 : vector<2x32xf32>
    %375 = tpu.concatenate %347, %374 in 1 : vector<2x32xf32>, vector<2x32xf32> -> vector<2x64xf32>
    %cst_58 = arith.constant dense<0.000000e+00> : vector<2x192xf32>
    %376 = tpu.matmul %375, %8, %cst_58 {dimension_numbers = #tpu.dot_dimension_numbers<[1], [0], [0], [1], [0, 0, 1, 1], [], []>} : vector<2x64xf32>, vector<64x192xf32>, vector<2x192xf32> -> vector<2x192xf32>
    %377 = vector.broadcast %9 : vector<1x192xf32> to vector<2x192xf32>
    %378 = arith.addf %376, %377 : vector<2x192xf32>
    %379 = vector.extract_strided_slice %12 {offsets = [12, 0], sizes = [2, 96], strides = [1, 1]} : vector<16x192xf32> to vector<2x96xf32>
    %380 = vector.extract_strided_slice %12 {offsets = [2, 96], sizes = [2, 96], strides = [1, 1]} : vector<16x192xf32> to vector<2x96xf32>
    %381 = vector.extract_strided_slice %378 {offsets = [0, 0], sizes = [2, 96], strides = [1, 1]} : vector<2x192xf32> to vector<2x96xf32>
    %382 = vector.extract_strided_slice %379 {offsets = [0, 0], sizes = [2, 32], strides = [1, 1]} : vector<2x96xf32> to vector<2x32xf32>
    %383 = vector.extract_strided_slice %381 {offsets = [0, 0], sizes = [2, 32], strides = [1, 1]} : vector<2x96xf32> to vector<2x32xf32>
    %384 = arith.addf %382, %383 : vector<2x32xf32>
    %385 = arith.negf %384 : vector<2x32xf32>
    %386 = math.exp %385 : vector<2x32xf32>
    %cst_59 = arith.constant 1.000000e+00 : f32
    %387 = vector.broadcast %cst_59 : f32 to vector<2x32xf32>
    %388 = arith.addf %387, %386 : vector<2x32xf32>
    %389 = arith.divf %387, %388 : vector<2x32xf32>
    %390 = vector.extract_strided_slice %379 {offsets = [0, 32], sizes = [2, 32], strides = [1, 1]} : vector<2x96xf32> to vector<2x32xf32>
    %391 = vector.extract_strided_slice %381 {offsets = [0, 32], sizes = [2, 32], strides = [1, 1]} : vector<2x96xf32> to vector<2x32xf32>
    %392 = arith.addf %390, %391 : vector<2x32xf32>
    %393 = arith.negf %392 : vector<2x32xf32>
    %394 = math.exp %393 : vector<2x32xf32>
    %cst_60 = arith.constant 1.000000e+00 : f32
    %395 = vector.broadcast %cst_60 : f32 to vector<2x32xf32>
    %396 = arith.addf %395, %394 : vector<2x32xf32>
    %397 = arith.divf %395, %396 : vector<2x32xf32>
    %398 = vector.extract_strided_slice %379 {offsets = [0, 64], sizes = [2, 32], strides = [1, 1]} : vector<2x96xf32> to vector<2x32xf32>
    %399 = vector.extract_strided_slice %381 {offsets = [0, 64], sizes = [2, 32], strides = [1, 1]} : vector<2x96xf32> to vector<2x32xf32>
    %400 = arith.mulf %389, %399 : vector<2x32xf32>
    %401 = arith.addf %398, %400 : vector<2x32xf32>
    %402 = math.tanh %401 : vector<2x32xf32>
    %cst_61 = arith.constant 1.000000e+00 : f32
    %403 = vector.broadcast %cst_61 : f32 to vector<2x32xf32>
    %404 = arith.subf %403, %397 : vector<2x32xf32>
    %405 = arith.mulf %404, %402 : vector<2x32xf32>
    %406 = arith.mulf %397, %347 : vector<2x32xf32>
    %407 = arith.addf %405, %406 : vector<2x32xf32>
    %408 = vector.extract_strided_slice %378 {offsets = [0, 96], sizes = [2, 96], strides = [1, 1]} : vector<2x192xf32> to vector<2x96xf32>
    %409 = vector.extract_strided_slice %380 {offsets = [0, 0], sizes = [2, 32], strides = [1, 1]} : vector<2x96xf32> to vector<2x32xf32>
    %410 = vector.extract_strided_slice %408 {offsets = [0, 0], sizes = [2, 32], strides = [1, 1]} : vector<2x96xf32> to vector<2x32xf32>
    %411 = arith.addf %409, %410 : vector<2x32xf32>
    %412 = arith.negf %411 : vector<2x32xf32>
    %413 = math.exp %412 : vector<2x32xf32>
    %cst_62 = arith.constant 1.000000e+00 : f32
    %414 = vector.broadcast %cst_62 : f32 to vector<2x32xf32>
    %415 = arith.addf %414, %413 : vector<2x32xf32>
    %416 = arith.divf %414, %415 : vector<2x32xf32>
    %417 = vector.extract_strided_slice %380 {offsets = [0, 32], sizes = [2, 32], strides = [1, 1]} : vector<2x96xf32> to vector<2x32xf32>
    %418 = vector.extract_strided_slice %408 {offsets = [0, 32], sizes = [2, 32], strides = [1, 1]} : vector<2x96xf32> to vector<2x32xf32>
    %419 = arith.addf %417, %418 : vector<2x32xf32>
    %420 = arith.negf %419 : vector<2x32xf32>
    %421 = math.exp %420 : vector<2x32xf32>
    %cst_63 = arith.constant 1.000000e+00 : f32
    %422 = vector.broadcast %cst_63 : f32 to vector<2x32xf32>
    %423 = arith.addf %422, %421 : vector<2x32xf32>
    %424 = arith.divf %422, %423 : vector<2x32xf32>
    %425 = vector.extract_strided_slice %380 {offsets = [0, 64], sizes = [2, 32], strides = [1, 1]} : vector<2x96xf32> to vector<2x32xf32>
    %426 = vector.extract_strided_slice %408 {offsets = [0, 64], sizes = [2, 32], strides = [1, 1]} : vector<2x96xf32> to vector<2x32xf32>
    %427 = arith.mulf %416, %426 : vector<2x32xf32>
    %428 = arith.addf %425, %427 : vector<2x32xf32>
    %429 = math.tanh %428 : vector<2x32xf32>
    %cst_64 = arith.constant 1.000000e+00 : f32
    %430 = vector.broadcast %cst_64 : f32 to vector<2x32xf32>
    %431 = arith.subf %430, %424 : vector<2x32xf32>
    %432 = arith.mulf %431, %429 : vector<2x32xf32>
    %433 = arith.mulf %424, %374 : vector<2x32xf32>
    %434 = arith.addf %432, %433 : vector<2x32xf32>
    %435 = tpu.concatenate %407, %434 in 1 : vector<2x32xf32>, vector<2x32xf32> -> vector<2x64xf32>
    %cst_65 = arith.constant dense<0.000000e+00> : vector<2x192xf32>
    %436 = tpu.matmul %435, %8, %cst_65 {dimension_numbers = #tpu.dot_dimension_numbers<[1], [0], [0], [1], [0, 0, 1, 1], [], []>} : vector<2x64xf32>, vector<64x192xf32>, vector<2x192xf32> -> vector<2x192xf32>
    %437 = vector.broadcast %9 : vector<1x192xf32> to vector<2x192xf32>
    %438 = arith.addf %436, %437 : vector<2x192xf32>
    %439 = vector.extract_strided_slice %12 {offsets = [14, 0], sizes = [2, 96], strides = [1, 1]} : vector<16x192xf32> to vector<2x96xf32>
    %440 = vector.extract_strided_slice %12 {offsets = [0, 96], sizes = [2, 96], strides = [1, 1]} : vector<16x192xf32> to vector<2x96xf32>
    %441 = vector.extract_strided_slice %438 {offsets = [0, 0], sizes = [2, 96], strides = [1, 1]} : vector<2x192xf32> to vector<2x96xf32>
    %442 = vector.extract_strided_slice %439 {offsets = [0, 0], sizes = [2, 32], strides = [1, 1]} : vector<2x96xf32> to vector<2x32xf32>
    %443 = vector.extract_strided_slice %441 {offsets = [0, 0], sizes = [2, 32], strides = [1, 1]} : vector<2x96xf32> to vector<2x32xf32>
    %444 = arith.addf %442, %443 : vector<2x32xf32>
    %445 = arith.negf %444 : vector<2x32xf32>
    %446 = math.exp %445 : vector<2x32xf32>
    %cst_66 = arith.constant 1.000000e+00 : f32
    %447 = vector.broadcast %cst_66 : f32 to vector<2x32xf32>
    %448 = arith.addf %447, %446 : vector<2x32xf32>
    %449 = arith.divf %447, %448 : vector<2x32xf32>
    %450 = vector.extract_strided_slice %439 {offsets = [0, 32], sizes = [2, 32], strides = [1, 1]} : vector<2x96xf32> to vector<2x32xf32>
    %451 = vector.extract_strided_slice %441 {offsets = [0, 32], sizes = [2, 32], strides = [1, 1]} : vector<2x96xf32> to vector<2x32xf32>
    %452 = arith.addf %450, %451 : vector<2x32xf32>
    %453 = arith.negf %452 : vector<2x32xf32>
    %454 = math.exp %453 : vector<2x32xf32>
    %cst_67 = arith.constant 1.000000e+00 : f32
    %455 = vector.broadcast %cst_67 : f32 to vector<2x32xf32>
    %456 = arith.addf %455, %454 : vector<2x32xf32>
    %457 = arith.divf %455, %456 : vector<2x32xf32>
    %458 = vector.extract_strided_slice %439 {offsets = [0, 64], sizes = [2, 32], strides = [1, 1]} : vector<2x96xf32> to vector<2x32xf32>
    %459 = vector.extract_strided_slice %441 {offsets = [0, 64], sizes = [2, 32], strides = [1, 1]} : vector<2x96xf32> to vector<2x32xf32>
    %460 = arith.mulf %449, %459 : vector<2x32xf32>
    %461 = arith.addf %458, %460 : vector<2x32xf32>
    %462 = math.tanh %461 : vector<2x32xf32>
    %cst_68 = arith.constant 1.000000e+00 : f32
    %463 = vector.broadcast %cst_68 : f32 to vector<2x32xf32>
    %464 = arith.subf %463, %457 : vector<2x32xf32>
    %465 = arith.mulf %464, %462 : vector<2x32xf32>
    %466 = arith.mulf %457, %407 : vector<2x32xf32>
    %467 = arith.addf %465, %466 : vector<2x32xf32>
    %468 = vector.extract_strided_slice %438 {offsets = [0, 96], sizes = [2, 96], strides = [1, 1]} : vector<2x192xf32> to vector<2x96xf32>
    %469 = vector.extract_strided_slice %440 {offsets = [0, 0], sizes = [2, 32], strides = [1, 1]} : vector<2x96xf32> to vector<2x32xf32>
    %470 = vector.extract_strided_slice %468 {offsets = [0, 0], sizes = [2, 32], strides = [1, 1]} : vector<2x96xf32> to vector<2x32xf32>
    %471 = arith.addf %469, %470 : vector<2x32xf32>
    %472 = arith.negf %471 : vector<2x32xf32>
    %473 = math.exp %472 : vector<2x32xf32>
    %cst_69 = arith.constant 1.000000e+00 : f32
    %474 = vector.broadcast %cst_69 : f32 to vector<2x32xf32>
    %475 = arith.addf %474, %473 : vector<2x32xf32>
    %476 = arith.divf %474, %475 : vector<2x32xf32>
    %477 = vector.extract_strided_slice %440 {offsets = [0, 32], sizes = [2, 32], strides = [1, 1]} : vector<2x96xf32> to vector<2x32xf32>
    %478 = vector.extract_strided_slice %468 {offsets = [0, 32], sizes = [2, 32], strides = [1, 1]} : vector<2x96xf32> to vector<2x32xf32>
    %479 = arith.addf %477, %478 : vector<2x32xf32>
    %480 = arith.negf %479 : vector<2x32xf32>
    %481 = math.exp %480 : vector<2x32xf32>
    %cst_70 = arith.constant 1.000000e+00 : f32
    %482 = vector.broadcast %cst_70 : f32 to vector<2x32xf32>
    %483 = arith.addf %482, %481 : vector<2x32xf32>
    %484 = arith.divf %482, %483 : vector<2x32xf32>
    %485 = vector.extract_strided_slice %440 {offsets = [0, 64], sizes = [2, 32], strides = [1, 1]} : vector<2x96xf32> to vector<2x32xf32>
    %486 = vector.extract_strided_slice %468 {offsets = [0, 64], sizes = [2, 32], strides = [1, 1]} : vector<2x96xf32> to vector<2x32xf32>
    %487 = arith.mulf %476, %486 : vector<2x32xf32>
    %488 = arith.addf %485, %487 : vector<2x32xf32>
    %489 = math.tanh %488 : vector<2x32xf32>
    %cst_71 = arith.constant 1.000000e+00 : f32
    %490 = vector.broadcast %cst_71 : f32 to vector<2x32xf32>
    %491 = arith.subf %490, %484 : vector<2x32xf32>
    %492 = arith.mulf %491, %489 : vector<2x32xf32>
    %493 = arith.mulf %484, %434 : vector<2x32xf32>
    %494 = arith.addf %492, %493 : vector<2x32xf32>
    %495 = tpu.concatenate %47, %107, %167, %227, %287, %347, %407, %467 in 0 : vector<2x32xf32>, vector<2x32xf32>, vector<2x32xf32>, vector<2x32xf32>, vector<2x32xf32>, vector<2x32xf32>, vector<2x32xf32>, vector<2x32xf32> -> vector<16x32xf32>
    %496 = tpu.concatenate %494, %434, %374, %314, %254, %194, %134, %74 in 0 : vector<2x32xf32>, vector<2x32xf32>, vector<2x32xf32>, vector<2x32xf32>, vector<2x32xf32>, vector<2x32xf32>, vector<2x32xf32>, vector<2x32xf32> -> vector<16x32xf32>
    %497 = tpu.concatenate %495, %496 in 1 : vector<16x32xf32>, vector<16x32xf32> -> vector<16x64xf32>
    %c0_72 = arith.constant 0 : index
    %c0_73 = arith.constant 0 : index
    %498 = vector.load %arg7[%c0_72, %c0_73] : memref<64x192xf32, #tpu.memory_space<vmem>>, vector<64x192xf32>
    %c0_74 = arith.constant 0 : index
    %c0_75 = arith.constant 0 : index
    %499 = vector.load %arg8[%c0_74, %c0_75] : memref<1x192xf32, #tpu.memory_space<vmem>>, vector<1x192xf32>
    %c0_76 = arith.constant 0 : index
    %c0_77 = arith.constant 0 : index
    %500 = vector.load %arg9[%c0_76, %c0_77] : memref<64x192xf32, #tpu.memory_space<vmem>>, vector<64x192xf32>
    %c0_78 = arith.constant 0 : index
    %c0_79 = arith.constant 0 : index
    %501 = vector.load %arg10[%c0_78, %c0_79] : memref<1x192xf32, #tpu.memory_space<vmem>>, vector<1x192xf32>
    %cst_80 = arith.constant dense<0.000000e+00> : vector<16x192xf32>
    %502 = tpu.matmul %497, %498, %cst_80 {dimension_numbers = #tpu.dot_dimension_numbers<[1], [0], [0], [1], [0, 0, 1, 1], [], []>} : vector<16x64xf32>, vector<64x192xf32>, vector<16x192xf32> -> vector<16x192xf32>
    %503 = vector.broadcast %499 : vector<1x192xf32> to vector<16x192xf32>
    %504 = arith.addf %502, %503 : vector<16x192xf32>
    %cst_81 = arith.constant 0.000000e+00 : f32
    %505 = vector.broadcast %cst_81 : f32 to vector<2x32xf32>
    %cst_82 = arith.constant 0.000000e+00 : f32
    %506 = vector.broadcast %cst_82 : f32 to vector<2x32xf32>
    %507 = tpu.concatenate %505, %506 in 1 : vector<2x32xf32>, vector<2x32xf32> -> vector<2x64xf32>
    %cst_83 = arith.constant dense<0.000000e+00> : vector<2x192xf32>
    %508 = tpu.matmul %507, %500, %cst_83 {dimension_numbers = #tpu.dot_dimension_numbers<[1], [0], [0], [1], [0, 0, 1, 1], [], []>} : vector<2x64xf32>, vector<64x192xf32>, vector<2x192xf32> -> vector<2x192xf32>
    %509 = vector.broadcast %501 : vector<1x192xf32> to vector<2x192xf32>
    %510 = arith.addf %508, %509 : vector<2x192xf32>
    %511 = vector.extract_strided_slice %504 {offsets = [0, 0], sizes = [2, 96], strides = [1, 1]} : vector<16x192xf32> to vector<2x96xf32>
    %512 = vector.extract_strided_slice %504 {offsets = [14, 96], sizes = [2, 96], strides = [1, 1]} : vector<16x192xf32> to vector<2x96xf32>
    %513 = vector.extract_strided_slice %510 {offsets = [0, 0], sizes = [2, 96], strides = [1, 1]} : vector<2x192xf32> to vector<2x96xf32>
    %514 = vector.extract_strided_slice %511 {offsets = [0, 0], sizes = [2, 32], strides = [1, 1]} : vector<2x96xf32> to vector<2x32xf32>
    %515 = vector.extract_strided_slice %513 {offsets = [0, 0], sizes = [2, 32], strides = [1, 1]} : vector<2x96xf32> to vector<2x32xf32>
    %516 = arith.addf %514, %515 : vector<2x32xf32>
    %517 = arith.negf %516 : vector<2x32xf32>
    %518 = math.exp %517 : vector<2x32xf32>
    %cst_84 = arith.constant 1.000000e+00 : f32
    %519 = vector.broadcast %cst_84 : f32 to vector<2x32xf32>
    %520 = arith.addf %519, %518 : vector<2x32xf32>
    %521 = arith.divf %519, %520 : vector<2x32xf32>
    %522 = vector.extract_strided_slice %511 {offsets = [0, 32], sizes = [2, 32], strides = [1, 1]} : vector<2x96xf32> to vector<2x32xf32>
    %523 = vector.extract_strided_slice %513 {offsets = [0, 32], sizes = [2, 32], strides = [1, 1]} : vector<2x96xf32> to vector<2x32xf32>
    %524 = arith.addf %522, %523 : vector<2x32xf32>
    %525 = arith.negf %524 : vector<2x32xf32>
    %526 = math.exp %525 : vector<2x32xf32>
    %cst_85 = arith.constant 1.000000e+00 : f32
    %527 = vector.broadcast %cst_85 : f32 to vector<2x32xf32>
    %528 = arith.addf %527, %526 : vector<2x32xf32>
    %529 = arith.divf %527, %528 : vector<2x32xf32>
    %530 = vector.extract_strided_slice %511 {offsets = [0, 64], sizes = [2, 32], strides = [1, 1]} : vector<2x96xf32> to vector<2x32xf32>
    %531 = vector.extract_strided_slice %513 {offsets = [0, 64], sizes = [2, 32], strides = [1, 1]} : vector<2x96xf32> to vector<2x32xf32>
    %532 = arith.mulf %521, %531 : vector<2x32xf32>
    %533 = arith.addf %530, %532 : vector<2x32xf32>
    %534 = math.tanh %533 : vector<2x32xf32>
    %cst_86 = arith.constant 1.000000e+00 : f32
    %535 = vector.broadcast %cst_86 : f32 to vector<2x32xf32>
    %536 = arith.subf %535, %529 : vector<2x32xf32>
    %537 = arith.mulf %536, %534 : vector<2x32xf32>
    %538 = arith.mulf %529, %505 : vector<2x32xf32>
    %539 = arith.addf %537, %538 : vector<2x32xf32>
    %540 = vector.extract_strided_slice %510 {offsets = [0, 96], sizes = [2, 96], strides = [1, 1]} : vector<2x192xf32> to vector<2x96xf32>
    %541 = vector.extract_strided_slice %512 {offsets = [0, 0], sizes = [2, 32], strides = [1, 1]} : vector<2x96xf32> to vector<2x32xf32>
    %542 = vector.extract_strided_slice %540 {offsets = [0, 0], sizes = [2, 32], strides = [1, 1]} : vector<2x96xf32> to vector<2x32xf32>
    %543 = arith.addf %541, %542 : vector<2x32xf32>
    %544 = arith.negf %543 : vector<2x32xf32>
    %545 = math.exp %544 : vector<2x32xf32>
    %cst_87 = arith.constant 1.000000e+00 : f32
    %546 = vector.broadcast %cst_87 : f32 to vector<2x32xf32>
    %547 = arith.addf %546, %545 : vector<2x32xf32>
    %548 = arith.divf %546, %547 : vector<2x32xf32>
    %549 = vector.extract_strided_slice %512 {offsets = [0, 32], sizes = [2, 32], strides = [1, 1]} : vector<2x96xf32> to vector<2x32xf32>
    %550 = vector.extract_strided_slice %540 {offsets = [0, 32], sizes = [2, 32], strides = [1, 1]} : vector<2x96xf32> to vector<2x32xf32>
    %551 = arith.addf %549, %550 : vector<2x32xf32>
    %552 = arith.negf %551 : vector<2x32xf32>
    %553 = math.exp %552 : vector<2x32xf32>
    %cst_88 = arith.constant 1.000000e+00 : f32
    %554 = vector.broadcast %cst_88 : f32 to vector<2x32xf32>
    %555 = arith.addf %554, %553 : vector<2x32xf32>
    %556 = arith.divf %554, %555 : vector<2x32xf32>
    %557 = vector.extract_strided_slice %512 {offsets = [0, 64], sizes = [2, 32], strides = [1, 1]} : vector<2x96xf32> to vector<2x32xf32>
    %558 = vector.extract_strided_slice %540 {offsets = [0, 64], sizes = [2, 32], strides = [1, 1]} : vector<2x96xf32> to vector<2x32xf32>
    %559 = arith.mulf %548, %558 : vector<2x32xf32>
    %560 = arith.addf %557, %559 : vector<2x32xf32>
    %561 = math.tanh %560 : vector<2x32xf32>
    %cst_89 = arith.constant 1.000000e+00 : f32
    %562 = vector.broadcast %cst_89 : f32 to vector<2x32xf32>
    %563 = arith.subf %562, %556 : vector<2x32xf32>
    %564 = arith.mulf %563, %561 : vector<2x32xf32>
    %565 = arith.mulf %556, %506 : vector<2x32xf32>
    %566 = arith.addf %564, %565 : vector<2x32xf32>
    %567 = tpu.concatenate %539, %566 in 1 : vector<2x32xf32>, vector<2x32xf32> -> vector<2x64xf32>
    %cst_90 = arith.constant dense<0.000000e+00> : vector<2x192xf32>
    %568 = tpu.matmul %567, %500, %cst_90 {dimension_numbers = #tpu.dot_dimension_numbers<[1], [0], [0], [1], [0, 0, 1, 1], [], []>} : vector<2x64xf32>, vector<64x192xf32>, vector<2x192xf32> -> vector<2x192xf32>
    %569 = vector.broadcast %501 : vector<1x192xf32> to vector<2x192xf32>
    %570 = arith.addf %568, %569 : vector<2x192xf32>
    %571 = vector.extract_strided_slice %504 {offsets = [2, 0], sizes = [2, 96], strides = [1, 1]} : vector<16x192xf32> to vector<2x96xf32>
    %572 = vector.extract_strided_slice %504 {offsets = [12, 96], sizes = [2, 96], strides = [1, 1]} : vector<16x192xf32> to vector<2x96xf32>
    %573 = vector.extract_strided_slice %570 {offsets = [0, 0], sizes = [2, 96], strides = [1, 1]} : vector<2x192xf32> to vector<2x96xf32>
    %574 = vector.extract_strided_slice %571 {offsets = [0, 0], sizes = [2, 32], strides = [1, 1]} : vector<2x96xf32> to vector<2x32xf32>
    %575 = vector.extract_strided_slice %573 {offsets = [0, 0], sizes = [2, 32], strides = [1, 1]} : vector<2x96xf32> to vector<2x32xf32>
    %576 = arith.addf %574, %575 : vector<2x32xf32>
    %577 = arith.negf %576 : vector<2x32xf32>
    %578 = math.exp %577 : vector<2x32xf32>
    %cst_91 = arith.constant 1.000000e+00 : f32
    %579 = vector.broadcast %cst_91 : f32 to vector<2x32xf32>
    %580 = arith.addf %579, %578 : vector<2x32xf32>
    %581 = arith.divf %579, %580 : vector<2x32xf32>
    %582 = vector.extract_strided_slice %571 {offsets = [0, 32], sizes = [2, 32], strides = [1, 1]} : vector<2x96xf32> to vector<2x32xf32>
    %583 = vector.extract_strided_slice %573 {offsets = [0, 32], sizes = [2, 32], strides = [1, 1]} : vector<2x96xf32> to vector<2x32xf32>
    %584 = arith.addf %582, %583 : vector<2x32xf32>
    %585 = arith.negf %584 : vector<2x32xf32>
    %586 = math.exp %585 : vector<2x32xf32>
    %cst_92 = arith.constant 1.000000e+00 : f32
    %587 = vector.broadcast %cst_92 : f32 to vector<2x32xf32>
    %588 = arith.addf %587, %586 : vector<2x32xf32>
    %589 = arith.divf %587, %588 : vector<2x32xf32>
    %590 = vector.extract_strided_slice %571 {offsets = [0, 64], sizes = [2, 32], strides = [1, 1]} : vector<2x96xf32> to vector<2x32xf32>
    %591 = vector.extract_strided_slice %573 {offsets = [0, 64], sizes = [2, 32], strides = [1, 1]} : vector<2x96xf32> to vector<2x32xf32>
    %592 = arith.mulf %581, %591 : vector<2x32xf32>
    %593 = arith.addf %590, %592 : vector<2x32xf32>
    %594 = math.tanh %593 : vector<2x32xf32>
    %cst_93 = arith.constant 1.000000e+00 : f32
    %595 = vector.broadcast %cst_93 : f32 to vector<2x32xf32>
    %596 = arith.subf %595, %589 : vector<2x32xf32>
    %597 = arith.mulf %596, %594 : vector<2x32xf32>
    %598 = arith.mulf %589, %539 : vector<2x32xf32>
    %599 = arith.addf %597, %598 : vector<2x32xf32>
    %600 = vector.extract_strided_slice %570 {offsets = [0, 96], sizes = [2, 96], strides = [1, 1]} : vector<2x192xf32> to vector<2x96xf32>
    %601 = vector.extract_strided_slice %572 {offsets = [0, 0], sizes = [2, 32], strides = [1, 1]} : vector<2x96xf32> to vector<2x32xf32>
    %602 = vector.extract_strided_slice %600 {offsets = [0, 0], sizes = [2, 32], strides = [1, 1]} : vector<2x96xf32> to vector<2x32xf32>
    %603 = arith.addf %601, %602 : vector<2x32xf32>
    %604 = arith.negf %603 : vector<2x32xf32>
    %605 = math.exp %604 : vector<2x32xf32>
    %cst_94 = arith.constant 1.000000e+00 : f32
    %606 = vector.broadcast %cst_94 : f32 to vector<2x32xf32>
    %607 = arith.addf %606, %605 : vector<2x32xf32>
    %608 = arith.divf %606, %607 : vector<2x32xf32>
    %609 = vector.extract_strided_slice %572 {offsets = [0, 32], sizes = [2, 32], strides = [1, 1]} : vector<2x96xf32> to vector<2x32xf32>
    %610 = vector.extract_strided_slice %600 {offsets = [0, 32], sizes = [2, 32], strides = [1, 1]} : vector<2x96xf32> to vector<2x32xf32>
    %611 = arith.addf %609, %610 : vector<2x32xf32>
    %612 = arith.negf %611 : vector<2x32xf32>
    %613 = math.exp %612 : vector<2x32xf32>
    %cst_95 = arith.constant 1.000000e+00 : f32
    %614 = vector.broadcast %cst_95 : f32 to vector<2x32xf32>
    %615 = arith.addf %614, %613 : vector<2x32xf32>
    %616 = arith.divf %614, %615 : vector<2x32xf32>
    %617 = vector.extract_strided_slice %572 {offsets = [0, 64], sizes = [2, 32], strides = [1, 1]} : vector<2x96xf32> to vector<2x32xf32>
    %618 = vector.extract_strided_slice %600 {offsets = [0, 64], sizes = [2, 32], strides = [1, 1]} : vector<2x96xf32> to vector<2x32xf32>
    %619 = arith.mulf %608, %618 : vector<2x32xf32>
    %620 = arith.addf %617, %619 : vector<2x32xf32>
    %621 = math.tanh %620 : vector<2x32xf32>
    %cst_96 = arith.constant 1.000000e+00 : f32
    %622 = vector.broadcast %cst_96 : f32 to vector<2x32xf32>
    %623 = arith.subf %622, %616 : vector<2x32xf32>
    %624 = arith.mulf %623, %621 : vector<2x32xf32>
    %625 = arith.mulf %616, %566 : vector<2x32xf32>
    %626 = arith.addf %624, %625 : vector<2x32xf32>
    %627 = tpu.concatenate %599, %626 in 1 : vector<2x32xf32>, vector<2x32xf32> -> vector<2x64xf32>
    %cst_97 = arith.constant dense<0.000000e+00> : vector<2x192xf32>
    %628 = tpu.matmul %627, %500, %cst_97 {dimension_numbers = #tpu.dot_dimension_numbers<[1], [0], [0], [1], [0, 0, 1, 1], [], []>} : vector<2x64xf32>, vector<64x192xf32>, vector<2x192xf32> -> vector<2x192xf32>
    %629 = vector.broadcast %501 : vector<1x192xf32> to vector<2x192xf32>
    %630 = arith.addf %628, %629 : vector<2x192xf32>
    %631 = vector.extract_strided_slice %504 {offsets = [4, 0], sizes = [2, 96], strides = [1, 1]} : vector<16x192xf32> to vector<2x96xf32>
    %632 = vector.extract_strided_slice %504 {offsets = [10, 96], sizes = [2, 96], strides = [1, 1]} : vector<16x192xf32> to vector<2x96xf32>
    %633 = vector.extract_strided_slice %630 {offsets = [0, 0], sizes = [2, 96], strides = [1, 1]} : vector<2x192xf32> to vector<2x96xf32>
    %634 = vector.extract_strided_slice %631 {offsets = [0, 0], sizes = [2, 32], strides = [1, 1]} : vector<2x96xf32> to vector<2x32xf32>
    %635 = vector.extract_strided_slice %633 {offsets = [0, 0], sizes = [2, 32], strides = [1, 1]} : vector<2x96xf32> to vector<2x32xf32>
    %636 = arith.addf %634, %635 : vector<2x32xf32>
    %637 = arith.negf %636 : vector<2x32xf32>
    %638 = math.exp %637 : vector<2x32xf32>
    %cst_98 = arith.constant 1.000000e+00 : f32
    %639 = vector.broadcast %cst_98 : f32 to vector<2x32xf32>
    %640 = arith.addf %639, %638 : vector<2x32xf32>
    %641 = arith.divf %639, %640 : vector<2x32xf32>
    %642 = vector.extract_strided_slice %631 {offsets = [0, 32], sizes = [2, 32], strides = [1, 1]} : vector<2x96xf32> to vector<2x32xf32>
    %643 = vector.extract_strided_slice %633 {offsets = [0, 32], sizes = [2, 32], strides = [1, 1]} : vector<2x96xf32> to vector<2x32xf32>
    %644 = arith.addf %642, %643 : vector<2x32xf32>
    %645 = arith.negf %644 : vector<2x32xf32>
    %646 = math.exp %645 : vector<2x32xf32>
    %cst_99 = arith.constant 1.000000e+00 : f32
    %647 = vector.broadcast %cst_99 : f32 to vector<2x32xf32>
    %648 = arith.addf %647, %646 : vector<2x32xf32>
    %649 = arith.divf %647, %648 : vector<2x32xf32>
    %650 = vector.extract_strided_slice %631 {offsets = [0, 64], sizes = [2, 32], strides = [1, 1]} : vector<2x96xf32> to vector<2x32xf32>
    %651 = vector.extract_strided_slice %633 {offsets = [0, 64], sizes = [2, 32], strides = [1, 1]} : vector<2x96xf32> to vector<2x32xf32>
    %652 = arith.mulf %641, %651 : vector<2x32xf32>
    %653 = arith.addf %650, %652 : vector<2x32xf32>
    %654 = math.tanh %653 : vector<2x32xf32>
    %cst_100 = arith.constant 1.000000e+00 : f32
    %655 = vector.broadcast %cst_100 : f32 to vector<2x32xf32>
    %656 = arith.subf %655, %649 : vector<2x32xf32>
    %657 = arith.mulf %656, %654 : vector<2x32xf32>
    %658 = arith.mulf %649, %599 : vector<2x32xf32>
    %659 = arith.addf %657, %658 : vector<2x32xf32>
    %660 = vector.extract_strided_slice %630 {offsets = [0, 96], sizes = [2, 96], strides = [1, 1]} : vector<2x192xf32> to vector<2x96xf32>
    %661 = vector.extract_strided_slice %632 {offsets = [0, 0], sizes = [2, 32], strides = [1, 1]} : vector<2x96xf32> to vector<2x32xf32>
    %662 = vector.extract_strided_slice %660 {offsets = [0, 0], sizes = [2, 32], strides = [1, 1]} : vector<2x96xf32> to vector<2x32xf32>
    %663 = arith.addf %661, %662 : vector<2x32xf32>
    %664 = arith.negf %663 : vector<2x32xf32>
    %665 = math.exp %664 : vector<2x32xf32>
    %cst_101 = arith.constant 1.000000e+00 : f32
    %666 = vector.broadcast %cst_101 : f32 to vector<2x32xf32>
    %667 = arith.addf %666, %665 : vector<2x32xf32>
    %668 = arith.divf %666, %667 : vector<2x32xf32>
    %669 = vector.extract_strided_slice %632 {offsets = [0, 32], sizes = [2, 32], strides = [1, 1]} : vector<2x96xf32> to vector<2x32xf32>
    %670 = vector.extract_strided_slice %660 {offsets = [0, 32], sizes = [2, 32], strides = [1, 1]} : vector<2x96xf32> to vector<2x32xf32>
    %671 = arith.addf %669, %670 : vector<2x32xf32>
    %672 = arith.negf %671 : vector<2x32xf32>
    %673 = math.exp %672 : vector<2x32xf32>
    %cst_102 = arith.constant 1.000000e+00 : f32
    %674 = vector.broadcast %cst_102 : f32 to vector<2x32xf32>
    %675 = arith.addf %674, %673 : vector<2x32xf32>
    %676 = arith.divf %674, %675 : vector<2x32xf32>
    %677 = vector.extract_strided_slice %632 {offsets = [0, 64], sizes = [2, 32], strides = [1, 1]} : vector<2x96xf32> to vector<2x32xf32>
    %678 = vector.extract_strided_slice %660 {offsets = [0, 64], sizes = [2, 32], strides = [1, 1]} : vector<2x96xf32> to vector<2x32xf32>
    %679 = arith.mulf %668, %678 : vector<2x32xf32>
    %680 = arith.addf %677, %679 : vector<2x32xf32>
    %681 = math.tanh %680 : vector<2x32xf32>
    %cst_103 = arith.constant 1.000000e+00 : f32
    %682 = vector.broadcast %cst_103 : f32 to vector<2x32xf32>
    %683 = arith.subf %682, %676 : vector<2x32xf32>
    %684 = arith.mulf %683, %681 : vector<2x32xf32>
    %685 = arith.mulf %676, %626 : vector<2x32xf32>
    %686 = arith.addf %684, %685 : vector<2x32xf32>
    %687 = tpu.concatenate %659, %686 in 1 : vector<2x32xf32>, vector<2x32xf32> -> vector<2x64xf32>
    %cst_104 = arith.constant dense<0.000000e+00> : vector<2x192xf32>
    %688 = tpu.matmul %687, %500, %cst_104 {dimension_numbers = #tpu.dot_dimension_numbers<[1], [0], [0], [1], [0, 0, 1, 1], [], []>} : vector<2x64xf32>, vector<64x192xf32>, vector<2x192xf32> -> vector<2x192xf32>
    %689 = vector.broadcast %501 : vector<1x192xf32> to vector<2x192xf32>
    %690 = arith.addf %688, %689 : vector<2x192xf32>
    %691 = vector.extract_strided_slice %504 {offsets = [6, 0], sizes = [2, 96], strides = [1, 1]} : vector<16x192xf32> to vector<2x96xf32>
    %692 = vector.extract_strided_slice %504 {offsets = [8, 96], sizes = [2, 96], strides = [1, 1]} : vector<16x192xf32> to vector<2x96xf32>
    %693 = vector.extract_strided_slice %690 {offsets = [0, 0], sizes = [2, 96], strides = [1, 1]} : vector<2x192xf32> to vector<2x96xf32>
    %694 = vector.extract_strided_slice %691 {offsets = [0, 0], sizes = [2, 32], strides = [1, 1]} : vector<2x96xf32> to vector<2x32xf32>
    %695 = vector.extract_strided_slice %693 {offsets = [0, 0], sizes = [2, 32], strides = [1, 1]} : vector<2x96xf32> to vector<2x32xf32>
    %696 = arith.addf %694, %695 : vector<2x32xf32>
    %697 = arith.negf %696 : vector<2x32xf32>
    %698 = math.exp %697 : vector<2x32xf32>
    %cst_105 = arith.constant 1.000000e+00 : f32
    %699 = vector.broadcast %cst_105 : f32 to vector<2x32xf32>
    %700 = arith.addf %699, %698 : vector<2x32xf32>
    %701 = arith.divf %699, %700 : vector<2x32xf32>
    %702 = vector.extract_strided_slice %691 {offsets = [0, 32], sizes = [2, 32], strides = [1, 1]} : vector<2x96xf32> to vector<2x32xf32>
    %703 = vector.extract_strided_slice %693 {offsets = [0, 32], sizes = [2, 32], strides = [1, 1]} : vector<2x96xf32> to vector<2x32xf32>
    %704 = arith.addf %702, %703 : vector<2x32xf32>
    %705 = arith.negf %704 : vector<2x32xf32>
    %706 = math.exp %705 : vector<2x32xf32>
    %cst_106 = arith.constant 1.000000e+00 : f32
    %707 = vector.broadcast %cst_106 : f32 to vector<2x32xf32>
    %708 = arith.addf %707, %706 : vector<2x32xf32>
    %709 = arith.divf %707, %708 : vector<2x32xf32>
    %710 = vector.extract_strided_slice %691 {offsets = [0, 64], sizes = [2, 32], strides = [1, 1]} : vector<2x96xf32> to vector<2x32xf32>
    %711 = vector.extract_strided_slice %693 {offsets = [0, 64], sizes = [2, 32], strides = [1, 1]} : vector<2x96xf32> to vector<2x32xf32>
    %712 = arith.mulf %701, %711 : vector<2x32xf32>
    %713 = arith.addf %710, %712 : vector<2x32xf32>
    %714 = math.tanh %713 : vector<2x32xf32>
    %cst_107 = arith.constant 1.000000e+00 : f32
    %715 = vector.broadcast %cst_107 : f32 to vector<2x32xf32>
    %716 = arith.subf %715, %709 : vector<2x32xf32>
    %717 = arith.mulf %716, %714 : vector<2x32xf32>
    %718 = arith.mulf %709, %659 : vector<2x32xf32>
    %719 = arith.addf %717, %718 : vector<2x32xf32>
    %720 = vector.extract_strided_slice %690 {offsets = [0, 96], sizes = [2, 96], strides = [1, 1]} : vector<2x192xf32> to vector<2x96xf32>
    %721 = vector.extract_strided_slice %692 {offsets = [0, 0], sizes = [2, 32], strides = [1, 1]} : vector<2x96xf32> to vector<2x32xf32>
    %722 = vector.extract_strided_slice %720 {offsets = [0, 0], sizes = [2, 32], strides = [1, 1]} : vector<2x96xf32> to vector<2x32xf32>
    %723 = arith.addf %721, %722 : vector<2x32xf32>
    %724 = arith.negf %723 : vector<2x32xf32>
    %725 = math.exp %724 : vector<2x32xf32>
    %cst_108 = arith.constant 1.000000e+00 : f32
    %726 = vector.broadcast %cst_108 : f32 to vector<2x32xf32>
    %727 = arith.addf %726, %725 : vector<2x32xf32>
    %728 = arith.divf %726, %727 : vector<2x32xf32>
    %729 = vector.extract_strided_slice %692 {offsets = [0, 32], sizes = [2, 32], strides = [1, 1]} : vector<2x96xf32> to vector<2x32xf32>
    %730 = vector.extract_strided_slice %720 {offsets = [0, 32], sizes = [2, 32], strides = [1, 1]} : vector<2x96xf32> to vector<2x32xf32>
    %731 = arith.addf %729, %730 : vector<2x32xf32>
    %732 = arith.negf %731 : vector<2x32xf32>
    %733 = math.exp %732 : vector<2x32xf32>
    %cst_109 = arith.constant 1.000000e+00 : f32
    %734 = vector.broadcast %cst_109 : f32 to vector<2x32xf32>
    %735 = arith.addf %734, %733 : vector<2x32xf32>
    %736 = arith.divf %734, %735 : vector<2x32xf32>
    %737 = vector.extract_strided_slice %692 {offsets = [0, 64], sizes = [2, 32], strides = [1, 1]} : vector<2x96xf32> to vector<2x32xf32>
    %738 = vector.extract_strided_slice %720 {offsets = [0, 64], sizes = [2, 32], strides = [1, 1]} : vector<2x96xf32> to vector<2x32xf32>
    %739 = arith.mulf %728, %738 : vector<2x32xf32>
    %740 = arith.addf %737, %739 : vector<2x32xf32>
    %741 = math.tanh %740 : vector<2x32xf32>
    %cst_110 = arith.constant 1.000000e+00 : f32
    %742 = vector.broadcast %cst_110 : f32 to vector<2x32xf32>
    %743 = arith.subf %742, %736 : vector<2x32xf32>
    %744 = arith.mulf %743, %741 : vector<2x32xf32>
    %745 = arith.mulf %736, %686 : vector<2x32xf32>
    %746 = arith.addf %744, %745 : vector<2x32xf32>
    %747 = tpu.concatenate %719, %746 in 1 : vector<2x32xf32>, vector<2x32xf32> -> vector<2x64xf32>
    %cst_111 = arith.constant dense<0.000000e+00> : vector<2x192xf32>
    %748 = tpu.matmul %747, %500, %cst_111 {dimension_numbers = #tpu.dot_dimension_numbers<[1], [0], [0], [1], [0, 0, 1, 1], [], []>} : vector<2x64xf32>, vector<64x192xf32>, vector<2x192xf32> -> vector<2x192xf32>
    %749 = vector.broadcast %501 : vector<1x192xf32> to vector<2x192xf32>
    %750 = arith.addf %748, %749 : vector<2x192xf32>
    %751 = vector.extract_strided_slice %504 {offsets = [8, 0], sizes = [2, 96], strides = [1, 1]} : vector<16x192xf32> to vector<2x96xf32>
    %752 = vector.extract_strided_slice %504 {offsets = [6, 96], sizes = [2, 96], strides = [1, 1]} : vector<16x192xf32> to vector<2x96xf32>
    %753 = vector.extract_strided_slice %750 {offsets = [0, 0], sizes = [2, 96], strides = [1, 1]} : vector<2x192xf32> to vector<2x96xf32>
    %754 = vector.extract_strided_slice %751 {offsets = [0, 0], sizes = [2, 32], strides = [1, 1]} : vector<2x96xf32> to vector<2x32xf32>
    %755 = vector.extract_strided_slice %753 {offsets = [0, 0], sizes = [2, 32], strides = [1, 1]} : vector<2x96xf32> to vector<2x32xf32>
    %756 = arith.addf %754, %755 : vector<2x32xf32>
    %757 = arith.negf %756 : vector<2x32xf32>
    %758 = math.exp %757 : vector<2x32xf32>
    %cst_112 = arith.constant 1.000000e+00 : f32
    %759 = vector.broadcast %cst_112 : f32 to vector<2x32xf32>
    %760 = arith.addf %759, %758 : vector<2x32xf32>
    %761 = arith.divf %759, %760 : vector<2x32xf32>
    %762 = vector.extract_strided_slice %751 {offsets = [0, 32], sizes = [2, 32], strides = [1, 1]} : vector<2x96xf32> to vector<2x32xf32>
    %763 = vector.extract_strided_slice %753 {offsets = [0, 32], sizes = [2, 32], strides = [1, 1]} : vector<2x96xf32> to vector<2x32xf32>
    %764 = arith.addf %762, %763 : vector<2x32xf32>
    %765 = arith.negf %764 : vector<2x32xf32>
    %766 = math.exp %765 : vector<2x32xf32>
    %cst_113 = arith.constant 1.000000e+00 : f32
    %767 = vector.broadcast %cst_113 : f32 to vector<2x32xf32>
    %768 = arith.addf %767, %766 : vector<2x32xf32>
    %769 = arith.divf %767, %768 : vector<2x32xf32>
    %770 = vector.extract_strided_slice %751 {offsets = [0, 64], sizes = [2, 32], strides = [1, 1]} : vector<2x96xf32> to vector<2x32xf32>
    %771 = vector.extract_strided_slice %753 {offsets = [0, 64], sizes = [2, 32], strides = [1, 1]} : vector<2x96xf32> to vector<2x32xf32>
    %772 = arith.mulf %761, %771 : vector<2x32xf32>
    %773 = arith.addf %770, %772 : vector<2x32xf32>
    %774 = math.tanh %773 : vector<2x32xf32>
    %cst_114 = arith.constant 1.000000e+00 : f32
    %775 = vector.broadcast %cst_114 : f32 to vector<2x32xf32>
    %776 = arith.subf %775, %769 : vector<2x32xf32>
    %777 = arith.mulf %776, %774 : vector<2x32xf32>
    %778 = arith.mulf %769, %719 : vector<2x32xf32>
    %779 = arith.addf %777, %778 : vector<2x32xf32>
    %780 = vector.extract_strided_slice %750 {offsets = [0, 96], sizes = [2, 96], strides = [1, 1]} : vector<2x192xf32> to vector<2x96xf32>
    %781 = vector.extract_strided_slice %752 {offsets = [0, 0], sizes = [2, 32], strides = [1, 1]} : vector<2x96xf32> to vector<2x32xf32>
    %782 = vector.extract_strided_slice %780 {offsets = [0, 0], sizes = [2, 32], strides = [1, 1]} : vector<2x96xf32> to vector<2x32xf32>
    %783 = arith.addf %781, %782 : vector<2x32xf32>
    %784 = arith.negf %783 : vector<2x32xf32>
    %785 = math.exp %784 : vector<2x32xf32>
    %cst_115 = arith.constant 1.000000e+00 : f32
    %786 = vector.broadcast %cst_115 : f32 to vector<2x32xf32>
    %787 = arith.addf %786, %785 : vector<2x32xf32>
    %788 = arith.divf %786, %787 : vector<2x32xf32>
    %789 = vector.extract_strided_slice %752 {offsets = [0, 32], sizes = [2, 32], strides = [1, 1]} : vector<2x96xf32> to vector<2x32xf32>
    %790 = vector.extract_strided_slice %780 {offsets = [0, 32], sizes = [2, 32], strides = [1, 1]} : vector<2x96xf32> to vector<2x32xf32>
    %791 = arith.addf %789, %790 : vector<2x32xf32>
    %792 = arith.negf %791 : vector<2x32xf32>
    %793 = math.exp %792 : vector<2x32xf32>
    %cst_116 = arith.constant 1.000000e+00 : f32
    %794 = vector.broadcast %cst_116 : f32 to vector<2x32xf32>
    %795 = arith.addf %794, %793 : vector<2x32xf32>
    %796 = arith.divf %794, %795 : vector<2x32xf32>
    %797 = vector.extract_strided_slice %752 {offsets = [0, 64], sizes = [2, 32], strides = [1, 1]} : vector<2x96xf32> to vector<2x32xf32>
    %798 = vector.extract_strided_slice %780 {offsets = [0, 64], sizes = [2, 32], strides = [1, 1]} : vector<2x96xf32> to vector<2x32xf32>
    %799 = arith.mulf %788, %798 : vector<2x32xf32>
    %800 = arith.addf %797, %799 : vector<2x32xf32>
    %801 = math.tanh %800 : vector<2x32xf32>
    %cst_117 = arith.constant 1.000000e+00 : f32
    %802 = vector.broadcast %cst_117 : f32 to vector<2x32xf32>
    %803 = arith.subf %802, %796 : vector<2x32xf32>
    %804 = arith.mulf %803, %801 : vector<2x32xf32>
    %805 = arith.mulf %796, %746 : vector<2x32xf32>
    %806 = arith.addf %804, %805 : vector<2x32xf32>
    %807 = tpu.concatenate %779, %806 in 1 : vector<2x32xf32>, vector<2x32xf32> -> vector<2x64xf32>
    %cst_118 = arith.constant dense<0.000000e+00> : vector<2x192xf32>
    %808 = tpu.matmul %807, %500, %cst_118 {dimension_numbers = #tpu.dot_dimension_numbers<[1], [0], [0], [1], [0, 0, 1, 1], [], []>} : vector<2x64xf32>, vector<64x192xf32>, vector<2x192xf32> -> vector<2x192xf32>
    %809 = vector.broadcast %501 : vector<1x192xf32> to vector<2x192xf32>
    %810 = arith.addf %808, %809 : vector<2x192xf32>
    %811 = vector.extract_strided_slice %504 {offsets = [10, 0], sizes = [2, 96], strides = [1, 1]} : vector<16x192xf32> to vector<2x96xf32>
    %812 = vector.extract_strided_slice %504 {offsets = [4, 96], sizes = [2, 96], strides = [1, 1]} : vector<16x192xf32> to vector<2x96xf32>
    %813 = vector.extract_strided_slice %810 {offsets = [0, 0], sizes = [2, 96], strides = [1, 1]} : vector<2x192xf32> to vector<2x96xf32>
    %814 = vector.extract_strided_slice %811 {offsets = [0, 0], sizes = [2, 32], strides = [1, 1]} : vector<2x96xf32> to vector<2x32xf32>
    %815 = vector.extract_strided_slice %813 {offsets = [0, 0], sizes = [2, 32], strides = [1, 1]} : vector<2x96xf32> to vector<2x32xf32>
    %816 = arith.addf %814, %815 : vector<2x32xf32>
    %817 = arith.negf %816 : vector<2x32xf32>
    %818 = math.exp %817 : vector<2x32xf32>
    %cst_119 = arith.constant 1.000000e+00 : f32
    %819 = vector.broadcast %cst_119 : f32 to vector<2x32xf32>
    %820 = arith.addf %819, %818 : vector<2x32xf32>
    %821 = arith.divf %819, %820 : vector<2x32xf32>
    %822 = vector.extract_strided_slice %811 {offsets = [0, 32], sizes = [2, 32], strides = [1, 1]} : vector<2x96xf32> to vector<2x32xf32>
    %823 = vector.extract_strided_slice %813 {offsets = [0, 32], sizes = [2, 32], strides = [1, 1]} : vector<2x96xf32> to vector<2x32xf32>
    %824 = arith.addf %822, %823 : vector<2x32xf32>
    %825 = arith.negf %824 : vector<2x32xf32>
    %826 = math.exp %825 : vector<2x32xf32>
    %cst_120 = arith.constant 1.000000e+00 : f32
    %827 = vector.broadcast %cst_120 : f32 to vector<2x32xf32>
    %828 = arith.addf %827, %826 : vector<2x32xf32>
    %829 = arith.divf %827, %828 : vector<2x32xf32>
    %830 = vector.extract_strided_slice %811 {offsets = [0, 64], sizes = [2, 32], strides = [1, 1]} : vector<2x96xf32> to vector<2x32xf32>
    %831 = vector.extract_strided_slice %813 {offsets = [0, 64], sizes = [2, 32], strides = [1, 1]} : vector<2x96xf32> to vector<2x32xf32>
    %832 = arith.mulf %821, %831 : vector<2x32xf32>
    %833 = arith.addf %830, %832 : vector<2x32xf32>
    %834 = math.tanh %833 : vector<2x32xf32>
    %cst_121 = arith.constant 1.000000e+00 : f32
    %835 = vector.broadcast %cst_121 : f32 to vector<2x32xf32>
    %836 = arith.subf %835, %829 : vector<2x32xf32>
    %837 = arith.mulf %836, %834 : vector<2x32xf32>
    %838 = arith.mulf %829, %779 : vector<2x32xf32>
    %839 = arith.addf %837, %838 : vector<2x32xf32>
    %840 = vector.extract_strided_slice %810 {offsets = [0, 96], sizes = [2, 96], strides = [1, 1]} : vector<2x192xf32> to vector<2x96xf32>
    %841 = vector.extract_strided_slice %812 {offsets = [0, 0], sizes = [2, 32], strides = [1, 1]} : vector<2x96xf32> to vector<2x32xf32>
    %842 = vector.extract_strided_slice %840 {offsets = [0, 0], sizes = [2, 32], strides = [1, 1]} : vector<2x96xf32> to vector<2x32xf32>
    %843 = arith.addf %841, %842 : vector<2x32xf32>
    %844 = arith.negf %843 : vector<2x32xf32>
    %845 = math.exp %844 : vector<2x32xf32>
    %cst_122 = arith.constant 1.000000e+00 : f32
    %846 = vector.broadcast %cst_122 : f32 to vector<2x32xf32>
    %847 = arith.addf %846, %845 : vector<2x32xf32>
    %848 = arith.divf %846, %847 : vector<2x32xf32>
    %849 = vector.extract_strided_slice %812 {offsets = [0, 32], sizes = [2, 32], strides = [1, 1]} : vector<2x96xf32> to vector<2x32xf32>
    %850 = vector.extract_strided_slice %840 {offsets = [0, 32], sizes = [2, 32], strides = [1, 1]} : vector<2x96xf32> to vector<2x32xf32>
    %851 = arith.addf %849, %850 : vector<2x32xf32>
    %852 = arith.negf %851 : vector<2x32xf32>
    %853 = math.exp %852 : vector<2x32xf32>
    %cst_123 = arith.constant 1.000000e+00 : f32
    %854 = vector.broadcast %cst_123 : f32 to vector<2x32xf32>
    %855 = arith.addf %854, %853 : vector<2x32xf32>
    %856 = arith.divf %854, %855 : vector<2x32xf32>
    %857 = vector.extract_strided_slice %812 {offsets = [0, 64], sizes = [2, 32], strides = [1, 1]} : vector<2x96xf32> to vector<2x32xf32>
    %858 = vector.extract_strided_slice %840 {offsets = [0, 64], sizes = [2, 32], strides = [1, 1]} : vector<2x96xf32> to vector<2x32xf32>
    %859 = arith.mulf %848, %858 : vector<2x32xf32>
    %860 = arith.addf %857, %859 : vector<2x32xf32>
    %861 = math.tanh %860 : vector<2x32xf32>
    %cst_124 = arith.constant 1.000000e+00 : f32
    %862 = vector.broadcast %cst_124 : f32 to vector<2x32xf32>
    %863 = arith.subf %862, %856 : vector<2x32xf32>
    %864 = arith.mulf %863, %861 : vector<2x32xf32>
    %865 = arith.mulf %856, %806 : vector<2x32xf32>
    %866 = arith.addf %864, %865 : vector<2x32xf32>
    %867 = tpu.concatenate %839, %866 in 1 : vector<2x32xf32>, vector<2x32xf32> -> vector<2x64xf32>
    %cst_125 = arith.constant dense<0.000000e+00> : vector<2x192xf32>
    %868 = tpu.matmul %867, %500, %cst_125 {dimension_numbers = #tpu.dot_dimension_numbers<[1], [0], [0], [1], [0, 0, 1, 1], [], []>} : vector<2x64xf32>, vector<64x192xf32>, vector<2x192xf32> -> vector<2x192xf32>
    %869 = vector.broadcast %501 : vector<1x192xf32> to vector<2x192xf32>
    %870 = arith.addf %868, %869 : vector<2x192xf32>
    %871 = vector.extract_strided_slice %504 {offsets = [12, 0], sizes = [2, 96], strides = [1, 1]} : vector<16x192xf32> to vector<2x96xf32>
    %872 = vector.extract_strided_slice %504 {offsets = [2, 96], sizes = [2, 96], strides = [1, 1]} : vector<16x192xf32> to vector<2x96xf32>
    %873 = vector.extract_strided_slice %870 {offsets = [0, 0], sizes = [2, 96], strides = [1, 1]} : vector<2x192xf32> to vector<2x96xf32>
    %874 = vector.extract_strided_slice %871 {offsets = [0, 0], sizes = [2, 32], strides = [1, 1]} : vector<2x96xf32> to vector<2x32xf32>
    %875 = vector.extract_strided_slice %873 {offsets = [0, 0], sizes = [2, 32], strides = [1, 1]} : vector<2x96xf32> to vector<2x32xf32>
    %876 = arith.addf %874, %875 : vector<2x32xf32>
    %877 = arith.negf %876 : vector<2x32xf32>
    %878 = math.exp %877 : vector<2x32xf32>
    %cst_126 = arith.constant 1.000000e+00 : f32
    %879 = vector.broadcast %cst_126 : f32 to vector<2x32xf32>
    %880 = arith.addf %879, %878 : vector<2x32xf32>
    %881 = arith.divf %879, %880 : vector<2x32xf32>
    %882 = vector.extract_strided_slice %871 {offsets = [0, 32], sizes = [2, 32], strides = [1, 1]} : vector<2x96xf32> to vector<2x32xf32>
    %883 = vector.extract_strided_slice %873 {offsets = [0, 32], sizes = [2, 32], strides = [1, 1]} : vector<2x96xf32> to vector<2x32xf32>
    %884 = arith.addf %882, %883 : vector<2x32xf32>
    %885 = arith.negf %884 : vector<2x32xf32>
    %886 = math.exp %885 : vector<2x32xf32>
    %cst_127 = arith.constant 1.000000e+00 : f32
    %887 = vector.broadcast %cst_127 : f32 to vector<2x32xf32>
    %888 = arith.addf %887, %886 : vector<2x32xf32>
    %889 = arith.divf %887, %888 : vector<2x32xf32>
    %890 = vector.extract_strided_slice %871 {offsets = [0, 64], sizes = [2, 32], strides = [1, 1]} : vector<2x96xf32> to vector<2x32xf32>
    %891 = vector.extract_strided_slice %873 {offsets = [0, 64], sizes = [2, 32], strides = [1, 1]} : vector<2x96xf32> to vector<2x32xf32>
    %892 = arith.mulf %881, %891 : vector<2x32xf32>
    %893 = arith.addf %890, %892 : vector<2x32xf32>
    %894 = math.tanh %893 : vector<2x32xf32>
    %cst_128 = arith.constant 1.000000e+00 : f32
    %895 = vector.broadcast %cst_128 : f32 to vector<2x32xf32>
    %896 = arith.subf %895, %889 : vector<2x32xf32>
    %897 = arith.mulf %896, %894 : vector<2x32xf32>
    %898 = arith.mulf %889, %839 : vector<2x32xf32>
    %899 = arith.addf %897, %898 : vector<2x32xf32>
    %900 = vector.extract_strided_slice %870 {offsets = [0, 96], sizes = [2, 96], strides = [1, 1]} : vector<2x192xf32> to vector<2x96xf32>
    %901 = vector.extract_strided_slice %872 {offsets = [0, 0], sizes = [2, 32], strides = [1, 1]} : vector<2x96xf32> to vector<2x32xf32>
    %902 = vector.extract_strided_slice %900 {offsets = [0, 0], sizes = [2, 32], strides = [1, 1]} : vector<2x96xf32> to vector<2x32xf32>
    %903 = arith.addf %901, %902 : vector<2x32xf32>
    %904 = arith.negf %903 : vector<2x32xf32>
    %905 = math.exp %904 : vector<2x32xf32>
    %cst_129 = arith.constant 1.000000e+00 : f32
    %906 = vector.broadcast %cst_129 : f32 to vector<2x32xf32>
    %907 = arith.addf %906, %905 : vector<2x32xf32>
    %908 = arith.divf %906, %907 : vector<2x32xf32>
    %909 = vector.extract_strided_slice %872 {offsets = [0, 32], sizes = [2, 32], strides = [1, 1]} : vector<2x96xf32> to vector<2x32xf32>
    %910 = vector.extract_strided_slice %900 {offsets = [0, 32], sizes = [2, 32], strides = [1, 1]} : vector<2x96xf32> to vector<2x32xf32>
    %911 = arith.addf %909, %910 : vector<2x32xf32>
    %912 = arith.negf %911 : vector<2x32xf32>
    %913 = math.exp %912 : vector<2x32xf32>
    %cst_130 = arith.constant 1.000000e+00 : f32
    %914 = vector.broadcast %cst_130 : f32 to vector<2x32xf32>
    %915 = arith.addf %914, %913 : vector<2x32xf32>
    %916 = arith.divf %914, %915 : vector<2x32xf32>
    %917 = vector.extract_strided_slice %872 {offsets = [0, 64], sizes = [2, 32], strides = [1, 1]} : vector<2x96xf32> to vector<2x32xf32>
    %918 = vector.extract_strided_slice %900 {offsets = [0, 64], sizes = [2, 32], strides = [1, 1]} : vector<2x96xf32> to vector<2x32xf32>
    %919 = arith.mulf %908, %918 : vector<2x32xf32>
    %920 = arith.addf %917, %919 : vector<2x32xf32>
    %921 = math.tanh %920 : vector<2x32xf32>
    %cst_131 = arith.constant 1.000000e+00 : f32
    %922 = vector.broadcast %cst_131 : f32 to vector<2x32xf32>
    %923 = arith.subf %922, %916 : vector<2x32xf32>
    %924 = arith.mulf %923, %921 : vector<2x32xf32>
    %925 = arith.mulf %916, %866 : vector<2x32xf32>
    %926 = arith.addf %924, %925 : vector<2x32xf32>
    %927 = tpu.concatenate %899, %926 in 1 : vector<2x32xf32>, vector<2x32xf32> -> vector<2x64xf32>
    %cst_132 = arith.constant dense<0.000000e+00> : vector<2x192xf32>
    %928 = tpu.matmul %927, %500, %cst_132 {dimension_numbers = #tpu.dot_dimension_numbers<[1], [0], [0], [1], [0, 0, 1, 1], [], []>} : vector<2x64xf32>, vector<64x192xf32>, vector<2x192xf32> -> vector<2x192xf32>
    %929 = vector.broadcast %501 : vector<1x192xf32> to vector<2x192xf32>
    %930 = arith.addf %928, %929 : vector<2x192xf32>
    %931 = vector.extract_strided_slice %504 {offsets = [14, 0], sizes = [2, 96], strides = [1, 1]} : vector<16x192xf32> to vector<2x96xf32>
    %932 = vector.extract_strided_slice %504 {offsets = [0, 96], sizes = [2, 96], strides = [1, 1]} : vector<16x192xf32> to vector<2x96xf32>
    %933 = vector.extract_strided_slice %930 {offsets = [0, 0], sizes = [2, 96], strides = [1, 1]} : vector<2x192xf32> to vector<2x96xf32>
    %934 = vector.extract_strided_slice %931 {offsets = [0, 0], sizes = [2, 32], strides = [1, 1]} : vector<2x96xf32> to vector<2x32xf32>
    %935 = vector.extract_strided_slice %933 {offsets = [0, 0], sizes = [2, 32], strides = [1, 1]} : vector<2x96xf32> to vector<2x32xf32>
    %936 = arith.addf %934, %935 : vector<2x32xf32>
    %937 = arith.negf %936 : vector<2x32xf32>
    %938 = math.exp %937 : vector<2x32xf32>
    %cst_133 = arith.constant 1.000000e+00 : f32
    %939 = vector.broadcast %cst_133 : f32 to vector<2x32xf32>
    %940 = arith.addf %939, %938 : vector<2x32xf32>
    %941 = arith.divf %939, %940 : vector<2x32xf32>
    %942 = vector.extract_strided_slice %931 {offsets = [0, 32], sizes = [2, 32], strides = [1, 1]} : vector<2x96xf32> to vector<2x32xf32>
    %943 = vector.extract_strided_slice %933 {offsets = [0, 32], sizes = [2, 32], strides = [1, 1]} : vector<2x96xf32> to vector<2x32xf32>
    %944 = arith.addf %942, %943 : vector<2x32xf32>
    %945 = arith.negf %944 : vector<2x32xf32>
    %946 = math.exp %945 : vector<2x32xf32>
    %cst_134 = arith.constant 1.000000e+00 : f32
    %947 = vector.broadcast %cst_134 : f32 to vector<2x32xf32>
    %948 = arith.addf %947, %946 : vector<2x32xf32>
    %949 = arith.divf %947, %948 : vector<2x32xf32>
    %950 = vector.extract_strided_slice %931 {offsets = [0, 64], sizes = [2, 32], strides = [1, 1]} : vector<2x96xf32> to vector<2x32xf32>
    %951 = vector.extract_strided_slice %933 {offsets = [0, 64], sizes = [2, 32], strides = [1, 1]} : vector<2x96xf32> to vector<2x32xf32>
    %952 = arith.mulf %941, %951 : vector<2x32xf32>
    %953 = arith.addf %950, %952 : vector<2x32xf32>
    %954 = math.tanh %953 : vector<2x32xf32>
    %cst_135 = arith.constant 1.000000e+00 : f32
    %955 = vector.broadcast %cst_135 : f32 to vector<2x32xf32>
    %956 = arith.subf %955, %949 : vector<2x32xf32>
    %957 = arith.mulf %956, %954 : vector<2x32xf32>
    %958 = arith.mulf %949, %899 : vector<2x32xf32>
    %959 = arith.addf %957, %958 : vector<2x32xf32>
    %960 = vector.extract_strided_slice %930 {offsets = [0, 96], sizes = [2, 96], strides = [1, 1]} : vector<2x192xf32> to vector<2x96xf32>
    %961 = vector.extract_strided_slice %932 {offsets = [0, 0], sizes = [2, 32], strides = [1, 1]} : vector<2x96xf32> to vector<2x32xf32>
    %962 = vector.extract_strided_slice %960 {offsets = [0, 0], sizes = [2, 32], strides = [1, 1]} : vector<2x96xf32> to vector<2x32xf32>
    %963 = arith.addf %961, %962 : vector<2x32xf32>
    %964 = arith.negf %963 : vector<2x32xf32>
    %965 = math.exp %964 : vector<2x32xf32>
    %cst_136 = arith.constant 1.000000e+00 : f32
    %966 = vector.broadcast %cst_136 : f32 to vector<2x32xf32>
    %967 = arith.addf %966, %965 : vector<2x32xf32>
    %968 = arith.divf %966, %967 : vector<2x32xf32>
    %969 = vector.extract_strided_slice %932 {offsets = [0, 32], sizes = [2, 32], strides = [1, 1]} : vector<2x96xf32> to vector<2x32xf32>
    %970 = vector.extract_strided_slice %960 {offsets = [0, 32], sizes = [2, 32], strides = [1, 1]} : vector<2x96xf32> to vector<2x32xf32>
    %971 = arith.addf %969, %970 : vector<2x32xf32>
    %972 = arith.negf %971 : vector<2x32xf32>
    %973 = math.exp %972 : vector<2x32xf32>
    %cst_137 = arith.constant 1.000000e+00 : f32
    %974 = vector.broadcast %cst_137 : f32 to vector<2x32xf32>
    %975 = arith.addf %974, %973 : vector<2x32xf32>
    %976 = arith.divf %974, %975 : vector<2x32xf32>
    %977 = vector.extract_strided_slice %932 {offsets = [0, 64], sizes = [2, 32], strides = [1, 1]} : vector<2x96xf32> to vector<2x32xf32>
    %978 = vector.extract_strided_slice %960 {offsets = [0, 64], sizes = [2, 32], strides = [1, 1]} : vector<2x96xf32> to vector<2x32xf32>
    %979 = arith.mulf %968, %978 : vector<2x32xf32>
    %980 = arith.addf %977, %979 : vector<2x32xf32>
    %981 = math.tanh %980 : vector<2x32xf32>
    %cst_138 = arith.constant 1.000000e+00 : f32
    %982 = vector.broadcast %cst_138 : f32 to vector<2x32xf32>
    %983 = arith.subf %982, %976 : vector<2x32xf32>
    %984 = arith.mulf %983, %981 : vector<2x32xf32>
    %985 = arith.mulf %976, %926 : vector<2x32xf32>
    %986 = arith.addf %984, %985 : vector<2x32xf32>
    %987 = tpu.concatenate %539, %599, %659, %719, %779, %839, %899, %959 in 0 : vector<2x32xf32>, vector<2x32xf32>, vector<2x32xf32>, vector<2x32xf32>, vector<2x32xf32>, vector<2x32xf32>, vector<2x32xf32>, vector<2x32xf32> -> vector<16x32xf32>
    %988 = tpu.concatenate %986, %926, %866, %806, %746, %686, %626, %566 in 0 : vector<2x32xf32>, vector<2x32xf32>, vector<2x32xf32>, vector<2x32xf32>, vector<2x32xf32>, vector<2x32xf32>, vector<2x32xf32>, vector<2x32xf32> -> vector<16x32xf32>
    %989 = tpu.concatenate %987, %988 in 1 : vector<16x32xf32>, vector<16x32xf32> -> vector<16x64xf32>
    %c0_139 = arith.constant 0 : index
    %c0_140 = arith.constant 0 : index
    %990 = vector.load %arg11[%c0_139, %c0_140] : memref<64x128xf32, #tpu.memory_space<vmem>>, vector<64x128xf32>
    %cst_141 = arith.constant dense<0.000000e+00> : vector<16x128xf32>
    %991 = tpu.matmul %989, %990, %cst_141 {dimension_numbers = #tpu.dot_dimension_numbers<[1], [0], [0], [1], [0, 0, 1, 1], [], []>} : vector<16x64xf32>, vector<64x128xf32>, vector<16x128xf32> -> vector<16x128xf32>
    %c0_142 = arith.constant 0 : index
    %c0_143 = arith.constant 0 : index
    %992 = vector.load %arg12[%c0_142, %c0_143] : memref<1x128xf32, #tpu.memory_space<vmem>>, vector<1x128xf32>
    %993 = vector.broadcast %992 : vector<1x128xf32> to vector<16x128xf32>
    %994 = arith.addf %991, %993 : vector<16x128xf32>
    %c0_144 = arith.constant 0 : index
    %c0_145 = arith.constant 0 : index
    %995 = vector.load %arg13[%c0_144, %c0_145] : memref<16x128xf32, #tpu.memory_space<vmem>>, vector<16x128xf32>
    tpu.vector_store %arg13[%c0_144, %c0_145], %994 {strides = array<i32>} : memref<16x128xf32, #tpu.memory_space<vmem>>, vector<16x128xf32>,
    return
  }
}

</mosaic_0001>

<bundles_post_ra>
// kernel: captcha_forward.3
= control target key start
LH: loop header
LB: loop body
LE: loop exit
PB: predicated region body
PF: predicated region fallthrough
CT: control target
= control target key end

     0   :  { %s4861_s21 = smov 0   ;;  %s6289_s0 = inlined_call_operand.vmem [shape: f32[1152,32], index: 0, kind: input, shape index: {}]   ;;  %s6290_s1 = inlined_call_operand.vmem [shape: f32[1152,32], index: 1, kind: input, shape index: {}]   ;;  %s6291_s2 = inlined_call_operand.vmem [shape: f32[1152,32], index: 2, kind: input, shape index: {}]   ;;  %s6292_s3 = inlined_call_operand.vmem [shape: f32[1152,32], index: 3, kind: input, shape index: {}]   ;;  %s6293_s4 = inlined_call_operand.vmem [shape: f32[32,128], index: 4, kind: input, shape index: {}]   ;;  %s6294_s5 = inlined_call_operand.vmem [shape: f32[1,128], index: 5, kind: input, shape index: {}]   ;;  %s6295_s6 = inlined_call_operand.vmem [shape: f32[1152,128], index: 6, kind: output, shape index: {}]  }
   0x1 LB: > { %s3709_s22 = sadd.s32 4294967295, %s4824_s21   ;;  %p3713_p0 = scmp.ge.s32.totalorder %s4824_s21, 1  ;;  %s4824_s21 = sphi %s4861_s21, %s16_s21  }
   0x2   : > { %p246_p1 = scmp.lt.s32.totalorder %s4824_s21, 3 }
   0x4   : > { %p247_p2 = pnand %p3713_p0, %p246_p1 }
   0x6   : > { %250 = sbr.rel (%p247_p2) target bundleno = 530 (0x212), region = 44 }
   0xd   : > { %v321_v0 = vld [vmem:[%s6293_s4] sm:$0xff]  ;;  %v322_v1 = vld [vmem:[%s6293_s4 + $0x8] sm:$0xff]  ;;  %v323_v2 = vld [vmem:[%s6293_s4 + $0x10] sm:$0xff]  ;;  %s291_s29 = smul.u32 72, %s3709_s22  ;;  %vm397_vm0 = vcmask 261120  }
   0xe   : > { %v4778_v3 = vpack.c.bf16 %v322_v1, %v321_v0  ;;  %v324_v4 = vld [vmem:[%s6293_s4 + $0x18] sm:$0xff] }
   0xf   : > { %v4782_v5 = vpack.c.bf16 %v324_v4, %v323_v2  ;;  %p292_p3 = scmp.lt.s32.totalorder %s291_s29, 143 }
  0x10   : > { %4779 = vmatprep.subr.bf16.mxu0 %v4778_v3  ;;  %4787 = vmatprep.subr.bf16.mxu1 %v4778_v3 }
  0x11   : > { %4781 = vmatpush3.bf16.msra.mxu0 %v4778_v3  ;;  %4789 = vmatpush3.bf16.msra.mxu1 %v4778_v3  ;;  %s6654_s29 = smov (!%p292_p3, %s291_s29), 143 }
  0x12   : > { %4783 = vmatprep.subr.bf16.mxu0 %v4782_v5  ;;  %4791 = vmatprep.subr.bf16.mxu1 %v4782_v5  ;;  %s4881_s8 = sshll.u32 %s6654_s29, 3 }
  0x13   : > { %s4887_s11 = scalar_lea.vmem %s6289_s0, %s4881_s8  ;;  %s4893_s14 = scalar_lea.vmem %s6290_s1, %s4881_s8 }
  0x14   : > { %v325_v6 = vld [vmem:[%s4887_s11] sm:$0xff]  ;;  %v326_v8 = vld [vmem:[%s4887_s11 + $0x8] sm:$0xff]  ;;  %v327_v10 = vld [vmem:[%s4887_s11 + $0x10] sm:$0xff]  ;;  %s5179_s17 = scalar_lea.vmem %s6291_s2, %s4881_s8  ;;  %s5185_s20 = scalar_lea.vmem %s6292_s3, %s4881_s8 }
  0x15   : > { %4785 = vmatpush3.bf16.msra.mxu0 %v4782_v5  ;;  %4793 = vmatpush3.bf16.msra.mxu1 %v4782_v5  ;;  %v1039_v7 = vld [vmem:[%s4893_s14] sm:$0xff]  ;;  %v1040_v9 = vld [vmem:[%s4893_s14 + $0x8] sm:$0xff]  ;;  %v1041_v11 = vld [vmem:[%s4893_s14 + $0x10] sm:$0xff]  ;;  %s5931_s26 = scalar_lea.vmem %s6295_s6, %s4881_s8 }
  0x16   : > { %4322 = vmatprep.mubr.msk.f32.mxu0 %vm397_vm0, %v325_v6  ;;  %4438 = vmatprep.mubr.msk.f32.mxu1 %vm397_vm0, %v1039_v7  ;;  %v328_v12 = vld [vmem:[%s4887_s11 + $0x18] sm:$0xff]  ;;  %v329_v14 = vld [vmem:[%s4887_s11 + $0x20] sm:$0xff]  ;;  %v330_v16 = vld [vmem:[%s4887_s11 + $0x28] sm:$0xff] }
  0x17   : > { %4795 = vmatprep.subr.bf16.mxu0 %v4778_v3  ;;  %4803 = vmatprep.subr.bf16.mxu1 %v4778_v3  ;;  %v1042_v13 = vld [vmem:[%s4893_s14 + $0x18] sm:$0xff]  ;;  %v1043_v15 = vld [vmem:[%s4893_s14 + $0x20] sm:$0xff]  ;;  %v1044_v17 = vld [vmem:[%s4893_s14 + $0x28] sm:$0xff] }
  0x18   : > { %4323 = vmatmul.mubr.msk.f32.vlgmr.msra.gmra.mrb[0].mxu0 %vm397_vm0, %v326_v8  ;;  %4439 = vmatmul.mubr.msk.f32.vlgmr.msra.gmra.mrb[0].mxu1 %vm397_vm0, %v1040_v9  ;;  %v331_v18 = vld [vmem:[%s4887_s11 + $0x30] sm:$0xff]  ;;  %v332_v20 = vld [vmem:[%s4887_s11 + $0x38] sm:$0xff]  ;;  %v333_v22 = vld [vmem:[%s4887_s11 + $0x40] sm:$0xff] }
  0x19   : > { %4797 = vmatpush3.bf16.msra.mxu0 %v4778_v3  ;;  %4805 = vmatpush3.bf16.msra.mxu1 %v4778_v3  ;;  %v1045_v19 = vld [vmem:[%s4893_s14 + $0x30] sm:$0xff]  ;;  %v1046_v21 = vld [vmem:[%s4893_s14 + $0x38] sm:$0xff]  ;;  %v1047_v23 = vld [vmem:[%s4893_s14 + $0x40] sm:$0xff] }
  0x1a   : > { %4325 = vmatprep.mubr.msk.f32.mxu0 %vm397_vm0, %v327_v10  ;;  %4441 = vmatprep.mubr.msk.f32.mxu1 %vm397_vm0, %v1041_v11  ;;  %v334_v24 = vld [vmem:[%s4887_s11 + $0x48] sm:$0xff]  ;;  %v335_v26 = vld [vmem:[%s4887_s11 + $0x50] sm:$0xff]  ;;  %v336_v28 = vld [vmem:[%s4887_s11 + $0x58] sm:$0xff] }
  0x1b   : > { %4799 = vmatprep.subr.bf16.mxu0 %v4782_v5  ;;  %4807 = vmatprep.subr.bf16.mxu1 %v4782_v5  ;;  %v1048_v25 = vld [vmem:[%s4893_s14 + $0x48] sm:$0xff]  ;;  %v1049_v27 = vld [vmem:[%s4893_s14 + $0x50] sm:$0xff]  ;;  %v1050_v29 = vld [vmem:[%s4893_s14 + $0x58] sm:$0xff] }
  0x1c   : > { %4326 = vmatmul.mubr.msk.f32.gmra.mrb[2].mxu0 %vm397_vm0, %v328_v12  ;;  %4442 = vmatmul.mubr.msk.f32.gmra.mrb[2].mxu1 %vm397_vm0, %v1042_v13  ;;  %v337_v30 = vld [vmem:[%s4887_s11 + $0x60] sm:$0xff]  ;;  %v338_v32 = vld [vmem:[%s4887_s11 + $0x68] sm:$0xff]  ;;  %v339_v34 = vld [vmem:[%s4887_s11 + $0x70] sm:$0xff] }
  0x1d   : > { %4328 = vmatprep.mubr.msk.f32.mxu0 %vm397_vm0, %v329_v14  ;;  %4444 = vmatprep.mubr.msk.f32.mxu1 %vm397_vm0, %v1043_v15  ;;  %v1051_v31 = vld [vmem:[%s4893_s14 + $0x60] sm:$0xff]  ;;  %v1052_v33 = vld [vmem:[%s4893_s14 + $0x68] sm:$0xff]  ;;  %v1053_v35 = vld [vmem:[%s4893_s14 + $0x70] sm:$0xff] }
  0x1e   : > { %4801 = vmatpush3.bf16.msra.mxu0 %v4782_v5  ;;  %4809 = vmatpush3.bf16.msra.mxu1 %v4782_v5  ;;  %v340_v36 = vld [vmem:[%s4887_s11 + $0x78] sm:$0xff]  ;;  %v341_v38 = vld [vmem:[%s4887_s11 + $0x80] sm:$0xff]  ;;  %v342_v40 = vld [vmem:[%s4887_s11 + $0x88] sm:$0xff] }
  0x1f   : > { %v1054_v37 = vld [vmem:[%s4893_s14 + $0x78] sm:$0xff]  ;;  %v1055_v39 = vld [vmem:[%s4893_s14 + $0x80] sm:$0xff]  ;;  %v1056_v41 = vld [vmem:[%s4893_s14 + $0x88] sm:$0xff] }
  0x20   : > { %4329 = vmatmul.mubr.msk.f32.gmra.mrb[4].mxu0 %vm397_vm0, %v330_v16  ;;  %4445 = vmatmul.mubr.msk.f32.gmra.mrb[4].mxu1 %vm397_vm0, %v1044_v17  ;;  %v343_v42 = vld [vmem:[%s4887_s11 + $0x90] sm:$0xff]  ;;  %v344_v44 = vld [vmem:[%s4887_s11 + $0x98] sm:$0xff]  ;;  %v345_v46 = vld [vmem:[%s4887_s11 + $0xa0] sm:$0xff] }
  0x21   : > { %4331 = vmatprep.mubr.msk.f32.mxu0 %vm397_vm0, %v331_v18  ;;  %4447 = vmatprep.mubr.msk.f32.mxu1 %vm397_vm0, %v1045_v19  ;;  %v1057_v43 = vld [vmem:[%s4893_s14 + $0x90] sm:$0xff]  ;;  %v1058_v45 = vld [vmem:[%s4893_s14 + $0x98] sm:$0xff]  ;;  %v1059_v47 = vld [vmem:[%s4893_s14 + $0xa0] sm:$0xff] }
  0x22   : > { %v346_v48 = vld [vmem:[%s4887_s11 + $0xa8] sm:$0xff]  ;;  %v347_v50 = vld [vmem:[%s4887_s11 + $0xb0] sm:$0xff]  ;;  %v348_v52 = vld [vmem:[%s4887_s11 + $0xb8] sm:$0xff] }
  0x23   : > { %v1060_v49 = vld [vmem:[%s4893_s14 + $0xa8] sm:$0xff]  ;;  %v1061_v51 = vld [vmem:[%s4893_s14 + $0xb0] sm:$0xff]  ;;  %v1062_v53 = vld [vmem:[%s4893_s14 + $0xb8] sm:$0xff] }
  0x24   : > { %4332 = vmatmul.mubr.msk.f32.gmra.mrb[6].mxu0 %vm397_vm0, %v332_v20  ;;  %4448 = vmatmul.mubr.msk.f32.gmra.mrb[6].mxu1 %vm397_vm0, %v1046_v21  ;;  %v349_v54 = vld [vmem:[%s4887_s11 + $0xc0] sm:$0xff]  ;;  %v350_v56 = vld [vmem:[%s4887_s11 + $0xc8] sm:$0xff]  ;;  %v351_v58 = vld [vmem:[%s4887_s11 + $0xd0] sm:$0xff] }
  0x25   : > { %4334 = vmatprep.mubr.msk.f32.mxu0 %vm397_vm0, %v333_v22  ;;  %4450 = vmatprep.mubr.msk.f32.mxu1 %vm397_vm0, %v1047_v23  ;;  %v1063_v55 = vld [vmem:[%s4893_s14 + $0xc0] sm:$0xff]  ;;  %v1064_v57 = vld [vmem:[%s4893_s14 + $0xc8] sm:$0xff]  ;;  %v1065_v59 = vld [vmem:[%s4893_s14 + $0xd0] sm:$0xff] }
  0x26   : > { %v352_v60 = vld [vmem:[%s4887_s11 + $0xd8] sm:$0xff]  ;;  %v353_v62 = vld [vmem:[%s4887_s11 + $0xe0] sm:$0xff]  ;;  %v354_v0 = vld [vmem:[%s4887_s11 + $0xe8] sm:$0xff] }
  0x27   : > { %v1066_v61 = vld [vmem:[%s4893_s14 + $0xd8] sm:$0xff]  ;;  %v1067_v63 = vld [vmem:[%s4893_s14 + $0xe0] sm:$0xff]  ;;  %v1068_v1 = vld [vmem:[%s4893_s14 + $0xe8] sm:$0xff] }
  0x28   : > { %4335 = vmatmul.mubr.msk.f32.gmra.mrb[8].mxu0 %vm397_vm0, %v334_v24  ;;  %4451 = vmatmul.mubr.msk.f32.gmra.mrb[8].mxu1 %vm397_vm0, %v1048_v25  ;;  %v355_v2 = vld [vmem:[%s4887_s11 + $0xf0] sm:$0xff]  ;;  %v356_v4 = vld [vmem:[%s4887_s11 + $0xf8] sm:$0xff]  ;;  %v357_v6 = vld [vmem:[%s4887_s11 + $0x100] sm:$0xff] }
  0x29   : > { %4337 = vmatprep.mubr.msk.f32.mxu0 %vm397_vm0, %v335_v26  ;;  %4453 = vmatprep.mubr.msk.f32.mxu1 %vm397_vm0, %v1049_v27  ;;  %v1069_v3 = vld [vmem:[%s4893_s14 + $0xf0] sm:$0xff]  ;;  %v1070_v5 = vld [vmem:[%s4893_s14 + $0xf8] sm:$0xff]  ;;  %v1071_v7 = vld [vmem:[%s4893_s14 + $0x100] sm:$0xff] }
  0x2a   : > { %v358_v8 = vld [vmem:[%s4887_s11 + $0x108] sm:$0xff]  ;;  %v359_v10 = vld [vmem:[%s4887_s11 + $0x110] sm:$0xff]  ;;  %v360_v12 = vld [vmem:[%s4887_s11 + $0x118] sm:$0xff] }
  0x2b   : > { %v1072_v9 = vld [vmem:[%s4893_s14 + $0x108] sm:$0xff]  ;;  %v1073_v11 = vld [vmem:[%s4893_s14 + $0x110] sm:$0xff]  ;;  %v1074_v13 = vld [vmem:[%s4893_s14 + $0x118] sm:$0xff] }
  0x2c   : > { %4338 = vmatmul.mubr.msk.f32.gmra.mrb[10].mxu0 %vm397_vm0, %v336_v28  ;;  %4454 = vmatmul.mubr.msk.f32.gmra.mrb[10].mxu1 %vm397_vm0, %v1050_v29  ;;  %v361_v14 = vld [vmem:[%s4887_s11 + $0x120] sm:$0xff]  ;;  %v362_v16 = vld [vmem:[%s4887_s11 + $0x128] sm:$0xff]  ;;  %v363_v18 = vld [vmem:[%s4887_s11 + $0x130] sm:$0xff] }
  0x2d   : > { %4340 = vmatprep.mubr.msk.f32.mxu0 %vm397_vm0, %v337_v30  ;;  %4456 = vmatprep.mubr.msk.f32.mxu1 %vm397_vm0, %v1051_v31  ;;  %v1075_v15 = vld [vmem:[%s4893_s14 + $0x120] sm:$0xff]  ;;  %v1076_v17 = vld [vmem:[%s4893_s14 + $0x128] sm:$0xff]  ;;  %v1077_v19 = vld [vmem:[%s4893_s14 + $0x130] sm:$0xff] }
  0x2e   : > { %v364_v20 = vld [vmem:[%s4887_s11 + $0x138] sm:$0xff]  ;;  %v365_v22 = vld [vmem:[%s4887_s11 + $0x140] sm:$0xff]  ;;  %v366_v24 = vld [vmem:[%s4887_s11 + $0x148] sm:$0xff] }
  0x2f   : > { %v1078_v21 = vld [vmem:[%s4893_s14 + $0x138] sm:$0xff]  ;;  %v1079_v23 = vld [vmem:[%s4893_s14 + $0x140] sm:$0xff]  ;;  %v1080_v25 = vld [vmem:[%s4893_s14 + $0x148] sm:$0xff] }
  0x30   : > { %4341 = vmatmul.mubr.msk.f32.gmra.mrb[12].mxu0 %vm397_vm0, %v338_v32  ;;  %4457 = vmatmul.mubr.msk.f32.gmra.mrb[12].mxu1 %vm397_vm0, %v1052_v33  ;;  %v367_v26 = vld [vmem:[%s4887_s11 + $0x150] sm:$0xff]  ;;  %v368_v28 = vld [vmem:[%s4887_s11 + $0x158] sm:$0xff]  ;;  %v369_v30 = vld [vmem:[%s4887_s11 + $0x160] sm:$0xff] }
  0x31   : > { %4343 = vmatprep.mubr.msk.f32.mxu0 %vm397_vm0, %v339_v34  ;;  %4459 = vmatprep.mubr.msk.f32.mxu1 %vm397_vm0, %v1053_v35  ;;  %v1081_v27 = vld [vmem:[%s4893_s14 + $0x150] sm:$0xff]  ;;  %v1082_v29 = vld [vmem:[%s4893_s14 + $0x158] sm:$0xff]  ;;  %v1083_v31 = vld [vmem:[%s4893_s14 + $0x160] sm:$0xff] }
  0x32   : > { %v370_v32 = vld [vmem:[%s4887_s11 + $0x168] sm:$0xff]  ;;  %v371_v34 = vld [vmem:[%s4887_s11 + $0x170] sm:$0xff] }
  0x33   : > { %v1084_v33 = vld [vmem:[%s4893_s14 + $0x168] sm:$0xff]  ;;  %v1085_v35 = vld [vmem:[%s4893_s14 + $0x170] sm:$0xff] }
  0x34   : > { %4344 = vmatmul.mubr.msk.f32.gmra.mrb[14].mxu0 %vm397_vm0, %v340_v36  ;;  %4460 = vmatmul.mubr.msk.f32.gmra.mrb[14].mxu1 %vm397_vm0, %v1054_v37  ;;  %v372_v36 = vld [vmem:[%s4887_s11 + $0x178] sm:$0xff] }
  0x35   : > { %4346 = vmatprep.mubr.msk.f32.mxu0 %vm397_vm0, %v341_v38  ;;  %4462 = vmatprep.mubr.msk.f32.mxu1 %vm397_vm0, %v1055_v39  ;;  %v1086_v37 = vld [vmem:[%s4893_s14 + $0x178] sm:$0xff]  ;;  %v373_v38 = vld [vmem:[%s4887_s11 + $0x180] sm:$0xff] }
  0x36   : > { %v1087_v39 = vld [vmem:[%s4893_s14 + $0x180] sm:$0xff] }
  0x38   : > { %4347 = vmatmul.mubr.msk.f32.gmra.mrb[16].mxu0 %vm397_vm0, %v342_v40  ;;  %4463 = vmatmul.mubr.msk.f32.gmra.mrb[16].mxu1 %vm397_vm0, %v1056_v41  ;;  %v374_v40 = vld [vmem:[%s4887_s11 + $0x188] sm:$0xff] }
  0x39   : > { %4349 = vmatprep.mubr.msk.f32.mxu0 %vm397_vm0, %v343_v42  ;;  %4465 = vmatprep.mubr.msk.f32.mxu1 %vm397_vm0, %v1057_v43  ;;  %v1088_v41 = vld [vmem:[%s4893_s14 + $0x188] sm:$0xff]  ;;  %v375_v42 = vld [vmem:[%s4887_s11 + $0x190] sm:$0xff] }
  0x3a   : > { %v1089_v43 = vld [vmem:[%s4893_s14 + $0x190] sm:$0xff] }
  0x3c   : > { %4350 = vmatmul.mubr.msk.f32.gmra.mrb[18].mxu0 %vm397_vm0, %v344_v44  ;;  %4466 = vmatmul.mubr.msk.f32.gmra.mrb[18].mxu1 %vm397_vm0, %v1058_v45  ;;  %v376_v44 = vld [vmem:[%s4887_s11 + $0x198] sm:$0xff] }
  0x3d   : > { %4352 = vmatprep.mubr.msk.f32.mxu0 %vm397_vm0, %v345_v46  ;;  %4468 = vmatprep.mubr.msk.f32.mxu1 %vm397_vm0, %v1059_v47  ;;  %v1090_v45 = vld [vmem:[%s4893_s14 + $0x198] sm:$0xff]  ;;  %v377_v46 = vld [vmem:[%s4887_s11 + $0x1a0] sm:$0xff] }
  0x3e   : > { %v1091_v47 = vld [vmem:[%s4893_s14 + $0x1a0] sm:$0xff] }
  0x40   : > { %4353 = vmatmul.mubr.msk.f32.gmra.mrb[20].mxu0 %vm397_vm0, %v346_v48  ;;  %4469 = vmatmul.mubr.msk.f32.gmra.mrb[20].mxu1 %vm397_vm0, %v1060_v49  ;;  %v378_v48 = vld [vmem:[%s4887_s11 + $0x1a8] sm:$0xff] }
  0x41   : > { %4355 = vmatprep.mubr.msk.f32.mxu0 %vm397_vm0, %v347_v50  ;;  %4471 = vmatprep.mubr.msk.f32.mxu1 %vm397_vm0, %v1061_v51  ;;  %v1092_v49 = vld [vmem:[%s4893_s14 + $0x1a8] sm:$0xff]  ;;  %v379_v50 = vld [vmem:[%s4887_s11 + $0x1b0] sm:$0xff] }
  0x42   : > { %v1093_v51 = vld [vmem:[%s4893_s14 + $0x1b0] sm:$0xff] }
  0x44   : > { %4356 = vmatmul.mubr.msk.f32.gmra.mrb[22].mxu0 %vm397_vm0, %v348_v52  ;;  %4472 = vmatmul.mubr.msk.f32.gmra.mrb[22].mxu1 %vm397_vm0, %v1062_v53  ;;  %v380_v52 = vld [vmem:[%s4887_s11 + $0x1b8] sm:$0xff] }
  0x45   : > { %4358 = vmatprep.mubr.msk.f32.mxu0 %vm397_vm0, %v349_v54  ;;  %4474 = vmatprep.mubr.msk.f32.mxu1 %vm397_vm0, %v1063_v55  ;;  %v1094_v53 = vld [vmem:[%s4893_s14 + $0x1b8] sm:$0xff]  ;;  %v381_v54 = vld [vmem:[%s4887_s11 + $0x1c0] sm:$0xff] }
  0x46   : > { %v1095_v55 = vld [vmem:[%s4893_s14 + $0x1c0] sm:$0xff] }
  0x48   : > { %4359 = vmatmul.mubr.msk.f32.gmra.mrb[24].mxu0 %vm397_vm0, %v350_v56  ;;  %4475 = vmatmul.mubr.msk.f32.gmra.mrb[24].mxu1 %vm397_vm0, %v1064_v57  ;;  %v382_v56 = vld [vmem:[%s4887_s11 + $0x1c8] sm:$0xff] }
  0x49   : > { %4361 = vmatprep.mubr.msk.f32.mxu0 %vm397_vm0, %v351_v58  ;;  %4477 = vmatprep.mubr.msk.f32.mxu1 %vm397_vm0, %v1065_v59  ;;  %v1096_v57 = vld [vmem:[%s4893_s14 + $0x1c8] sm:$0xff]  ;;  %v383_v58 = vld [vmem:[%s4887_s11 + $0x1d0] sm:$0xff] }
  0x4a   : > { %v1097_v59 = vld [vmem:[%s4893_s14 + $0x1d0] sm:$0xff] }
  0x4c   : > { %4362 = vmatmul.mubr.msk.f32.gmra.mrb[26].mxu0 %vm397_vm0, %v352_v60  ;;  %4478 = vmatmul.mubr.msk.f32.gmra.mrb[26].mxu1 %vm397_vm0, %v1066_v61  ;;  %v384_v60 = vld [vmem:[%s4887_s11 + $0x1d8] sm:$0xff] }
  0x4d   : > { %4364 = vmatprep.mubr.msk.f32.mxu0 %vm397_vm0, %v353_v62  ;;  %4480 = vmatprep.mubr.msk.f32.mxu1 %vm397_vm0, %v1067_v63  ;;  %v1098_v61 = vld [vmem:[%s4893_s14 + $0x1d8] sm:$0xff]  ;;  %v385_v62 = vld [vmem:[%s4887_s11 + $0x1e0] sm:$0xff] }
  0x4e   : > { %v1099_v63 = vld [vmem:[%s4893_s14 + $0x1e0] sm:$0xff] }
  0x50   : > { %4365 = vmatmul.mubr.msk.f32.gmra.mrb[28].mxu0 %vm397_vm0, %v354_v0  ;;  %4481 = vmatmul.mubr.msk.f32.gmra.mrb[28].mxu1 %vm397_vm0, %v1068_v1  ;;  %v386_v0 = vld [vmem:[%s4887_s11 + $0x1e8] sm:$0xff] }
  0x51   : > { %4367 = vmatprep.mubr.msk.f32.mxu0 %vm397_vm0, %v355_v2  ;;  %4483 = vmatprep.mubr.msk.f32.mxu1 %vm397_vm0, %v1069_v3  ;;  %v1100_v1 = vld [vmem:[%s4893_s14 + $0x1e8] sm:$0xff]  ;;  %v387_v2 = vld [vmem:[%s4887_s11 + $0x1f0] sm:$0xff] }
  0x52   : > { %v1101_v3 = vld [vmem:[%s4893_s14 + $0x1f0] sm:$0xff] }
  0x54   : > { %4368 = vmatmul.mubr.msk.f32.gmra.mrb[30].mxu0 %vm397_vm0, %v356_v4  ;;  %4484 = vmatmul.mubr.msk.f32.gmra.mrb[30].mxu1 %vm397_vm0, %v1070_v5  ;;  %v388_v4 = vld [vmem:[%s4887_s11 + $0x1f8] sm:$0xff] }
  0x55   : > { %4370 = vmatprep.mubr.msk.f32.mxu0 %vm397_vm0, %v357_v6  ;;  %4486 = vmatprep.mubr.msk.f32.mxu1 %vm397_vm0, %v1071_v7  ;;  %v1102_v5 = vld [vmem:[%s4893_s14 + $0x1f8] sm:$0xff]  ;;  %v389_v6 = vld [vmem:[%s4887_s11 + $0x200] sm:$0xff] }
  0x56   : > { %v1103_v7 = vld [vmem:[%s4893_s14 + $0x200] sm:$0xff] }
  0x58   : > { %4371 = vmatmul.mubr.msk.f32.gmra.mrb[32].mxu0 %vm397_vm0, %v358_v8  ;;  %4487 = vmatmul.mubr.msk.f32.gmra.mrb[32].mxu1 %vm397_vm0, %v1072_v9  ;;  %v390_v8 = vld [vmem:[%s4887_s11 + $0x208] sm:$0xff] }
  0x59   : > { %4373 = vmatprep.mubr.msk.f32.mxu0 %vm397_vm0, %v359_v10  ;;  %4489 = vmatprep.mubr.msk.f32.mxu1 %vm397_vm0, %v1073_v11  ;;  %v1104_v9 = vld [vmem:[%s4893_s14 + $0x208] sm:$0xff]  ;;  %v391_v10 = vld [vmem:[%s4887_s11 + $0x210] sm:$0xff] }
  0x5a   : > { %v1105_v11 = vld [vmem:[%s4893_s14 + $0x210] sm:$0xff] }
  0x5c   : > { %4374 = vmatmul.mubr.msk.f32.gmra.mrb[34].mxu0 %vm397_vm0, %v360_v12  ;;  %4490 = vmatmul.mubr.msk.f32.gmra.mrb[34].mxu1 %vm397_vm0, %v1074_v13  ;;  %v392_v12 = vld [vmem:[%s4887_s11 + $0x218] sm:$0xff] }
  0x5d   : > { %4376 = vmatprep.mubr.msk.f32.mxu0 %vm397_vm0, %v361_v14  ;;  %4492 = vmatprep.mubr.msk.f32.mxu1 %vm397_vm0, %v1075_v15  ;;  %v1106_v13 = vld [vmem:[%s4893_s14 + $0x218] sm:$0xff]  ;;  %v393_v14 = vld [vmem:[%s4887_s11 + $0x220] sm:$0xff] }
  0x5e   : > { %v1107_v15 = vld [vmem:[%s4893_s14 + $0x220] sm:$0xff] }
  0x60   : > { %4377 = vmatmul.mubr.msk.f32.gmra.mrb[36].mxu0 %vm397_vm0, %v362_v16  ;;  %4493 = vmatmul.mubr.msk.f32.gmra.mrb[36].mxu1 %vm397_vm0, %v1076_v17  ;;  %v394_v16 = vld [vmem:[%s4887_s11 + $0x228] sm:$0xff] }
  0x61   : > { %4379 = vmatprep.mubr.msk.f32.mxu0 %vm397_vm0, %v363_v18  ;;  %4495 = vmatprep.mubr.msk.f32.mxu1 %vm397_vm0, %v1077_v19  ;;  %v1108_v17 = vld [vmem:[%s4893_s14 + $0x228] sm:$0xff]  ;;  %v395_v18 = vld [vmem:[%s4887_s11 + $0x230] sm:$0xff] }
  0x62   : > { %v1109_v19 = vld [vmem:[%s4893_s14 + $0x230] sm:$0xff] }
  0x64   : > { %4380 = vmatmul.mubr.msk.f32.gmra.mrb[38].mxu0 %vm397_vm0, %v364_v20  ;;  %4496 = vmatmul.mubr.msk.f32.gmra.mrb[38].mxu1 %vm397_vm0, %v1078_v21  ;;  %v396_v20 = vld [vmem:[%s4887_s11 + $0x238] sm:$0xff] }
  0x65   : > { %4382 = vmatprep.mubr.msk.f32.mxu0 %vm397_vm0, %v365_v22  ;;  %4498 = vmatprep.mubr.msk.f32.mxu1 %vm397_vm0, %v1079_v23  ;;  %v1110_v21 = vld [vmem:[%s4893_s14 + $0x238] sm:$0xff]  ;;  %v1752_v22 = vld [vmem:[%s5179_s17] sm:$0xff] }
  0x66   : > { %v2465_v23 = vld [vmem:[%s5185_s20] sm:$0xff] }
  0x68   : > { %4383 = vmatmul.mubr.msk.f32.gmra.mrb[40].mxu0 %vm397_vm0, %v366_v24  ;;  %4499 = vmatmul.mubr.msk.f32.gmra.mrb[40].mxu1 %vm397_vm0, %v1080_v25  ;;  %v1753_v24 = vld [vmem:[%s5179_s17 + $0x8] sm:$0xff] }
  0x69   : > { %4385 = vmatprep.mubr.msk.f32.mxu0 %vm397_vm0, %v367_v26  ;;  %4501 = vmatprep.mubr.msk.f32.mxu1 %vm397_vm0, %v1081_v27  ;;  %v2466_v25 = vld [vmem:[%s5185_s20 + $0x8] sm:$0xff]  ;;  %v1754_v26 = vld [vmem:[%s5179_s17 + $0x10] sm:$0xff] }
  0x6a   : > { %v2467_v27 = vld [vmem:[%s5185_s20 + $0x10] sm:$0xff] }
  0x6c   : > { %4386 = vmatmul.mubr.msk.f32.gmra.mrb[42].mxu0 %vm397_vm0, %v368_v28  ;;  %4502 = vmatmul.mubr.msk.f32.gmra.mrb[42].mxu1 %vm397_vm0, %v1082_v29  ;;  %v1755_v28 = vld [vmem:[%s5179_s17 + $0x18] sm:$0xff] }
  0x6d   : > { %4388 = vmatprep.mubr.msk.f32.mxu0 %vm397_vm0, %v369_v30  ;;  %4504 = vmatprep.mubr.msk.f32.mxu1 %vm397_vm0, %v1083_v31  ;;  %v2468_v29 = vld [vmem:[%s5185_s20 + $0x18] sm:$0xff]  ;;  %v1756_v30 = vld [vmem:[%s5179_s17 + $0x20] sm:$0xff] }
  0x6e   : > { %v2469_v31 = vld [vmem:[%s5185_s20 + $0x20] sm:$0xff] }
  0x70   : > { %4389 = vmatmul.mubr.msk.f32.gmra.mrb[44].mxu0 %vm397_vm0, %v370_v32  ;;  %4505 = vmatmul.mubr.msk.f32.gmra.mrb[44].mxu1 %vm397_vm0, %v1084_v33  ;;  %v1757_v32 = vld [vmem:[%s5179_s17 + $0x28] sm:$0xff] }
  0x71   : > { %4391 = vmatprep.mubr.msk.f32.mxu0 %vm397_vm0, %v371_v34  ;;  %4507 = vmatprep.mubr.msk.f32.mxu1 %vm397_vm0, %v1085_v35  ;;  %v2470_v33 = vld [vmem:[%s5185_s20 + $0x28] sm:$0xff]  ;;  %v1758_v34 = vld [vmem:[%s5179_s17 + $0x30] sm:$0xff] }
  0x72   : > { %v2471_v35 = vld [vmem:[%s5185_s20 + $0x30] sm:$0xff] }
  0x74   : > { %4392 = vmatmul.mubr.msk.f32.gmra.mrb[46].mxu0 %vm397_vm0, %v372_v36  ;;  %4508 = vmatmul.mubr.msk.f32.gmra.mrb[46].mxu1 %vm397_vm0, %v1086_v37  ;;  %v1759_v36 = vld [vmem:[%s5179_s17 + $0x38] sm:$0xff] }
  0x75   : > { %4394 = vmatprep.mubr.msk.f32.mxu0 %vm397_vm0, %v373_v38  ;;  %4510 = vmatprep.mubr.msk.f32.mxu1 %vm397_vm0, %v1087_v39  ;;  %v2472_v37 = vld [vmem:[%s5185_s20 + $0x38] sm:$0xff]  ;;  %v1760_v38 = vld [vmem:[%s5179_s17 + $0x40] sm:$0xff] }
  0x76   : > { %v2473_v39 = vld [vmem:[%s5185_s20 + $0x40] sm:$0xff] }
  0x78   : > { %4395 = vmatmul.mubr.msk.f32.gmra.mrb[48].mxu0 %vm397_vm0, %v374_v40  ;;  %4511 = vmatmul.mubr.msk.f32.gmra.mrb[48].mxu1 %vm397_vm0, %v1088_v41  ;;  %v1761_v40 = vld [vmem:[%s5179_s17 + $0x48] sm:$0xff] }
  0x79   : > { %4397 = vmatprep.mubr.msk.f32.mxu0 %vm397_vm0, %v375_v42  ;;  %4513 = vmatprep.mubr.msk.f32.mxu1 %vm397_vm0, %v1089_v43  ;;  %v2474_v41 = vld [vmem:[%s5185_s20 + $0x48] sm:$0xff]  ;;  %v1762_v42 = vld [vmem:[%s5179_s17 + $0x50] sm:$0xff] }
  0x7a   : > { %v2475_v43 = vld [vmem:[%s5185_s20 + $0x50] sm:$0xff] }
  0x7c   : > { %4398 = vmatmul.mubr.msk.f32.gmra.mrb[50].mxu0 %vm397_vm0, %v376_v44  ;;  %4514 = vmatmul.mubr.msk.f32.gmra.mrb[50].mxu1 %vm397_vm0, %v1090_v45  ;;  %v1763_v44 = vld [vmem:[%s5179_s17 + $0x58] sm:$0xff] }
  0x7d   : > { %4400 = vmatprep.mubr.msk.f32.mxu0 %vm397_vm0, %v377_v46  ;;  %4516 = vmatprep.mubr.msk.f32.mxu1 %vm397_vm0, %v1091_v47  ;;  %v2476_v45 = vld [vmem:[%s5185_s20 + $0x58] sm:$0xff]  ;;  %v1764_v46 = vld [vmem:[%s5179_s17 + $0x60] sm:$0xff] }
  0x7e   : > { %v2477_v47 = vld [vmem:[%s5185_s20 + $0x60] sm:$0xff] }
  0x80   : > { %4401 = vmatmul.mubr.msk.f32.gmra.mrb[52].mxu0 %vm397_vm0, %v378_v48  ;;  %4517 = vmatmul.mubr.msk.f32.gmra.mrb[52].mxu1 %vm397_vm0, %v1092_v49  ;;  %v1765_v48 = vld [vmem:[%s5179_s17 + $0x68] sm:$0xff] }
  0x81   : > { %4403 = vmatprep.mubr.msk.f32.mxu0 %vm397_vm0, %v379_v50  ;;  %4519 = vmatprep.mubr.msk.f32.mxu1 %vm397_vm0, %v1093_v51  ;;  %v2478_v49 = vld [vmem:[%s5185_s20 + $0x68] sm:$0xff]  ;;  %v1766_v50 = vld [vmem:[%s5179_s17 + $0x70] sm:$0xff] }
  0x82   : > { %v2479_v51 = vld [vmem:[%s5185_s20 + $0x70] sm:$0xff] }
  0x84   : > { %4404 = vmatmul.mubr.msk.f32.gmra.mrb[54].mxu0 %vm397_vm0, %v380_v52  ;;  %4520 = vmatmul.mubr.msk.f32.gmra.mrb[54].mxu1 %vm397_vm0, %v1094_v53  ;;  %v1767_v52 = vld [vmem:[%s5179_s17 + $0x78] sm:$0xff] }
  0x85   : > { %4406 = vmatprep.mubr.msk.f32.mxu0 %vm397_vm0, %v381_v54  ;;  %4522 = vmatprep.mubr.msk.f32.mxu1 %vm397_vm0, %v1095_v55  ;;  %v2480_v53 = vld [vmem:[%s5185_s20 + $0x78] sm:$0xff]  ;;  %v1768_v54 = vld [vmem:[%s5179_s17 + $0x80] sm:$0xff] }
  0x86   : > { %v2481_v55 = vld [vmem:[%s5185_s20 + $0x80] sm:$0xff] }
  0x88   : > { %4407 = vmatmul.mubr.msk.f32.gmra.mrb[56].mxu0 %vm397_vm0, %v382_v56  ;;  %4523 = vmatmul.mubr.msk.f32.gmra.mrb[56].mxu1 %vm397_vm0, %v1096_v57  ;;  %v1769_v56 = vld [vmem:[%s5179_s17 + $0x88] sm:$0xff] }
  0x89   : > { %4409 = vmatprep.mubr.msk.f32.mxu0 %vm397_vm0, %v383_v58  ;;  %4525 = vmatprep.mubr.msk.f32.mxu1 %vm397_vm0, %v1097_v59  ;;  %v2482_v57 = vld [vmem:[%s5185_s20 + $0x88] sm:$0xff]  ;;  %v1770_v58 = vld [vmem:[%s5179_s17 + $0x90] sm:$0xff] }
  0x8a   : > { %v2483_v59 = vld [vmem:[%s5185_s20 + $0x90] sm:$0xff] }
  0x8c   : > { %4410 = vmatmul.mubr.msk.f32.gmra.mrb[58].mxu0 %vm397_vm0, %v384_v60  ;;  %4526 = vmatmul.mubr.msk.f32.gmra.mrb[58].mxu1 %vm397_vm0, %v1098_v61  ;;  %v1771_v60 = vld [vmem:[%s5179_s17 + $0x98] sm:$0xff] }
  0x8d   : > { %4412 = vmatprep.mubr.msk.f32.mxu0 %vm397_vm0, %v385_v62  ;;  %4528 = vmatprep.mubr.msk.f32.mxu1 %vm397_vm0, %v1099_v63  ;;  %v2484_v61 = vld [vmem:[%s5185_s20 + $0x98] sm:$0xff]  ;;  %v1772_v62 = vld [vmem:[%s5179_s17 + $0xa0] sm:$0xff] }
  0x8e   : > { %v2485_v63 = vld [vmem:[%s5185_s20 + $0xa0] sm:$0xff] }
  0x90   : > { %4413 = vmatmul.mubr.msk.f32.gmra.mrb[60].mxu0 %vm397_vm0, %v386_v0  ;;  %4529 = vmatmul.mubr.msk.f32.gmra.mrb[60].mxu1 %vm397_vm0, %v1100_v1  ;;  %v1773_v0 = vld [vmem:[%s5179_s17 + $0xa8] sm:$0xff] }
  0x91   : > { %4415 = vmatprep.mubr.msk.f32.mxu0 %vm397_vm0, %v387_v2  ;;  %4531 = vmatprep.mubr.msk.f32.mxu1 %vm397_vm0, %v1101_v3  ;;  %v2486_v1 = vld [vmem:[%s5185_s20 + $0xa8] sm:$0xff]  ;;  %v1774_v2 = vld [vmem:[%s5179_s17 + $0xb0] sm:$0xff] }
  0x92   : > { %v2487_v3 = vld [vmem:[%s5185_s20 + $0xb0] sm:$0xff] }
  0x94   : > { %4416 = vmatmul.mubr.msk.f32.gmra.mrb[62].mxu0 %vm397_vm0, %v388_v4  ;;  %4532 = vmatmul.mubr.msk.f32.gmra.mrb[62].mxu1 %vm397_vm0, %v1102_v5  ;;  %v1775_v4 = vld [vmem:[%s5179_s17 + $0xb8] sm:$0xff] }
  0x95   : > { %4418 = vmatprep.mubr.msk.f32.mxu0 %vm397_vm0, %v389_v6  ;;  %4534 = vmatprep.mubr.msk.f32.mxu1 %vm397_vm0, %v1103_v7  ;;  %v2488_v5 = vld [vmem:[%s5185_s20 + $0xb8] sm:$0xff]  ;;  %v1776_v6 = vld [vmem:[%s5179_s17 + $0xc0] sm:$0xff] }
  0x96   : > { %v2489_v7 = vld [vmem:[%s5185_s20 + $0xc0] sm:$0xff] }
  0x98   : > { %4419 = vmatmul.mubr.msk.f32.gmra.mrb[64].mxu0 %vm397_vm0, %v390_v8  ;;  %4535 = vmatmul.mubr.msk.f32.gmra.mrb[64].mxu1 %vm397_vm0, %v1104_v9  ;;  %v1777_v8 = vld [vmem:[%s5179_s17 + $0xc8] sm:$0xff] }
  0x99   : > { %4421 = vmatprep.mubr.msk.f32.mxu0 %vm397_vm0, %v391_v10  ;;  %4537 = vmatprep.mubr.msk.f32.mxu1 %vm397_vm0, %v1105_v11  ;;  %v2490_v9 = vld [vmem:[%s5185_s20 + $0xc8] sm:$0xff]  ;;  %v1778_v10 = vld [vmem:[%s5179_s17 + $0xd0] sm:$0xff] }
  0x9a   : > { %v2491_v11 = vld [vmem:[%s5185_s20 + $0xd0] sm:$0xff] }
  0x9c   : > { %4422 = vmatmul.mubr.msk.f32.gmra.mrb[66].mxu0 %vm397_vm0, %v392_v12  ;;  %4538 = vmatmul.mubr.msk.f32.gmra.mrb[66].mxu1 %vm397_vm0, %v1106_v13  ;;  %v1779_v12 = vld [vmem:[%s5179_s17 + $0xd8] sm:$0xff] }
  0x9d   : > { %4424 = vmatprep.mubr.msk.f32.mxu0 %vm397_vm0, %v393_v14  ;;  %4540 = vmatprep.mubr.msk.f32.mxu1 %vm397_vm0, %v1107_v15  ;;  %v2492_v13 = vld [vmem:[%s5185_s20 + $0xd8] sm:$0xff]  ;;  %v1780_v14 = vld [vmem:[%s5179_s17 + $0xe0] sm:$0xff] }
  0x9e   : > { %v2493_v15 = vld [vmem:[%s5185_s20 + $0xe0] sm:$0xff] }
  0xa0   : > { %4425 = vmatmul.mubr.msk.f32.gmra.mrb[68].mxu0 %vm397_vm0, %v394_v16  ;;  %4541 = vmatmul.mubr.msk.f32.gmra.mrb[68].mxu1 %vm397_vm0, %v1108_v17  ;;  %v1781_v16 = vld [vmem:[%s5179_s17 + $0xe8] sm:$0xff] }
  0xa1   : > { %4427 = vmatprep.mubr.msk.f32.mxu0 %vm397_vm0, %v395_v18  ;;  %4543 = vmatprep.mubr.msk.f32.mxu1 %vm397_vm0, %v1109_v19  ;;  %v2494_v17 = vld [vmem:[%s5185_s20 + $0xe8] sm:$0xff]  ;;  %v1782_v18 = vld [vmem:[%s5179_s17 + $0xf0] sm:$0xff] }
  0xa2   : > { %v2495_v19 = vld [vmem:[%s5185_s20 + $0xf0] sm:$0xff] }
  0xa4   : > { %4428 = vmatmul.mubr.msk.f32.gmra.mrb[70].mxu0 %vm397_vm0, %v396_v20  ;;  %4544 = vmatmul.mubr.msk.f32.gmra.mrb[70].mxu1 %vm397_vm0, %v1110_v21  ;;  %v1783_v20 = vld [vmem:[%s5179_s17 + $0xf8] sm:$0xff] }
  0xa5   : > { %4554 = vmatprep.mubr.msk.f32.mxu0 %vm397_vm0, %v1752_v22  ;;  %4670 = vmatprep.mubr.msk.f32.mxu1 %vm397_vm0, %v2465_v23  ;;  %v2496_v21 = vld [vmem:[%s5185_s20 + $0xf8] sm:$0xff]  ;;  %v1784_v22 = vld [vmem:[%s5179_s17 + $0x100] sm:$0xff] }
  0xa6   : > { %v2497_v23 = vld [vmem:[%s5185_s20 + $0x100] sm:$0xff] }
  0xa8   : > { %4555 = vmatmul.mubr.msk.f32.vlgmr.msra.gmra.mrb[72].mxu0 %vm397_vm0, %v1753_v24  ;;  %4671 = vmatmul.mubr.msk.f32.vlgmr.msra.gmra.mrb[72].mxu1 %vm397_vm0, %v2466_v25  ;;  %v1785_v24 = vld [vmem:[%s5179_s17 + $0x108] sm:$0xff] }
  0xa9   : > { %4557 = vmatprep.mubr.msk.f32.mxu0 %vm397_vm0, %v1754_v26  ;;  %4673 = vmatprep.mubr.msk.f32.mxu1 %vm397_vm0, %v2467_v27  ;;  %v2498_v25 = vld [vmem:[%s5185_s20 + $0x108] sm:$0xff]  ;;  %v1786_v26 = vld [vmem:[%s5179_s17 + $0x110] sm:$0xff] }
  0xaa   : > { %v2499_v27 = vld [vmem:[%s5185_s20 + $0x110] sm:$0xff] }
  0xac   : > { %4558 = vmatmul.mubr.msk.f32.gmra.mrb[74].mxu0 %vm397_vm0, %v1755_v28  ;;  %4674 = vmatmul.mubr.msk.f32.gmra.mrb[74].mxu1 %vm397_vm0, %v2468_v29  ;;  %v1787_v28 = vld [vmem:[%s5179_s17 + $0x118] sm:$0xff] }
  0xad   : > { %4560 = vmatprep.mubr.msk.f32.mxu0 %vm397_vm0, %v1756_v30  ;;  %4676 = vmatprep.mubr.msk.f32.mxu1 %vm397_vm0, %v2469_v31  ;;  %v2500_v29 = vld [vmem:[%s5185_s20 + $0x118] sm:$0xff]  ;;  %v1788_v30 = vld [vmem:[%s5179_s17 + $0x120] sm:$0xff] }
  0xae   : > { %v2501_v31 = vld [vmem:[%s5185_s20 + $0x120] sm:$0xff] }
  0xb0   : > { %4561 = vmatmul.mubr.msk.f32.gmra.mrb[76].mxu0 %vm397_vm0, %v1757_v32  ;;  %4677 = vmatmul.mubr.msk.f32.gmra.mrb[76].mxu1 %vm397_vm0, %v2470_v33 }
  0xb1   : > { %4563 = vmatprep.mubr.msk.f32.mxu0 %vm397_vm0, %v1758_v34  ;;  %4679 = vmatprep.mubr.msk.f32.mxu1 %vm397_vm0, %v2471_v35  ;;  %v1816_v34 = vld [vmem:[%s5179_s17 + $0x200] sm:$0xff] }
  0xb4   : > { %4564 = vmatmul.mubr.msk.f32.gmra.mrb[78].mxu0 %vm397_vm0, %v1759_v36  ;;  %4680 = vmatmul.mubr.msk.f32.gmra.mrb[78].mxu1 %vm397_vm0, %v2472_v37  ;;  %v1815_v37 = vld [vmem:[%s5179_s17 + $0x1f8] sm:$0xff] }
  0xb5   : > { %4566 = vmatprep.mubr.msk.f32.mxu0 %vm397_vm0, %v1760_v38  ;;  %4682 = vmatprep.mubr.msk.f32.mxu1 %vm397_vm0, %v2473_v39  ;;  %v1789_v38 = vld [vmem:[%s5179_s17 + $0x128] sm:$0xff] }
  0xb6   : > { %v2502_v39 = vld [vmem:[%s5185_s20 + $0x128] sm:$0xff] }
  0xb8   : > { %4567 = vmatmul.mubr.msk.f32.gmra.mrb[80].mxu0 %vm397_vm0, %v1761_v40  ;;  %4683 = vmatmul.mubr.msk.f32.gmra.mrb[80].mxu1 %vm397_vm0, %v2474_v41  ;;  %v1790_v40 = vld [vmem:[%s5179_s17 + $0x130] sm:$0xff] }
  0xb9   : > { %4569 = vmatprep.mubr.msk.f32.mxu0 %vm397_vm0, %v1762_v42  ;;  %4685 = vmatprep.mubr.msk.f32.mxu1 %vm397_vm0, %v2475_v43  ;;  %v2503_v41 = vld [vmem:[%s5185_s20 + $0x130] sm:$0xff] }
  0xbc   : > { %4570 = vmatmul.mubr.msk.f32.gmra.mrb[82].mxu0 %vm397_vm0, %v1763_v44  ;;  %4686 = vmatmul.mubr.msk.f32.gmra.mrb[82].mxu1 %vm397_vm0, %v2476_v45 }
  0xbd   : > { %4572 = vmatprep.mubr.msk.f32.mxu0 %vm397_vm0, %v1764_v46  ;;  %4688 = vmatprep.mubr.msk.f32.mxu1 %vm397_vm0, %v2477_v47  ;;  %v2527_v47 = vld [vmem:[%s5185_s20 + $0x1f0] sm:$0xff] }
  0xc0   : > { %4573 = vmatmul.mubr.msk.f32.gmra.mrb[84].mxu0 %vm397_vm0, %v1765_v48  ;;  %4689 = vmatmul.mubr.msk.f32.gmra.mrb[84].mxu1 %vm397_vm0, %v2478_v49  ;;  %v1791_v48 = vld [vmem:[%s5179_s17 + $0x138] sm:$0xff] }
  0xc1   : > { %4575 = vmatprep.mubr.msk.f32.mxu0 %vm397_vm0, %v1766_v50  ;;  %4691 = vmatprep.mubr.msk.f32.mxu1 %vm397_vm0, %v2479_v51  ;;  %v2504_v49 = vld [vmem:[%s5185_s20 + $0x138] sm:$0xff]  ;;  %v1792_v50 = vld [vmem:[%s5179_s17 + $0x140] sm:$0xff] }
  0xc2   : > { %v2505_v51 = vld [vmem:[%s5185_s20 + $0x140] sm:$0xff] }
  0xc4   : > { %4576 = vmatmul.mubr.msk.f32.gmra.mrb[86].mxu0 %vm397_vm0, %v1767_v52  ;;  %4692 = vmatmul.mubr.msk.f32.gmra.mrb[86].mxu1 %vm397_vm0, %v2480_v53 }
  0xc5   : > { %4578 = vmatprep.mubr.msk.f32.mxu0 %vm397_vm0, %v1768_v54  ;;  %4694 = vmatprep.mubr.msk.f32.mxu1 %vm397_vm0, %v2481_v55  ;;  %v1814_v54 = vld [vmem:[%s5179_s17 + $0x1f0] sm:$0xff] }
  0xc8   : > { %4579 = vmatmul.mubr.msk.f32.gmra.mrb[88].mxu0 %vm397_vm0, %v1769_v56  ;;  %4695 = vmatmul.mubr.msk.f32.gmra.mrb[88].mxu1 %vm397_vm0, %v2482_v57  ;;  %v1813_v57 = vld [vmem:[%s5179_s17 + $0x1e8] sm:$0xff] }
  0xc9   : > { %4581 = vmatprep.mubr.msk.f32.mxu0 %vm397_vm0, %v1770_v58  ;;  %4697 = vmatprep.mubr.msk.f32.mxu1 %vm397_vm0, %v2483_v59  ;;  %v1793_v58 = vld [vmem:[%s5179_s17 + $0x148] sm:$0xff] }
  0xca   : > { %v2506_v59 = vld [vmem:[%s5185_s20 + $0x148] sm:$0xff] }
  0xcc   : > { %4582 = vmatmul.mubr.msk.f32.gmra.mrb[90].mxu0 %vm397_vm0, %v1771_v60  ;;  %4698 = vmatmul.mubr.msk.f32.gmra.mrb[90].mxu1 %vm397_vm0, %v2484_v61  ;;  %v1794_v60 = vld [vmem:[%s5179_s17 + $0x150] sm:$0xff] }
  0xcd   : > { %4584 = vmatprep.mubr.msk.f32.mxu0 %vm397_vm0, %v1772_v62  ;;  %4700 = vmatprep.mubr.msk.f32.mxu1 %vm397_vm0, %v2485_v63  ;;  %v2507_v61 = vld [vmem:[%s5185_s20 + $0x150] sm:$0xff] }
  0xd0   : > { %4585 = vmatmul.mubr.msk.f32.gmra.mrb[92].mxu0 %vm397_vm0, %v1773_v0  ;;  %4701 = vmatmul.mubr.msk.f32.gmra.mrb[92].mxu1 %vm397_vm0, %v2486_v1 }
  0xd1   : > { %4587 = vmatprep.mubr.msk.f32.mxu0 %vm397_vm0, %v1774_v2  ;;  %4703 = vmatprep.mubr.msk.f32.mxu1 %vm397_vm0, %v2487_v3  ;;  %v2525_v3 = vld [vmem:[%s5185_s20 + $0x1e0] sm:$0xff] }
  0xd4   : > { %4588 = vmatmul.mubr.msk.f32.gmra.mrb[94].mxu0 %vm397_vm0, %v1775_v4  ;;  %4704 = vmatmul.mubr.msk.f32.gmra.mrb[94].mxu1 %vm397_vm0, %v2488_v5  ;;  %v1795_v4 = vld [vmem:[%s5179_s17 + $0x158] sm:$0xff] }
  0xd5   : > { %4590 = vmatprep.mubr.msk.f32.mxu0 %vm397_vm0, %v1776_v6  ;;  %4706 = vmatprep.mubr.msk.f32.mxu1 %vm397_vm0, %v2489_v7  ;;  %v2508_v5 = vld [vmem:[%s5185_s20 + $0x158] sm:$0xff]  ;;  %v1796_v6 = vld [vmem:[%s5179_s17 + $0x160] sm:$0xff] }
  0xd6   : > { %v2509_v7 = vld [vmem:[%s5185_s20 + $0x160] sm:$0xff] }
  0xd8   : > { %4591 = vmatmul.mubr.msk.f32.gmra.mrb[96].mxu0 %vm397_vm0, %v1777_v8  ;;  %4707 = vmatmul.mubr.msk.f32.gmra.mrb[96].mxu1 %vm397_vm0, %v2490_v9 }
  0xd9   : > { %4593 = vmatprep.mubr.msk.f32.mxu0 %vm397_vm0, %v1778_v10  ;;  %4709 = vmatprep.mubr.msk.f32.mxu1 %vm397_vm0, %v2491_v11  ;;  %v1812_v10 = vld [vmem:[%s5179_s17 + $0x1e0] sm:$0xff] }
  0xdc   : > { %4594 = vmatmul.mubr.msk.f32.gmra.mrb[98].mxu0 %vm397_vm0, %v1779_v12  ;;  %4710 = vmatmul.mubr.msk.f32.gmra.mrb[98].mxu1 %vm397_vm0, %v2492_v13  ;;  %v1811_v13 = vld [vmem:[%s5179_s17 + $0x1d8] sm:$0xff] }
  0xdd   : > { %4596 = vmatprep.mubr.msk.f32.mxu0 %vm397_vm0, %v1780_v14  ;;  %4712 = vmatprep.mubr.msk.f32.mxu1 %vm397_vm0, %v2493_v15  ;;  %v1797_v14 = vld [vmem:[%s5179_s17 + $0x168] sm:$0xff] }
  0xde   : > { %v2510_v15 = vld [vmem:[%s5185_s20 + $0x168] sm:$0xff] }
  0xe0   : > { %4597 = vmatmul.mubr.msk.f32.gmra.mrb[100].mxu0 %vm397_vm0, %v1781_v16  ;;  %4713 = vmatmul.mubr.msk.f32.gmra.mrb[100].mxu1 %vm397_vm0, %v2494_v17  ;;  %v1798_v16 = vld [vmem:[%s5179_s17 + $0x170] sm:$0xff] }
  0xe1   : > { %4599 = vmatprep.mubr.msk.f32.mxu0 %vm397_vm0, %v1782_v18  ;;  %4715 = vmatprep.mubr.msk.f32.mxu1 %vm397_vm0, %v2495_v19  ;;  %v2511_v17 = vld [vmem:[%s5185_s20 + $0x170] sm:$0xff] }
  0xe4   : > { %4600 = vmatmul.mubr.msk.f32.gmra.mrb[102].mxu0 %vm397_vm0, %v1783_v20  ;;  %4716 = vmatmul.mubr.msk.f32.gmra.mrb[102].mxu1 %vm397_vm0, %v2496_v21 }
  0xe5   : > { %4602 = vmatprep.mubr.msk.f32.mxu0 %vm397_vm0, %v1784_v22  ;;  %4718 = vmatprep.mubr.msk.f32.mxu1 %vm397_vm0, %v2497_v23  ;;  %v2523_v23 = vld [vmem:[%s5185_s20 + $0x1d0] sm:$0xff] }
  0xe8   : > { %4603 = vmatmul.mubr.msk.f32.gmra.mrb[104].mxu0 %vm397_vm0, %v1785_v24  ;;  %4719 = vmatmul.mubr.msk.f32.gmra.mrb[104].mxu1 %vm397_vm0, %v2498_v25  ;;  %v1799_v24 = vld [vmem:[%s5179_s17 + $0x178] sm:$0xff] }
  0xe9   : > { %4605 = vmatprep.mubr.msk.f32.mxu0 %vm397_vm0, %v1786_v26  ;;  %4721 = vmatprep.mubr.msk.f32.mxu1 %vm397_vm0, %v2499_v27  ;;  %v2512_v25 = vld [vmem:[%s5185_s20 + $0x178] sm:$0xff]  ;;  %v1800_v26 = vld [vmem:[%s5179_s17 + $0x180] sm:$0xff] }
  0xea   : > { %v2513_v27 = vld [vmem:[%s5185_s20 + $0x180] sm:$0xff] }
  0xeb   : > { %v5339_v32 = vpop.f32.mrb[0].mxu0  ;;  %v5341_v33 = vpop.f32.mrb[0].mxu1 }
  0xec   : > { %v5345_v35 = vpop.f32.mrb[1].mxu0  ;;  %v5347_v36 = vpop.f32.mrb[1].mxu1  ;;  %4606 = vmatmul.mubr.msk.f32.gmra.mrb[106].mxu0 %vm397_vm0, %v1787_v28  ;;  %4722 = vmatmul.mubr.msk.f32.gmra.mrb[106].mxu1 %vm397_vm0, %v2500_v29 }
  0xed   : > { %4608 = vmatprep.mubr.msk.f32.mxu0 %vm397_vm0, %v1788_v30  ;;  %4724 = vmatprep.mubr.msk.f32.mxu1 %vm397_vm0, %v2501_v31  ;;  %v1810_v30 = vld [vmem:[%s5179_s17 + $0x1d0] sm:$0xff] }
  0xef   : > { %v5359_v42 = vpop.f32.mrb[2].mxu0  ;;  %v5361_v43 = vpop.f32.mrb[2].mxu1 }
  0xf0   : > { %v5365_v45 = vpop.f32.mrb[3].mxu0  ;;  %v5367_v46 = vpop.f32.mrb[3].mxu1  ;;  %4609 = vmatmul.mubr.msk.f32.gmra.mrb[108].mxu0 %vm397_vm0, %v1789_v38  ;;  %4725 = vmatmul.mubr.msk.f32.gmra.mrb[108].mxu1 %vm397_vm0, %v2502_v39  ;;  %v1809_v39 = vld [vmem:[%s5179_s17 + $0x1c8] sm:$0xff] }
  0xf1   : > { %4611 = vmatprep.mubr.msk.f32.mxu0 %vm397_vm0, %v1790_v40  ;;  %4727 = vmatprep.mubr.msk.f32.mxu1 %vm397_vm0, %v2503_v41  ;;  %v1801_v40 = vld [vmem:[%s5179_s17 + $0x188] sm:$0xff] }
  0xf2   : > { %v2514_v41 = vld [vmem:[%s5185_s20 + $0x188] sm:$0xff] }
  0xf3   : > { %v5379_v52 = vpop.f32.mrb[4].mxu0  ;;  %v5381_v53 = vpop.f32.mrb[4].mxu1 }
  0xf4   : > { %v5385_v55 = vpop.f32.mrb[5].mxu0  ;;  %v5387_v56 = vpop.f32.mrb[5].mxu1  ;;  %4612 = vmatmul.mubr.msk.f32.gmra.mrb[110].mxu0 %vm397_vm0, %v1791_v48  ;;  %4728 = vmatmul.mubr.msk.f32.gmra.mrb[110].mxu1 %vm397_vm0, %v2504_v49  ;;  %v1802_v48 = vld [vmem:[%s5179_s17 + $0x190] sm:$0xff] }
  0xf5   : > { %4614 = vmatprep.mubr.msk.f32.mxu0 %vm397_vm0, %v1792_v50  ;;  %4730 = vmatprep.mubr.msk.f32.mxu1 %vm397_vm0, %v2505_v51  ;;  %v2515_v49 = vld [vmem:[%s5185_s20 + $0x190] sm:$0xff] }
  0xf7   : > { %v5399_v62 = vpop.f32.mrb[6].mxu0  ;;  %v5401_v63 = vpop.f32.mrb[6].mxu1 }
  0xf8   : > { %v5405_v1 = vpop.f32.mrb[7].mxu0  ;;  %v5407_v2 = vpop.f32.mrb[7].mxu1  ;;  %4615 = vmatmul.mubr.msk.f32.gmra.mrb[112].mxu0 %vm397_vm0, %v1793_v58  ;;  %4731 = vmatmul.mubr.msk.f32.gmra.mrb[112].mxu1 %vm397_vm0, %v2506_v59 }
  0xf9   : > { %4617 = vmatprep.mubr.msk.f32.mxu0 %vm397_vm0, %v1794_v60  ;;  %4733 = vmatprep.mubr.msk.f32.mxu1 %vm397_vm0, %v2507_v61  ;;  %v2521_v61 = vld [vmem:[%s5185_s20 + $0x1c0] sm:$0xff] }
  0xfb   : > { %v5419_v8 = vpop.f32.mrb[8].mxu0  ;;  %v5421_v9 = vpop.f32.mrb[8].mxu1 }
  0xfc   : > { %v5425_v11 = vpop.f32.mrb[9].mxu0  ;;  %v5427_v12 = vpop.f32.mrb[9].mxu1  ;;  %4618 = vmatmul.mubr.msk.f32.gmra.mrb[114].mxu0 %vm397_vm0, %v1795_v4  ;;  %4734 = vmatmul.mubr.msk.f32.gmra.mrb[114].mxu1 %vm397_vm0, %v2508_v5  ;;  %v1803_v4 = vld [vmem:[%s5179_s17 + $0x198] sm:$0xff] }
  0xfd   : > { %4620 = vmatprep.mubr.msk.f32.mxu0 %vm397_vm0, %v1796_v6  ;;  %4736 = vmatprep.mubr.msk.f32.mxu1 %vm397_vm0, %v2509_v7  ;;  %v2516_v5 = vld [vmem:[%s5185_s20 + $0x198] sm:$0xff]  ;;  %v1804_v6 = vld [vmem:[%s5179_s17 + $0x1a0] sm:$0xff] }
  0xfe   : > { %v2517_v7 = vld [vmem:[%s5185_s20 + $0x1a0] sm:$0xff] }
  0xff   : > { %v5439_v18 = vpop.f32.mrb[10].mxu0  ;;  %v5441_v19 = vpop.f32.mrb[10].mxu1 }
 0x100   : > { %v5445_v21 = vpop.f32.mrb[11].mxu0  ;;  %v5447_v22 = vpop.f32.mrb[11].mxu1  ;;  %4621 = vmatmul.mubr.msk.f32.gmra.mrb[116].mxu0 %vm397_vm0, %v1797_v14  ;;  %4737 = vmatmul.mubr.msk.f32.gmra.mrb[116].mxu1 %vm397_vm0, %v2510_v15 }
 0x101   : > { %4623 = vmatprep.mubr.msk.f32.mxu0 %vm397_vm0, %v1798_v16  ;;  %4739 = vmatprep.mubr.msk.f32.mxu1 %vm397_vm0, %v2511_v17  ;;  %v1808_v16 = vld [vmem:[%s5179_s17 + $0x1c0] sm:$0xff] }
 0x103   : > { %v5459_v28 = vpop.f32.mrb[12].mxu0  ;;  %v5461_v29 = vpop.f32.mrb[12].mxu1 }
 0x104   : > { %v5465_v31 = vpop.f32.mrb[13].mxu0  ;;  %v5467_v38 = vpop.f32.mrb[13].mxu1  ;;  %4624 = vmatmul.mubr.msk.f32.gmra.mrb[118].mxu0 %vm397_vm0, %v1799_v24  ;;  %4740 = vmatmul.mubr.msk.f32.gmra.mrb[118].mxu1 %vm397_vm0, %v2512_v25  ;;  %v1807_v25 = vld [vmem:[%s5179_s17 + $0x1b8] sm:$0xff] }
 0x105   : > { %4626 = vmatprep.mubr.msk.f32.mxu0 %vm397_vm0, %v1800_v26  ;;  %4742 = vmatprep.mubr.msk.f32.mxu1 %vm397_vm0, %v2513_v27  ;;  %v1805_v26 = vld [vmem:[%s5179_s17 + $0x1a8] sm:$0xff] }
 0x106   : > { %v2518_v27 = vld [vmem:[%s5185_s20 + $0x1a8] sm:$0xff] }
 0x107   : > { %v5479_v50 = vpop.f32.mrb[14].mxu0  ;;  %v5481_v51 = vpop.f32.mrb[14].mxu1 }
 0x108   : > { %v5485_v59 = vpop.f32.mrb[15].mxu0  ;;  %v5487_v60 = vpop.f32.mrb[15].mxu1  ;;  %4627 = vmatmul.mubr.msk.f32.gmra.mrb[120].mxu0 %vm397_vm0, %v1801_v40  ;;  %4743 = vmatmul.mubr.msk.f32.gmra.mrb[120].mxu1 %vm397_vm0, %v2514_v41  ;;  %v1806_v40 = vld [vmem:[%s5179_s17 + $0x1b0] sm:$0xff] }
 0x109   : > { %4629 = vmatprep.mubr.msk.f32.mxu0 %vm397_vm0, %v1802_v48  ;;  %4745 = vmatprep.mubr.msk.f32.mxu1 %vm397_vm0, %v2515_v49  ;;  %v2519_v41 = vld [vmem:[%s5185_s20 + $0x1b0] sm:$0xff] }
 0x10b   : > { %v5499_v14 = vpop.f32.mrb[16].mxu0  ;;  %v5501_v15 = vpop.f32.mrb[16].mxu1 }
 0x10c   : > { %v5505_v17 = vpop.f32.mrb[17].mxu0  ;;  %v5507_v24 = vpop.f32.mrb[17].mxu1  ;;  %4630 = vmatmul.mubr.msk.f32.gmra.mrb[122].mxu0 %vm397_vm0, %v1803_v4  ;;  %4746 = vmatmul.mubr.msk.f32.gmra.mrb[122].mxu1 %vm397_vm0, %v2516_v5  ;;  %v2520_v4 = vld [vmem:[%s5185_s20 + $0x1b8] sm:$0xff] }
 0x10d   : > { %4632 = vmatprep.mubr.msk.f32.mxu0 %vm397_vm0, %v1804_v6  ;;  %4748 = vmatprep.mubr.msk.f32.mxu1 %vm397_vm0, %v2517_v7 }
 0x10f   : > { %v5519_v48 = vpop.f32.mrb[18].mxu0  ;;  %v5521_v49 = vpop.f32.mrb[18].mxu1 }
 0x110   : > { %v5525_v5 = vpop.f32.mrb[19].mxu0  ;;  %v5527_v6 = vpop.f32.mrb[19].mxu1  ;;  %4633 = vmatmul.mubr.msk.f32.gmra.mrb[124].mxu0 %vm397_vm0, %v1805_v26  ;;  %4749 = vmatmul.mubr.msk.f32.gmra.mrb[124].mxu1 %vm397_vm0, %v2518_v27  ;;  %v2522_v27 = vld [vmem:[%s5185_s20 + $0x1c8] sm:$0xff] }
 0x111   : > { %4635 = vmatprep.mubr.msk.f32.mxu0 %vm397_vm0, %v1806_v40  ;;  %4751 = vmatprep.mubr.msk.f32.mxu1 %vm397_vm0, %v2519_v41 }
 0x113   : > { %v5539_v58 = vpop.f32.mrb[20].mxu0  ;;  %v5541_v26 = vpop.f32.mrb[20].mxu1 }
 0x114   : > { %v5545_v7 = vpop.f32.mrb[21].mxu0  ;;  %v5547_v40 = vpop.f32.mrb[21].mxu1  ;;  %4636 = vmatmul.mubr.msk.f32.gmra.mrb[126].mxu0 %vm397_vm0, %v1807_v25  ;;  %4752 = vmatmul.mubr.msk.f32.gmra.mrb[126].mxu1 %vm397_vm0, %v2520_v4  ;;  %v2524_v4 = vld [vmem:[%s5185_s20 + $0x1d8] sm:$0xff] }
 0x115   : > { %4638 = vmatprep.mubr.msk.f32.mxu0 %vm397_vm0, %v1808_v16  ;;  %4754 = vmatprep.mubr.msk.f32.mxu1 %vm397_vm0, %v2521_v61 }
 0x117   : > { %v5559_v20 = vpop.f32.mrb[22].mxu0  ;;  %v5561_v25 = vpop.f32.mrb[22].mxu1 }
 0x118   : > { %v5565_v41 = vpop.f32.mrb[23].mxu0  ;;  %v5567_v16 = vpop.f32.mrb[23].mxu1  ;;  %4639 = vmatmul.mubr.msk.f32.gmra.mrb[128].mxu0 %vm397_vm0, %v1809_v39  ;;  %4755 = vmatmul.mubr.msk.f32.gmra.mrb[128].mxu1 %vm397_vm0, %v2522_v27  ;;  %v2526_v27 = vld [vmem:[%s5185_s20 + $0x1e8] sm:$0xff] }
 0x119   : > { %4641 = vmatprep.mubr.msk.f32.mxu0 %vm397_vm0, %v1810_v30  ;;  %4757 = vmatprep.mubr.msk.f32.mxu1 %vm397_vm0, %v2523_v23 }
 0x11b   : > { %v5579_v0 = vpop.f32.mrb[24].mxu0  ;;  %v5581_v39 = vpop.f32.mrb[24].mxu1 }
 0x11c   : > { %6391 = vst [vmem:[#allocation2_spill] sm:$0xff] %v5581_v39  ;;  %v5585_v61 = vpop.f32.mrb[25].mxu0  ;;  %v5587_v30 = vpop.f32.mrb[25].mxu1  ;;  %4642 = vmatmul.mubr.msk.f32.gmra.mrb[130].mxu0 %vm397_vm0, %v1811_v13  ;;  %4758 = vmatmul.mubr.msk.f32.gmra.mrb[130].mxu1 %vm397_vm0, %v2524_v4  ;;  %v2528_v4 = vld [vmem:[%s5185_s20 + $0x1f8] sm:$0xff] }
 0x11d   : > { %6392 = vst [vmem:[#allocation3_spill] sm:$0xff] %v5585_v61  ;;  %6393 = vst [vmem:[#allocation4_spill] sm:$0xff] %v5587_v30  ;;  %4644 = vmatprep.mubr.msk.f32.mxu0 %vm397_vm0, %v1812_v10  ;;  %4760 = vmatprep.mubr.msk.f32.mxu1 %vm397_vm0, %v2525_v3 }
 0x11f   : > { %v5599_v44 = vpop.f32.mrb[26].mxu0  ;;  %v5601_v13 = vpop.f32.mrb[26].mxu1 }
 0x120   : > { %6394 = vst [vmem:[#allocation5_spill] sm:$0xff] %v5599_v44  ;;  %6395 = vst [vmem:[#allocation6_spill] sm:$0xff] %v5601_v13  ;;  %v5605_v23 = vpop.f32.mrb[27].mxu0  ;;  %v5607_v10 = vpop.f32.mrb[27].mxu1  ;;  %4645 = vmatmul.mubr.msk.f32.gmra.mrb[132].mxu0 %vm397_vm0, %v1813_v57  ;;  %4761 = vmatmul.mubr.msk.f32.gmra.mrb[132].mxu1 %vm397_vm0, %v2526_v27  ;;  %v2529_v13 = vld [vmem:[%s5185_s20 + $0x200] sm:$0xff]  ;;  %v2530_v27 = vld [vmem:[%s5185_s20 + $0x208] sm:$0xff] }
 0x121   : > { %6396 = vst [vmem:[#allocation7_spill] sm:$0xff] %v5605_v23  ;;  %6397 = vst [vmem:[#allocation8_spill] sm:$0xff] %v5607_v10  ;;  %4647 = vmatprep.mubr.msk.f32.mxu0 %vm397_vm0, %v1814_v54  ;;  %4763 = vmatprep.mubr.msk.f32.mxu1 %vm397_vm0, %v2527_v47  ;;  %v1817_v10 = vld [vmem:[%s5179_s17 + $0x208] sm:$0xff] }
 0x123   : > { %v5619_v44 = vpop.f32.mrb[28].mxu0  ;;  %v5621_v57 = vpop.f32.mrb[28].mxu1 }
 0x124   : > { %6398 = vst [vmem:[#allocation9_spill] sm:$0xff] %v5619_v44  ;;  %6399 = vst [vmem:[#allocation10_spill] sm:$0xff] %v5621_v57  ;;  %v5625_v3 = vpop.f32.mrb[29].mxu0  ;;  %v5627_v54 = vpop.f32.mrb[29].mxu1  ;;  %4648 = vmatmul.mubr.msk.f32.gmra.mrb[134].mxu0 %vm397_vm0, %v1815_v37  ;;  %4764 = vmatmul.mubr.msk.f32.gmra.mrb[134].mxu1 %vm397_vm0, %v2528_v4  ;;  %v1818_v57 = vld [vmem:[%s5179_s17 + $0x210] sm:$0xff]  ;;  %v2532_v4 = vld [vmem:[%s5185_s20 + $0x218] sm:$0xff] }
 0x125   : > { %6400 = vst [vmem:[#allocation11_spill] sm:$0xff] %v5625_v3  ;;  %6401 = vst [vmem:[#allocation12_spill] sm:$0xff] %v5627_v54  ;;  %4650 = vmatprep.mubr.msk.f32.mxu0 %vm397_vm0, %v1816_v34  ;;  %4766 = vmatprep.mubr.msk.f32.mxu1 %vm397_vm0, %v2529_v13  ;;  %v2531_v44 = vld [vmem:[%s5185_s20 + $0x210] sm:$0xff]  ;;  %v1819_v54 = vld [vmem:[%s5179_s17 + $0x218] sm:$0xff] }
 0x127   : > { %v5639_v23 = vpop.f32.mrb[30].mxu0  ;;  %v5641_v37 = vpop.f32.mrb[30].mxu1 }
 0x128   : > { %6402 = vst [vmem:[#allocation13_spill] sm:$0xff] %v5639_v23  ;;  %6403 = vst [vmem:[#allocation14_spill] sm:$0xff] %v5641_v37  ;;  %v5645_v47 = vpop.f32.mrb[31].mxu0  ;;  %v5647_v34 = vpop.f32.mrb[31].mxu1  ;;  %4651 = vmatmul.mubr.msk.f32.gmra.mrb[136].mxu0 %vm397_vm0, %v1817_v10  ;;  %4767 = vmatmul.mubr.msk.f32.gmra.mrb[136].mxu1 %vm397_vm0, %v2530_v27  ;;  %v1820_v37 = vld [vmem:[%s5179_s17 + $0x220] sm:$0xff]  ;;  %v1822_v27 = vld [vmem:[%s5179_s17 + $0x230] sm:$0xff] }
 0x129   : > { %6404 = vst [vmem:[#allocation15_spill] sm:$0xff] %v5645_v47  ;;  %6405 = vst [vmem:[#allocation16_spill] sm:$0xff] %v5647_v34  ;;  %4653 = vmatprep.mubr.msk.f32.mxu0 %vm397_vm0, %v1818_v57  ;;  %4769 = vmatprep.mubr.msk.f32.mxu1 %vm397_vm0, %v2531_v44  ;;  %v2533_v23 = vld [vmem:[%s5185_s20 + $0x220] sm:$0xff]  ;;  %v1821_v34 = vld [vmem:[%s5179_s17 + $0x228] sm:$0xff] }
 0x12a   : > { %v2534_v47 = vld [vmem:[%s5185_s20 + $0x228] sm:$0xff] }
 0x12b   : > { %v5659_v3 = vpop.f32.mrb[32].mxu0  ;;  %v5661_v10 = vpop.f32.mrb[32].mxu1 }
 0x12c   : > { %6406 = vst [vmem:[#allocation17_spill] sm:$0xff] %v5659_v3  ;;  %6407 = vst [vmem:[#allocation18_spill] sm:$0xff] %v5661_v10  ;;  %v5665_v13 = vpop.f32.mrb[33].mxu0  ;;  %v5667_v57 = vpop.f32.mrb[33].mxu1  ;;  %4654 = vmatmul.mubr.msk.f32.gmra.mrb[138].mxu0 %vm397_vm0, %v1819_v54  ;;  %4770 = vmatmul.mubr.msk.f32.gmra.mrb[138].mxu1 %vm397_vm0, %v2532_v4  ;;  %v2535_v10 = vld [vmem:[%s5185_s20 + $0x230] sm:$0xff] }
 0x12d   : > { %6408 = vst [vmem:[#allocation19_spill] sm:$0xff] %v5665_v13  ;;  %6409 = vst [vmem:[#allocation20_spill] sm:$0xff] %v5667_v57  ;;  %4656 = vmatprep.mubr.msk.f32.mxu0 %vm397_vm0, %v1820_v37  ;;  %4772 = vmatprep.mubr.msk.f32.mxu1 %vm397_vm0, %v2533_v23  ;;  %v1823_v37 = vld [vmem:[%s5179_s17 + $0x238] sm:$0xff] }
 0x12e   : > { %v2536_v57 = vld [vmem:[%s5185_s20 + $0x238] sm:$0xff] }
 0x12f   : > { %v5679_v3 = vpop.f32.mrb[34].mxu0  ;;  %v5681_v30 = vpop.f32.mrb[34].mxu1 }
 0x130   : > { %6410 = vst [vmem:[#allocation21_spill] sm:$0xff] %v5679_v3  ;;  %6411 = vst [vmem:[#allocation22_spill] sm:$0xff] %v5681_v30  ;;  %v5685_v4 = vpop.f32.mrb[35].mxu0  ;;  %v5687_v44 = vpop.f32.mrb[35].mxu1  ;;  %4657 = vmatmul.mubr.msk.f32.gmra.mrb[140].mxu0 %vm397_vm0, %v1821_v34  ;;  %4773 = vmatmul.mubr.msk.f32.gmra.mrb[140].mxu1 %vm397_vm0, %v2534_v47  ;;  %v6486_v47 = vmax.f32 %v5339_v32, %v5341_v33 }
 0x131   : > { %6412 = vst [vmem:[#allocation23_spill] sm:$0xff] %v5685_v4  ;;  %6413 = vst [vmem:[#allocation24_spill] sm:$0xff] %v5687_v44  ;;  %4659 = vmatprep.mubr.msk.f32.mxu0 %vm397_vm0, %v1822_v27  ;;  %4775 = vmatprep.mubr.msk.f32.mxu1 %vm397_vm0, %v2535_v10 }
 0x133   : > { %v5697_v13 = vpop.f32.mrb[36].mxu0  ;;  %v5699_v54 = vpop.f32.mrb[36].mxu1 }
 0x134   : > { %6414 = vst [vmem:[#allocation25_spill] sm:$0xff] %v5697_v13  ;;  %6415 = vst [vmem:[#allocation26_spill] sm:$0xff] %v5699_v54  ;;  %v5703_v3 = vpop.f32.mrb[37].mxu0  ;;  %v5705_v34 = vpop.f32.mrb[37].mxu1  ;;  %4660 = vmatmul.mubr.msk.f32.gmra.mrb[142].mxu0 %vm397_vm0, %v1823_v37  ;;  %4776 = vmatmul.mubr.msk.f32.gmra.mrb[142].mxu1 %vm397_vm0, %v2536_v57 }
 0x135   : > { %6416 = vst [vmem:[#allocation27_spill] sm:$0xff] %v5703_v3  ;;  %6417 = vst [vmem:[#allocation28_spill] sm:$0xff] %v5705_v34 }
 0x137   : > { %v5711_v10 = vpop.f32.mrb[38].mxu0  ;;  %v5713_v27 = vpop.f32.mrb[38].mxu1 }
 0x138   : > { %6418 = vst [vmem:[#allocation29_spill] sm:$0xff] %v5711_v10  ;;  %6419 = vst [vmem:[#allocation30_spill] sm:$0xff] %v5713_v27  ;;  %v5717_v44 = vpop.f32.mrb[39].mxu0  ;;  %v5719_v30 = vpop.f32.mrb[39].mxu1 }
 0x139   : > { %6420 = vst [vmem:[#allocation31_spill] sm:$0xff] %v5717_v44  ;;  %6421 = vst [vmem:[#allocation32_spill] sm:$0xff] %v5719_v30 }
 0x13b   : > { %v5723_v37 = vpop.f32.mrb[40].mxu0  ;;  %v5725_v57 = vpop.f32.mrb[40].mxu1 }
 0x13c   : > { %6422 = vst [vmem:[#allocation33_spill] sm:$0xff] %v5723_v37  ;;  %6423 = vst [vmem:[#allocation34_spill] sm:$0xff] %v5725_v57  ;;  %v5729_v34 = vpop.f32.mrb[41].mxu0  ;;  %v5731_v3 = vpop.f32.mrb[41].mxu1 }
 0x13d   : > { %6424 = vst [vmem:[#allocation35_spill] sm:$0xff] %v5729_v34  ;;  %6425 = vst [vmem:[#allocation36_spill] sm:$0xff] %v5731_v3 }
 0x13f   : > { %v5735_v27 = vpop.f32.mrb[42].mxu0  ;;  %v5737_v10 = vpop.f32.mrb[42].mxu1 }
 0x140   : > { %6426 = vst [vmem:[#allocation37_spill] sm:$0xff] %v5735_v27  ;;  %6427 = vst [vmem:[#allocation38_spill] sm:$0xff] %v5737_v10  ;;  %v5741_v30 = vpop.f32.mrb[43].mxu0  ;;  %v5743_v44 = vpop.f32.mrb[43].mxu1 }
 0x141   : > { %6428 = vst [vmem:[#allocation39_spill] sm:$0xff] %v5741_v30  ;;  %6429 = vst [vmem:[#allocation40_spill] sm:$0xff] %v5743_v44 }
 0x143   : > { %v5747_v57 = vpop.f32.mrb[44].mxu0  ;;  %v5749_v37 = vpop.f32.mrb[44].mxu1 }
 0x144   : > { %6430 = vst [vmem:[#allocation41_spill] sm:$0xff] %v5747_v57  ;;  %6431 = vst [vmem:[#allocation42_spill] sm:$0xff] %v5749_v37  ;;  %v5753_v3 = vpop.f32.mrb[45].mxu0  ;;  %v5755_v34 = vpop.f32.mrb[45].mxu1 }
 0x145   : > { %6432 = vst [vmem:[#allocation43_spill] sm:$0xff] %v5753_v3  ;;  %6433 = vst [vmem:[#allocation44_spill] sm:$0xff] %v5755_v34 }
 0x147   : > { %v5759_v10 = vpop.f32.mrb[46].mxu0  ;;  %v5761_v27 = vpop.f32.mrb[46].mxu1 }
 0x148   : > { %6434 = vst [vmem:[#allocation45_spill] sm:$0xff] %v5759_v10  ;;  %6435 = vst [vmem:[#allocation46_spill] sm:$0xff] %v5761_v27  ;;  %v5765_v44 = vpop.f32.mrb[47].mxu0  ;;  %v5767_v30 = vpop.f32.mrb[47].mxu1 }
 0x149   : > { %6436 = vst [vmem:[#allocation47_spill] sm:$0xff] %v5765_v44  ;;  %6437 = vst [vmem:[#allocation48_spill] sm:$0xff] %v5767_v30 }
 0x14b   : > { %v5771_v37 = vpop.f32.mrb[48].mxu0  ;;  %v5773_v57 = vpop.f32.mrb[48].mxu1 }
 0x14c   : > { %6438 = vst [vmem:[#allocation49_spill] sm:$0xff] %v5771_v37  ;;  %6439 = vst [vmem:[#allocation50_spill] sm:$0xff] %v5773_v57  ;;  %v5777_v34 = vpop.f32.mrb[49].mxu0  ;;  %v5779_v3 = vpop.f32.mrb[49].mxu1 }
 0x14d   : > { %6440 = vst [vmem:[#allocation51_spill] sm:$0xff] %v5777_v34  ;;  %6441 = vst [vmem:[#allocation52_spill] sm:$0xff] %v5779_v3 }
 0x14f   : > { %v5783_v27 = vpop.f32.mrb[50].mxu0  ;;  %v5785_v10 = vpop.f32.mrb[50].mxu1 }
 0x150   : > { %6442 = vst [vmem:[#allocation53_spill] sm:$0xff] %v5783_v27  ;;  %6443 = vst [vmem:[#allocation54_spill] sm:$0xff] %v5785_v10  ;;  %v5789_v30 = vpop.f32.mrb[51].mxu0  ;;  %v5791_v44 = vpop.f32.mrb[51].mxu1 }
 0x151   : > { %6444 = vst [vmem:[#allocation55_spill] sm:$0xff] %v5789_v30  ;;  %6445 = vst [vmem:[#allocation56_spill] sm:$0xff] %v5791_v44 }
 0x153   : > { %v5795_v57 = vpop.f32.mrb[52].mxu0  ;;  %v5797_v37 = vpop.f32.mrb[52].mxu1 }
 0x154   : > { %6446 = vst [vmem:[#allocation57_spill] sm:$0xff] %v5795_v57  ;;  %6447 = vst [vmem:[#allocation58_spill] sm:$0xff] %v5797_v37  ;;  %v5801_v3 = vpop.f32.mrb[53].mxu0  ;;  %v5803_v34 = vpop.f32.mrb[53].mxu1 }
 0x155   : > { %6448 = vst [vmem:[#allocation59_spill] sm:$0xff] %v5801_v3  ;;  %6449 = vst [vmem:[#allocation60_spill] sm:$0xff] %v5803_v34 }
 0x157   : > { %v5807_v10 = vpop.f32.mrb[54].mxu0  ;;  %v5809_v27 = vpop.f32.mrb[54].mxu1 }
 0x158   : > { %6450 = vst [vmem:[#allocation61_spill] sm:$0xff] %v5807_v10  ;;  %6451 = vst [vmem:[#allocation62_spill] sm:$0xff] %v5809_v27  ;;  %v5813_v44 = vpop.f32.mrb[55].mxu0  ;;  %v5815_v30 = vpop.f32.mrb[55].mxu1 }
 0x159   : > { %6452 = vst [vmem:[#allocation63_spill] sm:$0xff] %v5813_v44  ;;  %6453 = vst [vmem:[#allocation64_spill] sm:$0xff] %v5815_v30 }
 0x15b   : > { %v5819_v37 = vpop.f32.mrb[56].mxu0  ;;  %v5821_v57 = vpop.f32.mrb[56].mxu1 }
 0x15c   : > { %6454 = vst [vmem:[#allocation65_spill] sm:$0xff] %v5819_v37  ;;  %6455 = vst [vmem:[#allocation66_spill] sm:$0xff] %v5821_v57  ;;  %v5825_v34 = vpop.f32.mrb[57].mxu0  ;;  %v5827_v3 = vpop.f32.mrb[57].mxu1 }
 0x15d   : > { %6456 = vst [vmem:[#allocation67_spill] sm:$0xff] %v5825_v34  ;;  %6457 = vst [vmem:[#allocation68_spill] sm:$0xff] %v5827_v3 }
 0x15f   : > { %v5831_v27 = vpop.f32.mrb[58].mxu0  ;;  %v5833_v10 = vpop.f32.mrb[58].mxu1 }
 0x160   : > { %6458 = vst [vmem:[#allocation69_spill] sm:$0xff] %v5831_v27  ;;  %6459 = vst [vmem:[#allocation70_spill] sm:$0xff] %v5833_v10  ;;  %v5837_v30 = vpop.f32.mrb[59].mxu0  ;;  %v5839_v44 = vpop.f32.mrb[59].mxu1 }
 0x161   : > { %6460 = vst [vmem:[#allocation71_spill] sm:$0xff] %v5837_v30  ;;  %6461 = vst [vmem:[#allocation72_spill] sm:$0xff] %v5839_v44 }
 0x163   : > { %v5843_v57 = vpop.f32.mrb[60].mxu0  ;;  %v5845_v37 = vpop.f32.mrb[60].mxu1 }
 0x164   : > { %6462 = vst [vmem:[#allocation73_spill] sm:$0xff] %v5843_v57  ;;  %6463 = vst [vmem:[#allocation74_spill] sm:$0xff] %v5845_v37  ;;  %v5849_v3 = vpop.f32.mrb[61].mxu0  ;;  %v5851_v34 = vpop.f32.mrb[61].mxu1 }
 0x165   : > { %6464 = vst [vmem:[#allocation75_spill] sm:$0xff] %v5849_v3  ;;  %6465 = vst [vmem:[#allocation76_spill] sm:$0xff] %v5851_v34 }
 0x167   : > { %v5855_v10 = vpop.f32.mrb[62].mxu0  ;;  %v5857_v27 = vpop.f32.mrb[62].mxu1 }
 0x168   : > { %6466 = vst [vmem:[#allocation77_spill] sm:$0xff] %v5855_v10  ;;  %6467 = vst [vmem:[#allocation78_spill] sm:$0xff] %v5857_v27  ;;  %v5861_v44 = vpop.f32.mrb[63].mxu0  ;;  %v5863_v30 = vpop.f32.mrb[63].mxu1 }
 0x169   : > { %6468 = vst [vmem:[#allocation79_spill] sm:$0xff] %v5861_v44  ;;  %6469 = vst [vmem:[#allocation80_spill] sm:$0xff] %v5863_v30 }
 0x16b   : > { %v5867_v37 = vpop.f32.mrb[64].mxu0  ;;  %v5869_v57 = vpop.f32.mrb[64].mxu1 }
 0x16c   : > { %6470 = vst [vmem:[#allocation81_spill] sm:$0xff] %v5867_v37  ;;  %6471 = vst [vmem:[#allocation82_spill] sm:$0xff] %v5869_v57  ;;  %v5873_v34 = vpop.f32.mrb[65].mxu0  ;;  %v5875_v3 = vpop.f32.mrb[65].mxu1 }
 0x16d   : > { %6472 = vst [vmem:[#allocation83_spill] sm:$0xff] %v5873_v34  ;;  %6473 = vst [vmem:[#allocation84_spill] sm:$0xff] %v5875_v3 }
 0x16f   : > { %v5879_v27 = vpop.f32.mrb[66].mxu0  ;;  %v5881_v10 = vpop.f32.mrb[66].mxu1 }
 0x170   : > { %6474 = vst [vmem:[#allocation85_spill] sm:$0xff] %v5879_v27  ;;  %6475 = vst [vmem:[#allocation86_spill] sm:$0xff] %v5881_v10  ;;  %v5885_v30 = vpop.f32.mrb[67].mxu0  ;;  %v5887_v44 = vpop.f32.mrb[67].mxu1 }
 0x171   : > { %6476 = vst [vmem:[#allocation87_spill] sm:$0xff] %v5885_v30  ;;  %6477 = vst [vmem:[#allocation88_spill] sm:$0xff] %v5887_v44 }
 0x173   : > { %v5891_v57 = vpop.f32.mrb[68].mxu0  ;;  %v5893_v37 = vpop.f32.mrb[68].mxu1 }
 0x174   : > { %6478 = vst [vmem:[#allocation89_spill] sm:$0xff] %v5891_v57  ;;  %6479 = vst [vmem:[#allocation90_spill] sm:$0xff] %v5893_v37  ;;  %v5897_v3 = vpop.f32.mrb[69].mxu0  ;;  %v5899_v34 = vpop.f32.mrb[69].mxu1 }
 0x175   : > { %6480 = vst [vmem:[#allocation91_spill] sm:$0xff] %v5897_v3  ;;  %6481 = vst [vmem:[#allocation92_spill] sm:$0xff] %v5899_v34  ;;  %v5918_v34 = vld [vmem:[%s6294_s5] ss:$0 sm:$0xff] }
 0x177   : > { %v5903_v10 = vpop.f32.mrb[70].mxu0  ;;  %v5905_v27 = vpop.f32.mrb[70].mxu1 }
 0x178   : > { %6482 = vst [vmem:[#allocation93_spill] sm:$0xff] %v5903_v10  ;;  %6483 = vst [vmem:[#allocation94_spill] sm:$0xff] %v5905_v27  ;;  %v5909_v44 = vpop.f32.mrb[71].mxu0  ;;  %v5911_v30 = vpop.f32.mrb[71].mxu1  ;;  %v6487_v10 = vmax.f32 %v5345_v35, %v5347_v36  ;;  %v6488_v35 = vmax.f32 %v5359_v42, %v5361_v43 }
 0x179   : > { %6484 = vst [vmem:[#allocation95_spill] sm:$0xff] %v5909_v44  ;;  %6485 = vst [vmem:[#allocation96_spill] sm:$0xff] %v5911_v30 }
 0x17b   : > { %v4556_v37 = vpop.f32.mrb[72].mxu0  ;;  %v4672_v57 = vpop.f32.mrb[72].mxu1 }
 0x17c   : > { %v3251_v13 = vmax.f32 %v4556_v37, %v4672_v57  ;;  %v2106_v4 = vpop.f32.mrb[73].mxu0  ;;  %v2819_v54 = vpop.f32.mrb[73].mxu1 }
 0x17d   : > { %v3250_v3 = vmax.f32 %v2106_v4, %v2819_v54 }
 0x17e   : > { %v3323_v27 = vmax.f32 %v6486_v47, %v3251_v13 }
 0x17f   : > { %v3322_v23 = vmax.f32 %v6487_v10, %v3250_v3  ;;  %v4559_v30 = vpop.f32.mrb[74].mxu0  ;;  %v4675_v44 = vpop.f32.mrb[74].mxu1 }
 0x180   : > { %v3402_v37 = vadd.f32 %v5918_v34, %v3323_v27  ;;  %v3253_v57 = vmax.f32 %v4559_v30, %v4675_v44  ;;  %v2116_v61 = vpop.f32.mrb[75].mxu0  ;;  %v2829_v39 = vpop.f32.mrb[75].mxu1  ;;  %v6489_v30 = vmax.f32 %v5365_v45, %v5367_v46 }
 0x181   : > { %v3401_v32 = vadd.f32 %v5918_v34, %v3322_v23  ;;  %v3252_v33 = vmax.f32 %v2116_v61, %v2829_v39  ;;  %v6490_v23 = vmax.f32 %v5379_v52, %v5381_v53 }
 0x182   : > { %v3474_v13 = vmax.f32 %v3402_v37, 0.0  ;;  %v3325_v36 = vmax.f32 %v6488_v35, %v3253_v57  ;;  %v6491_v37 = vmax.f32 %v5385_v55, %v5387_v56 }
 0x183   : > { %v3473_v3 = vmax.f32 %v3401_v32, 0.0  ;;  %v3324_v44 = vmax.f32 %v6489_v30, %v3252_v33  ;;  %v4562_v54 = vpop.f32.mrb[76].mxu0  ;;  %v4678_v4 = vpop.f32.mrb[76].mxu1 }
 0x184   : > { %3546 = vst [vmem:[%s5931_s26 + $0x8] sm:$0xff] %v3474_v13  ;;  %v3404_v47 = vadd.f32 %v5918_v34, %v3325_v36  ;;  %v3255_v10 = vmax.f32 %v4562_v54, %v4678_v4  ;;  %v2126_v27 = vpop.f32.mrb[77].mxu0  ;;  %v2839_v61 = vpop.f32.mrb[77].mxu1  ;;  %v6493_v54 = vmax.f32 %v5405_v1, %v5407_v2 }
 0x185   : > { %3545 = vst [vmem:[%s5931_s26] sm:$0xff] %v3473_v3  ;;  %v3403_v39 = vadd.f32 %v5918_v34, %v3324_v44  ;;  %v3254_v42 = vmax.f32 %v2126_v27, %v2839_v61  ;;  %v6492_v44 = vmax.f32 %v5399_v62, %v5401_v63 }
 0x186   : > { %v3476_v43 = vmax.f32 %v3404_v47, 0.0  ;;  %v3327_v45 = vmax.f32 %v6490_v23, %v3255_v10  ;;  %v6494_v23 = vmax.f32 %v5419_v8, %v5421_v9 }
 0x187   : > { %v3475_v46 = vmax.f32 %v3403_v39, 0.0  ;;  %v3326_v57 = vmax.f32 %v6491_v37, %v3254_v42  ;;  %v4565_v32 = vpop.f32.mrb[78].mxu0  ;;  %v4681_v33 = vpop.f32.mrb[78].mxu1 }
 0x188   : > { %3548 = vst [vmem:[%s5931_s26 + $0x18] sm:$0xff] %v3476_v43  ;;  %v3406_v13 = vadd.f32 %v5918_v34, %v3327_v45  ;;  %v3257_v35 = vmax.f32 %v4565_v32, %v4681_v33  ;;  %v2136_v36 = vpop.f32.mrb[79].mxu0  ;;  %v2849_v3 = vpop.f32.mrb[79].mxu1  ;;  %v6495_v45 = vmax.f32 %v5425_v11, %v5427_v12 }
 0x189   : > { %3547 = vst [vmem:[%s5931_s26 + $0x10] sm:$0xff] %v3475_v46  ;;  %v3405_v30 = vadd.f32 %v5918_v34, %v3326_v57  ;;  %v3256_v52 = vmax.f32 %v2136_v36, %v2849_v3  ;;  %v6496_v3 = vmax.f32 %v5439_v18, %v5441_v19 }
 0x18a   : > { %v3478_v53 = vmax.f32 %v3406_v13, 0.0  ;;  %v3329_v55 = vmax.f32 %v6492_v44, %v3257_v35 }
 0x18b   : > { %v3477_v56 = vmax.f32 %v3405_v30, 0.0  ;;  %v3328_v4 = vmax.f32 %v6493_v54, %v3256_v52  ;;  %v4568_v47 = vpop.f32.mrb[80].mxu0  ;;  %v4684_v10 = vpop.f32.mrb[80].mxu1  ;;  %v6497_v30 = vmax.f32 %v5445_v21, %v5447_v22 }
 0x18c   : > { %3550 = vst [vmem:[%s5931_s26 + $0x28] sm:$0xff] %v3478_v53  ;;  %v3408_v27 = vadd.f32 %v5918_v34, %v3329_v55  ;;  %v3259_v61 = vmax.f32 %v4568_v47, %v4684_v10  ;;  %v2146_v39 = vpop.f32.mrb[81].mxu0  ;;  %v2859_v42 = vpop.f32.mrb[81].mxu1  ;;  %v6498_v10 = vmax.f32 %v5459_v28, %v5461_v29 }
 0x18d   : > { %3549 = vst [vmem:[%s5931_s26 + $0x20] sm:$0xff] %v3477_v56  ;;  %v3407_v43 = vadd.f32 %v5918_v34, %v3328_v4  ;;  %v3258_v62 = vmax.f32 %v2146_v39, %v2859_v42 }
 0x18e   : > { %v3480_v63 = vmax.f32 %v3408_v27, 0.0  ;;  %v3331_v1 = vmax.f32 %v6494_v23, %v3259_v61  ;;  %v6499_v27 = vmax.f32 %v5465_v31, %v5467_v38 }
 0x18f   : > { %v3479_v2 = vmax.f32 %v3407_v43, 0.0  ;;  %v3330_v46 = vmax.f32 %v6495_v45, %v3258_v62  ;;  %v4571_v37 = vpop.f32.mrb[82].mxu0  ;;  %v4687_v57 = vpop.f32.mrb[82].mxu1  ;;  %v6501_v45 = vmax.f32 %v5485_v59, %v5487_v60 }
 0x190   : > { %3552 = vst [vmem:[%s5931_s26 + $0x38] sm:$0xff] %v3480_v63  ;;  %v3410_v32 = vadd.f32 %v5918_v34, %v3331_v1  ;;  %v3261_v33 = vmax.f32 %v4571_v37, %v4687_v57  ;;  %v2156_v13 = vpop.f32.mrb[83].mxu0  ;;  %v2869_v35 = vpop.f32.mrb[83].mxu1 }
 0x191   : > { %3551 = vst [vmem:[%s5931_s26 + $0x30] sm:$0xff] %v3479_v2  ;;  %v3409_v36 = vadd.f32 %v5918_v34, %v3330_v46  ;;  %v3260_v8 = vmax.f32 %v2156_v13, %v2869_v35  ;;  %v6500_v2 = vmax.f32 %v5479_v50, %v5481_v51 }
 0x192   : > { %v3482_v9 = vmax.f32 %v3410_v32, 0.0  ;;  %v3333_v11 = vmax.f32 %v6496_v3, %v3261_v33 }
 0x193   : > { %v3481_v12 = vmax.f32 %v3409_v36, 0.0  ;;  %v3332_v52 = vmax.f32 %v6497_v30, %v3260_v8  ;;  %v4574_v53 = vpop.f32.mrb[84].mxu0  ;;  %v4690_v44 = vpop.f32.mrb[84].mxu1  ;;  %v6502_v8 = vmax.f32 %v5499_v14, %v5501_v15 }
 0x194   : > { %3554 = vst [vmem:[%s5931_s26 + $0x48] sm:$0xff] %v3482_v9  ;;  %v3412_v55 = vadd.f32 %v5918_v34, %v3333_v11  ;;  %v3263_v56 = vmax.f32 %v4574_v53, %v4690_v44  ;;  %v2166_v54 = vpop.f32.mrb[85].mxu0  ;;  %v2879_v4 = vpop.f32.mrb[85].mxu1  ;;  %v6503_v9 = vmax.f32 %v5505_v17, %v5507_v24 }
 0x195   : > { %3553 = vst [vmem:[%s5931_s26 + $0x40] sm:$0xff] %v3481_v12  ;;  %v3411_v47 = vadd.f32 %v5918_v34, %v3332_v52  ;;  %v3262_v18 = vmax.f32 %v2166_v54, %v2879_v4  ;;  %v6505_v54 = vmax.f32 %v5525_v5, %v5527_v6 }
 0x196   : > { %v3484_v19 = vmax.f32 %v3412_v55, 0.0  ;;  %v3335_v21 = vmax.f32 %v6498_v10, %v3263_v56  ;;  %v6504_v56 = vmax.f32 %v5519_v48, %v5521_v49 }
 0x197   : > { %v3483_v22 = vmax.f32 %v3411_v47, 0.0  ;;  %v3334_v61 = vmax.f32 %v6499_v27, %v3262_v18  ;;  %v4577_v39 = vpop.f32.mrb[86].mxu0  ;;  %v4693_v42 = vpop.f32.mrb[86].mxu1 }
 0x198   : > { %3556 = vst [vmem:[%s5931_s26 + $0x58] sm:$0xff] %v3484_v19  ;;  %v3414_v43 = vadd.f32 %v5918_v34, %v3335_v21  ;;  %v3265_v62 = vmax.f32 %v4577_v39, %v4693_v42  ;;  %v2176_v63 = vpop.f32.mrb[87].mxu0  ;;  %v2889_v23 = vpop.f32.mrb[87].mxu1  ;;  %v6507_v39 = vmax.f32 %v5545_v7, %v5547_v40 }
 0x199   : > { %3555 = vst [vmem:[%s5931_s26 + $0x50] sm:$0xff] %v3483_v22  ;;  %v3413_v1 = vadd.f32 %v5918_v34, %v3334_v61  ;;  %v3264_v28 = vmax.f32 %v2176_v63, %v2889_v23  ;;  %v6506_v61 = vmax.f32 %v5539_v58, %v5541_v26 }
 0x19a   : > { %v3486_v29 = vmax.f32 %v3414_v43, 0.0  ;;  %v3337_v31 = vmax.f32 %v6500_v2, %v3265_v62  ;;  %v6508_v2 = vmax.f32 %v5559_v20, %v5561_v25 }
 0x19b   : > { %v3485_v38 = vmax.f32 %v3413_v1, 0.0  ;;  %v3336_v46 = vmax.f32 %v6501_v45, %v3264_v28  ;;  %v4580_v37 = vpop.f32.mrb[88].mxu0  ;;  %v4696_v57 = vpop.f32.mrb[88].mxu1 }
 0x19c   : > { %3558 = vst [vmem:[%s5931_s26 + $0x68] sm:$0xff] %v3486_v29  ;;  %v3416_v32 = vadd.f32 %v5918_v34, %v3337_v31  ;;  %v3267_v33 = vmax.f32 %v4580_v37, %v4696_v57  ;;  %v2186_v13 = vpop.f32.mrb[89].mxu0  ;;  %v2899_v35 = vpop.f32.mrb[89].mxu1  ;;  %v6509_v31 = vmax.f32 %v5565_v41, %v5567_v16 }
 0x19d   : > { %3557 = vst [vmem:[%s5931_s26 + $0x60] sm:$0xff] %v3485_v38  ;;  %v3415_v36 = vadd.f32 %v5918_v34, %v3336_v46  ;;  %v3266_v50 = vmax.f32 %v2186_v13, %v2899_v35  ;;  %v6510_v35 = vld [vmem:[#allocation2_spill] sm:$0xff] }
 0x19e   : > { %v3488_v51 = vmax.f32 %v3416_v32, 0.0  ;;  %v3339_v59 = vmax.f32 %v6502_v8, %v3267_v33 }
 0x19f   : > { %v3487_v60 = vmax.f32 %v3415_v36, 0.0  ;;  %v3338_v3 = vmax.f32 %v6503_v9, %v3266_v50  ;;  %v4583_v11 = vpop.f32.mrb[90].mxu0  ;;  %v4699_v12 = vpop.f32.mrb[90].mxu1  ;;  %v6511_v36 = vmax.f32 %v5579_v0, %v6510_v35  ;;  %v6512_v50 = vld [vmem:[#allocation3_spill] sm:$0xff] }
 0x1a0   : > { %3560 = vst [vmem:[%s5931_s26 + $0x78] sm:$0xff] %v3488_v51  ;;  %v3418_v30 = vadd.f32 %v5918_v34, %v3339_v59  ;;  %v3269_v52 = vmax.f32 %v4583_v11, %v4699_v12  ;;  %v2196_v53 = vpop.f32.mrb[91].mxu0  ;;  %v2909_v44 = vpop.f32.mrb[91].mxu1  ;;  %v6513_v51 = vld [vmem:[#allocation4_spill] sm:$0xff] }
 0x1a1   : > { %3559 = vst [vmem:[%s5931_s26 + $0x70] sm:$0xff] %v3487_v60  ;;  %v3417_v55 = vadd.f32 %v5918_v34, %v3338_v3  ;;  %v3268_v14 = vmax.f32 %v2196_v53, %v2909_v44  ;;  %v6514_v8 = vmax.f32 %v6512_v50, %v6513_v51  ;;  %v6515_v44 = vld [vmem:[#allocation5_spill] sm:$0xff] }
 0x1a2   : > { %v3490_v15 = vmax.f32 %v3418_v30, 0.0  ;;  %v3341_v17 = vmax.f32 %v6504_v56, %v3269_v52 }
 0x1a3   : > { %v3489_v24 = vmax.f32 %v3417_v55, 0.0  ;;  %v3340_v4 = vmax.f32 %v6505_v54, %v3268_v14  ;;  %v4586_v47 = vpop.f32.mrb[92].mxu0  ;;  %v4702_v18 = vpop.f32.mrb[92].mxu1  ;;  %v6516_v55 = vld [vmem:[#allocation6_spill] sm:$0xff] }
 0x1a4   : > { %3562 = vst [vmem:[%s5931_s26 + $0x88] sm:$0xff] %v3490_v15  ;;  %v3420_v19 = vadd.f32 %v5918_v34, %v3341_v17  ;;  %v3271_v10 = vmax.f32 %v4586_v47, %v4702_v18  ;;  %v2206_v21 = vpop.f32.mrb[93].mxu0  ;;  %v2919_v22 = vpop.f32.mrb[93].mxu1  ;;  %v6517_v14 = vmax.f32 %v6515_v44, %v6516_v55  ;;  %v6518_v17 = vld [vmem:[#allocation7_spill] sm:$0xff] }
 0x1a5   : > { %3561 = vst [vmem:[%s5931_s26 + $0x80] sm:$0xff] %v3489_v24  ;;  %v3419_v27 = vadd.f32 %v5918_v34, %v3340_v4  ;;  %v3270_v48 = vmax.f32 %v2206_v21, %v2919_v22  ;;  %v6519_v24 = vld [vmem:[#allocation8_spill] sm:$0xff] }
 0x1a6   : > { %v3492_v49 = vmax.f32 %v3420_v19, 0.0  ;;  %v3343_v5 = vmax.f32 %v6506_v61, %v3271_v10  ;;  %v6520_v54 = vmax.f32 %v6518_v17, %v6519_v24  ;;  %v6521_v61 = vld [vmem:[#allocation9_spill] sm:$0xff] }
 0x1a7   : > { %v3491_v6 = vmax.f32 %v3419_v27, 0.0  ;;  %v3342_v42 = vmax.f32 %v6507_v39, %v3270_v48  ;;  %v4589_v43 = vpop.f32.mrb[94].mxu0  ;;  %v4705_v62 = vpop.f32.mrb[94].mxu1 }
 0x1a8   : > { %3564 = vst [vmem:[%s5931_s26 + $0x98] sm:$0xff] %v3492_v49  ;;  %v3422_v63 = vadd.f32 %v5918_v34, %v3343_v5  ;;  %v3273_v23 = vmax.f32 %v4589_v43, %v4705_v62  ;;  %v2216_v1 = vpop.f32.mrb[95].mxu0  ;;  %v2929_v28 = vpop.f32.mrb[95].mxu1  ;;  %v6522_v5 = vld [vmem:[#allocation10_spill] sm:$0xff]  ;;  %v6524_v43 = vld [vmem:[#allocation11_spill] sm:$0xff]  ;;  %v6525_v62 = vld [vmem:[#allocation12_spill] sm:$0xff] }
 0x1a9   : > { %3563 = vst [vmem:[%s5931_s26 + $0x90] sm:$0xff] %v3491_v6  ;;  %v3421_v29 = vadd.f32 %v5918_v34, %v3342_v42  ;;  %v3272_v58 = vmax.f32 %v2216_v1, %v2929_v28  ;;  %v6523_v6 = vmax.f32 %v6521_v61, %v6522_v5 }
 0x1aa   : > { %v3494_v26 = vmax.f32 %v3422_v63, 0.0  ;;  %v3345_v7 = vmax.f32 %v6508_v2, %v3273_v23  ;;  %v6526_v63 = vmax.f32 %v6524_v43, %v6525_v62 }
 0x1ab   : > { %v3493_v40 = vmax.f32 %v3421_v29, 0.0  ;;  %v3344_v38 = vmax.f32 %v6509_v31, %v3272_v58  ;;  %v4592_v45 = vpop.f32.mrb[96].mxu0  ;;  %v4708_v46 = vpop.f32.mrb[96].mxu1 }
 0x1ac   : > { %3566 = vst [vmem:[%s5931_s26 + $0xa8] sm:$0xff] %v3494_v26  ;;  %v3424_v37 = vadd.f32 %v5918_v34, %v3345_v7  ;;  %v3275_v57 = vmax.f32 %v4592_v45, %v4708_v46  ;;  %v2226_v32 = vpop.f32.mrb[97].mxu0  ;;  %v2939_v33 = vpop.f32.mrb[97].mxu1  ;;  %v6528_v45 = vld [vmem:[#allocation14_spill] sm:$0xff] }
 0x1ad   : > { %3565 = vst [vmem:[%s5931_s26 + $0xa0] sm:$0xff] %v3493_v40  ;;  %v3423_v13 = vadd.f32 %v5918_v34, %v3344_v38  ;;  %v3274_v20 = vmax.f32 %v2226_v32, %v2939_v33  ;;  %v6527_v38 = vld [vmem:[#allocation13_spill] sm:$0xff]  ;;  %v6530_v32 = vld [vmem:[#allocation15_spill] sm:$0xff]  ;;  %v6531_v33 = vld [vmem:[#allocation16_spill] sm:$0xff] }
 0x1ae   : > { %v3496_v25 = vmax.f32 %v3424_v37, 0.0  ;;  %v3347_v41 = vmax.f32 %v6511_v36, %v3275_v57  ;;  %v6529_v46 = vmax.f32 %v6527_v38, %v6528_v45 }
 0x1af   : > { %v3495_v16 = vmax.f32 %v3423_v13, 0.0  ;;  %v3346_v59 = vmax.f32 %v6514_v8, %v3274_v20  ;;  %v4595_v60 = vpop.f32.mrb[98].mxu0  ;;  %v4711_v9 = vpop.f32.mrb[98].mxu1  ;;  %v6532_v13 = vmax.f32 %v6530_v32, %v6531_v33 }
 0x1b0   : > { %3568 = vst [vmem:[%s5931_s26 + $0xb8] sm:$0xff] %v3496_v25  ;;  %v3426_v3 = vadd.f32 %v5918_v34, %v3347_v41  ;;  %v3277_v11 = vmax.f32 %v4595_v60, %v4711_v9  ;;  %v2236_v12 = vpop.f32.mrb[99].mxu0  ;;  %v2949_v30 = vpop.f32.mrb[99].mxu1  ;;  %v6533_v60 = vld [vmem:[#allocation17_spill] sm:$0xff]  ;;  %v6534_v9 = vld [vmem:[#allocation18_spill] sm:$0xff] }
 0x1b1   : > { %3567 = vst [vmem:[%s5931_s26 + $0xb0] sm:$0xff] %v3495_v16  ;;  %v3425_v52 = vadd.f32 %v5918_v34, %v3346_v59  ;;  %v3276_v0 = vmax.f32 %v2236_v12, %v2949_v30  ;;  %v6536_v30 = vld [vmem:[#allocation19_spill] sm:$0xff] }
 0x1b2   : > { %v3498_v53 = vmax.f32 %v3426_v3, 0.0  ;;  %v3349_v15 = vmax.f32 %v6517_v14, %v3277_v11  ;;  %v6535_v3 = vmax.f32 %v6533_v60, %v6534_v9 }
 0x1b3   : > { %v3497_v56 = vmax.f32 %v3425_v52, 0.0  ;;  %v3348_v4 = vmax.f32 %v6520_v54, %v3276_v0  ;;  %v4598_v47 = vpop.f32.mrb[100].mxu0  ;;  %v4714_v18 = vpop.f32.mrb[100].mxu1  ;;  %v6537_v52 = vld [vmem:[#allocation20_spill] sm:$0xff] }
 0x1b4   : > { %3570 = vst [vmem:[%s5931_s26 + $0xc8] sm:$0xff] %v3498_v53  ;;  %v3428_v19 = vadd.f32 %v5918_v34, %v3349_v15  ;;  %v3279_v10 = vmax.f32 %v4598_v47, %v4714_v18  ;;  %v2246_v21 = vpop.f32.mrb[101].mxu0  ;;  %v2959_v22 = vpop.f32.mrb[101].mxu1  ;;  %v6538_v0 = vmax.f32 %v6536_v30, %v6537_v52  ;;  %v6539_v47 = vld [vmem:[#allocation21_spill] sm:$0xff]  ;;  %v6540_v18 = vld [vmem:[#allocation22_spill] sm:$0xff] }
 0x1b5   : > { %3569 = vst [vmem:[%s5931_s26 + $0xc0] sm:$0xff] %v3497_v56  ;;  %v3427_v27 = vadd.f32 %v5918_v34, %v3348_v4  ;;  %v3278_v48 = vmax.f32 %v2246_v21, %v2959_v22  ;;  %v6542_v22 = vld [vmem:[#allocation23_spill] sm:$0xff] }
 0x1b6   : > { %v3500_v49 = vmax.f32 %v3428_v19, 0.0  ;;  %v3351_v39 = vmax.f32 %v6523_v6, %v3279_v10  ;;  %v6541_v19 = vmax.f32 %v6539_v47, %v6540_v18 }
 0x1b7   : > { %v3499_v42 = vmax.f32 %v3427_v27, 0.0  ;;  %v3350_v23 = vmax.f32 %v6526_v63, %v3278_v48  ;;  %v4601_v1 = vpop.f32.mrb[102].mxu0  ;;  %v4717_v28 = vpop.f32.mrb[102].mxu1  ;;  %v6543_v27 = vld [vmem:[#allocation24_spill] sm:$0xff] }
 0x1b8   : > { %3572 = vst [vmem:[%s5931_s26 + $0xd8] sm:$0xff] %v3500_v49  ;;  %v3430_v29 = vadd.f32 %v5918_v34, %v3351_v39  ;;  %v3281_v58 = vmax.f32 %v4601_v1, %v4717_v28  ;;  %v2256_v26 = vpop.f32.mrb[103].mxu0  ;;  %v2969_v2 = vpop.f32.mrb[103].mxu1  ;;  %v6544_v48 = vmax.f32 %v6542_v22, %v6543_v27  ;;  %v6545_v1 = vld [vmem:[#allocation25_spill] sm:$0xff]  ;;  %v6546_v28 = vld [vmem:[#allocation26_spill] sm:$0xff] }
 0x1b9   : > { %3571 = vst [vmem:[%s5931_s26 + $0xd0] sm:$0xff] %v3499_v42  ;;  %v3429_v7 = vadd.f32 %v5918_v34, %v3350_v23  ;;  %v3280_v40 = vmax.f32 %v2256_v26, %v2969_v2  ;;  %v6548_v2 = vld [vmem:[#allocation27_spill] sm:$0xff] }
 0x1ba   : > { %v3502_v31 = vmax.f32 %v3430_v29, 0.0  ;;  %v3353_v37 = vmax.f32 %v6529_v46, %v3281_v58  ;;  %v6547_v29 = vmax.f32 %v6545_v1, %v6546_v28 }
 0x1bb   : > { %v3501_v57 = vmax.f32 %v3429_v7, 0.0  ;;  %v3352_v20 = vmax.f32 %v6532_v13, %v3280_v40  ;;  %v4604_v25 = vpop.f32.mrb[104].mxu0  ;;  %v4720_v35 = vpop.f32.mrb[104].mxu1  ;;  %v6549_v7 = vld [vmem:[#allocation28_spill] sm:$0xff] }
 0x1bc   : > { %3574 = vst [vmem:[%s5931_s26 + $0xe8] sm:$0xff] %v3502_v31  ;;  %v3432_v36 = vadd.f32 %v5918_v34, %v3353_v37  ;;  %v3283_v41 = vmax.f32 %v4604_v25, %v4720_v35  ;;  %v2266_v16 = vpop.f32.mrb[105].mxu0  ;;  %v2979_v50 = vpop.f32.mrb[105].mxu1  ;;  %v6550_v40 = vmax.f32 %v6548_v2, %v6549_v7  ;;  %v6551_v25 = vld [vmem:[#allocation29_spill] sm:$0xff]  ;;  %v6552_v35 = vld [vmem:[#allocation30_spill] sm:$0xff] }
 0x1bd   : > { %3573 = vst [vmem:[%s5931_s26 + $0xe0] sm:$0xff] %v3501_v57  ;;  %v3431_v51 = vadd.f32 %v5918_v34, %v3352_v20  ;;  %v3282_v8 = vmax.f32 %v2266_v16, %v2979_v50  ;;  %v6554_v50 = vld [vmem:[#allocation31_spill] sm:$0xff] }
 0x1be   : > { %v3504_v59 = vmax.f32 %v3432_v36, 0.0  ;;  %v3355_v11 = vmax.f32 %v6535_v3, %v3283_v41  ;;  %v6553_v36 = vmax.f32 %v6551_v25, %v6552_v35 }
 0x1bf   : > { %v3503_v12 = vmax.f32 %v3431_v51, 0.0  ;;  %v3354_v53 = vmax.f32 %v6538_v0, %v3282_v8  ;;  %v4607_v44 = vpop.f32.mrb[106].mxu0  ;;  %v4723_v55 = vpop.f32.mrb[106].mxu1  ;;  %v6555_v51 = vld [vmem:[#allocation32_spill] sm:$0xff] }
 0x1c0   : > { %3576 = vst [vmem:[%s5931_s26 + $0xf8] sm:$0xff] %v3504_v59  ;;  %v3434_v14 = vadd.f32 %v5918_v34, %v3355_v11  ;;  %v3285_v15 = vmax.f32 %v4607_v44, %v4723_v55  ;;  %v2276_v56 = vpop.f32.mrb[107].mxu0  ;;  %v2989_v17 = vpop.f32.mrb[107].mxu1  ;;  %v6556_v8 = vmax.f32 %v6554_v50, %v6555_v51  ;;  %v6557_v44 = vld [vmem:[#allocation33_spill] sm:$0xff]  ;;  %v6558_v55 = vld [vmem:[#allocation34_spill] sm:$0xff] }
 0x1c1   : > { %3575 = vst [vmem:[%s5931_s26 + $0xf0] sm:$0xff] %v3503_v12  ;;  %v3433_v24 = vadd.f32 %v5918_v34, %v3354_v53  ;;  %v3284_v54 = vmax.f32 %v2276_v56, %v2989_v17  ;;  %v6560_v17 = vld [vmem:[#allocation35_spill] sm:$0xff] }
 0x1c2   : > { %v3506_v4 = vmax.f32 %v3434_v14, 0.0  ;;  %v3357_v10 = vmax.f32 %v6541_v19, %v3285_v15  ;;  %v6559_v14 = vmax.f32 %v6557_v44, %v6558_v55 }
 0x1c3   : > { %v3505_v21 = vmax.f32 %v3433_v24, 0.0  ;;  %v3356_v49 = vmax.f32 %v6544_v48, %v3284_v54  ;;  %v4610_v61 = vpop.f32.mrb[108].mxu0  ;;  %v4726_v5 = vpop.f32.mrb[108].mxu1  ;;  %v6561_v24 = vld [vmem:[#allocation36_spill] sm:$0xff] }
 0x1c4   : > { %3578 = vst [vmem:[%s5931_s26 + $0x108] sm:$0xff] %v3506_v4  ;;  %v3436_v6 = vadd.f32 %v5918_v34, %v3357_v10  ;;  %v3287_v39 = vmax.f32 %v4610_v61, %v4726_v5  ;;  %v2286_v42 = vpop.f32.mrb[109].mxu0  ;;  %v2999_v43 = vpop.f32.mrb[109].mxu1  ;;  %v6562_v54 = vmax.f32 %v6560_v17, %v6561_v24  ;;  %v6563_v61 = vld [vmem:[#allocation37_spill] sm:$0xff]  ;;  %v6564_v5 = vld [vmem:[#allocation38_spill] sm:$0xff] }
 0x1c5   : > { %3577 = vst [vmem:[%s5931_s26 + $0x100] sm:$0xff] %v3505_v21  ;;  %v3435_v62 = vadd.f32 %v5918_v34, %v3356_v49  ;;  %v3286_v63 = vmax.f32 %v2286_v42, %v2999_v43  ;;  %v6566_v43 = vld [vmem:[#allocation39_spill] sm:$0xff] }
 0x1c6   : > { %v3508_v23 = vmax.f32 %v3436_v6, 0.0  ;;  %v3359_v58 = vmax.f32 %v6547_v29, %v3287_v39  ;;  %v6565_v6 = vmax.f32 %v6563_v61, %v6564_v5 }
 0x1c7   : > { %v3507_v26 = vmax.f32 %v3435_v62, 0.0  ;;  %v3358_v31 = vmax.f32 %v6550_v40, %v3286_v63  ;;  %v4613_v38 = vpop.f32.mrb[110].mxu0  ;;  %v4729_v45 = vpop.f32.mrb[110].mxu1  ;;  %v6567_v62 = vld [vmem:[#allocation40_spill] sm:$0xff] }
 0x1c8   : > { %3580 = vst [vmem:[%s5931_s26 + $0x118] sm:$0xff] %v3508_v23  ;;  %v3438_v46 = vadd.f32 %v5918_v34, %v3359_v58  ;;  %v3289_v37 = vmax.f32 %v4613_v38, %v4729_v45  ;;  %v2296_v57 = vpop.f32.mrb[111].mxu0  ;;  %v3009_v32 = vpop.f32.mrb[111].mxu1  ;;  %v6568_v63 = vmax.f32 %v6566_v43, %v6567_v62  ;;  %v6569_v38 = vld [vmem:[#allocation41_spill] sm:$0xff]  ;;  %v6570_v45 = vld [vmem:[#allocation42_spill] sm:$0xff] }
 0x1c9   : > { %3579 = vst [vmem:[%s5931_s26 + $0x110] sm:$0xff] %v3507_v26  ;;  %v3437_v33 = vadd.f32 %v5918_v34, %v3358_v31  ;;  %v3288_v13 = vmax.f32 %v2296_v57, %v3009_v32  ;;  %v6572_v32 = vld [vmem:[#allocation43_spill] sm:$0xff] }
 0x1ca   : > { %v3510_v20 = vmax.f32 %v3438_v46, 0.0  ;;  %v3361_v41 = vmax.f32 %v6553_v36, %v3289_v37  ;;  %v6571_v46 = vmax.f32 %v6569_v38, %v6570_v45 }
 0x1cb   : > { %v3509_v16 = vmax.f32 %v3437_v33, 0.0  ;;  %v3360_v59 = vmax.f32 %v6556_v8, %v3288_v13  ;;  %v4616_v60 = vpop.f32.mrb[112].mxu0  ;;  %v4732_v9 = vpop.f32.mrb[112].mxu1  ;;  %v6573_v33 = vld [vmem:[#allocation44_spill] sm:$0xff] }
 0x1cc   : > { %3582 = vst [vmem:[%s5931_s26 + $0x128] sm:$0xff] %v3510_v20  ;;  %v3440_v3 = vadd.f32 %v5918_v34, %v3361_v41  ;;  %v3291_v11 = vmax.f32 %v4616_v60, %v4732_v9  ;;  %v2306_v12 = vpop.f32.mrb[113].mxu0  ;;  %v3019_v30 = vpop.f32.mrb[113].mxu1  ;;  %v6574_v13 = vmax.f32 %v6572_v32, %v6573_v33  ;;  %v6575_v60 = vld [vmem:[#allocation45_spill] sm:$0xff]  ;;  %v6576_v9 = vld [vmem:[#allocation46_spill] sm:$0xff] }
 0x1cd   : > { %3581 = vst [vmem:[%s5931_s26 + $0x120] sm:$0xff] %v3509_v16  ;;  %v3439_v52 = vadd.f32 %v5918_v34, %v3360_v59  ;;  %v3290_v0 = vmax.f32 %v2306_v12, %v3019_v30  ;;  %v6578_v30 = vld [vmem:[#allocation47_spill] sm:$0xff] }
 0x1ce   : > { %v3512_v53 = vmax.f32 %v3440_v3, 0.0  ;;  %v3363_v15 = vmax.f32 %v6559_v14, %v3291_v11  ;;  %v6577_v3 = vmax.f32 %v6575_v60, %v6576_v9 }
 0x1cf   : > { %v3511_v56 = vmax.f32 %v3439_v52, 0.0  ;;  %v3362_v4 = vmax.f32 %v6562_v54, %v3290_v0  ;;  %v4619_v47 = vpop.f32.mrb[114].mxu0  ;;  %v4735_v18 = vpop.f32.mrb[114].mxu1  ;;  %v6579_v52 = vld [vmem:[#allocation48_spill] sm:$0xff] }
 0x1d0   : > { %3584 = vst [vmem:[%s5931_s26 + $0x138] sm:$0xff] %v3512_v53  ;;  %v3442_v19 = vadd.f32 %v5918_v34, %v3363_v15  ;;  %v3293_v10 = vmax.f32 %v4619_v47, %v4735_v18  ;;  %v2316_v21 = vpop.f32.mrb[115].mxu0  ;;  %v3029_v22 = vpop.f32.mrb[115].mxu1  ;;  %v6580_v0 = vmax.f32 %v6578_v30, %v6579_v52  ;;  %v6581_v47 = vld [vmem:[#allocation49_spill] sm:$0xff]  ;;  %v6582_v18 = vld [vmem:[#allocation50_spill] sm:$0xff] }
 0x1d1   : > { %3583 = vst [vmem:[%s5931_s26 + $0x130] sm:$0xff] %v3511_v56  ;;  %v3441_v27 = vadd.f32 %v5918_v34, %v3362_v4  ;;  %v3292_v48 = vmax.f32 %v2316_v21, %v3029_v22  ;;  %v6584_v22 = vld [vmem:[#allocation51_spill] sm:$0xff] }
 0x1d2   : > { %v3514_v49 = vmax.f32 %v3442_v19, 0.0  ;;  %v3365_v39 = vmax.f32 %v6565_v6, %v3293_v10  ;;  %v6583_v19 = vmax.f32 %v6581_v47, %v6582_v18 }
 0x1d3   : > { %v3513_v42 = vmax.f32 %v3441_v27, 0.0  ;;  %v3364_v23 = vmax.f32 %v6568_v63, %v3292_v48  ;;  %v4622_v1 = vpop.f32.mrb[116].mxu0  ;;  %v4738_v28 = vpop.f32.mrb[116].mxu1  ;;  %v6585_v27 = vld [vmem:[#allocation52_spill] sm:$0xff] }
 0x1d4   : > { %3586 = vst [vmem:[%s5931_s26 + $0x148] sm:$0xff] %v3514_v49  ;;  %v3444_v29 = vadd.f32 %v5918_v34, %v3365_v39  ;;  %v3295_v58 = vmax.f32 %v4622_v1, %v4738_v28  ;;  %v2326_v26 = vpop.f32.mrb[117].mxu0  ;;  %v3039_v2 = vpop.f32.mrb[117].mxu1  ;;  %v6586_v48 = vmax.f32 %v6584_v22, %v6585_v27  ;;  %v6587_v1 = vld [vmem:[#allocation53_spill] sm:$0xff]  ;;  %v6588_v28 = vld [vmem:[#allocation54_spill] sm:$0xff] }
 0x1d5   : > { %3585 = vst [vmem:[%s5931_s26 + $0x140] sm:$0xff] %v3513_v42  ;;  %v3443_v7 = vadd.f32 %v5918_v34, %v3364_v23  ;;  %v3294_v40 = vmax.f32 %v2326_v26, %v3039_v2  ;;  %v6590_v2 = vld [vmem:[#allocation55_spill] sm:$0xff] }
 0x1d6   : > { %v3516_v31 = vmax.f32 %v3444_v29, 0.0  ;;  %v3367_v37 = vmax.f32 %v6571_v46, %v3295_v58  ;;  %v6589_v29 = vmax.f32 %v6587_v1, %v6588_v28 }
 0x1d7   : > { %v3515_v57 = vmax.f32 %v3443_v7, 0.0  ;;  %v3366_v20 = vmax.f32 %v6574_v13, %v3294_v40  ;;  %v4625_v25 = vpop.f32.mrb[118].mxu0  ;;  %v4741_v35 = vpop.f32.mrb[118].mxu1  ;;  %v6591_v7 = vld [vmem:[#allocation56_spill] sm:$0xff] }
 0x1d8   : > { %3588 = vst [vmem:[%s5931_s26 + $0x158] sm:$0xff] %v3516_v31  ;;  %v3446_v36 = vadd.f32 %v5918_v34, %v3367_v37  ;;  %v3297_v41 = vmax.f32 %v4625_v25, %v4741_v35  ;;  %v2336_v16 = vpop.f32.mrb[119].mxu0  ;;  %v3049_v50 = vpop.f32.mrb[119].mxu1  ;;  %v6592_v40 = vmax.f32 %v6590_v2, %v6591_v7  ;;  %v6593_v25 = vld [vmem:[#allocation57_spill] sm:$0xff]  ;;  %v6594_v35 = vld [vmem:[#allocation58_spill] sm:$0xff] }
 0x1d9   : > { %3587 = vst [vmem:[%s5931_s26 + $0x150] sm:$0xff] %v3515_v57  ;;  %v3445_v51 = vadd.f32 %v5918_v34, %v3366_v20  ;;  %v3296_v8 = vmax.f32 %v2336_v16, %v3049_v50  ;;  %v6596_v50 = vld [vmem:[#allocation59_spill] sm:$0xff] }
 0x1da   : > { %v3518_v59 = vmax.f32 %v3446_v36, 0.0  ;;  %v3369_v11 = vmax.f32 %v6577_v3, %v3297_v41  ;;  %v6595_v36 = vmax.f32 %v6593_v25, %v6594_v35 }
 0x1db   : > { %v3517_v12 = vmax.f32 %v3445_v51, 0.0  ;;  %v3368_v53 = vmax.f32 %v6580_v0, %v3296_v8  ;;  %v4628_v44 = vpop.f32.mrb[120].mxu0  ;;  %v4744_v55 = vpop.f32.mrb[120].mxu1  ;;  %v6597_v51 = vld [vmem:[#allocation60_spill] sm:$0xff] }
 0x1dc   : > { %3590 = vst [vmem:[%s5931_s26 + $0x168] sm:$0xff] %v3518_v59  ;;  %v3448_v14 = vadd.f32 %v5918_v34, %v3369_v11  ;;  %v3299_v15 = vmax.f32 %v4628_v44, %v4744_v55  ;;  %v2346_v56 = vpop.f32.mrb[121].mxu0  ;;  %v3059_v17 = vpop.f32.mrb[121].mxu1  ;;  %v6598_v8 = vmax.f32 %v6596_v50, %v6597_v51  ;;  %v6599_v44 = vld [vmem:[#allocation61_spill] sm:$0xff]  ;;  %v6600_v55 = vld [vmem:[#allocation62_spill] sm:$0xff] }
 0x1dd   : > { %3589 = vst [vmem:[%s5931_s26 + $0x160] sm:$0xff] %v3517_v12  ;;  %v3447_v24 = vadd.f32 %v5918_v34, %v3368_v53  ;;  %v3298_v54 = vmax.f32 %v2346_v56, %v3059_v17  ;;  %v6602_v17 = vld [vmem:[#allocation63_spill] sm:$0xff] }
 0x1de   : > { %v3520_v4 = vmax.f32 %v3448_v14, 0.0  ;;  %v3371_v10 = vmax.f32 %v6583_v19, %v3299_v15  ;;  %v6601_v14 = vmax.f32 %v6599_v44, %v6600_v55 }
 0x1df   : > { %v3519_v21 = vmax.f32 %v3447_v24, 0.0  ;;  %v3370_v49 = vmax.f32 %v6586_v48, %v3298_v54  ;;  %v4631_v61 = vpop.f32.mrb[122].mxu0  ;;  %v4747_v5 = vpop.f32.mrb[122].mxu1  ;;  %v6603_v24 = vld [vmem:[#allocation64_spill] sm:$0xff] }
 0x1e0   : > { %3592 = vst [vmem:[%s5931_s26 + $0x178] sm:$0xff] %v3520_v4  ;;  %v3450_v6 = vadd.f32 %v5918_v34, %v3371_v10  ;;  %v3301_v39 = vmax.f32 %v4631_v61, %v4747_v5  ;;  %v2356_v42 = vpop.f32.mrb[123].mxu0  ;;  %v3069_v43 = vpop.f32.mrb[123].mxu1  ;;  %v6604_v54 = vmax.f32 %v6602_v17, %v6603_v24  ;;  %v6605_v61 = vld [vmem:[#allocation65_spill] sm:$0xff]  ;;  %v6606_v5 = vld [vmem:[#allocation66_spill] sm:$0xff] }
 0x1e1   : > { %3591 = vst [vmem:[%s5931_s26 + $0x170] sm:$0xff] %v3519_v21  ;;  %v3449_v62 = vadd.f32 %v5918_v34, %v3370_v49  ;;  %v3300_v63 = vmax.f32 %v2356_v42, %v3069_v43  ;;  %v6608_v43 = vld [vmem:[#allocation67_spill] sm:$0xff] }
 0x1e2   : > { %v3522_v23 = vmax.f32 %v3450_v6, 0.0  ;;  %v3373_v58 = vmax.f32 %v6589_v29, %v3301_v39  ;;  %v6607_v6 = vmax.f32 %v6605_v61, %v6606_v5 }
 0x1e3   : > { %v3521_v26 = vmax.f32 %v3449_v62, 0.0  ;;  %v3372_v31 = vmax.f32 %v6592_v40, %v3300_v63  ;;  %v4634_v38 = vpop.f32.mrb[124].mxu0  ;;  %v4750_v45 = vpop.f32.mrb[124].mxu1  ;;  %v6609_v62 = vld [vmem:[#allocation68_spill] sm:$0xff] }
 0x1e4   : > { %3594 = vst [vmem:[%s5931_s26 + $0x188] sm:$0xff] %v3522_v23  ;;  %v3452_v46 = vadd.f32 %v5918_v34, %v3373_v58  ;;  %v3303_v37 = vmax.f32 %v4634_v38, %v4750_v45  ;;  %v2366_v57 = vpop.f32.mrb[125].mxu0  ;;  %v3079_v32 = vpop.f32.mrb[125].mxu1  ;;  %v6610_v63 = vmax.f32 %v6608_v43, %v6609_v62  ;;  %v6611_v38 = vld [vmem:[#allocation69_spill] sm:$0xff]  ;;  %v6612_v45 = vld [vmem:[#allocation70_spill] sm:$0xff] }
 0x1e5   : > { %3593 = vst [vmem:[%s5931_s26 + $0x180] sm:$0xff] %v3521_v26  ;;  %v3451_v33 = vadd.f32 %v5918_v34, %v3372_v31  ;;  %v3302_v13 = vmax.f32 %v2366_v57, %v3079_v32  ;;  %v6614_v32 = vld [vmem:[#allocation71_spill] sm:$0xff] }
 0x1e6   : > { %v3524_v20 = vmax.f32 %v3452_v46, 0.0  ;;  %v3375_v41 = vmax.f32 %v6595_v36, %v3303_v37  ;;  %v6613_v46 = vmax.f32 %v6611_v38, %v6612_v45 }
 0x1e7   : > { %v3523_v16 = vmax.f32 %v3451_v33, 0.0  ;;  %v3374_v59 = vmax.f32 %v6598_v8, %v3302_v13  ;;  %v4637_v60 = vpop.f32.mrb[126].mxu0  ;;  %v4753_v9 = vpop.f32.mrb[126].mxu1  ;;  %v6615_v33 = vld [vmem:[#allocation72_spill] sm:$0xff] }
 0x1e8   : > { %3596 = vst [vmem:[%s5931_s26 + $0x198] sm:$0xff] %v3524_v20  ;;  %v3454_v3 = vadd.f32 %v5918_v34, %v3375_v41  ;;  %v3305_v11 = vmax.f32 %v4637_v60, %v4753_v9  ;;  %v2376_v12 = vpop.f32.mrb[127].mxu0  ;;  %v3089_v30 = vpop.f32.mrb[127].mxu1  ;;  %v6616_v13 = vmax.f32 %v6614_v32, %v6615_v33  ;;  %v6617_v60 = vld [vmem:[#allocation73_spill] sm:$0xff]  ;;  %v6618_v9 = vld [vmem:[#allocation74_spill] sm:$0xff] }
 0x1e9   : > { %3595 = vst [vmem:[%s5931_s26 + $0x190] sm:$0xff] %v3523_v16  ;;  %v3453_v52 = vadd.f32 %v5918_v34, %v3374_v59  ;;  %v3304_v0 = vmax.f32 %v2376_v12, %v3089_v30  ;;  %v6620_v30 = vld [vmem:[#allocation75_spill] sm:$0xff] }
 0x1ea   : > { %v3526_v53 = vmax.f32 %v3454_v3, 0.0  ;;  %v3377_v15 = vmax.f32 %v6601_v14, %v3305_v11  ;;  %v6619_v3 = vmax.f32 %v6617_v60, %v6618_v9 }
 0x1eb   : > { %v3525_v56 = vmax.f32 %v3453_v52, 0.0  ;;  %v3376_v4 = vmax.f32 %v6604_v54, %v3304_v0  ;;  %v4640_v47 = vpop.f32.mrb[128].mxu0  ;;  %v4756_v18 = vpop.f32.mrb[128].mxu1  ;;  %v6621_v52 = vld [vmem:[#allocation76_spill] sm:$0xff] }
 0x1ec   : > { %3598 = vst [vmem:[%s5931_s26 + $0x1a8] sm:$0xff] %v3526_v53  ;;  %v3456_v19 = vadd.f32 %v5918_v34, %v3377_v15  ;;  %v3307_v10 = vmax.f32 %v4640_v47, %v4756_v18  ;;  %v2386_v21 = vpop.f32.mrb[129].mxu0  ;;  %v3099_v22 = vpop.f32.mrb[129].mxu1  ;;  %v6622_v0 = vmax.f32 %v6620_v30, %v6621_v52  ;;  %v6623_v47 = vld [vmem:[#allocation77_spill] sm:$0xff]  ;;  %v6624_v18 = vld [vmem:[#allocation78_spill] sm:$0xff] }
 0x1ed   : > { %3597 = vst [vmem:[%s5931_s26 + $0x1a0] sm:$0xff] %v3525_v56  ;;  %v3455_v27 = vadd.f32 %v5918_v34, %v3376_v4  ;;  %v3306_v48 = vmax.f32 %v2386_v21, %v3099_v22  ;;  %v6626_v22 = vld [vmem:[#allocation79_spill] sm:$0xff] }
 0x1ee   : > { %v3528_v49 = vmax.f32 %v3456_v19, 0.0  ;;  %v3379_v39 = vmax.f32 %v6607_v6, %v3307_v10  ;;  %v6625_v19 = vmax.f32 %v6623_v47, %v6624_v18 }
 0x1ef   : > { %v3527_v42 = vmax.f32 %v3455_v27, 0.0  ;;  %v3378_v23 = vmax.f32 %v6610_v63, %v3306_v48  ;;  %v4643_v1 = vpop.f32.mrb[130].mxu0  ;;  %v4759_v28 = vpop.f32.mrb[130].mxu1  ;;  %v6627_v27 = vld [vmem:[#allocation80_spill] sm:$0xff] }
 0x1f0   : > { %3600 = vst [vmem:[%s5931_s26 + $0x1b8] sm:$0xff] %v3528_v49  ;;  %v3458_v29 = vadd.f32 %v5918_v34, %v3379_v39  ;;  %v3309_v58 = vmax.f32 %v4643_v1, %v4759_v28  ;;  %v2396_v26 = vpop.f32.mrb[131].mxu0  ;;  %v3109_v2 = vpop.f32.mrb[131].mxu1  ;;  %v6628_v48 = vmax.f32 %v6626_v22, %v6627_v27  ;;  %v6629_v1 = vld [vmem:[#allocation81_spill] sm:$0xff]  ;;  %v6630_v28 = vld [vmem:[#allocation82_spill] sm:$0xff] }
 0x1f1   : > { %3599 = vst [vmem:[%s5931_s26 + $0x1b0] sm:$0xff] %v3527_v42  ;;  %v3457_v7 = vadd.f32 %v5918_v34, %v3378_v23  ;;  %v3308_v40 = vmax.f32 %v2396_v26, %v3109_v2  ;;  %v6632_v2 = vld [vmem:[#allocation83_spill] sm:$0xff] }
 0x1f2   : > { %v3530_v31 = vmax.f32 %v3458_v29, 0.0  ;;  %v3381_v37 = vmax.f32 %v6613_v46, %v3309_v58  ;;  %v6631_v29 = vmax.f32 %v6629_v1, %v6630_v28 }
 0x1f3   : > { %v3529_v57 = vmax.f32 %v3457_v7, 0.0  ;;  %v3380_v20 = vmax.f32 %v6616_v13, %v3308_v40  ;;  %v4646_v25 = vpop.f32.mrb[132].mxu0  ;;  %v4762_v35 = vpop.f32.mrb[132].mxu1  ;;  %v6633_v7 = vld [vmem:[#allocation84_spill] sm:$0xff] }
 0x1f4   : > { %3602 = vst [vmem:[%s5931_s26 + $0x1c8] sm:$0xff] %v3530_v31  ;;  %v3460_v36 = vadd.f32 %v5918_v34, %v3381_v37  ;;  %v3311_v41 = vmax.f32 %v4646_v25, %v4762_v35  ;;  %v2406_v16 = vpop.f32.mrb[133].mxu0  ;;  %v3119_v50 = vpop.f32.mrb[133].mxu1  ;;  %v6634_v40 = vmax.f32 %v6632_v2, %v6633_v7  ;;  %v6635_v25 = vld [vmem:[#allocation85_spill] sm:$0xff]  ;;  %v6636_v35 = vld [vmem:[#allocation86_spill] sm:$0xff] }
 0x1f5   : > { %3601 = vst [vmem:[%s5931_s26 + $0x1c0] sm:$0xff] %v3529_v57  ;;  %v3459_v51 = vadd.f32 %v5918_v34, %v3380_v20  ;;  %v3310_v8 = vmax.f32 %v2406_v16, %v3119_v50  ;;  %v6638_v50 = vld [vmem:[#allocation87_spill] sm:$0xff] }
 0x1f6   : > { %v3532_v59 = vmax.f32 %v3460_v36, 0.0  ;;  %v3383_v11 = vmax.f32 %v6619_v3, %v3311_v41  ;;  %v6637_v36 = vmax.f32 %v6635_v25, %v6636_v35 }
 0x1f7   : > { %v3531_v12 = vmax.f32 %v3459_v51, 0.0  ;;  %v3382_v53 = vmax.f32 %v6622_v0, %v3310_v8  ;;  %v4649_v44 = vpop.f32.mrb[134].mxu0  ;;  %v4765_v55 = vpop.f32.mrb[134].mxu1  ;;  %v6639_v51 = vld [vmem:[#allocation88_spill] sm:$0xff] }
 0x1f8   : > { %3604 = vst [vmem:[%s5931_s26 + $0x1d8] sm:$0xff] %v3532_v59  ;;  %v3462_v14 = vadd.f32 %v5918_v34, %v3383_v11  ;;  %v3313_v15 = vmax.f32 %v4649_v44, %v4765_v55  ;;  %v2416_v56 = vpop.f32.mrb[135].mxu0  ;;  %v3129_v17 = vpop.f32.mrb[135].mxu1  ;;  %v6640_v8 = vmax.f32 %v6638_v50, %v6639_v51  ;;  %v6641_v44 = vld [vmem:[#allocation89_spill] sm:$0xff]  ;;  %v6642_v55 = vld [vmem:[#allocation90_spill] sm:$0xff] }
 0x1f9   : > { %3603 = vst [vmem:[%s5931_s26 + $0x1d0] sm:$0xff] %v3531_v12  ;;  %v3461_v24 = vadd.f32 %v5918_v34, %v3382_v53  ;;  %v3312_v54 = vmax.f32 %v2416_v56, %v3129_v17  ;;  %v6644_v17 = vld [vmem:[#allocation91_spill] sm:$0xff] }
 0x1fa   : > { %v3534_v4 = vmax.f32 %v3462_v14, 0.0  ;;  %v3385_v10 = vmax.f32 %v6625_v19, %v3313_v15  ;;  %v6643_v14 = vmax.f32 %v6641_v44, %v6642_v55 }
 0x1fb   : > { %v3533_v21 = vmax.f32 %v3461_v24, 0.0  ;;  %v3384_v49 = vmax.f32 %v6628_v48, %v3312_v54  ;;  %v4652_v61 = vpop.f32.mrb[136].mxu0  ;;  %v4768_v5 = vpop.f32.mrb[136].mxu1  ;;  %v6645_v24 = vld [vmem:[#allocation92_spill] sm:$0xff] }
 0x1fc   : > { %3606 = vst [vmem:[%s5931_s26 + $0x1e8] sm:$0xff] %v3534_v4  ;;  %v3464_v6 = vadd.f32 %v5918_v34, %v3385_v10  ;;  %v3315_v39 = vmax.f32 %v4652_v61, %v4768_v5  ;;  %v2426_v42 = vpop.f32.mrb[137].mxu0  ;;  %v3139_v43 = vpop.f32.mrb[137].mxu1  ;;  %v6646_v54 = vmax.f32 %v6644_v17, %v6645_v24  ;;  %v6647_v61 = vld [vmem:[#allocation93_spill] sm:$0xff]  ;;  %v6648_v5 = vld [vmem:[#allocation94_spill] sm:$0xff] }
 0x1fd   : > { %3605 = vst [vmem:[%s5931_s26 + $0x1e0] sm:$0xff] %v3533_v21  ;;  %v3463_v62 = vadd.f32 %v5918_v34, %v3384_v49  ;;  %v3314_v63 = vmax.f32 %v2426_v42, %v3139_v43  ;;  %v6650_v43 = vld [vmem:[#allocation95_spill] sm:$0xff] }
 0x1fe   : > { %v3536_v23 = vmax.f32 %v3464_v6, 0.0  ;;  %v3387_v58 = vmax.f32 %v6631_v29, %v3315_v39  ;;  %v6649_v6 = vmax.f32 %v6647_v61, %v6648_v5 }
 0x1ff   : > { %v3535_v26 = vmax.f32 %v3463_v62, 0.0  ;;  %v3386_v31 = vmax.f32 %v6634_v40, %v3314_v63  ;;  %v4655_v38 = vpop.f32.mrb[138].mxu0  ;;  %v4771_v45 = vpop.f32.mrb[138].mxu1  ;;  %v6651_v62 = vld [vmem:[#allocation96_spill] sm:$0xff] }
 0x200   : > { %3608 = vst [vmem:[%s5931_s26 + $0x1f8] sm:$0xff] %v3536_v23  ;;  %v3466_v46 = vadd.f32 %v5918_v34, %v3387_v58  ;;  %v3317_v37 = vmax.f32 %v4655_v38, %v4771_v45  ;;  %v2436_v57 = vpop.f32.mrb[139].mxu0  ;;  %v3149_v32 = vpop.f32.mrb[139].mxu1  ;;  %v6652_v63 = vmax.f32 %v6650_v43, %v6651_v62 }
 0x201   : > { %3607 = vst [vmem:[%s5931_s26 + $0x1f0] sm:$0xff] %v3535_v26  ;;  %v3465_v33 = vadd.f32 %v5918_v34, %v3386_v31  ;;  %v3316_v13 = vmax.f32 %v2436_v57, %v3149_v32 }
 0x202   : > { %v3538_v20 = vmax.f32 %v3466_v46, 0.0  ;;  %v3389_v41 = vmax.f32 %v6637_v36, %v3317_v37 }
 0x203   : > { %v3537_v16 = vmax.f32 %v3465_v33, 0.0  ;;  %v3388_v59 = vmax.f32 %v6640_v8, %v3316_v13  ;;  %v4658_v60 = vpop.f32.mrb[140].mxu0  ;;  %v4774_v9 = vpop.f32.mrb[140].mxu1 }
 0x204   : > { %3610 = vst [vmem:[%s5931_s26 + $0x208] sm:$0xff] %v3538_v20  ;;  %v3468_v3 = vadd.f32 %v5918_v34, %v3389_v41  ;;  %v3319_v11 = vmax.f32 %v4658_v60, %v4774_v9  ;;  %v2446_v12 = vpop.f32.mrb[141].mxu0  ;;  %v3159_v30 = vpop.f32.mrb[141].mxu1 }
 0x205   : > { %3609 = vst [vmem:[%s5931_s26 + $0x200] sm:$0xff] %v3537_v16  ;;  %v3467_v52 = vadd.f32 %v5918_v34, %v3388_v59  ;;  %v3318_v0 = vmax.f32 %v2446_v12, %v3159_v30 }
 0x206   : > { %v3540_v53 = vmax.f32 %v3468_v3, 0.0  ;;  %v3391_v15 = vmax.f32 %v6643_v14, %v3319_v11 }
 0x207   : > { %v3539_v56 = vmax.f32 %v3467_v52, 0.0  ;;  %v3390_v4 = vmax.f32 %v6646_v54, %v3318_v0  ;;  %v4661_v47 = vpop.f32.mrb[142].mxu0  ;;  %v4777_v18 = vpop.f32.mrb[142].mxu1 }
 0x208   : > { %3612 = vst [vmem:[%s5931_s26 + $0x218] sm:$0xff] %v3540_v53  ;;  %v3470_v19 = vadd.f32 %v5918_v34, %v3391_v15  ;;  %v3321_v10 = vmax.f32 %v4661_v47, %v4777_v18  ;;  %v2456_v21 = vpop.f32.mrb[143].mxu0  ;;  %v3169_v22 = vpop.f32.mrb[143].mxu1 }
 0x209   : > { %3611 = vst [vmem:[%s5931_s26 + $0x210] sm:$0xff] %v3539_v56  ;;  %v3469_v27 = vadd.f32 %v5918_v34, %v3390_v4  ;;  %v3320_v48 = vmax.f32 %v2456_v21, %v3169_v22 }
 0x20a   : > { %v3542_v49 = vmax.f32 %v3470_v19, 0.0  ;;  %v3393_v39 = vmax.f32 %v6649_v6, %v3321_v10 }
 0x20b   : > { %v3541_v42 = vmax.f32 %v3469_v27, 0.0  ;;  %v3392_v23 = vmax.f32 %v6652_v63, %v3320_v48 }
 0x20c   : > { %3614 = vst [vmem:[%s5931_s26 + $0x228] sm:$0xff] %v3542_v49  ;;  %v3472_v1 = vadd.f32 %v5918_v34, %v3393_v39 }
 0x20d   : > { %3613 = vst [vmem:[%s5931_s26 + $0x220] sm:$0xff] %v3541_v42  ;;  %v3471_v28 = vadd.f32 %v5918_v34, %v3392_v23 }
 0x20e   : > { %v3544_v29 = vmax.f32 %v3472_v1, 0.0 }
 0x20f   : > { %v3543_v58 = vmax.f32 %v3471_v28, 0.0 }
 0x210   : > { %3616 = vst [vmem:[%s5931_s26 + $0x238] sm:$0xff] %v3544_v29 }
 0x211   : > { %3615 = vst [vmem:[%s5931_s26 + $0x230] sm:$0xff] %v3543_v58 }
 0x212 PF: > { %s16_s21 = sadd.s32 1, %s4824_s21  }
 0x213   : > { %p13_p4 = scmp.ge.s32.totalorder %s16_s21, 4  }
 0x215   :  { %15 = sbr.rel (!%p13_p4) target bundleno = 1 (0x1), region = 83 }

// kernel: captcha_forward.4
= control target key start
LH: loop header
LB: loop body
LE: loop exit
PB: predicated region body
PF: predicated region fallthrough
CT: control target
= control target key end

     0   :  { %s6200_s21 = smov 0   ;;  %s8471_s0 = inlined_call_operand.vmem [shape: f32[288,1152], index: 0, kind: input, shape index: {}]   ;;  %s8472_s1 = inlined_call_operand.vmem [shape: f32[288,1152], index: 1, kind: input, shape index: {}]   ;;  %s8473_s2 = inlined_call_operand.vmem [shape: f32[288,1152], index: 2, kind: input, shape index: {}]   ;;  %s8474_s3 = inlined_call_operand.vmem [shape: f32[288,1152], index: 3, kind: input, shape index: {}]   ;;  %s8475_s4 = inlined_call_operand.vmem [shape: f32[1152,64], index: 4, kind: input, shape index: {}]   ;;  %s8476_s5 = inlined_call_operand.vmem [shape: f32[1,64], index: 5, kind: input, shape index: {}]   ;;  %s8477_s6 = inlined_call_operand.vmem [shape: f32[288,64], index: 6, kind: output, shape index: {}]  }
   0x1 LB: > { %s4433_s22 = sadd.s32 4294967295, %s6162_s21   ;;  %p4437_p0 = scmp.ge.s32.totalorder %s6162_s21, 1  ;;  %s6162_s21 = sphi %s6200_s21, %s16_s21  }
   0x2   : > { %p250_p1 = scmp.lt.s32.totalorder %s6162_s21, 3 }
   0x4   : > { %p251_p2 = pnand %p4437_p0, %p250_p1 }
   0x6   : > { %254 = sbr.rel (%p251_p2) target bundleno = 974 (0x3ce), region = 44 }
   0xd   : > { %v333_v0 = vld [vmem:[%s8475_s4] sm:$0xff]  ;;  %v334_v1 = vld [vmem:[%s8475_s4 + $0x8] sm:$0xff]  ;;  %s299_s29 = smul.u32 18, %s4433_s22  ;;  %v8498_v3 = vmov 0.0|0.0   ;;  %v335_v6 = vld [vmem:[%s8475_s4 + $0x10] sm:$0xff]  ;;  %vm4322_vm0 = vcmask 523264  }
   0xe   : > { %v461_v2 = vld [vmem:[%s8475_s4 + $0x400] sm:$0xff]  ;;  %4818 = vmatprep.subr.bf16.mxu0 %v8498_v3  ;;  %v6218_v4 = vpack.c.bf16 %v334_v1, %v333_v0  ;;  %v462_v5 = vld [vmem:[%s8475_s4 + $0x408] sm:$0xff]  ;;  %v336_v7 = vld [vmem:[%s8475_s4 + $0x18] sm:$0xff] }
   0xf   : > { %v6229_v8 = vpack.c.bf16 %v462_v5, %v461_v2  ;;  %v463_v9 = vld [vmem:[%s8475_s4 + $0x410] sm:$0xff]  ;;  %v464_v10 = vld [vmem:[%s8475_s4 + $0x418] sm:$0xff]  ;;  %p300_p3 = scmp.lt.s32.totalorder %s299_s29, 35  ;;  %v6238_v11 = vpack.c.bf16 %v336_v7, %v335_v6  ;;  %v465_v13 = vld [vmem:[%s8475_s4 + $0x420] sm:$0xff] }
  0x10   : > { %4820 = vmatpush1.bf16.msra.mxu0 %v6218_v4  ;;  %v6240_v12 = vpack.c.bf16 %v464_v10, %v463_v9  ;;  %v466_v14 = vld [vmem:[%s8475_s4 + $0x428] sm:$0xff]  ;;  %v337_v15 = vld [vmem:[%s8475_s4 + $0x20] sm:$0xff]  ;;  %v467_v19 = vld [vmem:[%s8475_s4 + $0x430] sm:$0xff] }
  0x11   : > { %5011 = vmatprep.subr.bf16.mxu1 %v6229_v8  ;;  %4821 = vmatprep.subr.bf16.mxu0 %v8498_v3  ;;  %v338_v16 = vld [vmem:[%s8475_s4 + $0x28] sm:$0xff]  ;;  %s8654_s29 = smov (!%p300_p3, %s299_s29), 35  ;;  %v6260_v17 = vpack.c.bf16 %v466_v14, %v465_v13  ;;  %v468_v20 = vld [vmem:[%s8475_s4 + $0x438] sm:$0xff]  ;;  %v339_v21 = vld [vmem:[%s8475_s4 + $0x30] sm:$0xff] }
  0x12   : > { %5013 = vmatpush3.bf16.msra.mxu1 %v6229_v8  ;;  %s6263_s25 = smul.u32 72, %s8654_s29  ;;  %v6266_v18 = vpack.c.bf16 %v338_v16, %v337_v15  ;;  %v340_v22 = vld [vmem:[%s8475_s4 + $0x38] sm:$0xff]  ;;  %v6289_v23 = vpack.c.bf16 %v468_v20, %v467_v19  ;;  %v469_v25 = vld [vmem:[%s8475_s4 + $0x440] sm:$0xff]  ;;  %v470_v26 = vld [vmem:[%s8475_s4 + $0x448] sm:$0xff]  ;;  %s4442_s7 = sshll.u32 %s8654_s29, 3 }
  0x13   : > { %5015 = vmatprep.subr.bf16.mxu1 %v6240_v12  ;;  %v6292_v24 = vpack.c.bf16 %v340_v22, %v339_v21  ;;  %v341_v28 = vld [vmem:[%s8475_s4 + $0x40] sm:$0xff]  ;;  %v342_v29 = vld [vmem:[%s8475_s4 + $0x48] sm:$0xff]  ;;  %v6310_v30 = vpack.c.bf16 %v470_v26, %v469_v25  ;;  %v471_v32 = vld [vmem:[%s8475_s4 + $0x450] sm:$0xff]  ;;  %s8346_s10 = scalar_lea.vmem %s8477_s6, %s4442_s7 }
  0x14   : > { %4823 = vmatpush1.bf16.msra.mxu0 %v6238_v11  ;;  %s6285_s13 = scalar_lea.vmem %s8471_s0, %s6263_s25  ;;  %v6313_v31 = vpack.c.bf16 %v342_v29, %v341_v28  ;;  %v472_v33 = vld [vmem:[%s8475_s4 + $0x458] sm:$0xff]  ;;  %v343_v34 = vld [vmem:[%s8475_s4 + $0x50] sm:$0xff]  ;;  %v473_v39 = vld [vmem:[%s8475_s4 + $0x460] sm:$0xff]  ;;  %s6505_s26 = scalar_lea.vmem %s8472_s1, %s6263_s25 }
  0x15   : > { %4824 = vmatprep.subr.bf16.mxu0 %v8498_v3  ;;  %v485_v27 = vld [vmem:[%s6285_s13 + $0x40] sm:$0xff]  ;;  %v344_v35 = vld [vmem:[%s8475_s4 + $0x58] sm:$0xff]  ;;  %v478_v36 = vld [vmem:[%s6285_s13 + $0x8] sm:$0xff]  ;;  %v6331_v37 = vpack.c.bf16 %v472_v33, %v471_v32  ;;  %s7497_s24 = scalar_lea.vmem %s8473_s2, %s6263_s25  ;;  %s7573_s28 = scalar_lea.vmem %s8474_s3, %s6263_s25 }
  0x16   : > { %5017 = vmatpush3.bf16.msra.mxu1 %v6240_v12  ;;  %4614 = vmatprep.mubr.f32.mxu1 %v485_v27  ;;  %v6334_v38 = vpack.c.bf16 %v344_v35, %v343_v34  ;;  %v474_v40 = vld [vmem:[%s8475_s4 + $0x468] sm:$0xff]  ;;  %v345_v41 = vld [vmem:[%s8475_s4 + $0x60] sm:$0xff]  ;;  %v475_v45 = vld [vmem:[%s8475_s4 + $0x470] sm:$0xff] }
  0x17   : > { %5019 = vmatprep.subr.bf16.mxu1 %v6260_v17  ;;  %703 = vmatprep.mubr.f32.mxu0 %v478_v36  ;;  %8541 = vst [vmem:[#allocation2_spill] sm:$0xff] %v6331_v37  ;;  %v346_v42 = vld [vmem:[%s8475_s4 + $0x68] sm:$0xff]  ;;  %v6351_v43 = vpack.c.bf16 %v474_v40, %v473_v39  ;;  %v476_v46 = vld [vmem:[%s8475_s4 + $0x478] sm:$0xff]  ;;  %v347_v47 = vld [vmem:[%s8475_s4 + $0x70] sm:$0xff] }
  0x18   : > { %4826 = vmatpush1.bf16.msra.mxu0 %v6266_v18  ;;  %v6354_v44 = vpack.c.bf16 %v346_v42, %v345_v41  ;;  %v348_v48 = vld [vmem:[%s8475_s4 + $0x78] sm:$0xff]  ;;  %v6371_v49 = vpack.c.bf16 %v476_v46, %v475_v45  ;;  %v349_v51 = vld [vmem:[%s8475_s4 + $0x80] sm:$0xff]  ;;  %v350_v52 = vld [vmem:[%s8475_s4 + $0x88] sm:$0xff] }
  0x19   : > { %4827 = vmatprep.subr.bf16.mxu0 %v8498_v3  ;;  %8542 = vst [vmem:[#allocation3_spill] sm:$0xff] %v6351_v43  ;;  %v6374_v50 = vpack.c.bf16 %v348_v48, %v347_v47  ;;  %v6386_v53 = vpack.c.bf16 %v350_v52, %v349_v51  ;;  %v351_v54 = vld [vmem:[%s8475_s4 + $0x90] sm:$0xff]  ;;  %v352_v55 = vld [vmem:[%s8475_s4 + $0x98] sm:$0xff]  ;;  %v494_v56 = vld [vmem:[%s6285_s13 + $0x88] sm:$0xff] }
  0x1a   : > { %5021 = vmatpush3.bf16.msra.mxu1 %v6260_v17  ;;  %8543 = vst [vmem:[#allocation4_spill] sm:$0xff] %v6371_v49  ;;  %v503_v57 = vld [vmem:[%s6285_s13 + $0xd0] sm:$0xff]  ;;  %v6400_v58 = vpack.c.bf16 %v352_v55, %v351_v54  ;;  %v353_v59 = vld [vmem:[%s8475_s4 + $0xa0] sm:$0xff]  ;;  %v354_v60 = vld [vmem:[%s8475_s4 + $0xa8] sm:$0xff] }
  0x1b   : > { %5023 = vmatprep.subr.bf16.mxu1 %v6289_v23  ;;  %v512_v61 = vld [vmem:[%s6285_s13 + $0x118] sm:$0xff]  ;;  %v521_v62 = vld [vmem:[%s6285_s13 + $0x160] sm:$0xff]  ;;  %v6414_v63 = vpack.c.bf16 %v354_v60, %v353_v59  ;;  %v355_v0 = vld [vmem:[%s8475_s4 + $0xb0] sm:$0xff] }
  0x1c   : > { %4829 = vmatpush1.bf16.msra.mxu0 %v6292_v24  ;;  %v356_v1 = vld [vmem:[%s8475_s4 + $0xb8] sm:$0xff]  ;;  %v530_v2 = vld [vmem:[%s6285_s13 + $0x1a8] sm:$0xff]  ;;  %v539_v5 = vld [vmem:[%s6285_s13 + $0x1f0] sm:$0xff] }
  0x1d   : > { %4830 = vmatprep.subr.bf16.mxu0 %v8498_v3  ;;  %v6428_v6 = vpack.c.bf16 %v356_v1, %v355_v0  ;;  %v357_v7 = vld [vmem:[%s8475_s4 + $0xc0] sm:$0xff]  ;;  %v358_v9 = vld [vmem:[%s8475_s4 + $0xc8] sm:$0xff]  ;;  %v548_v10 = vld [vmem:[%s6285_s13 + $0x238] sm:$0xff] }
  0x1e   : > { %5025 = vmatpush3.bf16.msra.mxu1 %v6289_v23  ;;  %v557_v13 = vld [vmem:[%s6285_s13 + $0x280] sm:$0xff]  ;;  %v6442_v14 = vpack.c.bf16 %v358_v9, %v357_v7  ;;  %v359_v15 = vld [vmem:[%s8475_s4 + $0xd0] sm:$0xff]  ;;  %v360_v16 = vld [vmem:[%s8475_s4 + $0xd8] sm:$0xff] }
  0x1f   : > { %5027 = vmatprep.subr.bf16.mxu1 %v6310_v30  ;;  %v566_v19 = vld [vmem:[%s6285_s13 + $0x2c8] sm:$0xff]  ;;  %v575_v20 = vld [vmem:[%s6285_s13 + $0x310] sm:$0xff]  ;;  %v6456_v21 = vpack.c.bf16 %v360_v16, %v359_v15  ;;  %v361_v22 = vld [vmem:[%s8475_s4 + $0xe0] sm:$0xff] }
  0x20   : > { %4832 = vmatpush1.bf16.msra.mxu0 %v6313_v31  ;;  %v362_v25 = vld [vmem:[%s8475_s4 + $0xe8] sm:$0xff]  ;;  %v584_v26 = vld [vmem:[%s6285_s13 + $0x358] sm:$0xff]  ;;  %v593_v27 = vld [vmem:[%s6285_s13 + $0x3a0] sm:$0xff] }
  0x21   : > { %4833 = vmatprep.subr.bf16.mxu0 %v8498_v3  ;;  %v6470_v28 = vpack.c.bf16 %v362_v25, %v361_v22  ;;  %v363_v29 = vld [vmem:[%s8475_s4 + $0xf0] sm:$0xff]  ;;  %v364_v32 = vld [vmem:[%s8475_s4 + $0xf8] sm:$0xff]  ;;  %v602_v33 = vld [vmem:[%s6285_s13 + $0x3e8] sm:$0xff] }
  0x22   : > { %5029 = vmatpush3.bf16.msra.mxu1 %v6310_v30  ;;  %v611_v34 = vld [vmem:[%s6285_s13 + $0x430] sm:$0xff]  ;;  %v6484_v35 = vpack.c.bf16 %v364_v32, %v363_v29  ;;  %v365_v36 = vld [vmem:[%s8475_s4 + $0x100] sm:$0xff]  ;;  %v366_v39 = vld [vmem:[%s8475_s4 + $0x108] sm:$0xff] }
  0x23   : > { %5031 = vmatprep.subr.bf16.mxu1 %v6331_v37  ;;  %v620_v40 = vld [vmem:[%s6285_s13 + $0x478] sm:$0xff]  ;;  %v629_v41 = vld [vmem:[%s6285_s13 + $0x4c0] sm:$0xff]  ;;  %v6499_v45 = vpack.c.bf16 %v366_v39, %v365_v36  ;;  %v487_v46 = vld [vmem:[%s6285_s13 + $0x50] sm:$0xff] }
  0x24   : > { %4835 = vmatpush1.bf16.msra.mxu0 %v6334_v38  ;;  %v477_v42 = vld [vmem:[%s6285_s13] sm:$0xff]  ;;  %v367_v47 = vld [vmem:[%s8475_s4 + $0x110] sm:$0xff]  ;;  %v368_v48 = vld [vmem:[%s8475_s4 + $0x118] sm:$0xff] }
  0x25   : > { %4836 = vmatprep.subr.bf16.mxu0 %v8498_v3  ;;  %v638_v51 = vld [vmem:[%s6285_s13 + $0x508] sm:$0xff]  ;;  %v6521_v55 = vpack.c.bf16 %v368_v48, %v367_v47  ;;  %v495_v60 = vld [vmem:[%s6285_s13 + $0x90] sm:$0xff]  ;;  %v372_v1 = vld [vmem:[%s8475_s4 + $0x138] sm:$0xff] }
  0x26   : > { %5033 = vmatpush3.bf16.msra.mxu1 %v6331_v37  ;;  %v1415_v52 = vld [vmem:[%s6505_s26 + $0x8] sm:$0xff]  ;;  %v371_v0 = vld [vmem:[%s8475_s4 + $0x130] sm:$0xff]  ;;  %v373_v9 = vld [vmem:[%s8475_s4 + $0x140] sm:$0xff] }
  0x27   : > { %5035 = vmatprep.subr.bf16.mxu1 %v6351_v43  ;;  %v486_v54 = vld [vmem:[%s6285_s13 + $0x48] sm:$0xff]  ;;  %v523_v16 = vld [vmem:[%s6285_s13 + $0x170] sm:$0xff]  ;;  %v380_v39 = vld [vmem:[%s8475_s4 + $0x178] sm:$0xff] }
  0x28   : > { %4838 = vmatpush1.bf16.msra.mxu0 %v6354_v44  ;;  %v370_v59 = vld [vmem:[%s8475_s4 + $0x128] sm:$0xff]  ;;  %v531_v32 = vld [vmem:[%s6285_s13 + $0x1b0] sm:$0xff]  ;;  %v549_v48 = vld [vmem:[%s6285_s13 + $0x240] sm:$0xff] }
  0x29   : > { %4839 = vmatprep.subr.bf16.mxu0 %v8498_v3  ;;  %v514_v7 = vld [vmem:[%s6285_s13 + $0x128] sm:$0xff]  ;;  %v379_v36 = vld [vmem:[%s8475_s4 + $0x170] sm:$0xff] }
  0x2a   : > { %5037 = vmatpush3.bf16.msra.mxu1 %v6351_v43  ;;  %v522_v22 = vld [vmem:[%s6285_s13 + $0x168] sm:$0xff] }
  0x2b   : > { %5039 = vmatprep.subr.bf16.mxu1 %v6371_v49  ;;  %v378_v29 = vld [vmem:[%s8475_s4 + $0x168] sm:$0xff] }
  0x2c   : > { %4841 = vmatpush1.bf16.msra.mxu0 %v6374_v50  ;;  %v382_v47 = vld [vmem:[%s8475_s4 + $0x188] sm:$0xff] }
  0x2d   : > { %4842 = vmatprep.subr.bf16.mxu0 %v8498_v3 }
  0x2e   : > { %5041 = vmatpush3.bf16.msra.mxu1 %v6371_v49 }
  0x2f   : > { %5042 = vmatprep.subr.bf16.mxu1 %v8498_v3 }
  0x30   : > { %4844 = vmatpush1.bf16.msra.mxu0 %v6386_v53 }
  0x31   : > { %4615 = vmatmul.mubr.f32.vlgmr.msra.gmra.mrb[0].mxu1 %v494_v56  ;;  %4845 = vmatprep.subr.bf16.mxu0 %v8498_v3  ;;  %v496_v56 = vld [vmem:[%s6285_s13 + $0x98] sm:$0xff] }
  0x32   : > { %5044 = vmatpush1.bf16.msra.mxu1 %v6218_v4  ;;  %4617 = vmatprep.mubr.f32.mxu1 %v503_v57  ;;  %v369_v57 = vld [vmem:[%s8475_s4 + $0x120] sm:$0xff] }
  0x33   : > { %5045 = vmatprep.subr.bf16.mxu1 %v8498_v3 }
  0x34   : > { %4847 = vmatpush1.bf16.msra.mxu0 %v6400_v58 }
  0x35   : > { %4848 = vmatprep.subr.bf16.mxu0 %v8498_v3  ;;  %4618 = vmatmul.mubr.f32.gmra.mrb[2].mxu1 %v512_v61  ;;  %v6535_v61 = vpack.c.bf16 %v370_v59, %v369_v57  ;;  %v1414_v57 = vld [vmem:[%s6505_s26] sm:$0xff]  ;;  %v1424_v59 = vld [vmem:[%s6505_s26 + $0x50] sm:$0xff] }
  0x36   : > { %5047 = vmatpush1.bf16.msra.mxu1 %v6238_v11  ;;  %4620 = vmatprep.mubr.f32.mxu1 %v521_v62  ;;  %v505_v62 = vld [vmem:[%s6285_s13 + $0xe0] sm:$0xff] }
  0x37   : > { %5048 = vmatprep.subr.bf16.mxu1 %v8498_v3 }
  0x38   : > { %4850 = vmatpush1.bf16.msra.mxu0 %v6414_v63 }
  0x39   : > { %4851 = vmatprep.subr.bf16.mxu0 %v8498_v3  ;;  %4621 = vmatmul.mubr.f32.gmra.mrb[4].mxu1 %v530_v2  ;;  %v504_v2 = vld [vmem:[%s6285_s13 + $0xd8] sm:$0xff] }
  0x3a   : > { %5050 = vmatpush1.bf16.msra.mxu1 %v6266_v18  ;;  %4623 = vmatprep.mubr.f32.mxu1 %v539_v5  ;;  %v6549_v5 = vpack.c.bf16 %v372_v1, %v371_v0  ;;  %v568_v0 = vld [vmem:[%s6285_s13 + $0x2d8] sm:$0xff]  ;;  %v385_v1 = vld [vmem:[%s8475_s4 + $0x1a0] sm:$0xff] }
  0x3b   : > { %5051 = vmatprep.subr.bf16.mxu1 %v8498_v3 }
  0x3c   : > { %4853 = vmatpush1.bf16.msra.mxu0 %v6428_v6 }
  0x3d   : > { %4854 = vmatprep.subr.bf16.mxu0 %v8498_v3  ;;  %4624 = vmatmul.mubr.f32.gmra.mrb[6].mxu1 %v548_v10  ;;  %v374_v10 = vld [vmem:[%s8475_s4 + $0x148] sm:$0xff] }
  0x3e   : > { %5053 = vmatpush1.bf16.msra.mxu1 %v6292_v24  ;;  %4626 = vmatprep.mubr.f32.mxu1 %v557_v13  ;;  %v513_v13 = vld [vmem:[%s6285_s13 + $0x120] sm:$0xff]  ;;  %v6563_v15 = vpack.c.bf16 %v374_v10, %v373_v9  ;;  %v1433_v9 = vld [vmem:[%s6505_s26 + $0x98] sm:$0xff]  ;;  %v567_v10 = vld [vmem:[%s6285_s13 + $0x2d0] sm:$0xff] }
  0x3f   : > { %5054 = vmatprep.subr.bf16.mxu1 %v8498_v3 }
  0x40   : > { %4856 = vmatpush1.bf16.msra.mxu0 %v6442_v14 }
  0x41   : > { %4857 = vmatprep.subr.bf16.mxu0 %v8498_v3  ;;  %4627 = vmatmul.mubr.f32.gmra.mrb[8].mxu1 %v566_v19  ;;  %v375_v19 = vld [vmem:[%s8475_s4 + $0x150] sm:$0xff] }
  0x42   : > { %5056 = vmatpush1.bf16.msra.mxu1 %v6313_v31  ;;  %4629 = vmatprep.mubr.f32.mxu1 %v575_v20  ;;  %v376_v20 = vld [vmem:[%s8475_s4 + $0x158] sm:$0xff] }
  0x43   : > { %5057 = vmatprep.subr.bf16.mxu1 %v8498_v3  ;;  %v6577_v25 = vpack.c.bf16 %v376_v20, %v375_v19  ;;  %v387_v19 = vld [vmem:[%s8475_s4 + $0x1b0] sm:$0xff]  ;;  %v388_v20 = vld [vmem:[%s8475_s4 + $0x1b8] sm:$0xff] }
  0x44   : > { %4859 = vmatpush1.bf16.msra.mxu0 %v6456_v21 }
  0x45   : > { %4860 = vmatprep.subr.bf16.mxu0 %v8498_v3  ;;  %4630 = vmatmul.mubr.f32.gmra.mrb[10].mxu1 %v584_v26  ;;  %v532_v26 = vld [vmem:[%s6285_s13 + $0x1b8] sm:$0xff] }
  0x46   : > { %5059 = vmatpush1.bf16.msra.mxu1 %v6334_v38  ;;  %4632 = vmatprep.mubr.f32.mxu1 %v593_v27  ;;  %v377_v27 = vld [vmem:[%s8475_s4 + $0x160] sm:$0xff] }
  0x47   : > { %5060 = vmatprep.subr.bf16.mxu1 %v8498_v3 }
  0x48   : > { %4862 = vmatpush1.bf16.msra.mxu0 %v6470_v28 }
  0x49   : > { %4863 = vmatprep.subr.bf16.mxu0 %v8498_v3  ;;  %4633 = vmatmul.mubr.f32.gmra.mrb[12].mxu1 %v602_v33  ;;  %v6591_v33 = vpack.c.bf16 %v378_v29, %v377_v27  ;;  %v576_v27 = vld [vmem:[%s6285_s13 + $0x318] sm:$0xff]  ;;  %v6667_v29 = vpack.c.bf16 %v388_v20, %v387_v19  ;;  %v395_v19 = vld [vmem:[%s8475_s4 + $0x1f0] sm:$0xff] }
  0x4a   : > { %5062 = vmatpush1.bf16.msra.mxu1 %v6354_v44  ;;  %4635 = vmatprep.mubr.f32.mxu1 %v611_v34  ;;  %v541_v34 = vld [vmem:[%s6285_s13 + $0x200] sm:$0xff]  ;;  %v396_v20 = vld [vmem:[%s8475_s4 + $0x1f8] sm:$0xff] }
  0x4b   : > { %5063 = vmatprep.subr.bf16.mxu1 %v8498_v3 }
  0x4c   : > { %4865 = vmatpush1.bf16.msra.mxu0 %v6484_v35 }
  0x4d   : > { %4866 = vmatprep.subr.bf16.mxu0 %v8498_v3  ;;  %4636 = vmatmul.mubr.f32.gmra.mrb[14].mxu1 %v620_v40  ;;  %v540_v40 = vld [vmem:[%s6285_s13 + $0x1f8] sm:$0xff] }
  0x4e   : > { %5065 = vmatpush1.bf16.msra.mxu1 %v6374_v50  ;;  %4638 = vmatprep.mubr.f32.mxu1 %v629_v41  ;;  %v6605_v41 = vpack.c.bf16 %v380_v39, %v379_v36  ;;  %v390_v36 = vld [vmem:[%s8475_s4 + $0x1c8] sm:$0xff]  ;;  %v1441_v39 = vld [vmem:[%s6505_s26 + $0xd8] sm:$0xff] }
  0x4f   : > { %704 = vmatmul.mubr.f32.vlgmr.msra.gmra.mrb[0].mxu0 %v477_v42  ;;  %5066 = vmatprep.subr.bf16.mxu1 %v8498_v3  ;;  %v550_v42 = vld [vmem:[%s6285_s13 + $0x248] sm:$0xff] }
  0x50   : > { %4868 = vmatpush1.bf16.msra.mxu0 %v6499_v45  ;;  %708 = vmatprep.mubr.f32.mxu0 %v487_v46  ;;  %v381_v46 = vld [vmem:[%s8475_s4 + $0x180] sm:$0xff] }
  0x51   : > { %4869 = vmatprep.subr.bf16.mxu0 %v8498_v3  ;;  %4639 = vmatmul.mubr.f32.gmra.mrb[16].mxu1 %v638_v51  ;;  %v6619_v51 = vpack.c.bf16 %v382_v47, %v381_v46  ;;  %v595_v47 = vld [vmem:[%s6285_s13 + $0x3b0] sm:$0xff] }
  0x52   : > { %5068 = vmatpush1.bf16.msra.mxu1 %v6386_v53  ;;  %1640 = vmatprep.mubr.f32.mxu1 %v1415_v52  ;;  %v559_v52 = vld [vmem:[%s6285_s13 + $0x290] sm:$0xff] }
  0x53   : > { %709 = vmatmul.mubr.f32.gmra.mrb[2].mxu0 %v486_v54  ;;  %5069 = vmatprep.subr.bf16.mxu1 %v8498_v3  ;;  %v383_v54 = vld [vmem:[%s8475_s4 + $0x190] sm:$0xff] }
  0x54   : > { %4871 = vmatpush1.bf16.msra.mxu0 %v6521_v55  ;;  %713 = vmatprep.mubr.f32.mxu0 %v496_v56  ;;  %v384_v56 = vld [vmem:[%s8475_s4 + $0x198] sm:$0xff] }
  0x55   : > { %4872 = vmatprep.subr.bf16.mxu0 %v8498_v3 }
  0x56   : > { %5071 = vmatpush1.bf16.msra.mxu1 %v6400_v58 }
  0x57   : > { %714 = vmatmul.mubr.f32.gmra.mrb[4].mxu0 %v495_v60  ;;  %5072 = vmatprep.subr.bf16.mxu1 %v8498_v3  ;;  %v558_v60 = vld [vmem:[%s6285_s13 + $0x288] sm:$0xff] }
  0x58   : > { %4874 = vmatpush1.bf16.msra.mxu0 %v6535_v61  ;;  %718 = vmatprep.mubr.f32.mxu0 %v505_v62  ;;  %v6635_v62 = vpack.c.bf16 %v384_v56, %v383_v54  ;;  %v1450_v54 = vld [vmem:[%s6505_s26 + $0x120] sm:$0xff]  ;;  %v1460_v56 = vld [vmem:[%s6505_s26 + $0x170] sm:$0xff] }
  0x59   : > { %4875 = vmatprep.subr.bf16.mxu0 %v8498_v3 }
  0x5a   : > { %5074 = vmatpush1.bf16.msra.mxu1 %v6414_v63 }
  0x5b   : > { %719 = vmatmul.mubr.f32.gmra.mrb[6].mxu0 %v504_v2  ;;  %5075 = vmatprep.subr.bf16.mxu1 %v8498_v3  ;;  %v386_v2 = vld [vmem:[%s8475_s4 + $0x1a8] sm:$0xff] }
  0x5c   : > { %723 = vmatprep.mubr.f32.mxu0 %v514_v7  ;;  %4877 = vmatpush1.bf16.msra.mxu0 %v6549_v5  ;;  %v1423_v7 = vld [vmem:[%s6505_s26 + $0x48] sm:$0xff] }
  0x5d   : > { %4878 = vmatprep.subr.bf16.mxu0 %v8498_v3 }
  0x5e   : > { %5077 = vmatpush1.bf16.msra.mxu1 %v6428_v6 }
  0x5f   : > { %724 = vmatmul.mubr.f32.gmra.mrb[8].mxu0 %v513_v13  ;;  %5078 = vmatprep.subr.bf16.mxu1 %v8498_v3  ;;  %v6651_v13 = vpack.c.bf16 %v386_v2, %v385_v1  ;;  %v394_v1 = vld [vmem:[%s8475_s4 + $0x1e8] sm:$0xff] }
  0x60   : > { %728 = vmatprep.mubr.f32.mxu0 %v523_v16  ;;  %4880 = vmatpush1.bf16.msra.mxu0 %v6563_v15  ;;  %v577_v16 = vld [vmem:[%s6285_s13 + $0x320] sm:$0xff]  ;;  %v1459_v2 = vld [vmem:[%s6505_s26 + $0x168] sm:$0xff] }
  0x61   : > { %4881 = vmatprep.subr.bf16.mxu0 %v8498_v3 }
  0x62   : > { %5080 = vmatpush1.bf16.msra.mxu1 %v6442_v14 }
  0x63   : > { %729 = vmatmul.mubr.f32.gmra.mrb[10].mxu0 %v522_v22  ;;  %5081 = vmatprep.subr.bf16.mxu1 %v8498_v3  ;;  %v1432_v22 = vld [vmem:[%s6505_s26 + $0x90] sm:$0xff] }
  0x64   : > { %733 = vmatprep.mubr.f32.mxu0 %v532_v26  ;;  %4883 = vmatpush1.bf16.msra.mxu0 %v6577_v25  ;;  %v1442_v26 = vld [vmem:[%s6505_s26 + $0xe0] sm:$0xff] }
  0x65   : > { %4884 = vmatprep.subr.bf16.mxu0 %v8498_v3 }
  0x66   : > { %5083 = vmatpush1.bf16.msra.mxu1 %v6456_v21 }
  0x67   : > { %734 = vmatmul.mubr.f32.gmra.mrb[12].mxu0 %v531_v32  ;;  %5084 = vmatprep.subr.bf16.mxu1 %v8498_v3  ;;  %v586_v32 = vld [vmem:[%s6285_s13 + $0x368] sm:$0xff] }
  0x68   : > { %738 = vmatprep.mubr.f32.mxu0 %v541_v34  ;;  %4886 = vmatpush1.bf16.msra.mxu0 %v6591_v33  ;;  %v389_v34 = vld [vmem:[%s8475_s4 + $0x1c0] sm:$0xff] }
  0x69   : > { %4887 = vmatprep.subr.bf16.mxu0 %v8498_v3  ;;  %v6683_v46 = vpack.c.bf16 %v390_v36, %v389_v34  ;;  %v622_v34 = vld [vmem:[%s6285_s13 + $0x488] sm:$0xff]  ;;  %v1477_v36 = vld [vmem:[%s6505_s26 + $0x1f8] sm:$0xff] }
  0x6a   : > { %5086 = vmatpush1.bf16.msra.mxu1 %v6470_v28 }
  0x6b   : > { %739 = vmatmul.mubr.f32.gmra.mrb[14].mxu0 %v540_v40  ;;  %5087 = vmatprep.subr.bf16.mxu1 %v8498_v3  ;;  %v1451_v40 = vld [vmem:[%s6505_s26 + $0x128] sm:$0xff] }
  0x6c   : > { %743 = vmatprep.mubr.f32.mxu0 %v550_v42  ;;  %4889 = vmatpush1.bf16.msra.mxu0 %v6605_v41  ;;  %v585_v42 = vld [vmem:[%s6285_s13 + $0x360] sm:$0xff] }
  0x6d   : > { %4890 = vmatprep.subr.bf16.mxu0 %v8498_v3 }
  0x6e   : > { %5089 = vmatpush1.bf16.msra.mxu1 %v6484_v35 }
  0x6f   : > { %744 = vmatmul.mubr.f32.gmra.mrb[16].mxu0 %v549_v48  ;;  %5090 = vmatprep.subr.bf16.mxu1 %v8498_v3  ;;  %v391_v48 = vld [vmem:[%s8475_s4 + $0x1d0] sm:$0xff] }
  0x70   : > { %748 = vmatprep.mubr.f32.mxu0 %v559_v52  ;;  %4892 = vmatpush1.bf16.msra.mxu0 %v6619_v51  ;;  %v392_v52 = vld [vmem:[%s8475_s4 + $0x1d8] sm:$0xff] }
  0x71   : > { %1641 = vmatmul.mubr.f32.vlgmr.msra.gmra.mrb[18].mxu1 %v1414_v57  ;;  %4893 = vmatprep.subr.bf16.mxu0 %v8498_v3  ;;  %v594_v57 = vld [vmem:[%s6285_s13 + $0x3a8] sm:$0xff] }
  0x72   : > { %1645 = vmatprep.mubr.f32.mxu1 %v1424_v59  ;;  %5092 = vmatpush1.bf16.msra.mxu1 %v6499_v45  ;;  %v6699_v59 = vpack.c.bf16 %v392_v52, %v391_v48  ;;  %v1496_v48 = vld [vmem:[%s6505_s26 + $0x290] sm:$0xff]  ;;  %v630_v52 = vld [vmem:[%s6285_s13 + $0x4c8] sm:$0xff] }
  0x73   : > { %749 = vmatmul.mubr.f32.gmra.mrb[18].mxu0 %v558_v60  ;;  %5093 = vmatprep.subr.bf16.mxu1 %v8498_v3  ;;  %v604_v60 = vld [vmem:[%s6285_s13 + $0x3f8] sm:$0xff] }
  0x74   : > { %753 = vmatprep.mubr.f32.mxu0 %v568_v0  ;;  %4895 = vmatpush1.bf16.msra.mxu0 %v6635_v62  ;;  %v393_v0 = vld [vmem:[%s8475_s4 + $0x1e0] sm:$0xff] }
  0x75   : > { %1646 = vmatmul.mubr.f32.gmra.mrb[20].mxu1 %v1423_v7  ;;  %4896 = vmatprep.subr.bf16.mxu0 %v8498_v3  ;;  %v1469_v7 = vld [vmem:[%s6505_s26 + $0x1b8] sm:$0xff] }
  0x76   : > { %1650 = vmatprep.mubr.f32.mxu1 %v1433_v9  ;;  %5095 = vmatpush1.bf16.msra.mxu1 %v6521_v55  ;;  %v603_v9 = vld [vmem:[%s6285_s13 + $0x3f0] sm:$0xff] }
  0x77   : > { %754 = vmatmul.mubr.f32.gmra.mrb[20].mxu0 %v567_v10  ;;  %5096 = vmatprep.subr.bf16.mxu1 %v8498_v3  ;;  %v6715_v10 = vpack.c.bf16 %v394_v1, %v393_v0  ;;  %v1505_v0 = vld [vmem:[%s6505_s26 + $0x2d8] sm:$0xff]  ;;  %v479_v1 = vld [vmem:[%s6285_s13 + $0x10] sm:$0xff] }
  0x78   : > { %758 = vmatprep.mubr.f32.mxu0 %v577_v16  ;;  %4898 = vmatpush1.bf16.msra.mxu0 %v6651_v13  ;;  %v613_v16 = vld [vmem:[%s6285_s13 + $0x440] sm:$0xff] }
  0x79   : > { %1651 = vmatmul.mubr.f32.gmra.mrb[22].mxu1 %v1432_v22  ;;  %4899 = vmatprep.subr.bf16.mxu0 %v8498_v3  ;;  %v1468_v22 = vld [vmem:[%s6505_s26 + $0x1b0] sm:$0xff] }
  0x7a   : > { %1655 = vmatprep.mubr.f32.mxu1 %v1442_v26  ;;  %5098 = vmatpush1.bf16.msra.mxu1 %v6535_v61  ;;  %v1478_v26 = vld [vmem:[%s6505_s26 + $0x200] sm:$0xff] }
  0x7b   : > { %759 = vmatmul.mubr.f32.gmra.mrb[22].mxu0 %v576_v27  ;;  %5099 = vmatprep.subr.bf16.mxu1 %v8498_v3  ;;  %v612_v27 = vld [vmem:[%s6285_s13 + $0x438] sm:$0xff] }
  0x7c   : > { %763 = vmatprep.mubr.f32.mxu0 %v586_v32  ;;  %4901 = vmatpush1.bf16.msra.mxu0 %v6667_v29  ;;  %v6731_v32 = vpack.c.bf16 %v396_v20, %v395_v19  ;;  %v1504_v19 = vld [vmem:[%s6505_s26 + $0x2d0] sm:$0xff]  ;;  %v1514_v20 = vld [vmem:[%s6505_s26 + $0x320] sm:$0xff] }
  0x7d   : > { %1656 = vmatmul.mubr.f32.gmra.mrb[24].mxu1 %v1441_v39  ;;  %4902 = vmatprep.subr.bf16.mxu0 %v8498_v3  ;;  %v1487_v39 = vld [vmem:[%s6505_s26 + $0x248] sm:$0xff] }
  0x7e   : > { %1660 = vmatprep.mubr.f32.mxu1 %v1451_v40  ;;  %5101 = vmatpush1.bf16.msra.mxu1 %v6549_v5  ;;  %v621_v40 = vld [vmem:[%s6285_s13 + $0x480] sm:$0xff] }
  0x7f   : > { %764 = vmatmul.mubr.f32.gmra.mrb[24].mxu0 %v585_v42  ;;  %5102 = vmatprep.subr.bf16.mxu1 %v8498_v3  ;;  %v631_v42 = vld [vmem:[%s6285_s13 + $0x4d0] sm:$0xff] }
  0x80   : > { %768 = vmatprep.mubr.f32.mxu0 %v595_v47  ;;  %4904 = vmatpush1.bf16.msra.mxu0 %v6683_v46  ;;  %v1486_v47 = vld [vmem:[%s6505_s26 + $0x240] sm:$0xff] }
  0x81   : > { %1661 = vmatmul.mubr.f32.gmra.mrb[26].mxu1 %v1450_v54  ;;  %4905 = vmatprep.subr.bf16.mxu0 %v8498_v3  ;;  %v480_v54 = vld [vmem:[%s6285_s13 + $0x18] sm:$0xff] }
  0x82   : > { %1665 = vmatprep.mubr.f32.mxu1 %v1460_v56  ;;  %5104 = vmatpush1.bf16.msra.mxu1 %v6563_v15  ;;  %v397_v56 = vld [vmem:[%s8475_s4 + $0x200] sm:$0xff] }
  0x83   : > { %769 = vmatmul.mubr.f32.gmra.mrb[26].mxu0 %v594_v57  ;;  %5105 = vmatprep.subr.bf16.mxu1 %v8498_v3  ;;  %v398_v57 = vld [vmem:[%s8475_s4 + $0x208] sm:$0xff] }
  0x84   : > { %773 = vmatprep.mubr.f32.mxu0 %v604_v60  ;;  %4907 = vmatpush1.bf16.msra.mxu0 %v6699_v59  ;;  %v1495_v60 = vld [vmem:[%s6505_s26 + $0x288] sm:$0xff] }
  0x85   : > { %1666 = vmatmul.mubr.f32.gmra.mrb[28].mxu1 %v1459_v2  ;;  %4908 = vmatprep.subr.bf16.mxu0 %v8498_v3  ;;  %v6760_v2 = vpack.c.bf16 %v398_v57, %v397_v56  ;;  %v1522_v56 = vld [vmem:[%s6505_s26 + $0x360] sm:$0xff]  ;;  %v1532_v57 = vld [vmem:[%s6505_s26 + $0x3b0] sm:$0xff] }
  0x86   : > { %1670 = vmatprep.mubr.f32.mxu1 %v1469_v7  ;;  %5107 = vmatpush1.bf16.msra.mxu1 %v6577_v25  ;;  %v489_v7 = vld [vmem:[%s6285_s13 + $0x60] sm:$0xff] }
  0x87   : > { %774 = vmatmul.mubr.f32.gmra.mrb[28].mxu0 %v603_v9  ;;  %5108 = vmatprep.subr.bf16.mxu1 %v8498_v3  ;;  %v399_v9 = vld [vmem:[%s8475_s4 + $0x210] sm:$0xff] }
  0x88   : > { %778 = vmatprep.mubr.f32.mxu0 %v613_v16  ;;  %4910 = vmatpush1.bf16.msra.mxu0 %v6715_v10  ;;  %v400_v16 = vld [vmem:[%s8475_s4 + $0x218] sm:$0xff] }
  0x89   : > { %1671 = vmatmul.mubr.f32.gmra.mrb[30].mxu1 %v1468_v22  ;;  %4911 = vmatprep.subr.bf16.mxu0 %v8498_v3  ;;  %v488_v22 = vld [vmem:[%s6285_s13 + $0x58] sm:$0xff] }
  0x8a   : > { %1675 = vmatprep.mubr.f32.mxu1 %v1478_v26  ;;  %5110 = vmatpush1.bf16.msra.mxu1 %v6591_v33  ;;  %v6775_v26 = vpack.c.bf16 %v400_v16, %v399_v9  ;;  %v406_v9 = vld [vmem:[%s8475_s4 + $0x248] sm:$0xff] }
  0x8b   : > { %779 = vmatmul.mubr.f32.gmra.mrb[30].mxu0 %v612_v27  ;;  %5111 = vmatprep.subr.bf16.mxu1 %v8498_v3  ;;  %v498_v27 = vld [vmem:[%s6285_s13 + $0xa8] sm:$0xff] }
  0x8c   : > { %783 = vmatprep.mubr.f32.mxu0 %v622_v34  ;;  %4913 = vmatpush1.bf16.msra.mxu0 %v6731_v32  ;;  %v401_v34 = vld [vmem:[%s8475_s4 + $0x220] sm:$0xff]  ;;  %v1531_v16 = vld [vmem:[%s6505_s26 + $0x3a8] sm:$0xff] }
  0x8d   : > { %1676 = vmatmul.mubr.f32.gmra.mrb[32].mxu1 %v1477_v36  ;;  %4914 = vmatprep.subr.bf16.mxu0 %v8498_v3  ;;  %v402_v36 = vld [vmem:[%s8475_s4 + $0x228] sm:$0xff] }
  0x8e   : > { %1680 = vmatprep.mubr.f32.mxu1 %v1487_v39  ;;  %5113 = vmatpush1.bf16.msra.mxu1 %v6605_v41  ;;  %v1513_v39 = vld [vmem:[%s6505_s26 + $0x318] sm:$0xff] }
  0x8f   : > { %784 = vmatmul.mubr.f32.gmra.mrb[32].mxu0 %v621_v40  ;;  %5114 = vmatprep.subr.bf16.mxu1 %v8498_v3  ;;  %v1523_v40 = vld [vmem:[%s6505_s26 + $0x368] sm:$0xff] }
  0x90   : > { %788 = vmatprep.mubr.f32.mxu0 %v631_v42  ;;  %v497_v42 = vld [vmem:[%s6285_s13 + $0xa0] sm:$0xff] }
  0x91   : > { %1681 = vmatmul.mubr.f32.gmra.mrb[34].mxu1 %v1486_v47  ;;  %v6791_v47 = vpack.c.bf16 %v402_v36, %v401_v34  ;;  %v407_v34 = vld [vmem:[%s8475_s4 + $0x250] sm:$0xff]  ;;  %v408_v36 = vld [vmem:[%s8475_s4 + $0x258] sm:$0xff] }
  0x92   : > { %1685 = vmatprep.mubr.f32.mxu1 %v1496_v48  ;;  %5116 = vmatpush1.bf16.msra.mxu1 %v6619_v51  ;;  %v507_v48 = vld [vmem:[%s6285_s13 + $0xf0] sm:$0xff] }
  0x93   : > { %789 = vmatmul.mubr.f32.gmra.mrb[34].mxu0 %v630_v52  ;;  %5117 = vmatprep.subr.bf16.mxu1 %v8498_v3  ;;  %8544 = vst [vmem:[#allocation5_spill] sm:$0xff] %v6791_v47  ;;  %v403_v52 = vld [vmem:[%s8475_s4 + $0x230] sm:$0xff] }
  0x94   : > { %858 = vmatprep.mubr.f32.mxu0 %v480_v54  ;;  %v404_v54 = vld [vmem:[%s8475_s4 + $0x238] sm:$0xff] }
  0x95   : > { %1686 = vmatmul.mubr.f32.gmra.mrb[36].mxu1 %v1495_v60  ;;  %v506_v60 = vld [vmem:[%s6285_s13 + $0xe8] sm:$0xff] }
  0x96   : > { %1690 = vmatprep.mubr.f32.mxu1 %v1505_v0  ;;  %5119 = vmatpush1.bf16.msra.mxu1 %v6635_v62  ;;  %v6807_v0 = vpack.c.bf16 %v404_v54, %v403_v52  ;;  %v534_v52 = vld [vmem:[%s6285_s13 + $0x1c8] sm:$0xff]  ;;  %v409_v54 = vld [vmem:[%s8475_s4 + $0x260] sm:$0xff] }
  0x97   : > { %859 = vmatmul.mubr.f32.vlgmr.msra.gmra.mrb[0].mxu0 %v479_v1  ;;  %5120 = vmatprep.subr.bf16.mxu1 %v8498_v3  ;;  %v516_v1 = vld [vmem:[%s6285_s13 + $0x138] sm:$0xff] }
  0x98   : > { %4916 = vmatpush1.bf16.msra.mxu0 %v6760_v2  ;;  %863 = vmatprep.mubr.f32.mxu0 %v489_v7  ;;  %8545 = vst [vmem:[#allocation6_spill] sm:$0xff] %v6807_v0  ;;  %v405_v7 = vld [vmem:[%s8475_s4 + $0x240] sm:$0xff] }
  0x99   : > { %1691 = vmatmul.mubr.f32.gmra.mrb[38].mxu1 %v1504_v19  ;;  %4917 = vmatprep.subr.bf16.mxu0 %v8498_v3  ;;  %v1541_v19 = vld [vmem:[%s6505_s26 + $0x3f8] sm:$0xff] }
  0x9a   : > { %1695 = vmatprep.mubr.f32.mxu1 %v1514_v20  ;;  %5122 = vmatpush1.bf16.msra.mxu1 %v6651_v13  ;;  %v515_v20 = vld [vmem:[%s6285_s13 + $0x130] sm:$0xff] }
  0x9b   : > { %864 = vmatmul.mubr.f32.gmra.mrb[2].mxu0 %v488_v22  ;;  %5123 = vmatprep.subr.bf16.mxu1 %v8498_v3  ;;  %v6823_v22 = vpack.c.bf16 %v406_v9, %v405_v7  ;;  %v543_v9 = vld [vmem:[%s6285_s13 + $0x210] sm:$0xff] }
  0x9c   : > { %4919 = vmatpush1.bf16.msra.mxu0 %v6775_v26  ;;  %868 = vmatprep.mubr.f32.mxu0 %v498_v27  ;;  %v525_v27 = vld [vmem:[%s6285_s13 + $0x180] sm:$0xff] }
  0x9d   : > { %1696 = vmatmul.mubr.f32.gmra.mrb[40].mxu1 %v1513_v39  ;;  %4920 = vmatprep.subr.bf16.mxu0 %v8498_v3  ;;  %8546 = vst [vmem:[#allocation7_spill] sm:$0xff] %v6823_v22  ;;  %v1540_v39 = vld [vmem:[%s6505_s26 + $0x3f0] sm:$0xff] }
  0x9e   : > { %1700 = vmatprep.mubr.f32.mxu1 %v1523_v40  ;;  %5125 = vmatpush1.bf16.msra.mxu1 %v6667_v29  ;;  %v1550_v40 = vld [vmem:[%s6505_s26 + $0x440] sm:$0xff] }
  0x9f   : > { %869 = vmatmul.mubr.f32.gmra.mrb[4].mxu0 %v497_v42  ;;  %5126 = vmatprep.subr.bf16.mxu1 %v8498_v3  ;;  %v524_v42 = vld [vmem:[%s6285_s13 + $0x178] sm:$0xff] }
  0xa0   : > { %4922 = vmatpush1.bf16.msra.mxu0 %v6791_v47  ;;  %873 = vmatprep.mubr.f32.mxu0 %v507_v48  ;;  %v6839_v48 = vpack.c.bf16 %v408_v36, %v407_v34  ;;  %v542_v34 = vld [vmem:[%s6285_s13 + $0x208] sm:$0xff] }
  0xa1   : > { %1701 = vmatmul.mubr.f32.gmra.mrb[42].mxu1 %v1522_v56  ;;  %4923 = vmatprep.subr.bf16.mxu0 %v8498_v3  ;;  %v410_v56 = vld [vmem:[%s8475_s4 + $0x268] sm:$0xff] }
  0xa2   : > { %1705 = vmatprep.mubr.f32.mxu1 %v1532_v57  ;;  %5128 = vmatpush1.bf16.msra.mxu1 %v6683_v46  ;;  %8547 = vst [vmem:[#allocation8_spill] sm:$0xff] %v6839_v48  ;;  %v1549_v57 = vld [vmem:[%s6505_s26 + $0x438] sm:$0xff]  ;;  %v6855_v7 = vpack.c.bf16 %v410_v56, %v409_v54  ;;  %v551_v56 = vld [vmem:[%s6285_s13 + $0x250] sm:$0xff] }
  0xa3   : > { %874 = vmatmul.mubr.f32.gmra.mrb[6].mxu0 %v506_v60  ;;  %5129 = vmatprep.subr.bf16.mxu1 %v8498_v3  ;;  %v1559_v60 = vld [vmem:[%s6505_s26 + $0x488] sm:$0xff]  ;;  %v1417_v54 = vld [vmem:[%s6505_s26 + $0x18] sm:$0xff] }
  0xa4   : > { %878 = vmatprep.mubr.f32.mxu0 %v516_v1  ;;  %4925 = vmatpush1.bf16.msra.mxu0 %v6807_v0  ;;  %v533_v1 = vld [vmem:[%s6285_s13 + $0x1c0] sm:$0xff]  ;;  %8548 = vst [vmem:[#allocation9_spill] sm:$0xff] %v6855_v7 }
  0xa5   : > { %1706 = vmatmul.mubr.f32.gmra.mrb[44].mxu1 %v1531_v16  ;;  %4926 = vmatprep.subr.bf16.mxu0 %v8498_v3  ;;  %v411_v16 = vld [vmem:[%s8475_s4 + $0x270] sm:$0xff] }
  0xa6   : > { %1710 = vmatprep.mubr.f32.mxu1 %v1541_v19  ;;  %5131 = vmatpush1.bf16.msra.mxu1 %v6699_v59  ;;  %v412_v19 = vld [vmem:[%s8475_s4 + $0x278] sm:$0xff] }
  0xa7   : > { %879 = vmatmul.mubr.f32.gmra.mrb[8].mxu0 %v515_v20  ;;  %5132 = vmatprep.subr.bf16.mxu1 %v8498_v3  ;;  %v1558_v20 = vld [vmem:[%s6505_s26 + $0x480] sm:$0xff]  ;;  %v6871_v36 = vpack.c.bf16 %v412_v19, %v411_v16  ;;  %v1416_v16 = vld [vmem:[%s6505_s26 + $0x10] sm:$0xff] }
  0xa8   : > { %883 = vmatprep.mubr.f32.mxu0 %v525_v27  ;;  %4928 = vmatpush1.bf16.msra.mxu0 %v6823_v22  ;;  %v1568_v27 = vld [vmem:[%s6505_s26 + $0x4d0] sm:$0xff]  ;;  %v1426_v19 = vld [vmem:[%s6505_s26 + $0x60] sm:$0xff] }
  0xa9   : > { %1711 = vmatmul.mubr.f32.gmra.mrb[46].mxu1 %v1540_v39  ;;  %4929 = vmatprep.subr.bf16.mxu0 %v8498_v3  ;;  %8549 = vst [vmem:[#allocation10_spill] sm:$0xff] %v6871_v36  ;;  %v552_v39 = vld [vmem:[%s6285_s13 + $0x258] sm:$0xff] }
  0xaa   : > { %1715 = vmatprep.mubr.f32.mxu1 %v1550_v40  ;;  %5134 = vmatpush1.bf16.msra.mxu1 %v6715_v10  ;;  %v413_v40 = vld [vmem:[%s8475_s4 + $0x280] sm:$0xff] }
  0xab   : > { %884 = vmatmul.mubr.f32.gmra.mrb[10].mxu0 %v524_v42  ;;  %5135 = vmatprep.subr.bf16.mxu1 %v8498_v3  ;;  %v414_v42 = vld [vmem:[%s8475_s4 + $0x288] sm:$0xff] }
  0xac   : > { %888 = vmatprep.mubr.f32.mxu0 %v534_v52  ;;  %4931 = vmatpush1.bf16.msra.mxu0 %v6839_v48  ;;  %v1567_v52 = vld [vmem:[%s6505_s26 + $0x4c8] sm:$0xff] }
  0xad   : > { %1716 = vmatmul.mubr.f32.gmra.mrb[48].mxu1 %v1549_v57  ;;  %4932 = vmatprep.subr.bf16.mxu0 %v8498_v3  ;;  %v6885_v57 = vpack.c.bf16 %v414_v42, %v413_v40  ;;  %v418_v40 = vld [vmem:[%s8475_s4 + $0x2a8] sm:$0xff]  ;;  %v1425_v42 = vld [vmem:[%s6505_s26 + $0x58] sm:$0xff] }
  0xae   : > { %1720 = vmatprep.mubr.f32.mxu1 %v1559_v60  ;;  %5137 = vmatpush1.bf16.msra.mxu1 %v6731_v32  ;;  %v561_v60 = vld [vmem:[%s6285_s13 + $0x2a0] sm:$0xff] }
  0xaf   : > { %889 = vmatmul.mubr.f32.gmra.mrb[12].mxu0 %v533_v1  ;;  %5138 = vmatprep.subr.bf16.mxu1 %v8498_v3  ;;  %8550 = vst [vmem:[#allocation11_spill] sm:$0xff] %v6885_v57  ;;  %v415_v1 = vld [vmem:[%s8475_s4 + $0x290] sm:$0xff] }
  0xb0   : > { %893 = vmatprep.mubr.f32.mxu0 %v543_v9  ;;  %4934 = vmatpush1.bf16.msra.mxu0 %v6855_v7  ;;  %v416_v9 = vld [vmem:[%s8475_s4 + $0x298] sm:$0xff] }
  0xb1   : > { %1721 = vmatmul.mubr.f32.gmra.mrb[50].mxu1 %v1558_v20  ;;  %4935 = vmatprep.subr.bf16.mxu0 %v8498_v3  ;;  %v560_v20 = vld [vmem:[%s6285_s13 + $0x298] sm:$0xff] }
  0xb2   : > { %1725 = vmatprep.mubr.f32.mxu1 %v1568_v27  ;;  %v6899_v27 = vpack.c.bf16 %v416_v9, %v415_v1  ;;  %v419_v1 = vld [vmem:[%s8475_s4 + $0x2b0] sm:$0xff]  ;;  %v420_v9 = vld [vmem:[%s8475_s4 + $0x2b8] sm:$0xff] }
  0xb3   : > { %894 = vmatmul.mubr.f32.gmra.mrb[14].mxu0 %v542_v34  ;;  %v570_v34 = vld [vmem:[%s6285_s13 + $0x2e8] sm:$0xff] }
  0xb4   : > { %898 = vmatprep.mubr.f32.mxu0 %v552_v39  ;;  %4937 = vmatpush1.bf16.msra.mxu0 %v6871_v36  ;;  %8551 = vst [vmem:[#allocation12_spill] sm:$0xff] %v6899_v27  ;;  %v417_v39 = vld [vmem:[%s8475_s4 + $0x2a0] sm:$0xff] }
  0xb5   : > { %1726 = vmatmul.mubr.f32.gmra.mrb[52].mxu1 %v1567_v52  ;;  %4938 = vmatprep.subr.bf16.mxu0 %v8498_v3  ;;  %v1435_v52 = vld [vmem:[%s6505_s26 + $0xa8] sm:$0xff] }
  0xb6   : > { %1795 = vmatprep.mubr.f32.mxu1 %v1417_v54  ;;  %v569_v54 = vld [vmem:[%s6285_s13 + $0x2e0] sm:$0xff] }
  0xb7   : > { %899 = vmatmul.mubr.f32.gmra.mrb[16].mxu0 %v551_v56  ;;  %v6915_v56 = vpack.c.bf16 %v418_v40, %v417_v39  ;;  %v588_v39 = vld [vmem:[%s6285_s13 + $0x378] sm:$0xff]  ;;  %v421_v40 = vld [vmem:[%s8475_s4 + $0x2c0] sm:$0xff] }
  0xb8   : > { %903 = vmatprep.mubr.f32.mxu0 %v561_v60  ;;  %4940 = vmatpush1.bf16.msra.mxu0 %v6885_v57  ;;  %v579_v60 = vld [vmem:[%s6285_s13 + $0x330] sm:$0xff] }
  0xb9   : > { %1796 = vmatmul.mubr.f32.vlgmr.msra.gmra.mrb[18].mxu1 %v1416_v16  ;;  %4941 = vmatprep.subr.bf16.mxu0 %v8498_v3  ;;  %8552 = vst [vmem:[#allocation13_spill] sm:$0xff] %v6915_v56  ;;  %v1434_v16 = vld [vmem:[%s6505_s26 + $0xa0] sm:$0xff] }
  0xba   : > { %1800 = vmatprep.mubr.f32.mxu1 %v1426_v19  ;;  %5140 = vmatpush1.bf16.msra.mxu1 %v6760_v2  ;;  %v1444_v19 = vld [vmem:[%s6505_s26 + $0xf0] sm:$0xff] }
  0xbb   : > { %904 = vmatmul.mubr.f32.gmra.mrb[18].mxu0 %v560_v20  ;;  %5141 = vmatprep.subr.bf16.mxu1 %v8498_v3  ;;  %v578_v20 = vld [vmem:[%s6285_s13 + $0x328] sm:$0xff] }
  0xbc   : > { %908 = vmatprep.mubr.f32.mxu0 %v570_v34  ;;  %4943 = vmatpush1.bf16.msra.mxu0 %v6899_v27  ;;  %v6931_v34 = vpack.c.bf16 %v420_v9, %v419_v1  ;;  %v597_v9 = vld [vmem:[%s6285_s13 + $0x3c0] sm:$0xff] }
  0xbd   : > { %1801 = vmatmul.mubr.f32.gmra.mrb[20].mxu1 %v1425_v42  ;;  %4944 = vmatprep.subr.bf16.mxu0 %v8498_v3  ;;  %v422_v42 = vld [vmem:[%s8475_s4 + $0x2c8] sm:$0xff] }
  0xbe   : > { %1805 = vmatprep.mubr.f32.mxu1 %v1435_v52  ;;  %5143 = vmatpush1.bf16.msra.mxu1 %v6775_v26  ;;  %8553 = vst [vmem:[#allocation14_spill] sm:$0xff] %v6931_v34  ;;  %v1443_v52 = vld [vmem:[%s6505_s26 + $0xe8] sm:$0xff]  ;;  %v6947_v1 = vpack.c.bf16 %v422_v42, %v421_v40  ;;  %v596_v40 = vld [vmem:[%s6285_s13 + $0x3b8] sm:$0xff] }
  0xbf   : > { %909 = vmatmul.mubr.f32.gmra.mrb[20].mxu0 %v569_v54  ;;  %5144 = vmatprep.subr.bf16.mxu1 %v8498_v3  ;;  %v1453_v54 = vld [vmem:[%s6505_s26 + $0x138] sm:$0xff] }
  0xc0   : > { %913 = vmatprep.mubr.f32.mxu0 %v579_v60  ;;  %4946 = vmatpush1.bf16.msra.mxu0 %v6915_v56  ;;  %v587_v60 = vld [vmem:[%s6285_s13 + $0x370] sm:$0xff]  ;;  %8554 = vst [vmem:[#allocation15_spill] sm:$0xff] %v6947_v1 }
  0xc1   : > { %1806 = vmatmul.mubr.f32.gmra.mrb[22].mxu1 %v1434_v16  ;;  %4947 = vmatprep.subr.bf16.mxu0 %v8498_v3  ;;  %v423_v16 = vld [vmem:[%s8475_s4 + $0x2d0] sm:$0xff] }
  0xc2   : > { %1810 = vmatprep.mubr.f32.mxu1 %v1444_v19  ;;  %5146 = vmatpush1.bf16.msra.mxu1 %v6791_v47  ;;  %v424_v19 = vld [vmem:[%s8475_s4 + $0x2d8] sm:$0xff] }
  0xc3   : > { %914 = vmatmul.mubr.f32.gmra.mrb[22].mxu0 %v578_v20  ;;  %5147 = vmatprep.subr.bf16.mxu1 %v8498_v3  ;;  %v1452_v20 = vld [vmem:[%s6505_s26 + $0x130] sm:$0xff]  ;;  %v6963_v42 = vpack.c.bf16 %v424_v19, %v423_v16  ;;  %v1471_v16 = vld [vmem:[%s6505_s26 + $0x1c8] sm:$0xff]  ;;  %v605_v19 = vld [vmem:[%s6285_s13 + $0x400] sm:$0xff] }
  0xc4   : > { %918 = vmatprep.mubr.f32.mxu0 %v588_v39  ;;  %4949 = vmatpush1.bf16.msra.mxu0 %v6931_v34  ;;  %v1462_v39 = vld [vmem:[%s6505_s26 + $0x180] sm:$0xff] }
  0xc5   : > { %1811 = vmatmul.mubr.f32.gmra.mrb[24].mxu1 %v1443_v52  ;;  %4950 = vmatprep.subr.bf16.mxu0 %v8498_v3  ;;  %8555 = vst [vmem:[#allocation16_spill] sm:$0xff] %v6963_v42  ;;  %v606_v52 = vld [vmem:[%s6285_s13 + $0x408] sm:$0xff] }
  0xc6   : > { %1815 = vmatprep.mubr.f32.mxu1 %v1453_v54  ;;  %5149 = vmatpush1.bf16.msra.mxu1 %v6807_v0  ;;  %v425_v54 = vld [vmem:[%s8475_s4 + $0x2e0] sm:$0xff]  ;;  %v615_v0 = vld [vmem:[%s6285_s13 + $0x450] sm:$0xff] }
  0xc7   : > { %919 = vmatmul.mubr.f32.gmra.mrb[24].mxu0 %v587_v60  ;;  %5150 = vmatprep.subr.bf16.mxu1 %v8498_v3  ;;  %v426_v60 = vld [vmem:[%s8475_s4 + $0x2e8] sm:$0xff] }
  0xc8   : > { %923 = vmatprep.mubr.f32.mxu0 %v597_v9  ;;  %4952 = vmatpush1.bf16.msra.mxu0 %v6947_v1  ;;  %v1461_v9 = vld [vmem:[%s6505_s26 + $0x178] sm:$0xff] }
  0xc9   : > { %1816 = vmatmul.mubr.f32.gmra.mrb[26].mxu1 %v1452_v20  ;;  %4953 = vmatprep.subr.bf16.mxu0 %v8498_v3  ;;  %v6979_v20 = vpack.c.bf16 %v426_v60, %v425_v54  ;;  %v1480_v54 = vld [vmem:[%s6505_s26 + $0x210] sm:$0xff]  ;;  %v614_v60 = vld [vmem:[%s6285_s13 + $0x448] sm:$0xff] }
  0xca   : > { %1820 = vmatprep.mubr.f32.mxu1 %v1462_v39  ;;  %5152 = vmatpush1.bf16.msra.mxu1 %v6823_v22  ;;  %v427_v39 = vld [vmem:[%s8475_s4 + $0x2f0] sm:$0xff]  ;;  %v624_v22 = vld [vmem:[%s6285_s13 + $0x498] sm:$0xff] }
  0xcb   : > { %924 = vmatmul.mubr.f32.gmra.mrb[26].mxu0 %v596_v40  ;;  %5153 = vmatprep.subr.bf16.mxu1 %v8498_v3  ;;  %8556 = vst [vmem:[#allocation17_spill] sm:$0xff] %v6979_v20  ;;  %v428_v40 = vld [vmem:[%s8475_s4 + $0x2f8] sm:$0xff] }
  0xcc   : > { %928 = vmatprep.mubr.f32.mxu0 %v606_v52  ;;  %4955 = vmatpush1.bf16.msra.mxu0 %v6963_v42  ;;  %v1470_v52 = vld [vmem:[%s6505_s26 + $0x1c0] sm:$0xff] }
  0xcd   : > { %1821 = vmatmul.mubr.f32.gmra.mrb[28].mxu1 %v1461_v9  ;;  %4956 = vmatprep.subr.bf16.mxu0 %v8498_v3  ;;  %v6995_v9 = vpack.c.bf16 %v428_v40, %v427_v39  ;;  %v633_v39 = vld [vmem:[%s6285_s13 + $0x4e0] sm:$0xff]  ;;  %v1488_v40 = vld [vmem:[%s6505_s26 + $0x250] sm:$0xff] }
  0xce   : > { %1825 = vmatprep.mubr.f32.mxu1 %v1471_v16  ;;  %5155 = vmatpush1.bf16.msra.mxu1 %v6839_v48  ;;  %v1479_v16 = vld [vmem:[%s6505_s26 + $0x208] sm:$0xff] }
  0xcf   : > { %929 = vmatmul.mubr.f32.gmra.mrb[28].mxu0 %v605_v19  ;;  %5156 = vmatprep.subr.bf16.mxu1 %v8498_v3  ;;  %8557 = vst [vmem:[#allocation18_spill] sm:$0xff] %v6995_v9  ;;  %v1489_v19 = vld [vmem:[%s6505_s26 + $0x258] sm:$0xff] }
  0xd0   : > { %933 = vmatprep.mubr.f32.mxu0 %v615_v0  ;;  %4958 = vmatpush1.bf16.msra.mxu0 %v6979_v20  ;;  %v623_v0 = vld [vmem:[%s6285_s13 + $0x490] sm:$0xff] }
  0xd1   : > { %1826 = vmatmul.mubr.f32.gmra.mrb[30].mxu1 %v1470_v52  ;;  %4959 = vmatprep.subr.bf16.mxu0 %v8498_v3  ;;  %v1498_v52 = vld [vmem:[%s6505_s26 + $0x2a0] sm:$0xff] }
  0xd2   : > { %1830 = vmatprep.mubr.f32.mxu1 %v1480_v54  ;;  %5158 = vmatpush1.bf16.msra.mxu1 %v6855_v7  ;;  %v482_v54 = vld [vmem:[%s6285_s13 + $0x28] sm:$0xff]  ;;  %v1428_v7 = vld [vmem:[%s6505_s26 + $0x70] sm:$0xff] }
  0xd3   : > { %934 = vmatmul.mubr.f32.gmra.mrb[30].mxu0 %v614_v60  ;;  %5159 = vmatprep.subr.bf16.mxu1 %v8498_v3  ;;  %v429_v60 = vld [vmem:[%s8475_s4 + $0x300] sm:$0xff] }
  0xd4   : > { %938 = vmatprep.mubr.f32.mxu0 %v624_v22  ;;  %4961 = vmatpush1.bf16.msra.mxu0 %v6995_v9  ;;  %v632_v22 = vld [vmem:[%s6285_s13 + $0x4d8] sm:$0xff] }
  0xd5   : > { %1831 = vmatmul.mubr.f32.gmra.mrb[32].mxu1 %v1479_v16  ;;  %4962 = vmatprep.subr.bf16.mxu0 %v8498_v3  ;;  %v430_v16 = vld [vmem:[%s8475_s4 + $0x308] sm:$0xff] }
  0xd6   : > { %1835 = vmatprep.mubr.f32.mxu1 %v1489_v19  ;;  %5161 = vmatpush1.bf16.msra.mxu1 %v6871_v36  ;;  %v1497_v19 = vld [vmem:[%s6505_s26 + $0x298] sm:$0xff]  ;;  %v491_v36 = vld [vmem:[%s6285_s13 + $0x70] sm:$0xff] }
  0xd7   : > { %939 = vmatmul.mubr.f32.gmra.mrb[32].mxu0 %v623_v0  ;;  %5162 = vmatprep.subr.bf16.mxu1 %v8498_v3  ;;  %v1507_v0 = vld [vmem:[%s6505_s26 + $0x2e8] sm:$0xff] }
  0xd8   : > { %943 = vmatprep.mubr.f32.mxu0 %v633_v39  ;;  %v481_v39 = vld [vmem:[%s6285_s13 + $0x20] sm:$0xff] }
  0xd9   : > { %1836 = vmatmul.mubr.f32.gmra.mrb[34].mxu1 %v1488_v40  ;;  %v7024_v40 = vpack.c.bf16 %v430_v16, %v429_v60  ;;  %v490_v60 = vld [vmem:[%s6285_s13 + $0x68] sm:$0xff] }
  0xda   : > { %1840 = vmatprep.mubr.f32.mxu1 %v1498_v52  ;;  %5164 = vmatpush1.bf16.msra.mxu1 %v6885_v57  ;;  %v431_v52 = vld [vmem:[%s8475_s4 + $0x310] sm:$0xff]  ;;  %v432_v57 = vld [vmem:[%s8475_s4 + $0x318] sm:$0xff] }
  0xdb   : > { %944 = vmatmul.mubr.f32.gmra.mrb[34].mxu0 %v632_v22  ;;  %5165 = vmatprep.subr.bf16.mxu1 %v8498_v3  ;;  %8558 = vst [vmem:[#allocation19_spill] sm:$0xff] %v7024_v40  ;;  %v1506_v22 = vld [vmem:[%s6505_s26 + $0x2e0] sm:$0xff]  ;;  %v7039_v16 = vpack.c.bf16 %v432_v57, %v431_v52  ;;  %v1525_v57 = vld [vmem:[%s6505_s26 + $0x378] sm:$0xff]  ;;  %v499_v52 = vld [vmem:[%s6285_s13 + $0xb0] sm:$0xff] }
  0xdc   : > { %1013 = vmatprep.mubr.f32.mxu0 %v482_v54  ;;  %v1516_v54 = vld [vmem:[%s6505_s26 + $0x330] sm:$0xff] }
  0xdd   : > { %1841 = vmatmul.mubr.f32.gmra.mrb[36].mxu1 %v1497_v19  ;;  %8559 = vst [vmem:[#allocation20_spill] sm:$0xff] %v7039_v16  ;;  %v500_v19 = vld [vmem:[%s6285_s13 + $0xb8] sm:$0xff] }
  0xde   : > { %1845 = vmatprep.mubr.f32.mxu1 %v1507_v0  ;;  %5167 = vmatpush1.bf16.msra.mxu1 %v6899_v27  ;;  %v433_v0 = vld [vmem:[%s8475_s4 + $0x320] sm:$0xff]  ;;  %v536_v27 = vld [vmem:[%s6285_s13 + $0x1d8] sm:$0xff] }
  0xdf   : > { %1014 = vmatmul.mubr.f32.vlgmr.msra.gmra.mrb[0].mxu0 %v481_v39  ;;  %5168 = vmatprep.subr.bf16.mxu1 %v8498_v3  ;;  %v434_v39 = vld [vmem:[%s8475_s4 + $0x328] sm:$0xff] }
  0xe0   : > { %4964 = vmatpush1.bf16.msra.mxu0 %v7024_v40  ;;  %1018 = vmatprep.mubr.f32.mxu0 %v491_v36  ;;  %v1515_v36 = vld [vmem:[%s6505_s26 + $0x328] sm:$0xff] }
  0xe1   : > { %1846 = vmatmul.mubr.f32.gmra.mrb[38].mxu1 %v1506_v22  ;;  %4965 = vmatprep.subr.bf16.mxu0 %v8498_v3  ;;  %v7055_v22 = vpack.c.bf16 %v434_v39, %v433_v0  ;;  %v1534_v0 = vld [vmem:[%s6505_s26 + $0x3c0] sm:$0xff]  ;;  %v508_v39 = vld [vmem:[%s6285_s13 + $0xf8] sm:$0xff] }
  0xe2   : > { %1850 = vmatprep.mubr.f32.mxu1 %v1516_v54  ;;  %5170 = vmatpush1.bf16.msra.mxu1 %v6915_v56  ;;  %v509_v54 = vld [vmem:[%s6285_s13 + $0x100] sm:$0xff]  ;;  %v436_v56 = vld [vmem:[%s8475_s4 + $0x338] sm:$0xff] }
  0xe3   : > { %1019 = vmatmul.mubr.f32.gmra.mrb[2].mxu0 %v490_v60  ;;  %5171 = vmatprep.subr.bf16.mxu1 %v8498_v3  ;;  %8560 = vst [vmem:[#allocation21_spill] sm:$0xff] %v7055_v22  ;;  %v435_v60 = vld [vmem:[%s8475_s4 + $0x330] sm:$0xff] }
  0xe4   : > { %4967 = vmatpush1.bf16.msra.mxu0 %v7039_v16  ;;  %1023 = vmatprep.mubr.f32.mxu0 %v500_v19  ;;  %v1524_v19 = vld [vmem:[%s6505_s26 + $0x370] sm:$0xff] }
  0xe5   : > { %1851 = vmatmul.mubr.f32.gmra.mrb[40].mxu1 %v1515_v36  ;;  %4968 = vmatprep.subr.bf16.mxu0 %v8498_v3  ;;  %v7071_v36 = vpack.c.bf16 %v436_v56, %v435_v60  ;;  %v1543_v56 = vld [vmem:[%s6505_s26 + $0x408] sm:$0xff]  ;;  %v517_v60 = vld [vmem:[%s6285_s13 + $0x140] sm:$0xff] }
  0xe6   : > { %1855 = vmatprep.mubr.f32.mxu1 %v1525_v57  ;;  %5173 = vmatpush1.bf16.msra.mxu1 %v6931_v34  ;;  %v518_v57 = vld [vmem:[%s6285_s13 + $0x148] sm:$0xff] }
  0xe7   : > { %1024 = vmatmul.mubr.f32.gmra.mrb[4].mxu0 %v499_v52  ;;  %5174 = vmatprep.subr.bf16.mxu1 %v8498_v3  ;;  %8561 = vst [vmem:[#allocation22_spill] sm:$0xff] %v7071_v36  ;;  %v437_v52 = vld [vmem:[%s8475_s4 + $0x340] sm:$0xff]  ;;  %v438_v34 = vld [vmem:[%s8475_s4 + $0x348] sm:$0xff] }
  0xe8   : > { %4970 = vmatpush1.bf16.msra.mxu0 %v7055_v22  ;;  %1028 = vmatprep.mubr.f32.mxu0 %v509_v54  ;;  %v1533_v54 = vld [vmem:[%s6505_s26 + $0x3b8] sm:$0xff] }
  0xe9   : > { %1856 = vmatmul.mubr.f32.gmra.mrb[42].mxu1 %v1524_v19  ;;  %4971 = vmatprep.subr.bf16.mxu0 %v8498_v3  ;;  %v7087_v19 = vpack.c.bf16 %v438_v34, %v437_v52  ;;  %v1552_v34 = vld [vmem:[%s6505_s26 + $0x450] sm:$0xff]  ;;  %v526_v52 = vld [vmem:[%s6285_s13 + $0x188] sm:$0xff] }
  0xea   : > { %1860 = vmatprep.mubr.f32.mxu1 %v1534_v0  ;;  %5176 = vmatpush1.bf16.msra.mxu1 %v6947_v1  ;;  %v527_v0 = vld [vmem:[%s6285_s13 + $0x190] sm:$0xff]  ;;  %v440_v1 = vld [vmem:[%s8475_s4 + $0x358] sm:$0xff] }
  0xeb   : > { %1029 = vmatmul.mubr.f32.gmra.mrb[6].mxu0 %v508_v39  ;;  %5177 = vmatprep.subr.bf16.mxu1 %v8498_v3  ;;  %8562 = vst [vmem:[#allocation23_spill] sm:$0xff] %v7087_v19  ;;  %v439_v39 = vld [vmem:[%s8475_s4 + $0x350] sm:$0xff] }
  0xec   : > { %1033 = vmatprep.mubr.f32.mxu0 %v518_v57  ;;  %4973 = vmatpush1.bf16.msra.mxu0 %v7071_v36  ;;  %v1542_v57 = vld [vmem:[%s6505_s26 + $0x400] sm:$0xff] }
  0xed   : > { %1861 = vmatmul.mubr.f32.gmra.mrb[44].mxu1 %v1533_v54  ;;  %4974 = vmatprep.subr.bf16.mxu0 %v8498_v3  ;;  %v7103_v54 = vpack.c.bf16 %v440_v1, %v439_v39  ;;  %v1561_v1 = vld [vmem:[%s6505_s26 + $0x498] sm:$0xff]  ;;  %v535_v39 = vld [vmem:[%s6285_s13 + $0x1d0] sm:$0xff] }
  0xee   : > { %1865 = vmatprep.mubr.f32.mxu1 %v1543_v56  ;;  %5179 = vmatpush1.bf16.msra.mxu1 %v6963_v42  ;;  %v441_v56 = vld [vmem:[%s8475_s4 + $0x360] sm:$0xff] }
  0xef   : > { %1034 = vmatmul.mubr.f32.gmra.mrb[8].mxu0 %v517_v60  ;;  %5180 = vmatprep.subr.bf16.mxu1 %v8498_v3  ;;  %8563 = vst [vmem:[#allocation24_spill] sm:$0xff] %v7103_v54  ;;  %v442_v60 = vld [vmem:[%s8475_s4 + $0x368] sm:$0xff]  ;;  %v545_v42 = vld [vmem:[%s6285_s13 + $0x220] sm:$0xff] }
  0xf0   : > { %1038 = vmatprep.mubr.f32.mxu0 %v527_v0  ;;  %4976 = vmatpush1.bf16.msra.mxu0 %v7087_v19  ;;  %v1551_v0 = vld [vmem:[%s6505_s26 + $0x448] sm:$0xff] }
  0xf1   : > { %1866 = vmatmul.mubr.f32.gmra.mrb[46].mxu1 %v1542_v57  ;;  %4977 = vmatprep.subr.bf16.mxu0 %v8498_v3  ;;  %v7119_v57 = vpack.c.bf16 %v442_v60, %v441_v56  ;;  %v1570_v56 = vld [vmem:[%s6505_s26 + $0x4e0] sm:$0xff]  ;;  %v544_v60 = vld [vmem:[%s6285_s13 + $0x218] sm:$0xff] }
  0xf2   : > { %1870 = vmatprep.mubr.f32.mxu1 %v1552_v34  ;;  %5182 = vmatpush1.bf16.msra.mxu1 %v6979_v20  ;;  %v443_v34 = vld [vmem:[%s8475_s4 + $0x370] sm:$0xff]  ;;  %v554_v20 = vld [vmem:[%s6285_s13 + $0x268] sm:$0xff] }
  0xf3   : > { %1039 = vmatmul.mubr.f32.gmra.mrb[10].mxu0 %v526_v52  ;;  %5183 = vmatprep.subr.bf16.mxu1 %v8498_v3  ;;  %8564 = vst [vmem:[#allocation25_spill] sm:$0xff] %v7119_v57  ;;  %v444_v52 = vld [vmem:[%s8475_s4 + $0x378] sm:$0xff] }
  0xf4   : > { %1043 = vmatprep.mubr.f32.mxu0 %v536_v27  ;;  %4979 = vmatpush1.bf16.msra.mxu0 %v7103_v54  ;;  %v1560_v27 = vld [vmem:[%s6505_s26 + $0x490] sm:$0xff] }
  0xf5   : > { %1871 = vmatmul.mubr.f32.gmra.mrb[48].mxu1 %v1551_v0  ;;  %4980 = vmatprep.subr.bf16.mxu0 %v8498_v3  ;;  %v7135_v0 = vpack.c.bf16 %v444_v52, %v443_v34  ;;  %v1419_v34 = vld [vmem:[%s6505_s26 + $0x28] sm:$0xff]  ;;  %v553_v52 = vld [vmem:[%s6285_s13 + $0x260] sm:$0xff] }
  0xf6   : > { %1875 = vmatprep.mubr.f32.mxu1 %v1561_v1  ;;  %5185 = vmatpush1.bf16.msra.mxu1 %v6995_v9  ;;  %v445_v1 = vld [vmem:[%s8475_s4 + $0x380] sm:$0xff]  ;;  %v8567_v9 = vmov 0.0|0.0  }
  0xf7   : > { %1044 = vmatmul.mubr.f32.gmra.mrb[12].mxu0 %v535_v39  ;;  %5186 = vmatprep.subr.bf16.mxu1 %v8498_v3  ;;  %8565 = vst [vmem:[#allocation26_spill] sm:$0xff] %v7135_v0  ;;  %v446_v39 = vld [vmem:[%s8475_s4 + $0x388] sm:$0xff] }
  0xf8   : > { %1048 = vmatprep.mubr.f32.mxu0 %v545_v42  ;;  %4982 = vmatpush1.bf16.msra.mxu0 %v7119_v57  ;;  %v1569_v42 = vld [vmem:[%s6505_s26 + $0x4d8] sm:$0xff] }
  0xf9   : > { %1876 = vmatmul.mubr.f32.gmra.mrb[50].mxu1 %v1560_v27  ;;  %4983 = vmatprep.subr.bf16.mxu0 %v8498_v3  ;;  %v7149_v27 = vpack.c.bf16 %v446_v39, %v445_v1  ;;  %v563_v3 = vld [vmem:[%s6285_s13 + $0x2b0] sm:$0xff]  ;;  %v562_v1 = vld [vmem:[%s6285_s13 + $0x2a8] sm:$0xff] }
  0xfa   : > { %1880 = vmatprep.mubr.f32.mxu1 %v1570_v56  ;;  %v447_v56 = vld [vmem:[%s8475_s4 + $0x390] sm:$0xff] }
  0xfb   : > { %1049 = vmatmul.mubr.f32.gmra.mrb[14].mxu0 %v544_v60  ;;  %8566 = vst [vmem:[#allocation27_spill] sm:$0xff] %v7149_v27  ;;  %v448_v60 = vld [vmem:[%s8475_s4 + $0x398] sm:$0xff] }
  0xfc   : > { %1053 = vmatprep.mubr.f32.mxu0 %v554_v20  ;;  %4985 = vmatpush1.bf16.msra.mxu0 %v7135_v0  ;;  %v1418_v20 = vld [vmem:[%s6505_s26 + $0x20] sm:$0xff]  ;;  %v7163_v39 = vpack.c.bf16 %v448_v60, %v447_v56  ;;  %v1437_v56 = vld [vmem:[%s6505_s26 + $0xb8] sm:$0xff]  ;;  %v571_v60 = vld [vmem:[%s6285_s13 + $0x2f0] sm:$0xff] }
  0xfd   : > { %1881 = vmatmul.mubr.f32.gmra.mrb[52].mxu1 %v1569_v42  ;;  %4986 = vmatprep.subr.bf16.mxu0 %v8567_v9  ;;  %v572_v42 = vld [vmem:[%s6285_s13 + $0x2f8] sm:$0xff] }
  0xfe   : > { %1950 = vmatprep.mubr.f32.mxu1 %v1419_v34  ;;  %8568 = vst [vmem:[#allocation28_spill] sm:$0xff] %v7163_v39  ;;  %v449_v34 = vld [vmem:[%s8475_s4 + $0x3a0] sm:$0xff] }
  0xff   : > { %1054 = vmatmul.mubr.f32.gmra.mrb[16].mxu0 %v553_v52  ;;  %v450_v52 = vld [vmem:[%s8475_s4 + $0x3a8] sm:$0xff] }
 0x100   : > { %1058 = vmatprep.mubr.f32.mxu0 %v563_v3  ;;  %4988 = vmatpush1.bf16.msra.mxu0 %v7149_v27  ;;  %v1427_v3 = vld [vmem:[%s6505_s26 + $0x68] sm:$0xff] }
 0x101   : > { %1951 = vmatmul.mubr.f32.vlgmr.msra.gmra.mrb[18].mxu1 %v1418_v20  ;;  %4989 = vmatprep.subr.bf16.mxu0 %v8567_v9  ;;  %v7179_v20 = vpack.c.bf16 %v450_v52, %v449_v34  ;;  %v1436_v34 = vld [vmem:[%s6505_s26 + $0xb0] sm:$0xff]  ;;  %v1446_v52 = vld [vmem:[%s6505_s26 + $0x100] sm:$0xff] }
 0x102   : > { %1955 = vmatprep.mubr.f32.mxu1 %v1428_v7  ;;  %5188 = vmatpush1.bf16.msra.mxu1 %v7024_v40  ;;  %v581_v7 = vld [vmem:[%s6285_s13 + $0x340] sm:$0xff] }
 0x103   : > { %1059 = vmatmul.mubr.f32.gmra.mrb[18].mxu0 %v562_v1  ;;  %5189 = vmatprep.subr.bf16.mxu1 %v8567_v9  ;;  %v451_v1 = vld [vmem:[%s8475_s4 + $0x3b0] sm:$0xff] }
 0x104   : > { %1063 = vmatprep.mubr.f32.mxu0 %v572_v42  ;;  %4991 = vmatpush1.bf16.msra.mxu0 %v7163_v39  ;;  %v7181_v48 = vpop.f32.mrb[0].mxu1  ;;  %v452_v42 = vld [vmem:[%s8475_s4 + $0x3b8] sm:$0xff] }
 0x105   : > { %8569 = vst [vmem:[#allocation29_spill] sm:$0xff] %v7181_v48  ;;  %1956 = vmatmul.mubr.f32.gmra.mrb[20].mxu1 %v1427_v3  ;;  %4992 = vmatprep.subr.bf16.mxu0 %v8567_v9  ;;  %v7191_v40 = vpop.f32.mrb[1].mxu1  ;;  %v580_v3 = vld [vmem:[%s6285_s13 + $0x338] sm:$0xff]  ;;  %v7199_v48 = vpack.c.bf16 %v452_v42, %v451_v1  ;;  %v1455_v42 = vld [vmem:[%s6505_s26 + $0x148] sm:$0xff] }
 0x106   : > { %8570 = vst [vmem:[#allocation30_spill] sm:$0xff] %v7191_v40  ;;  %1960 = vmatprep.mubr.f32.mxu1 %v1437_v56  ;;  %5191 = vmatpush1.bf16.msra.mxu1 %v7039_v16  ;;  %v590_v56 = vld [vmem:[%s6285_s13 + $0x388] sm:$0xff]  ;;  %v1445_v1 = vld [vmem:[%s6505_s26 + $0xf8] sm:$0xff] }
 0x107   : > { %1064 = vmatmul.mubr.f32.gmra.mrb[20].mxu0 %v571_v60  ;;  %5192 = vmatprep.subr.bf16.mxu1 %v8567_v9  ;;  %v453_v60 = vld [vmem:[%s8475_s4 + $0x3c0] sm:$0xff] }
 0x108   : > { %1068 = vmatprep.mubr.f32.mxu0 %v581_v7  ;;  %4994 = vmatpush1.bf16.msra.mxu0 %v7179_v20  ;;  %v7201_v47 = vpop.f32.mrb[2].mxu1  ;;  %v454_v7 = vld [vmem:[%s8475_s4 + $0x3c8] sm:$0xff] }
 0x109   : > { %8571 = vst [vmem:[#allocation31_spill] sm:$0xff] %v7201_v47  ;;  %1961 = vmatmul.mubr.f32.gmra.mrb[22].mxu1 %v1436_v34  ;;  %4995 = vmatprep.subr.bf16.mxu0 %v8567_v9  ;;  %v7211_v16 = vpop.f32.mrb[3].mxu1  ;;  %v589_v34 = vld [vmem:[%s6285_s13 + $0x380] sm:$0xff]  ;;  %v7219_v47 = vpack.c.bf16 %v454_v7, %v453_v60  ;;  %v1464_v7 = vld [vmem:[%s6505_s26 + $0x190] sm:$0xff] }
 0x10a   : > { %8572 = vst [vmem:[#allocation32_spill] sm:$0xff] %v7211_v16  ;;  %1965 = vmatprep.mubr.f32.mxu1 %v1446_v52  ;;  %5194 = vmatpush1.bf16.msra.mxu1 %v7055_v22  ;;  %v599_v52 = vld [vmem:[%s6285_s13 + $0x3d0] sm:$0xff]  ;;  %v1454_v60 = vld [vmem:[%s6505_s26 + $0x140] sm:$0xff] }
 0x10b   : > { %1069 = vmatmul.mubr.f32.gmra.mrb[22].mxu0 %v580_v3  ;;  %5195 = vmatprep.subr.bf16.mxu1 %v8567_v9  ;;  %v455_v3 = vld [vmem:[%s8475_s4 + $0x3d0] sm:$0xff] }
 0x10c   : > { %1073 = vmatprep.mubr.f32.mxu0 %v590_v56  ;;  %4997 = vmatpush1.bf16.msra.mxu0 %v7199_v48  ;;  %v7221_v40 = vpop.f32.mrb[4].mxu1  ;;  %v456_v56 = vld [vmem:[%s8475_s4 + $0x3d8] sm:$0xff] }
 0x10d   : > { %8573 = vst [vmem:[#allocation33_spill] sm:$0xff] %v7221_v40  ;;  %1966 = vmatmul.mubr.f32.gmra.mrb[24].mxu1 %v1445_v1  ;;  %4998 = vmatprep.subr.bf16.mxu0 %v8567_v9  ;;  %v7231_v22 = vpop.f32.mrb[5].mxu1  ;;  %v598_v1 = vld [vmem:[%s6285_s13 + $0x3c8] sm:$0xff]  ;;  %v7239_v40 = vpack.c.bf16 %v456_v56, %v455_v3  ;;  %v1473_v56 = vld [vmem:[%s6505_s26 + $0x1d8] sm:$0xff] }
 0x10e   : > { %8574 = vst [vmem:[#allocation34_spill] sm:$0xff] %v7231_v22  ;;  %1970 = vmatprep.mubr.f32.mxu1 %v1455_v42  ;;  %5197 = vmatpush1.bf16.msra.mxu1 %v7071_v36  ;;  %v608_v42 = vld [vmem:[%s6285_s13 + $0x418] sm:$0xff]  ;;  %v1463_v3 = vld [vmem:[%s6505_s26 + $0x188] sm:$0xff] }
 0x10f   : > { %1074 = vmatmul.mubr.f32.gmra.mrb[24].mxu0 %v589_v34  ;;  %5198 = vmatprep.subr.bf16.mxu1 %v8567_v9  ;;  %v457_v34 = vld [vmem:[%s8475_s4 + $0x3e0] sm:$0xff] }
 0x110   : > { %1078 = vmatprep.mubr.f32.mxu0 %v599_v52  ;;  %5000 = vmatpush1.bf16.msra.mxu0 %v7219_v47  ;;  %v7241_v16 = vpop.f32.mrb[6].mxu1  ;;  %v458_v52 = vld [vmem:[%s8475_s4 + $0x3e8] sm:$0xff] }
 0x111   : > { %8575 = vst [vmem:[#allocation35_spill] sm:$0xff] %v7241_v16  ;;  %1971 = vmatmul.mubr.f32.gmra.mrb[26].mxu1 %v1454_v60  ;;  %5001 = vmatprep.subr.bf16.mxu0 %v8567_v9  ;;  %v7251_v36 = vpop.f32.mrb[7].mxu1  ;;  %v607_v60 = vld [vmem:[%s6285_s13 + $0x410] sm:$0xff]  ;;  %v7259_v16 = vpack.c.bf16 %v458_v52, %v457_v34  ;;  %v1482_v52 = vld [vmem:[%s6505_s26 + $0x220] sm:$0xff] }
 0x112   : > { %8576 = vst [vmem:[#allocation36_spill] sm:$0xff] %v7251_v36  ;;  %1975 = vmatprep.mubr.f32.mxu1 %v1464_v7  ;;  %5200 = vmatpush1.bf16.msra.mxu1 %v7087_v19  ;;  %v617_v7 = vld [vmem:[%s6285_s13 + $0x460] sm:$0xff]  ;;  %v1472_v34 = vld [vmem:[%s6505_s26 + $0x1d0] sm:$0xff] }
 0x113   : > { %1079 = vmatmul.mubr.f32.gmra.mrb[26].mxu0 %v598_v1  ;;  %5201 = vmatprep.subr.bf16.mxu1 %v8567_v9  ;;  %v459_v1 = vld [vmem:[%s8475_s4 + $0x3f0] sm:$0xff] }
 0x114   : > { %1083 = vmatprep.mubr.f32.mxu0 %v608_v42  ;;  %5003 = vmatpush1.bf16.msra.mxu0 %v7239_v40  ;;  %v7261_v22 = vpop.f32.mrb[8].mxu1  ;;  %v460_v42 = vld [vmem:[%s8475_s4 + $0x3f8] sm:$0xff] }
 0x115   : > { %8577 = vst [vmem:[#allocation37_spill] sm:$0xff] %v7261_v22  ;;  %1976 = vmatmul.mubr.f32.gmra.mrb[28].mxu1 %v1463_v3  ;;  %5004 = vmatprep.subr.bf16.mxu0 %v8567_v9  ;;  %v7271_v19 = vpop.f32.mrb[9].mxu1  ;;  %v616_v3 = vld [vmem:[%s6285_s13 + $0x458] sm:$0xff]  ;;  %v7279_v22 = vpack.c.bf16 %v460_v42, %v459_v1  ;;  %v625_v1 = vld [vmem:[%s6285_s13 + $0x4a0] sm:$0xff] }
 0x116   : > { %1980 = vmatprep.mubr.f32.mxu1 %v1473_v56  ;;  %5203 = vmatpush1.bf16.msra.mxu1 %v7103_v54  ;;  %v626_v56 = vld [vmem:[%s6285_s13 + $0x4a8] sm:$0xff] }
 0x117   : > { %1084 = vmatmul.mubr.f32.gmra.mrb[28].mxu0 %v607_v60  ;;  %5204 = vmatprep.subr.bf16.mxu1 %v8567_v9  ;;  %8578 = vst [vmem:[#allocation38_spill] sm:$0xff] %v7279_v22  ;;  %v1481_v60 = vld [vmem:[%s6505_s26 + $0x218] sm:$0xff] }
 0x118   : > { %1088 = vmatprep.mubr.f32.mxu0 %v617_v7  ;;  %5006 = vmatpush1.bf16.msra.mxu0 %v7259_v16  ;;  %v7281_v36 = vpop.f32.mrb[10].mxu1  ;;  %v1491_v7 = vld [vmem:[%s6505_s26 + $0x268] sm:$0xff] }
 0x119   : > { %8579 = vst [vmem:[#allocation39_spill] sm:$0xff] %v7281_v36  ;;  %1981 = vmatmul.mubr.f32.gmra.mrb[30].mxu1 %v1472_v34  ;;  %5007 = vmatprep.subr.bf16.mxu0 %v8567_v9  ;;  %v7285_v54 = vpop.f32.mrb[11].mxu1  ;;  %v635_v34 = vld [vmem:[%s6285_s13 + $0x4f0] sm:$0xff] }
 0x11a   : > { %1985 = vmatprep.mubr.f32.mxu1 %v1482_v52  ;;  %5206 = vmatpush1.bf16.msra.mxu1 %v7119_v57  ;;  %v634_v57 = vld [vmem:[%s6285_s13 + $0x4e8] sm:$0xff] }
 0x11b   : > { %1089 = vmatmul.mubr.f32.gmra.mrb[30].mxu0 %v616_v3  ;;  %5207 = vmatprep.subr.bf16.mxu1 %v8567_v9  ;;  %v1490_v3 = vld [vmem:[%s6505_s26 + $0x260] sm:$0xff] }
 0x11c   : > { %1093 = vmatprep.mubr.f32.mxu0 %v626_v56  ;;  %5009 = vmatpush1.bf16.msra.mxu0 %v7279_v22  ;;  %v7293_v42 = vpop.f32.mrb[12].mxu1  ;;  %v1500_v56 = vld [vmem:[%s6505_s26 + $0x2b0] sm:$0xff] }
 0x11d   : > { %8580 = vst [vmem:[#allocation40_spill] sm:$0xff] %v7293_v42  ;;  %1986 = vmatmul.mubr.f32.gmra.mrb[32].mxu1 %v1481_v60  ;;  %5235 = vmatprep.subr.bf16.mxu0 %v6229_v8  ;;  %v7297_v52 = vpop.f32.mrb[13].mxu1  ;;  %v484_v42 = vld [vmem:[%s6285_s13 + $0x38] sm:$0xff] }
 0x11e   : > { %1990 = vmatprep.mubr.f32.mxu1 %v1491_v7  ;;  %5209 = vmatpush1.bf16.msra.mxu1 %v7135_v0  ;;  %v1499_v7 = vld [vmem:[%s6505_s26 + $0x2a8] sm:$0xff] }
 0x11f   : > { %1094 = vmatmul.mubr.f32.gmra.mrb[32].mxu0 %v625_v1  ;;  %5210 = vmatprep.subr.bf16.mxu1 %v8567_v9  ;;  %v1509_v1 = vld [vmem:[%s6505_s26 + $0x2f8] sm:$0xff] }
 0x120   : > { %1098 = vmatprep.mubr.f32.mxu0 %v635_v34  ;;  %v7304_v60 = vpop.f32.mrb[14].mxu1  ;;  %v483_v34 = vld [vmem:[%s6285_s13 + $0x30] sm:$0xff] }
 0x121   : > { %8581 = vst [vmem:[#allocation41_spill] sm:$0xff] %v7304_v60  ;;  %1991 = vmatmul.mubr.f32.gmra.mrb[34].mxu1 %v1490_v3  ;;  %v7307_v36 = vpop.f32.mrb[15].mxu1  ;;  %v493_v3 = vld [vmem:[%s6285_s13 + $0x80] sm:$0xff] }
 0x122   : > { %1995 = vmatprep.mubr.f32.mxu1 %v1500_v56  ;;  %5212 = vmatpush1.bf16.msra.mxu1 %v7149_v27  ;;  %v1508_v56 = vld [vmem:[%s6505_s26 + $0x2f0] sm:$0xff] }
 0x123   : > { %1099 = vmatmul.mubr.f32.gmra.mrb[34].mxu0 %v634_v57  ;;  %5213 = vmatprep.subr.bf16.mxu1 %v8567_v9  ;;  %v1518_v57 = vld [vmem:[%s6505_s26 + $0x340] sm:$0xff] }
 0x124   : > { %1168 = vmatprep.mubr.f32.mxu0 %v484_v42  ;;  %v7314_v0 = vpop.f32.mrb[16].mxu1  ;;  %v492_v42 = vld [vmem:[%s6285_s13 + $0x78] sm:$0xff] }
 0x125   : > { %1996 = vmatmul.mubr.f32.gmra.mrb[36].mxu1 %v1499_v7  ;;  %v7317_v60 = vpop.f32.mrb[17].mxu1  ;;  %v502_v7 = vld [vmem:[%s6285_s13 + $0xc8] sm:$0xff] }
 0x126   : > { %2000 = vmatprep.mubr.f32.mxu1 %v1509_v1  ;;  %5215 = vmatpush1.bf16.msra.mxu1 %v7163_v39  ;;  %v1517_v1 = vld [vmem:[%s6505_s26 + $0x338] sm:$0xff]  ;;  %v501_v39 = vld [vmem:[%s6285_s13 + $0xc0] sm:$0xff] }
 0x127   : > { %1169 = vmatmul.mubr.f32.vlgmr.msra.gmra.mrb[0].mxu0 %v483_v34  ;;  %5216 = vmatprep.subr.bf16.mxu1 %v8567_v9  ;;  %v1527_v34 = vld [vmem:[%s6505_s26 + $0x388] sm:$0xff] }
 0x128   : > { %5237 = vmatpush3.bf16.msra.mxu0 %v6229_v8  ;;  %1173 = vmatprep.mubr.f32.mxu0 %v493_v3  ;;  %v511_v3 = vld [vmem:[%s6285_s13 + $0x110] sm:$0xff] }
 0x129   : > { %2001 = vmatmul.mubr.f32.gmra.mrb[38].mxu1 %v1508_v56  ;;  %5239 = vmatprep.subr.bf16.mxu0 %v6240_v12  ;;  %v1526_v56 = vld [vmem:[%s6505_s26 + $0x380] sm:$0xff] }
 0x12a   : > { %2005 = vmatprep.mubr.f32.mxu1 %v1518_v57  ;;  %5218 = vmatpush1.bf16.msra.mxu1 %v7179_v20  ;;  %v1536_v57 = vld [vmem:[%s6505_s26 + $0x3d0] sm:$0xff] }
 0x12b   : > { %1174 = vmatmul.mubr.f32.gmra.mrb[2].mxu0 %v492_v42  ;;  %5219 = vmatprep.subr.bf16.mxu1 %v8567_v9  ;;  %v510_v42 = vld [vmem:[%s6285_s13 + $0x108] sm:$0xff] }
 0x12c   : > { %1178 = vmatprep.mubr.f32.mxu0 %v502_v7  ;;  %5241 = vmatpush3.bf16.msra.mxu0 %v6240_v12  ;;  %v520_v7 = vld [vmem:[%s6285_s13 + $0x158] sm:$0xff] }
 0x12d   : > { %2006 = vmatmul.mubr.f32.gmra.mrb[40].mxu1 %v1517_v1  ;;  %5243 = vmatprep.subr.bf16.mxu0 %v6260_v17  ;;  %v1535_v1 = vld [vmem:[%s6505_s26 + $0x3c8] sm:$0xff] }
 0x12e   : > { %2010 = vmatprep.mubr.f32.mxu1 %v1527_v34  ;;  %5221 = vmatpush1.bf16.msra.mxu1 %v7199_v48  ;;  %v519_v34 = vld [vmem:[%s6285_s13 + $0x150] sm:$0xff] }
 0x12f   : > { %1179 = vmatmul.mubr.f32.gmra.mrb[4].mxu0 %v501_v39  ;;  %5222 = vmatprep.subr.bf16.mxu1 %v8567_v9  ;;  %v1545_v39 = vld [vmem:[%s6505_s26 + $0x418] sm:$0xff] }
 0x130   : > { %1183 = vmatprep.mubr.f32.mxu0 %v511_v3  ;;  %5245 = vmatpush3.bf16.msra.mxu0 %v6260_v17  ;;  %v529_v3 = vld [vmem:[%s6285_s13 + $0x1a0] sm:$0xff] }
 0x131   : > { %2011 = vmatmul.mubr.f32.gmra.mrb[42].mxu1 %v1526_v56  ;;  %5247 = vmatprep.subr.bf16.mxu0 %v6289_v23  ;;  %v1544_v56 = vld [vmem:[%s6505_s26 + $0x410] sm:$0xff] }
 0x132   : > { %2015 = vmatprep.mubr.f32.mxu1 %v1536_v57  ;;  %5224 = vmatpush1.bf16.msra.mxu1 %v7219_v47  ;;  %v1554_v57 = vld [vmem:[%s6505_s26 + $0x460] sm:$0xff] }
 0x133   : > { %1184 = vmatmul.mubr.f32.gmra.mrb[6].mxu0 %v510_v42  ;;  %5225 = vmatprep.subr.bf16.mxu1 %v8567_v9  ;;  %v528_v42 = vld [vmem:[%s6285_s13 + $0x198] sm:$0xff] }
 0x134   : > { %1188 = vmatprep.mubr.f32.mxu0 %v520_v7  ;;  %5249 = vmatpush3.bf16.msra.mxu0 %v6289_v23  ;;  %v538_v7 = vld [vmem:[%s6285_s13 + $0x1e8] sm:$0xff] }
 0x135   : > { %2016 = vmatmul.mubr.f32.gmra.mrb[44].mxu1 %v1535_v1  ;;  %5251 = vmatprep.subr.bf16.mxu0 %v6310_v30  ;;  %v1553_v1 = vld [vmem:[%s6505_s26 + $0x458] sm:$0xff] }
 0x136   : > { %2020 = vmatprep.mubr.f32.mxu1 %v1545_v39  ;;  %5227 = vmatpush1.bf16.msra.mxu1 %v7239_v40  ;;  %v1563_v39 = vld [vmem:[%s6505_s26 + $0x4a8] sm:$0xff] }
 0x137   : > { %1189 = vmatmul.mubr.f32.gmra.mrb[8].mxu0 %v519_v34  ;;  %5228 = vmatprep.subr.bf16.mxu1 %v8567_v9  ;;  %v537_v34 = vld [vmem:[%s6285_s13 + $0x1e0] sm:$0xff] }
 0x138   : > { %1193 = vmatprep.mubr.f32.mxu0 %v529_v3  ;;  %5253 = vmatpush3.bf16.msra.mxu0 %v6310_v30  ;;  %v547_v3 = vld [vmem:[%s6285_s13 + $0x230] sm:$0xff] }
 0x139   : > { %2021 = vmatmul.mubr.f32.gmra.mrb[46].mxu1 %v1544_v56  ;;  %5255 = vmatprep.subr.bf16.mxu0 %v6331_v37  ;;  %v1562_v56 = vld [vmem:[%s6505_s26 + $0x4a0] sm:$0xff] }
 0x13a   : > { %2025 = vmatprep.mubr.f32.mxu1 %v1554_v57  ;;  %5230 = vmatpush1.bf16.msra.mxu1 %v7259_v16  ;;  %v1572_v57 = vld [vmem:[%s6505_s26 + $0x4f0] sm:$0xff] }
 0x13b   : > { %1194 = vmatmul.mubr.f32.gmra.mrb[10].mxu0 %v528_v42  ;;  %5231 = vmatprep.subr.bf16.mxu1 %v8567_v9  ;;  %v546_v42 = vld [vmem:[%s6285_s13 + $0x228] sm:$0xff] }
 0x13c   : > { %1198 = vmatprep.mubr.f32.mxu0 %v538_v7  ;;  %5257 = vmatpush3.bf16.msra.mxu0 %v6331_v37  ;;  %v556_v7 = vld [vmem:[%s6285_s13 + $0x278] sm:$0xff] }
 0x13d   : > { %2026 = vmatmul.mubr.f32.gmra.mrb[48].mxu1 %v1553_v1  ;;  %5259 = vmatprep.subr.bf16.mxu0 %v6351_v43  ;;  %v1571_v1 = vld [vmem:[%s6505_s26 + $0x4e8] sm:$0xff] }
 0x13e   : > { %2030 = vmatprep.mubr.f32.mxu1 %v1563_v39  ;;  %5233 = vmatpush1.bf16.msra.mxu1 %v7279_v22  ;;  %v1421_v39 = vld [vmem:[%s6505_s26 + $0x38] sm:$0xff] }
 0x13f   : > { %1199 = vmatmul.mubr.f32.gmra.mrb[12].mxu0 %v537_v34  ;;  %5266 = vmatprep.subr.bf16.mxu1 %v8567_v9  ;;  %v555_v34 = vld [vmem:[%s6285_s13 + $0x270] sm:$0xff]  ;;  %v1429_v22 = vld [vmem:[%s6505_s26 + $0x78] sm:$0xff] }
 0x140   : > { %1203 = vmatprep.mubr.f32.mxu0 %v547_v3  ;;  %5261 = vmatpush3.bf16.msra.mxu0 %v6351_v43  ;;  %v565_v3 = vld [vmem:[%s6285_s13 + $0x2c0] sm:$0xff] }
 0x141   : > { %2031 = vmatmul.mubr.f32.gmra.mrb[50].mxu1 %v1562_v56  ;;  %5263 = vmatprep.subr.bf16.mxu0 %v6371_v49  ;;  %v1420_v56 = vld [vmem:[%s6505_s26 + $0x30] sm:$0xff] }
 0x142   : > { %2035 = vmatprep.mubr.f32.mxu1 %v1572_v57  ;;  %v1430_v57 = vld [vmem:[%s6505_s26 + $0x80] sm:$0xff] }
 0x143   : > { %1204 = vmatmul.mubr.f32.gmra.mrb[14].mxu0 %v546_v42  ;;  %v564_v42 = vld [vmem:[%s6285_s13 + $0x2b8] sm:$0xff] }
 0x144   : > { %1208 = vmatprep.mubr.f32.mxu0 %v556_v7  ;;  %5265 = vmatpush3.bf16.msra.mxu0 %v6371_v49  ;;  %v574_v7 = vld [vmem:[%s6285_s13 + $0x308] sm:$0xff] }
 0x145   : > { %2036 = vmatmul.mubr.f32.gmra.mrb[52].mxu1 %v1571_v1  ;;  %5459 = vmatprep.subr.bf16.mxu0 %v6229_v8  ;;  %v1439_v1 = vld [vmem:[%s6505_s26 + $0xc8] sm:$0xff] }
 0x146   : > { %2105 = vmatprep.mubr.f32.mxu1 %v1421_v39  ;;  %v573_v39 = vld [vmem:[%s6285_s13 + $0x300] sm:$0xff] }
 0x147   : > { %1209 = vmatmul.mubr.f32.gmra.mrb[16].mxu0 %v555_v34  ;;  %v583_v34 = vld [vmem:[%s6285_s13 + $0x350] sm:$0xff] }
 0x148   : > { %1213 = vmatprep.mubr.f32.mxu0 %v565_v3  ;;  %v1438_v3 = vld [vmem:[%s6505_s26 + $0xc0] sm:$0xff] }
 0x149   : > { %2106 = vmatmul.mubr.f32.vlgmr.msra.gmra.mrb[18].mxu1 %v1420_v56  ;;  %v1448_v56 = vld [vmem:[%s6505_s26 + $0x110] sm:$0xff] }
 0x14a   : > { %2110 = vmatprep.mubr.f32.mxu1 %v1430_v57  ;;  %5268 = vmatpush1.bf16.msra.mxu1 %v6218_v4  ;;  %v582_v57 = vld [vmem:[%s6285_s13 + $0x348] sm:$0xff] }
 0x14b   : > { %1214 = vmatmul.mubr.f32.gmra.mrb[18].mxu0 %v564_v42  ;;  %5269 = vmatprep.subr.bf16.mxu1 %v8567_v9  ;;  %v592_v42 = vld [vmem:[%s6285_s13 + $0x398] sm:$0xff] }
 0x14c   : > { %1218 = vmatprep.mubr.f32.mxu0 %v574_v7  ;;  %v1457_v7 = vld [vmem:[%s6505_s26 + $0x158] sm:$0xff] }
 0x14d   : > { %2111 = vmatmul.mubr.f32.gmra.mrb[20].mxu1 %v1429_v22  ;;  %v1447_v22 = vld [vmem:[%s6505_s26 + $0x108] sm:$0xff] }
 0x14e   : > { %2115 = vmatprep.mubr.f32.mxu1 %v1439_v1  ;;  %5271 = vmatpush1.bf16.msra.mxu1 %v6238_v11  ;;  %v591_v1 = vld [vmem:[%s6285_s13 + $0x390] sm:$0xff] }
 0x14f   : > { %1219 = vmatmul.mubr.f32.gmra.mrb[20].mxu0 %v573_v39  ;;  %5272 = vmatprep.subr.bf16.mxu1 %v8567_v9  ;;  %v601_v39 = vld [vmem:[%s6285_s13 + $0x3e0] sm:$0xff] }
 0x150   : > { %1223 = vmatprep.mubr.f32.mxu0 %v583_v34  ;;  %v1456_v34 = vld [vmem:[%s6505_s26 + $0x150] sm:$0xff] }
 0x151   : > { %2116 = vmatmul.mubr.f32.gmra.mrb[22].mxu1 %v1438_v3  ;;  %v1466_v3 = vld [vmem:[%s6505_s26 + $0x1a0] sm:$0xff] }
 0x152   : > { %2120 = vmatprep.mubr.f32.mxu1 %v1448_v56  ;;  %5274 = vmatpush1.bf16.msra.mxu1 %v6266_v18  ;;  %v600_v56 = vld [vmem:[%s6285_s13 + $0x3d8] sm:$0xff] }
 0x153   : > { %1224 = vmatmul.mubr.f32.gmra.mrb[22].mxu0 %v582_v57  ;;  %5275 = vmatprep.subr.bf16.mxu1 %v8567_v9  ;;  %v610_v57 = vld [vmem:[%s6285_s13 + $0x428] sm:$0xff] }
 0x154   : > { %1228 = vmatprep.mubr.f32.mxu0 %v592_v42  ;;  %v1465_v42 = vld [vmem:[%s6505_s26 + $0x198] sm:$0xff] }
 0x155   : > { %2121 = vmatmul.mubr.f32.gmra.mrb[24].mxu1 %v1447_v22  ;;  %v1475_v22 = vld [vmem:[%s6505_s26 + $0x1e8] sm:$0xff] }
 0x156   : > { %2125 = vmatprep.mubr.f32.mxu1 %v1457_v7  ;;  %5277 = vmatpush1.bf16.msra.mxu1 %v6292_v24  ;;  %v609_v7 = vld [vmem:[%s6285_s13 + $0x420] sm:$0xff] }
 0x157   : > { %1229 = vmatmul.mubr.f32.gmra.mrb[24].mxu0 %v591_v1  ;;  %5278 = vmatprep.subr.bf16.mxu1 %v8567_v9  ;;  %v619_v1 = vld [vmem:[%s6285_s13 + $0x470] sm:$0xff] }
 0x158   : > { %1233 = vmatprep.mubr.f32.mxu0 %v601_v39  ;;  %v1474_v39 = vld [vmem:[%s6505_s26 + $0x1e0] sm:$0xff] }
 0x159   : > { %2126 = vmatmul.mubr.f32.gmra.mrb[26].mxu1 %v1456_v34  ;;  %v1484_v34 = vld [vmem:[%s6505_s26 + $0x230] sm:$0xff] }
 0x15a   : > { %2130 = vmatprep.mubr.f32.mxu1 %v1466_v3  ;;  %5280 = vmatpush1.bf16.msra.mxu1 %v6313_v31  ;;  %v618_v3 = vld [vmem:[%s6285_s13 + $0x468] sm:$0xff] }
 0x15b   : > { %1234 = vmatmul.mubr.f32.gmra.mrb[26].mxu0 %v600_v56  ;;  %5281 = vmatprep.subr.bf16.mxu1 %v8567_v9  ;;  %v628_v56 = vld [vmem:[%s6285_s13 + $0x4b8] sm:$0xff] }
 0x15c   : > { %1238 = vmatprep.mubr.f32.mxu0 %v610_v57  ;;  %v1483_v57 = vld [vmem:[%s6505_s26 + $0x228] sm:$0xff] }
 0x15d   : > { %2131 = vmatmul.mubr.f32.gmra.mrb[28].mxu1 %v1465_v42  ;;  %v1493_v42 = vld [vmem:[%s6505_s26 + $0x278] sm:$0xff] }
 0x15e   : > { %2135 = vmatprep.mubr.f32.mxu1 %v1475_v22  ;;  %5283 = vmatpush1.bf16.msra.mxu1 %v6334_v38  ;;  %v627_v22 = vld [vmem:[%s6285_s13 + $0x4b0] sm:$0xff] }
 0x15f   : > { %1239 = vmatmul.mubr.f32.gmra.mrb[28].mxu0 %v609_v7  ;;  %5284 = vmatprep.subr.bf16.mxu1 %v8567_v9  ;;  %v637_v7 = vld [vmem:[%s6285_s13 + $0x500] sm:$0xff] }
 0x160   : > { %1243 = vmatprep.mubr.f32.mxu0 %v619_v1  ;;  %v1492_v1 = vld [vmem:[%s6505_s26 + $0x270] sm:$0xff] }
 0x161   : > { %2136 = vmatmul.mubr.f32.gmra.mrb[30].mxu1 %v1474_v39  ;;  %v1502_v39 = vld [vmem:[%s6505_s26 + $0x2c0] sm:$0xff] }
 0x162   : > { %2140 = vmatprep.mubr.f32.mxu1 %v1484_v34  ;;  %5286 = vmatpush1.bf16.msra.mxu1 %v6354_v44  ;;  %v636_v34 = vld [vmem:[%s6285_s13 + $0x4f8] sm:$0xff] }
 0x163   : > { %1244 = vmatmul.mubr.f32.gmra.mrb[30].mxu0 %v618_v3  ;;  %5287 = vmatprep.subr.bf16.mxu1 %v8567_v9  ;;  %v1422_v3 = vld [vmem:[%s6505_s26 + $0x40] sm:$0xff] }
 0x164   : > { %1248 = vmatprep.mubr.f32.mxu0 %v628_v56  ;;  %v1501_v56 = vld [vmem:[%s6505_s26 + $0x2b8] sm:$0xff] }
 0x165   : > { %2141 = vmatmul.mubr.f32.gmra.mrb[32].mxu1 %v1483_v57  ;;  %v1511_v57 = vld [vmem:[%s6505_s26 + $0x308] sm:$0xff] }
 0x166   : > { %2145 = vmatprep.mubr.f32.mxu1 %v1493_v42  ;;  %5289 = vmatpush1.bf16.msra.mxu1 %v6374_v50  ;;  %v1431_v42 = vld [vmem:[%s6505_s26 + $0x88] sm:$0xff] }
 0x167   : > { %1249 = vmatmul.mubr.f32.gmra.mrb[32].mxu0 %v627_v22  ;;  %5290 = vmatprep.subr.bf16.mxu1 %v8567_v9  ;;  %v1440_v22 = vld [vmem:[%s6505_s26 + $0xd0] sm:$0xff] }
 0x168   : > { %1253 = vmatprep.mubr.f32.mxu0 %v637_v7  ;;  %v1510_v7 = vld [vmem:[%s6505_s26 + $0x300] sm:$0xff] }
 0x169   : > { %2146 = vmatmul.mubr.f32.gmra.mrb[34].mxu1 %v1492_v1  ;;  %v1520_v1 = vld [vmem:[%s6505_s26 + $0x350] sm:$0xff] }
 0x16a   : > { %2150 = vmatprep.mubr.f32.mxu1 %v1502_v39  ;;  %5292 = vmatpush1.bf16.msra.mxu1 %v6386_v53  ;;  %v1449_v39 = vld [vmem:[%s6505_s26 + $0x118] sm:$0xff] }
 0x16b   : > { %1254 = vmatmul.mubr.f32.gmra.mrb[34].mxu0 %v636_v34  ;;  %5293 = vmatprep.subr.bf16.mxu1 %v8567_v9  ;;  %v1458_v34 = vld [vmem:[%s6505_s26 + $0x160] sm:$0xff] }
 0x16c   : > { %4673 = vmatprep.mubr.f32.mxu0 %v1422_v3  ;;  %v1519_v3 = vld [vmem:[%s6505_s26 + $0x348] sm:$0xff] }
 0x16d   : > { %2151 = vmatmul.mubr.f32.gmra.mrb[36].mxu1 %v1501_v56  ;;  %v1529_v56 = vld [vmem:[%s6505_s26 + $0x398] sm:$0xff] }
 0x16e   : > { %2155 = vmatprep.mubr.f32.mxu1 %v1511_v57  ;;  %5295 = vmatpush1.bf16.msra.mxu1 %v6400_v58  ;;  %v1467_v57 = vld [vmem:[%s6505_s26 + $0x1a8] sm:$0xff] }
 0x16f   : > { %4674 = vmatmul.mubr.f32.vlgmr.msra.gmra.mrb[36].mxu0 %v1431_v42  ;;  %5296 = vmatprep.subr.bf16.mxu1 %v8567_v9  ;;  %v1476_v42 = vld [vmem:[%s6505_s26 + $0x1f0] sm:$0xff] }
 0x170   : > { %5461 = vmatpush3.bf16.msra.mxu0 %v6229_v8  ;;  %4676 = vmatprep.mubr.f32.mxu0 %v1440_v22  ;;  %v1528_v22 = vld [vmem:[%s6505_s26 + $0x390] sm:$0xff] }
 0x171   : > { %2156 = vmatmul.mubr.f32.gmra.mrb[38].mxu1 %v1510_v7  ;;  %5463 = vmatprep.subr.bf16.mxu0 %v6240_v12  ;;  %v1538_v7 = vld [vmem:[%s6505_s26 + $0x3e0] sm:$0xff] }
 0x172   : > { %2160 = vmatprep.mubr.f32.mxu1 %v1520_v1  ;;  %5298 = vmatpush1.bf16.msra.mxu1 %v6414_v63  ;;  %v1485_v1 = vld [vmem:[%s6505_s26 + $0x238] sm:$0xff] }
 0x173   : > { %4677 = vmatmul.mubr.f32.gmra.mrb[38].mxu0 %v1449_v39  ;;  %5299 = vmatprep.subr.bf16.mxu1 %v8567_v9  ;;  %v1494_v39 = vld [vmem:[%s6505_s26 + $0x280] sm:$0xff] }
 0x174   : > { %5465 = vmatpush3.bf16.msra.mxu0 %v6240_v12  ;;  %4679 = vmatprep.mubr.f32.mxu0 %v1458_v34  ;;  %v1537_v34 = vld [vmem:[%s6505_s26 + $0x3d8] sm:$0xff] }
 0x175   : > { %2161 = vmatmul.mubr.f32.gmra.mrb[40].mxu1 %v1519_v3  ;;  %5467 = vmatprep.subr.bf16.mxu0 %v6260_v17  ;;  %v1547_v3 = vld [vmem:[%s6505_s26 + $0x428] sm:$0xff] }
 0x176   : > { %2165 = vmatprep.mubr.f32.mxu1 %v1529_v56  ;;  %5301 = vmatpush1.bf16.msra.mxu1 %v6428_v6  ;;  %v1503_v56 = vld [vmem:[%s6505_s26 + $0x2c8] sm:$0xff] }
 0x177   : > { %4680 = vmatmul.mubr.f32.gmra.mrb[40].mxu0 %v1467_v57  ;;  %5302 = vmatprep.subr.bf16.mxu1 %v8567_v9  ;;  %v1512_v57 = vld [vmem:[%s6505_s26 + $0x310] sm:$0xff] }
 0x178   : > { %5469 = vmatpush3.bf16.msra.mxu0 %v6260_v17  ;;  %4682 = vmatprep.mubr.f32.mxu0 %v1476_v42  ;;  %v1546_v42 = vld [vmem:[%s6505_s26 + $0x420] sm:$0xff] }
 0x179   : > { %2166 = vmatmul.mubr.f32.gmra.mrb[42].mxu1 %v1528_v22  ;;  %5471 = vmatprep.subr.bf16.mxu0 %v6289_v23  ;;  %v1556_v22 = vld [vmem:[%s6505_s26 + $0x470] sm:$0xff] }
 0x17a   : > { %2170 = vmatprep.mubr.f32.mxu1 %v1538_v7  ;;  %5304 = vmatpush1.bf16.msra.mxu1 %v6442_v14  ;;  %v1521_v7 = vld [vmem:[%s6505_s26 + $0x358] sm:$0xff] }
 0x17b   : > { %4683 = vmatmul.mubr.f32.gmra.mrb[42].mxu0 %v1485_v1  ;;  %5305 = vmatprep.subr.bf16.mxu1 %v8567_v9  ;;  %v1530_v1 = vld [vmem:[%s6505_s26 + $0x3a0] sm:$0xff] }
 0x17c   : > { %4685 = vmatprep.mubr.f32.mxu0 %v1494_v39  ;;  %5473 = vmatpush3.bf16.msra.mxu0 %v6289_v23  ;;  %v1555_v39 = vld [vmem:[%s6505_s26 + $0x468] sm:$0xff] }
 0x17d   : > { %2171 = vmatmul.mubr.f32.gmra.mrb[44].mxu1 %v1537_v34  ;;  %5475 = vmatprep.subr.bf16.mxu0 %v6310_v30  ;;  %v1565_v34 = vld [vmem:[%s6505_s26 + $0x4b8] sm:$0xff] }
 0x17e   : > { %2175 = vmatprep.mubr.f32.mxu1 %v1547_v3  ;;  %5307 = vmatpush1.bf16.msra.mxu1 %v6456_v21  ;;  %v1539_v3 = vld [vmem:[%s6505_s26 + $0x3e8] sm:$0xff] }
 0x17f   : > { %4686 = vmatmul.mubr.f32.gmra.mrb[44].mxu0 %v1503_v56  ;;  %5308 = vmatprep.subr.bf16.mxu1 %v8567_v9  ;;  %v1548_v56 = vld [vmem:[%s6505_s26 + $0x430] sm:$0xff] }
 0x180   : > { %4688 = vmatprep.mubr.f32.mxu0 %v1512_v57  ;;  %5477 = vmatpush3.bf16.msra.mxu0 %v6310_v30  ;;  %v1564_v57 = vld [vmem:[%s6505_s26 + $0x4b0] sm:$0xff] }
 0x181   : > { %2176 = vmatmul.mubr.f32.gmra.mrb[46].mxu1 %v1546_v42  ;;  %5479 = vmatprep.subr.bf16.mxu0 %v6331_v37  ;;  %v1574_v42 = vld [vmem:[%s6505_s26 + $0x500] sm:$0xff] }
 0x182   : > { %2180 = vmatprep.mubr.f32.mxu1 %v1556_v22  ;;  %5310 = vmatpush1.bf16.msra.mxu1 %v6470_v28  ;;  %v1557_v22 = vld [vmem:[%s6505_s26 + $0x478] sm:$0xff] }
 0x183   : > { %4689 = vmatmul.mubr.f32.gmra.mrb[46].mxu0 %v1521_v7  ;;  %5311 = vmatprep.subr.bf16.mxu1 %v8567_v9  ;;  %v1566_v7 = vld [vmem:[%s6505_s26 + $0x4c0] sm:$0xff] }
 0x184   : > { %4691 = vmatprep.mubr.f32.mxu0 %v1530_v1  ;;  %5481 = vmatpush3.bf16.msra.mxu0 %v6331_v37  ;;  %v1573_v1 = vld [vmem:[%s6505_s26 + $0x4f8] sm:$0xff]  ;;  %v2428_v37 = vld [vmem:[%s7497_s24 + $0x268] sm:$0xff] }
 0x185   : > { %2181 = vmatmul.mubr.f32.gmra.mrb[48].mxu1 %v1555_v39  ;;  %5483 = vmatprep.subr.bf16.mxu0 %v6351_v43  ;;  %v2352_v39 = vld [vmem:[%s7497_s24 + $0x8] sm:$0xff] }
 0x186   : > { %2185 = vmatprep.mubr.f32.mxu1 %v1565_v34  ;;  %5313 = vmatpush1.bf16.msra.mxu1 %v6484_v35  ;;  %v1575_v34 = vld [vmem:[%s6505_s26 + $0x508] sm:$0xff] }
 0x187   : > { %4692 = vmatmul.mubr.f32.gmra.mrb[48].mxu0 %v1539_v3  ;;  %5314 = vmatprep.subr.bf16.mxu1 %v8567_v9  ;;  %v2359_v3 = vld [vmem:[%s7497_s24 + $0x40] sm:$0xff] }
 0x188   : > { %4694 = vmatprep.mubr.f32.mxu0 %v1548_v56  ;;  %5485 = vmatpush3.bf16.msra.mxu0 %v6351_v43  ;;  %v2351_v56 = vld [vmem:[%s7497_s24] sm:$0xff] }
 0x189   : > { %2186 = vmatmul.mubr.f32.gmra.mrb[50].mxu1 %v1564_v57  ;;  %5487 = vmatprep.subr.bf16.mxu0 %v6371_v49  ;;  %v2361_v57 = vld [vmem:[%s7497_s24 + $0x50] sm:$0xff]  ;;  %v2419_v43 = vld [vmem:[%s7497_s24 + $0x220] sm:$0xff] }
 0x18a   : > { %2190 = vmatprep.mubr.f32.mxu1 %v1574_v42  ;;  %v2368_v42 = vld [vmem:[%s7497_s24 + $0x88] sm:$0xff] }
 0x18b   : > { %4695 = vmatmul.mubr.f32.gmra.mrb[50].mxu0 %v1557_v22  ;;  %v2377_v22 = vld [vmem:[%s7497_s24 + $0xd0] sm:$0xff] }
 0x18c   : > { %4697 = vmatprep.mubr.f32.mxu0 %v1566_v7  ;;  %5489 = vmatpush3.bf16.msra.mxu0 %v6371_v49  ;;  %v2360_v7 = vld [vmem:[%s7497_s24 + $0x48] sm:$0xff] }
 0x18d   : > { %2191 = vmatmul.mubr.f32.gmra.mrb[52].mxu1 %v1573_v1  ;;  %5490 = vmatprep.subr.bf16.mxu0 %v8567_v9  ;;  %v2370_v1 = vld [vmem:[%s7497_s24 + $0x98] sm:$0xff] }
 0x18e   : > { %2577 = vmatprep.mubr.f32.mxu1 %v2352_v39  ;;  %v2386_v39 = vld [vmem:[%s7497_s24 + $0x118] sm:$0xff] }
 0x18f   : > { %4698 = vmatmul.mubr.f32.gmra.mrb[52].mxu0 %v1575_v34  ;;  %v2395_v34 = vld [vmem:[%s7497_s24 + $0x160] sm:$0xff] }
 0x190   : > { %4732 = vmatprep.mubr.f32.mxu0 %v2359_v3  ;;  %v2369_v3 = vld [vmem:[%s7497_s24 + $0x90] sm:$0xff] }
 0x191   : > { %2578 = vmatmul.mubr.f32.vlgmr.msra.gmra.mrb[54].mxu1 %v2351_v56  ;;  %v2379_v56 = vld [vmem:[%s7497_s24 + $0xe0] sm:$0xff] }
 0x192   : > { %2582 = vmatprep.mubr.f32.mxu1 %v2361_v57  ;;  %5316 = vmatpush1.bf16.msra.mxu1 %v6499_v45  ;;  %v2413_v57 = vld [vmem:[%s7497_s24 + $0x1f0] sm:$0xff] }
 0x193   : > { %4733 = vmatmul.mubr.f32.vlgmr.msra.gmra.mrb[54].mxu0 %v2368_v42  ;;  %5317 = vmatprep.subr.bf16.mxu1 %v8567_v9  ;;  %v2378_v42 = vld [vmem:[%s7497_s24 + $0xd8] sm:$0xff] }
 0x194   : > { %5492 = vmatpush1.bf16.msra.mxu0 %v6218_v4  ;;  %4735 = vmatprep.mubr.f32.mxu0 %v2377_v22  ;;  %v2404_v4 = vld [vmem:[%s7497_s24 + $0x1a8] sm:$0xff] }
 0x195   : > { %2583 = vmatmul.mubr.f32.gmra.mrb[56].mxu1 %v2360_v7  ;;  %5493 = vmatprep.subr.bf16.mxu0 %v8567_v9  ;;  %v2388_v22 = vld [vmem:[%s7497_s24 + $0x128] sm:$0xff]  ;;  %v2431_v7 = vld [vmem:[%s7497_s24 + $0x280] sm:$0xff] }
 0x196   : > { %2587 = vmatprep.mubr.f32.mxu1 %v2370_v1  ;;  %5319 = vmatpush1.bf16.msra.mxu1 %v6521_v55  ;;  %v2387_v1 = vld [vmem:[%s7497_s24 + $0x120] sm:$0xff] }
 0x197   : > { %5320 = vmatprep.subr.bf16.mxu1 %v8567_v9  ;;  %4736 = vmatmul.mubr.f32.gmra.mrb[56].mxu0 %v2386_v39  ;;  %v2397_v39 = vld [vmem:[%s7497_s24 + $0x170] sm:$0xff] }
 0x198   : > { %5495 = vmatpush1.bf16.msra.mxu0 %v6238_v11  ;;  %4738 = vmatprep.mubr.f32.mxu0 %v2395_v34  ;;  %v2422_v11 = vld [vmem:[%s7497_s24 + $0x238] sm:$0xff]  ;;  %v2449_v34 = vld [vmem:[%s7497_s24 + $0x310] sm:$0xff] }
 0x199   : > { %2588 = vmatmul.mubr.f32.gmra.mrb[58].mxu1 %v2369_v3  ;;  %5496 = vmatprep.subr.bf16.mxu0 %v8567_v9  ;;  %v2396_v3 = vld [vmem:[%s7497_s24 + $0x168] sm:$0xff] }
 0x19a   : > { %2592 = vmatprep.mubr.f32.mxu1 %v2379_v56  ;;  %5322 = vmatpush1.bf16.msra.mxu1 %v6535_v61  ;;  %v2406_v56 = vld [vmem:[%s7497_s24 + $0x1b8] sm:$0xff] }
 0x19b   : > { %5323 = vmatprep.subr.bf16.mxu1 %v8567_v9  ;;  %4739 = vmatmul.mubr.f32.gmra.mrb[58].mxu0 %v2404_v4  ;;  %v2467_v4 = vld [vmem:[%s7497_s24 + $0x3a0] sm:$0xff] }
 0x19c   : > { %5498 = vmatpush1.bf16.msra.mxu0 %v6266_v18  ;;  %4741 = vmatprep.mubr.f32.mxu0 %v2413_v57  ;;  %v2440_v18 = vld [vmem:[%s7497_s24 + $0x2c8] sm:$0xff]  ;;  %v2405_v57 = vld [vmem:[%s7497_s24 + $0x1b0] sm:$0xff] }
 0x19d   : > { %2593 = vmatmul.mubr.f32.gmra.mrb[60].mxu1 %v2378_v42  ;;  %5499 = vmatprep.subr.bf16.mxu0 %v8567_v9  ;;  %v2415_v42 = vld [vmem:[%s7497_s24 + $0x200] sm:$0xff] }
 0x19e   : > { %2597 = vmatprep.mubr.f32.mxu1 %v2388_v22  ;;  %5325 = vmatpush1.bf16.msra.mxu1 %v6549_v5  ;;  %v2485_v22 = vld [vmem:[%s7497_s24 + $0x430] sm:$0xff] }
 0x19f   : > { %5326 = vmatprep.subr.bf16.mxu1 %v8567_v9  ;;  %4742 = vmatmul.mubr.f32.gmra.mrb[60].mxu0 %v2422_v11  ;;  %v2414_v11 = vld [vmem:[%s7497_s24 + $0x1f8] sm:$0xff] }
 0x1a0   : > { %5501 = vmatpush1.bf16.msra.mxu0 %v6292_v24  ;;  %4744 = vmatprep.mubr.f32.mxu0 %v2431_v7  ;;  %v2458_v24 = vld [vmem:[%s7497_s24 + $0x358] sm:$0xff]  ;;  %v2424_v7 = vld [vmem:[%s7497_s24 + $0x248] sm:$0xff] }
 0x1a1   : > { %2598 = vmatmul.mubr.f32.gmra.mrb[62].mxu1 %v2387_v1  ;;  %5502 = vmatprep.subr.bf16.mxu0 %v8567_v9  ;;  %v2503_v1 = vld [vmem:[%s7497_s24 + $0x4c0] sm:$0xff] }
 0x1a2   : > { %2602 = vmatprep.mubr.f32.mxu1 %v2397_v39  ;;  %5328 = vmatpush1.bf16.msra.mxu1 %v6563_v15  ;;  %v2423_v39 = vld [vmem:[%s7497_s24 + $0x240] sm:$0xff] }
 0x1a3   : > { %5329 = vmatprep.subr.bf16.mxu1 %v8567_v9  ;;  %4745 = vmatmul.mubr.f32.gmra.mrb[62].mxu0 %v2440_v18  ;;  %v2433_v18 = vld [vmem:[%s7497_s24 + $0x290] sm:$0xff] }
 0x1a4   : > { %5504 = vmatpush1.bf16.msra.mxu0 %v6313_v31  ;;  %4747 = vmatprep.mubr.f32.mxu0 %v2449_v34  ;;  %v2476_v31 = vld [vmem:[%s7497_s24 + $0x3e8] sm:$0xff] }
 0x1a5   : > { %2603 = vmatmul.mubr.f32.gmra.mrb[64].mxu1 %v2396_v3  ;;  %5505 = vmatprep.subr.bf16.mxu0 %v8567_v9  ;;  %v3289_v34 = vld [vmem:[%s7573_s28 + $0x8] sm:$0xff] }
 0x1a6   : > { %2607 = vmatprep.mubr.f32.mxu1 %v2406_v56  ;;  %5331 = vmatpush1.bf16.msra.mxu1 %v6577_v25  ;;  %v2432_v3 = vld [vmem:[%s7497_s24 + $0x288] sm:$0xff]  ;;  %v2442_v56 = vld [vmem:[%s7497_s24 + $0x2d8] sm:$0xff] }
 0x1a7   : > { %5332 = vmatprep.subr.bf16.mxu1 %v8567_v9  ;;  %4748 = vmatmul.mubr.f32.gmra.mrb[64].mxu0 %v2458_v24  ;;  %v2451_v24 = vld [vmem:[%s7497_s24 + $0x320] sm:$0xff] }
 0x1a8   : > { %5507 = vmatpush1.bf16.msra.mxu0 %v6334_v38  ;;  %4750 = vmatprep.mubr.f32.mxu0 %v2467_v4  ;;  %v2494_v38 = vld [vmem:[%s7497_s24 + $0x478] sm:$0xff]  ;;  %v2460_v4 = vld [vmem:[%s7497_s24 + $0x368] sm:$0xff] }
 0x1a9   : > { %2608 = vmatmul.mubr.f32.gmra.mrb[66].mxu1 %v2405_v57  ;;  %5508 = vmatprep.subr.bf16.mxu0 %v8567_v9  ;;  %v2459_v57 = vld [vmem:[%s7497_s24 + $0x360] sm:$0xff] }
 0x1aa   : > { %2612 = vmatprep.mubr.f32.mxu1 %v2415_v42  ;;  %5334 = vmatpush1.bf16.msra.mxu1 %v6591_v33  ;;  %v2468_v42 = vld [vmem:[%s7497_s24 + $0x3a8] sm:$0xff] }
 0x1ab   : > { %5335 = vmatprep.subr.bf16.mxu1 %v8567_v9  ;;  %4751 = vmatmul.mubr.f32.gmra.mrb[66].mxu0 %v2476_v31  ;;  %v2477_v31 = vld [vmem:[%s7497_s24 + $0x3f0] sm:$0xff] }
 0x1ac   : > { %5510 = vmatpush1.bf16.msra.mxu0 %v6354_v44  ;;  %4753 = vmatprep.mubr.f32.mxu0 %v2485_v22  ;;  %v2512_v44 = vld [vmem:[%s7497_s24 + $0x508] sm:$0xff] }
 0x1ad   : > { %2613 = vmatmul.mubr.f32.gmra.mrb[68].mxu1 %v2414_v11  ;;  %5511 = vmatprep.subr.bf16.mxu0 %v8567_v9  ;;  %v2496_v22 = vld [vmem:[%s7497_s24 + $0x488] sm:$0xff]  ;;  %v2505_v11 = vld [vmem:[%s7497_s24 + $0x4d0] sm:$0xff] }
 0x1ae   : > { %2617 = vmatprep.mubr.f32.mxu1 %v2424_v7  ;;  %5337 = vmatpush1.bf16.msra.mxu1 %v6605_v41  ;;  %v3288_v7 = vld [vmem:[%s7573_s28] sm:$0xff] }
 0x1af   : > { %5338 = vmatprep.subr.bf16.mxu1 %v8567_v9  ;;  %4754 = vmatmul.mubr.f32.gmra.mrb[68].mxu0 %v2494_v38  ;;  %v2504_v38 = vld [vmem:[%s7497_s24 + $0x4c8] sm:$0xff] }
 0x1b0   : > { %5513 = vmatpush1.bf16.msra.mxu0 %v6374_v50  ;;  %4756 = vmatprep.mubr.f32.mxu0 %v2503_v1  ;;  %v2441_v50 = vld [vmem:[%s7497_s24 + $0x2d0] sm:$0xff]  ;;  %v2354_v1 = vld [vmem:[%s7497_s24 + $0x18] sm:$0xff] }
 0x1b1   : > { %2618 = vmatmul.mubr.f32.gmra.mrb[70].mxu1 %v2423_v39  ;;  %5514 = vmatprep.subr.bf16.mxu0 %v8567_v9  ;;  %v3297_v39 = vld [vmem:[%s7573_s28 + $0x48] sm:$0xff] }
 0x1b2   : > { %2622 = vmatprep.mubr.f32.mxu1 %v2433_v18  ;;  %5340 = vmatpush1.bf16.msra.mxu1 %v6619_v51  ;;  %v2353_v18 = vld [vmem:[%s7497_s24 + $0x10] sm:$0xff] }
 0x1b3   : > { %5341 = vmatprep.subr.bf16.mxu1 %v8567_v9  ;;  %4757 = vmatmul.mubr.f32.gmra.mrb[70].mxu0 %v2512_v44  ;;  %v2363_v44 = vld [vmem:[%s7497_s24 + $0x60] sm:$0xff] }
 0x1b4   : > { %5516 = vmatpush1.bf16.msra.mxu0 %v6386_v53  ;;  %3514 = vmatprep.mubr.f32.mxu0 %v3289_v34  ;;  %v2450_v53 = vld [vmem:[%s7497_s24 + $0x318] sm:$0xff]  ;;  %v3306_v34 = vld [vmem:[%s7573_s28 + $0x90] sm:$0xff] }
 0x1b5   : > { %2623 = vmatmul.mubr.f32.gmra.mrb[72].mxu1 %v2432_v3  ;;  %5517 = vmatprep.subr.bf16.mxu0 %v8567_v9  ;;  %v2362_v3 = vld [vmem:[%s7497_s24 + $0x58] sm:$0xff] }
 0x1b6   : > { %2627 = vmatprep.mubr.f32.mxu1 %v2442_v56  ;;  %5343 = vmatpush1.bf16.msra.mxu1 %v6635_v62  ;;  %v2372_v56 = vld [vmem:[%s7497_s24 + $0xa8] sm:$0xff] }
 0x1b7   : > { %5344 = vmatprep.subr.bf16.mxu1 %v8567_v9 }
 0x1b8   : > { %5519 = vmatpush1.bf16.msra.mxu0 %v6400_v58  ;;  %v2469_v58 = vld [vmem:[%s7497_s24 + $0x3b0] sm:$0xff] }
 0x1b9   : > { %2628 = vmatmul.mubr.f32.gmra.mrb[74].mxu1 %v2441_v50  ;;  %5520 = vmatprep.subr.bf16.mxu0 %v8567_v9  ;;  %v3325_v50 = vld [vmem:[%s7573_s28 + $0x128] sm:$0xff] }
 0x1ba   : > { %2632 = vmatprep.mubr.f32.mxu1 %v2451_v24  ;;  %5346 = vmatpush1.bf16.msra.mxu1 %v6651_v13  ;;  %v2371_v24 = vld [vmem:[%s7497_s24 + $0xa0] sm:$0xff] }
 0x1bb   : > { %5347 = vmatprep.subr.bf16.mxu1 %v8567_v9 }
 0x1bc   : > { %5522 = vmatpush1.bf16.msra.mxu0 %v6414_v63  ;;  %v2478_v63 = vld [vmem:[%s7497_s24 + $0x3f8] sm:$0xff] }
 0x1bd   : > { %2633 = vmatmul.mubr.f32.gmra.mrb[76].mxu1 %v2450_v53  ;;  %5523 = vmatprep.subr.bf16.mxu0 %v8567_v9  ;;  %v2381_v53 = vld [vmem:[%s7497_s24 + $0xf0] sm:$0xff] }
 0x1be   : > { %2637 = vmatprep.mubr.f32.mxu1 %v2460_v4  ;;  %5349 = vmatpush1.bf16.msra.mxu1 %v6667_v29  ;;  %v3334_v4 = vld [vmem:[%s7573_s28 + $0x170] sm:$0xff] }
 0x1bf   : > { %5350 = vmatprep.subr.bf16.mxu1 %v8567_v9 }
 0x1c0   : > { %5525 = vmatpush1.bf16.msra.mxu0 %v6428_v6  ;;  %v2487_v6 = vld [vmem:[%s7497_s24 + $0x440] sm:$0xff] }
 0x1c1   : > { %2638 = vmatmul.mubr.f32.gmra.mrb[78].mxu1 %v2459_v57  ;;  %5526 = vmatprep.subr.bf16.mxu0 %v8567_v9  ;;  %v2380_v57 = vld [vmem:[%s7497_s24 + $0xe8] sm:$0xff] }
 0x1c2   : > { %2642 = vmatprep.mubr.f32.mxu1 %v2469_v58  ;;  %5352 = vmatpush1.bf16.msra.mxu1 %v6683_v46  ;;  %v8582_v58 = vld [vmem:[#allocation5_spill] sm:$0xff] }
 0x1c3   : > { %5353 = vmatprep.subr.bf16.mxu1 %v8567_v9 }
 0x1c4   : > { %5528 = vmatpush1.bf16.msra.mxu0 %v6442_v14  ;;  %v2486_v14 = vld [vmem:[%s7497_s24 + $0x438] sm:$0xff] }
 0x1c5   : > { %2643 = vmatmul.mubr.f32.gmra.mrb[80].mxu1 %v2468_v42  ;;  %5529 = vmatprep.subr.bf16.mxu0 %v8567_v9  ;;  %v2390_v42 = vld [vmem:[%s7497_s24 + $0x138] sm:$0xff] }
 0x1c6   : > { %2647 = vmatprep.mubr.f32.mxu1 %v2478_v63  ;;  %5355 = vmatpush1.bf16.msra.mxu1 %v6699_v59  ;;  %v3343_v63 = vld [vmem:[%s7573_s28 + $0x1b8] sm:$0xff] }
 0x1c7   : > { %5356 = vmatprep.subr.bf16.mxu1 %v8567_v9 }
 0x1c8   : > { %5531 = vmatpush1.bf16.msra.mxu0 %v6456_v21  ;;  %v2495_v21 = vld [vmem:[%s7497_s24 + $0x480] sm:$0xff] }
 0x1c9   : > { %2648 = vmatmul.mubr.f32.gmra.mrb[82].mxu1 %v2477_v31  ;;  %5532 = vmatprep.subr.bf16.mxu0 %v8567_v9  ;;  %v2389_v31 = vld [vmem:[%s7497_s24 + $0x130] sm:$0xff] }
 0x1ca   : > { %2652 = vmatprep.mubr.f32.mxu1 %v2487_v6  ;;  %5358 = vmatpush1.bf16.msra.mxu1 %v6715_v10  ;;  %v8583_v6 = vld [vmem:[#allocation6_spill] sm:$0xff] }
 0x1cb   : > { %5359 = vmatprep.subr.bf16.mxu1 %v8567_v9 }
 0x1cc   : > { %5534 = vmatpush1.bf16.msra.mxu0 %v6470_v28  ;;  %v3298_v28 = vld [vmem:[%s7573_s28 + $0x50] sm:$0xff] }
 0x1cd   : > { %2653 = vmatmul.mubr.f32.gmra.mrb[84].mxu1 %v2486_v14  ;;  %5535 = vmatprep.subr.bf16.mxu0 %v8567_v9  ;;  %v2399_v14 = vld [vmem:[%s7497_s24 + $0x180] sm:$0xff] }
 0x1ce   : > { %2657 = vmatprep.mubr.f32.mxu1 %v2496_v22  ;;  %5361 = vmatpush1.bf16.msra.mxu1 %v6731_v32  ;;  %v3342_v22 = vld [vmem:[%s7573_s28 + $0x1b0] sm:$0xff] }
 0x1cf   : > { %5362 = vmatprep.subr.bf16.mxu1 %v8567_v9 }
 0x1d0   : > { %5537 = vmatpush1.bf16.msra.mxu0 %v6484_v35  ;;  %v3307_v35 = vld [vmem:[%s7573_s28 + $0x98] sm:$0xff] }
 0x1d1   : > { %2658 = vmatmul.mubr.f32.gmra.mrb[86].mxu1 %v2495_v21  ;;  %5538 = vmatprep.subr.bf16.mxu0 %v8567_v9  ;;  %v2398_v21 = vld [vmem:[%s7497_s24 + $0x178] sm:$0xff] }
 0x1d2   : > { %2662 = vmatprep.mubr.f32.mxu1 %v2505_v11  ;;  %v8584_v11 = vld [vmem:[#allocation7_spill] sm:$0xff] }
 0x1d3   : > { %3515 = vmatmul.mubr.f32.vlgmr.msra.gmra.mrb[72].mxu0 %v3288_v7  ;;  %v2408_v7 = vld [vmem:[%s7497_s24 + $0x1c8] sm:$0xff] }
 0x1d4   : > { %5540 = vmatpush1.bf16.msra.mxu0 %v6499_v45  ;;  %3519 = vmatprep.mubr.f32.mxu0 %v3298_v28  ;;  %v3316_v45 = vld [vmem:[%s7573_s28 + $0xe0] sm:$0xff]  ;;  %v3351_v28 = vld [vmem:[%s7573_s28 + $0x1f8] sm:$0xff] }
 0x1d5   : > { %2663 = vmatmul.mubr.f32.gmra.mrb[88].mxu1 %v2504_v38  ;;  %5541 = vmatprep.subr.bf16.mxu0 %v8567_v9  ;;  %v2407_v38 = vld [vmem:[%s7497_s24 + $0x1c0] sm:$0xff] }
 0x1d6   : > { %2732 = vmatprep.mubr.f32.mxu1 %v2354_v1  ;;  %v8585_v1 = vld [vmem:[#allocation8_spill] sm:$0xff] }
 0x1d7   : > { %3520 = vmatmul.mubr.f32.gmra.mrb[74].mxu0 %v3297_v39  ;;  %v2417_v39 = vld [vmem:[%s7497_s24 + $0x210] sm:$0xff] }
 0x1d8   : > { %5543 = vmatpush1.bf16.msra.mxu0 %v6521_v55  ;;  %3524 = vmatprep.mubr.f32.mxu0 %v3307_v35  ;;  %v3315_v55 = vld [vmem:[%s7573_s28 + $0xd8] sm:$0xff]  ;;  %v3360_v35 = vld [vmem:[%s7573_s28 + $0x240] sm:$0xff] }
 0x1d9   : > { %2733 = vmatmul.mubr.f32.vlgmr.msra.gmra.mrb[54].mxu1 %v2353_v18  ;;  %5544 = vmatprep.subr.bf16.mxu0 %v8567_v9  ;;  %v2416_v18 = vld [vmem:[%s7497_s24 + $0x208] sm:$0xff] }
 0x1da   : > { %2737 = vmatprep.mubr.f32.mxu1 %v2363_v44  ;;  %5364 = vmatpush1.bf16.msra.mxu1 %v6760_v2  ;;  %v8586_v44 = vld [vmem:[#allocation9_spill] sm:$0xff] }
 0x1db   : > { %3525 = vmatmul.mubr.f32.gmra.mrb[76].mxu0 %v3306_v34  ;;  %5365 = vmatprep.subr.bf16.mxu1 %v8567_v9  ;;  %v2426_v34 = vld [vmem:[%s7497_s24 + $0x258] sm:$0xff] }
 0x1dc   : > { %5546 = vmatpush1.bf16.msra.mxu0 %v6535_v61  ;;  %3529 = vmatprep.mubr.f32.mxu0 %v3316_v45  ;;  %v3324_v61 = vld [vmem:[%s7573_s28 + $0x120] sm:$0xff]  ;;  %v3369_v45 = vld [vmem:[%s7573_s28 + $0x288] sm:$0xff] }
 0x1dd   : > { %2738 = vmatmul.mubr.f32.gmra.mrb[56].mxu1 %v2362_v3  ;;  %5547 = vmatprep.subr.bf16.mxu0 %v8567_v9  ;;  %v2425_v3 = vld [vmem:[%s7497_s24 + $0x250] sm:$0xff] }
 0x1de   : > { %2742 = vmatprep.mubr.f32.mxu1 %v2372_v56  ;;  %5367 = vmatpush1.bf16.msra.mxu1 %v6775_v26  ;;  %v8587_v56 = vld [vmem:[#allocation10_spill] sm:$0xff] }
 0x1df   : > { %3530 = vmatmul.mubr.f32.gmra.mrb[78].mxu0 %v3315_v55  ;;  %5368 = vmatprep.subr.bf16.mxu1 %v8567_v9  ;;  %v2435_v55 = vld [vmem:[%s7497_s24 + $0x2a0] sm:$0xff] }
 0x1e0   : > { %3534 = vmatprep.mubr.f32.mxu0 %v3325_v50  ;;  %5549 = vmatpush1.bf16.msra.mxu0 %v6549_v5  ;;  %v3333_v5 = vld [vmem:[%s7573_s28 + $0x168] sm:$0xff]  ;;  %v3378_v50 = vld [vmem:[%s7573_s28 + $0x2d0] sm:$0xff] }
 0x1e1   : > { %2743 = vmatmul.mubr.f32.gmra.mrb[58].mxu1 %v2371_v24  ;;  %5550 = vmatprep.subr.bf16.mxu0 %v8567_v9 }
 0x1e2   : > { %2747 = vmatprep.mubr.f32.mxu1 %v2381_v53  ;;  %5370 = vmatpush1.bf16.msra.mxu1 %v8582_v58  ;;  %v2434_v53 = vld [vmem:[%s7497_s24 + $0x298] sm:$0xff] }
 0x1e3   : > { %3535 = vmatmul.mubr.f32.gmra.mrb[80].mxu0 %v3324_v61  ;;  %5371 = vmatprep.subr.bf16.mxu1 %v8567_v9  ;;  %v8588_v61 = vld [vmem:[#allocation11_spill] sm:$0xff] }
 0x1e4   : > { %3539 = vmatprep.mubr.f32.mxu0 %v3334_v4  ;;  %5552 = vmatpush1.bf16.msra.mxu0 %v6563_v15  ;;  %v3352_v15 = vld [vmem:[%s7573_s28 + $0x200] sm:$0xff] }
 0x1e5   : > { %2748 = vmatmul.mubr.f32.gmra.mrb[60].mxu1 %v2380_v57  ;;  %5553 = vmatprep.subr.bf16.mxu0 %v8567_v9  ;;  %v8589_v4 = vld [vmem:[#allocation30_spill] sm:$0xff] }
 0x1e6   : > { %2752 = vmatprep.mubr.f32.mxu1 %v2390_v42  ;;  %5373 = vmatpush1.bf16.msra.mxu1 %v8583_v6 }
 0x1e7   : > { %3540 = vmatmul.mubr.f32.gmra.mrb[82].mxu0 %v3333_v5  ;;  %5374 = vmatprep.subr.bf16.mxu1 %v8567_v9  ;;  %v2444_v5 = vld [vmem:[%s7497_s24 + $0x2e8] sm:$0xff] }
 0x1e8   : > { %3544 = vmatprep.mubr.f32.mxu0 %v3343_v63  ;;  %5555 = vmatpush1.bf16.msra.mxu0 %v6577_v25  ;;  %v3361_v25 = vld [vmem:[%s7573_s28 + $0x248] sm:$0xff] }
 0x1e9   : > { %2753 = vmatmul.mubr.f32.gmra.mrb[62].mxu1 %v2389_v31  ;;  %5556 = vmatprep.subr.bf16.mxu0 %v8567_v9  ;;  %v3397_v63 = vld [vmem:[%s7573_s28 + $0x368] sm:$0xff] }
 0x1ea   : > { %2757 = vmatprep.mubr.f32.mxu1 %v2399_v14  ;;  %5376 = vmatpush1.bf16.msra.mxu1 %v8584_v11  ;;  %v2443_v14 = vld [vmem:[%s7497_s24 + $0x2e0] sm:$0xff] }
 0x1eb   : > { %3545 = vmatmul.mubr.f32.gmra.mrb[84].mxu0 %v3342_v22  ;;  %5377 = vmatprep.subr.bf16.mxu1 %v8567_v9  ;;  %v8590_v22 = vld [vmem:[#allocation12_spill] sm:$0xff] }
 0x1ec   : > { %3549 = vmatprep.mubr.f32.mxu0 %v3352_v15  ;;  %5558 = vmatpush1.bf16.msra.mxu0 %v6591_v33  ;;  %v3370_v33 = vld [vmem:[%s7573_s28 + $0x290] sm:$0xff]  ;;  %v8591_v15 = vld [vmem:[#allocation29_spill] sm:$0xff] }
 0x1ed   : > { %2758 = vmatmul.mubr.f32.gmra.mrb[64].mxu1 %v2398_v21  ;;  %5559 = vmatprep.subr.bf16.mxu0 %v8567_v9 }
 0x1ee   : > { %2762 = vmatprep.mubr.f32.mxu1 %v2408_v7  ;;  %5379 = vmatpush1.bf16.msra.mxu1 %v8585_v1 }
 0x1ef   : > { %3550 = vmatmul.mubr.f32.gmra.mrb[86].mxu0 %v3351_v28  ;;  %5380 = vmatprep.subr.bf16.mxu1 %v8567_v9  ;;  %v2453_v28 = vld [vmem:[%s7497_s24 + $0x330] sm:$0xff] }
 0x1f0   : > { %3554 = vmatprep.mubr.f32.mxu0 %v3361_v25  ;;  %5561 = vmatpush1.bf16.msra.mxu0 %v6605_v41  ;;  %v3379_v41 = vld [vmem:[%s7573_s28 + $0x2d8] sm:$0xff]  ;;  %v3406_v25 = vld [vmem:[%s7573_s28 + $0x3b0] sm:$0xff] }
 0x1f1   : > { %2763 = vmatmul.mubr.f32.gmra.mrb[66].mxu1 %v2407_v38  ;;  %5562 = vmatprep.subr.bf16.mxu0 %v8567_v9 }
 0x1f2   : > { %2767 = vmatprep.mubr.f32.mxu1 %v2417_v39  ;;  %5382 = vmatpush1.bf16.msra.mxu1 %v8586_v44  ;;  %v2452_v39 = vld [vmem:[%s7497_s24 + $0x328] sm:$0xff] }
 0x1f3   : > { %3555 = vmatmul.mubr.f32.gmra.mrb[88].mxu0 %v3360_v35  ;;  %5383 = vmatprep.subr.bf16.mxu1 %v8567_v9  ;;  %v8592_v35 = vld [vmem:[#allocation13_spill] sm:$0xff] }
 0x1f4   : > { %3559 = vmatprep.mubr.f32.mxu0 %v3370_v33  ;;  %5564 = vmatpush1.bf16.msra.mxu0 %v6619_v51  ;;  %v3388_v51 = vld [vmem:[%s7573_s28 + $0x320] sm:$0xff]  ;;  %v8593_v33 = vld [vmem:[#allocation32_spill] sm:$0xff] }
 0x1f5   : > { %2768 = vmatmul.mubr.f32.gmra.mrb[68].mxu1 %v2416_v18  ;;  %5565 = vmatprep.subr.bf16.mxu0 %v8567_v9 }
 0x1f6   : > { %2772 = vmatprep.mubr.f32.mxu1 %v2426_v34  ;;  %5385 = vmatpush1.bf16.msra.mxu1 %v8587_v56 }
 0x1f7   : > { %3560 = vmatmul.mubr.f32.gmra.mrb[90].mxu0 %v3369_v45  ;;  %5386 = vmatprep.subr.bf16.mxu1 %v8567_v9  ;;  %v2462_v45 = vld [vmem:[%s7497_s24 + $0x378] sm:$0xff] }
 0x1f8   : > { %3564 = vmatprep.mubr.f32.mxu0 %v3379_v41  ;;  %5567 = vmatpush1.bf16.msra.mxu0 %v6635_v62  ;;  %v3387_v62 = vld [vmem:[%s7573_s28 + $0x318] sm:$0xff] }
 0x1f9   : > { %2773 = vmatmul.mubr.f32.gmra.mrb[70].mxu1 %v2425_v3  ;;  %5568 = vmatprep.subr.bf16.mxu0 %v8567_v9  ;;  %v3415_v41 = vld [vmem:[%s7573_s28 + $0x3f8] sm:$0xff] }
 0x1fa   : > { %v1170_v24 = vpop.f32.mrb[0].mxu0  ;;  %2777 = vmatprep.mubr.f32.mxu1 %v2435_v55  ;;  %5388 = vmatpush1.bf16.msra.mxu1 %v8588_v61  ;;  %v2461_v55 = vld [vmem:[%s7497_s24 + $0x370] sm:$0xff] }
 0x1fb   : > { %v7710_v57 = vadd.f32 %v8589_v4, %v1170_v24  ;;  %3565 = vmatmul.mubr.f32.gmra.mrb[92].mxu0 %v3378_v50  ;;  %v1172_v42 = vpop.f32.mrb[1].mxu0  ;;  %5389 = vmatprep.subr.bf16.mxu1 %v8567_v9  ;;  %v8594_v50 = vld [vmem:[#allocation14_spill] sm:$0xff] }
 0x1fc   : > { %3569 = vmatprep.mubr.f32.mxu0 %v3388_v51  ;;  %5570 = vmatpush1.bf16.msra.mxu0 %v6651_v13  ;;  %v3396_v13 = vld [vmem:[%s7573_s28 + $0x360] sm:$0xff]  ;;  %v8595_v51 = vld [vmem:[#allocation31_spill] sm:$0xff] }
 0x1fd   : > { %2778 = vmatmul.mubr.f32.gmra.mrb[72].mxu1 %v2434_v53  ;;  %5571 = vmatprep.subr.bf16.mxu0 %v8567_v9  ;;  %v2471_v4 = vld [vmem:[%s7497_s24 + $0x3c0] sm:$0xff] }
 0x1fe   : > { %v1175_v31 = vpop.f32.mrb[2].mxu0  ;;  %2782 = vmatprep.mubr.f32.mxu1 %v2444_v5  ;;  %5391 = vmatpush1.bf16.msra.mxu1 %v8590_v22  ;;  %v3424_v42 = vld [vmem:[%s7573_s28 + $0x440] sm:$0xff] }
 0x1ff   : > { %v7721_v21 = vadd.f32 %v8591_v15, %v1175_v31  ;;  %3570 = vmatmul.mubr.f32.gmra.mrb[94].mxu0 %v3387_v62  ;;  %v1177_v7 = vpop.f32.mrb[3].mxu0  ;;  %5392 = vmatprep.subr.bf16.mxu1 %v8567_v9  ;;  %v2470_v62 = vld [vmem:[%s7497_s24 + $0x3b8] sm:$0xff]  ;;  %v8597_v31 = vld [vmem:[#allocation34_spill] sm:$0xff] }
 0x200   : > { %3574 = vmatprep.mubr.f32.mxu0 %v3397_v63  ;;  %5573 = vmatpush1.bf16.msra.mxu0 %v6667_v29  ;;  %v3405_v29 = vld [vmem:[%s7573_s28 + $0x3a8] sm:$0xff] }
 0x201   : > { %2783 = vmatmul.mubr.f32.gmra.mrb[74].mxu1 %v2443_v14  ;;  %5574 = vmatprep.subr.bf16.mxu0 %v8567_v9  ;;  %v8596_v63 = vld [vmem:[#allocation15_spill] sm:$0xff] }
 0x202   : > { %v1180_v38 = vpop.f32.mrb[4].mxu0  ;;  %2787 = vmatprep.mubr.f32.mxu1 %v2453_v28  ;;  %5394 = vmatpush1.bf16.msra.mxu1 %v8592_v35  ;;  %v2480_v7 = vld [vmem:[%s7497_s24 + $0x408] sm:$0xff] }
 0x203   : > { %v7732_v18 = vadd.f32 %v8593_v33, %v1180_v38  ;;  %3575 = vmatmul.mubr.f32.gmra.mrb[96].mxu0 %v3396_v13  ;;  %v1182_v34 = vpop.f32.mrb[5].mxu0  ;;  %5395 = vmatprep.subr.bf16.mxu1 %v8567_v9  ;;  %v3433_v28 = vld [vmem:[%s7573_s28 + $0x488] sm:$0xff]  ;;  %v8598_v38 = vld [vmem:[#allocation16_spill] sm:$0xff] }
 0x204   : > { %3579 = vmatprep.mubr.f32.mxu0 %v3406_v25  ;;  %5576 = vmatpush1.bf16.msra.mxu0 %v6683_v46  ;;  %v3414_v46 = vld [vmem:[%s7573_s28 + $0x3f0] sm:$0xff]  ;;  %v2479_v25 = vld [vmem:[%s7497_s24 + $0x400] sm:$0xff] }
 0x205   : > { %2788 = vmatmul.mubr.f32.gmra.mrb[76].mxu1 %v2452_v39  ;;  %5577 = vmatprep.subr.bf16.mxu0 %v8567_v9  ;;  %v8599_v39 = vld [vmem:[#allocation33_spill] sm:$0xff] }
 0x206   : > { %v1185_v3 = vpop.f32.mrb[6].mxu0  ;;  %2792 = vmatprep.mubr.f32.mxu1 %v2462_v45  ;;  %5397 = vmatpush1.bf16.msra.mxu1 %v8594_v50  ;;  %v2489_v45 = vld [vmem:[%s7497_s24 + $0x450] sm:$0xff] }
 0x207   : > { %v7743_v24 = vadd.f32 %v8595_v51, %v1185_v3  ;;  %3580 = vmatmul.mubr.f32.gmra.mrb[98].mxu0 %v3405_v29  ;;  %v1187_v53 = vpop.f32.mrb[7].mxu0  ;;  %5398 = vmatprep.subr.bf16.mxu1 %v8567_v9  ;;  %v3442_v29 = vld [vmem:[%s7573_s28 + $0x4d0] sm:$0xff]  ;;  %v2488_v3 = vld [vmem:[%s7497_s24 + $0x448] sm:$0xff] }
 0x208   : > { %3584 = vmatprep.mubr.f32.mxu0 %v3415_v41  ;;  %5579 = vmatpush1.bf16.msra.mxu0 %v6699_v59  ;;  %v3423_v59 = vld [vmem:[%s7573_s28 + $0x438] sm:$0xff]  ;;  %v8601_v51 = vld [vmem:[#allocation36_spill] sm:$0xff] }
 0x209   : > { %2793 = vmatmul.mubr.f32.gmra.mrb[78].mxu1 %v2461_v55  ;;  %5580 = vmatprep.subr.bf16.mxu0 %v8567_v9  ;;  %v8600_v55 = vld [vmem:[#allocation17_spill] sm:$0xff] }
 0x20a   : > { %v1190_v5 = vpop.f32.mrb[8].mxu0  ;;  %2797 = vmatprep.mubr.f32.mxu1 %v2471_v4  ;;  %5400 = vmatpush1.bf16.msra.mxu1 %v8596_v63 }
 0x20b   : > { %v7754_v14 = vadd.f32 %v8597_v31, %v1190_v5  ;;  %3585 = vmatmul.mubr.f32.gmra.mrb[100].mxu0 %v3414_v46  ;;  %v1192_v15 = vpop.f32.mrb[9].mxu0  ;;  %5401 = vmatprep.subr.bf16.mxu1 %v8567_v9  ;;  %v2498_v46 = vld [vmem:[%s7497_s24 + $0x498] sm:$0xff]  ;;  %v8602_v31 = vld [vmem:[#allocation18_spill] sm:$0xff] }
 0x20c   : > { %3589 = vmatprep.mubr.f32.mxu0 %v3424_v42  ;;  %5582 = vmatpush1.bf16.msra.mxu0 %v6715_v10  ;;  %v3432_v10 = vld [vmem:[%s7573_s28 + $0x480] sm:$0xff]  ;;  %v3291_v42 = vld [vmem:[%s7573_s28 + $0x18] sm:$0xff]  ;;  %v8603_v15 = vld [vmem:[#allocation35_spill] sm:$0xff] }
 0x20d   : > { %2798 = vmatmul.mubr.f32.gmra.mrb[80].mxu1 %v2470_v62  ;;  %5583 = vmatprep.subr.bf16.mxu0 %v8567_v9  ;;  %v2497_v62 = vld [vmem:[%s7497_s24 + $0x490] sm:$0xff] }
 0x20e   : > { %v1195_v13 = vpop.f32.mrb[10].mxu0  ;;  %2802 = vmatprep.mubr.f32.mxu1 %v2480_v7  ;;  %5403 = vmatpush1.bf16.msra.mxu1 %v8598_v38 }
 0x20f   : > { %v7765_v33 = vadd.f32 %v8599_v39, %v1195_v13  ;;  %3590 = vmatmul.mubr.f32.gmra.mrb[102].mxu0 %v3423_v59  ;;  %v1197_v34 = vpop.f32.mrb[11].mxu0  ;;  %5404 = vmatprep.subr.bf16.mxu1 %v8567_v9  ;;  %v3290_v13 = vld [vmem:[%s7573_s28 + $0x10] sm:$0xff] }
 0x210   : > { %3594 = vmatprep.mubr.f32.mxu0 %v3433_v28  ;;  %5585 = vmatpush1.bf16.msra.mxu0 %v6731_v32  ;;  %v3441_v32 = vld [vmem:[%s7573_s28 + $0x4c8] sm:$0xff]  ;;  %v2507_v28 = vld [vmem:[%s7497_s24 + $0x4e0] sm:$0xff]  ;;  %v2506_v34 = vld [vmem:[%s7497_s24 + $0x4d8] sm:$0xff] }
 0x211   : > { %2803 = vmatmul.mubr.f32.gmra.mrb[82].mxu1 %v2479_v25  ;;  %5586 = vmatprep.subr.bf16.mxu0 %v8567_v9  ;;  %v3300_v25 = vld [vmem:[%s7573_s28 + $0x60] sm:$0xff] }
 0x212   : > { %v1200_v41 = vpop.f32.mrb[12].mxu0  ;;  %2807 = vmatprep.mubr.f32.mxu1 %v2489_v45  ;;  %5406 = vmatpush1.bf16.msra.mxu1 %v8600_v55 }
 0x213   : > { %v7776_v53 = vadd.f32 %v8601_v51, %v1200_v41  ;;  %3595 = vmatmul.mubr.f32.gmra.mrb[104].mxu0 %v3432_v10  ;;  %v1202_v4 = vpop.f32.mrb[13].mxu0  ;;  %5407 = vmatprep.subr.bf16.mxu1 %v8567_v9 }
 0x214   : > { %3599 = vmatprep.mubr.f32.mxu0 %v3442_v29  ;;  %v2356_v29 = vld [vmem:[%s7497_s24 + $0x28] sm:$0xff] }
 0x215   : > { %2808 = vmatmul.mubr.f32.gmra.mrb[84].mxu1 %v2488_v3  ;;  %v3299_v3 = vld [vmem:[%s7573_s28 + $0x58] sm:$0xff]  ;;  %v3309_v4 = vld [vmem:[%s7573_s28 + $0xa8] sm:$0xff] }
 0x216   : > { %v1205_v5 = vpop.f32.mrb[14].mxu0  ;;  %2812 = vmatprep.mubr.f32.mxu1 %v2498_v46  ;;  %5409 = vmatpush1.bf16.msra.mxu1 %v8602_v31 }
 0x217   : > { %v7785_v7 = vadd.f32 %v8603_v15, %v1205_v5  ;;  %3600 = vmatmul.mubr.f32.gmra.mrb[106].mxu0 %v3441_v32  ;;  %v1207_v59 = vpop.f32.mrb[15].mxu0  ;;  %5410 = vmatprep.subr.bf16.mxu1 %v8567_v9  ;;  %v8604_v32 = vld [vmem:[#allocation37_spill] sm:$0xff]  ;;  %v3308_v15 = vld [vmem:[%s7573_s28 + $0xa0] sm:$0xff] }
 0x218   : > { %3669 = vmatprep.mubr.f32.mxu0 %v3291_v42 }
 0x219   : > { %2813 = vmatmul.mubr.f32.gmra.mrb[86].mxu1 %v2497_v62  ;;  %v2365_v62 = vld [vmem:[%s7497_s24 + $0x70] sm:$0xff] }
 0x21a   : > { %v1210_v39 = vpop.f32.mrb[16].mxu0  ;;  %2817 = vmatprep.mubr.f32.mxu1 %v2507_v28  ;;  %v3318_v28 = vld [vmem:[%s7573_s28 + $0xf0] sm:$0xff] }
 0x21b   : > { %v7793_v45 = vadd.f32 %v7271_v19, %v1210_v39  ;;  %3670 = vmatmul.mubr.f32.vlgmr.msra.gmra.mrb[72].mxu0 %v3290_v13  ;;  %v1212_v10 = vpop.f32.mrb[17].mxu0  ;;  %v2355_v19 = vld [vmem:[%s7497_s24 + $0x20] sm:$0xff]  ;;  %v8605_v39 = vld [vmem:[#allocation19_spill] sm:$0xff] }
 0x21c   : > { %v7796_v41 = vpop.f32.mrb[18].mxu1  ;;  %5588 = vmatpush1.bf16.msra.mxu0 %v6760_v2  ;;  %3674 = vmatprep.mubr.f32.mxu0 %v3300_v25  ;;  %v2364_v25 = vld [vmem:[%s7497_s24 + $0x68] sm:$0xff]  ;;  %v2374_v10 = vld [vmem:[%s7497_s24 + $0xb8] sm:$0xff] }
 0x21d   : > { %v2109_v51 = vpop.f32.mrb[19].mxu1  ;;  %2818 = vmatmul.mubr.f32.gmra.mrb[88].mxu1 %v2506_v34  ;;  %5589 = vmatprep.subr.bf16.mxu0 %v8567_v9 }
 0x21e   : > { %v1215_v46 = vpop.f32.mrb[18].mxu0  ;;  %2887 = vmatprep.mubr.f32.mxu1 %v2356_v29 }
 0x21f   : > { %v7804_v42 = vadd.f32 %v8604_v32, %v1215_v46  ;;  %3675 = vmatmul.mubr.f32.gmra.mrb[74].mxu0 %v3299_v3  ;;  %v1217_v5 = vpop.f32.mrb[19].mxu0  ;;  %v3317_v3 = vld [vmem:[%s7573_s28 + $0xe8] sm:$0xff]  ;;  %v2373_v46 = vld [vmem:[%s7497_s24 + $0xb0] sm:$0xff] }
 0x220   : > { %v7807_v2 = vpop.f32.mrb[20].mxu1  ;;  %5591 = vmatpush1.bf16.msra.mxu0 %v6775_v26  ;;  %3679 = vmatprep.mubr.f32.mxu0 %v3309_v4  ;;  %v3327_v4 = vld [vmem:[%s7573_s28 + $0x138] sm:$0xff]  ;;  %v8607_v32 = vld [vmem:[#allocation39_spill] sm:$0xff] }
 0x221   : > { %v2114_v59 = vpop.f32.mrb[21].mxu1  ;;  %2888 = vmatmul.mubr.f32.vlgmr.msra.gmra.mrb[54].mxu1 %v2355_v19  ;;  %5592 = vmatprep.subr.bf16.mxu0 %v8567_v9  ;;  %v8606_v19 = vld [vmem:[#allocation20_spill] sm:$0xff] }
 0x222   : > { %v1220_v13 = vpop.f32.mrb[20].mxu0  ;;  %2892 = vmatprep.mubr.f32.mxu1 %v2365_v62  ;;  %5412 = vmatpush1.bf16.msra.mxu1 %v8605_v39  ;;  %v2383_v62 = vld [vmem:[%s7497_s24 + $0x100] sm:$0xff]  ;;  %v3326_v59 = vld [vmem:[%s7573_s28 + $0x130] sm:$0xff] }
 0x223   : > { %v7816_v34 = vadd.f32 %v7285_v54, %v1220_v13  ;;  %3680 = vmatmul.mubr.f32.gmra.mrb[76].mxu0 %v3308_v15  ;;  %v1222_v26 = vpop.f32.mrb[21].mxu0  ;;  %5413 = vmatprep.subr.bf16.mxu1 %v8567_v9  ;;  %v3336_v13 = vld [vmem:[%s7573_s28 + $0x180] sm:$0xff] }
 0x224   : > { %v7820_v29 = vpop.f32.mrb[22].mxu1  ;;  %5594 = vmatpush1.bf16.msra.mxu0 %v8582_v58  ;;  %3684 = vmatprep.mubr.f32.mxu0 %v3318_v28  ;;  %v2382_v26 = vld [vmem:[%s7497_s24 + $0xf8] sm:$0xff] }
 0x225   : > { %v2119_v51 = vpop.f32.mrb[23].mxu1  ;;  %2893 = vmatmul.mubr.f32.gmra.mrb[56].mxu1 %v2364_v25  ;;  %5595 = vmatprep.subr.bf16.mxu0 %v8567_v9 }
 0x226   : > { %v1225_v54 = vpop.f32.mrb[22].mxu0  ;;  %2897 = vmatprep.mubr.f32.mxu1 %v2374_v10  ;;  %5415 = vmatpush1.bf16.msra.mxu1 %v8606_v19  ;;  %v8609_v10 = vld [vmem:[#allocation21_spill] sm:$0xff] }
 0x227   : > { %v7829_v5 = vadd.f32 %v8607_v32, %v1225_v54  ;;  %3685 = vmatmul.mubr.f32.gmra.mrb[78].mxu0 %v3317_v3  ;;  %v1227_v58 = vpop.f32.mrb[23].mxu0  ;;  %5416 = vmatprep.subr.bf16.mxu1 %v8567_v9  ;;  %v3335_v54 = vld [vmem:[%s7573_s28 + $0x178] sm:$0xff]  ;;  %v3345_v32 = vld [vmem:[%s7573_s28 + $0x1c8] sm:$0xff] }
 0x228   : > { %v7833_v15 = vpop.f32.mrb[24].mxu1  ;;  %3689 = vmatprep.mubr.f32.mxu0 %v3327_v4  ;;  %5597 = vmatpush1.bf16.msra.mxu0 %v8583_v6  ;;  %v2392_v6 = vld [vmem:[%s7497_s24 + $0x148] sm:$0xff]  ;;  %v2391_v58 = vld [vmem:[%s7497_s24 + $0x140] sm:$0xff] }
 0x229   : > { %8608 = vst [vmem:[#allocation5_spill] sm:$0xff] %v7829_v5  ;;  %v2124_v28 = vpop.f32.mrb[25].mxu1  ;;  %2898 = vmatmul.mubr.f32.gmra.mrb[58].mxu1 %v2373_v46  ;;  %5598 = vmatprep.subr.bf16.mxu0 %v8567_v9  ;;  %v8622_v5 = vld [vmem:[#allocation38_spill] sm:$0xff] }
 0x22a   : > { %v1230_v25 = vpop.f32.mrb[24].mxu0  ;;  %2902 = vmatprep.mubr.f32.mxu1 %v2383_v62  ;;  %5418 = vmatpush1.bf16.msra.mxu1 %v8609_v10  ;;  %v8610_v62 = vld [vmem:[#allocation22_spill] sm:$0xff] }
 0x22b   : > { %v7842_v3 = vadd.f32 %v7297_v52, %v1230_v25  ;;  %3690 = vmatmul.mubr.f32.gmra.mrb[80].mxu0 %v3326_v59  ;;  %v1232_v51 = vpop.f32.mrb[25].mxu0  ;;  %5419 = vmatprep.subr.bf16.mxu1 %v8567_v9  ;;  %v8611_v59 = vld [vmem:[#allocation40_spill] sm:$0xff] }
 0x22c   : > { %v7846_v4 = vpop.f32.mrb[26].mxu1  ;;  %3694 = vmatprep.mubr.f32.mxu0 %v3336_v13  ;;  %5600 = vmatpush1.bf16.msra.mxu0 %v8584_v11  ;;  %v2401_v11 = vld [vmem:[%s7497_s24 + $0x190] sm:$0xff] }
 0x22d   : > { %v2129_v46 = vpop.f32.mrb[27].mxu1  ;;  %2903 = vmatmul.mubr.f32.gmra.mrb[60].mxu1 %v2382_v26  ;;  %5601 = vmatprep.subr.bf16.mxu0 %v8567_v9  ;;  %v3344_v26 = vld [vmem:[%s7573_s28 + $0x1c0] sm:$0xff] }
 0x22e   : > { %v1235_v52 = vpop.f32.mrb[26].mxu0  ;;  %2907 = vmatprep.mubr.f32.mxu1 %v2392_v6  ;;  %5421 = vmatpush1.bf16.msra.mxu1 %v8610_v62  ;;  %v3354_v6 = vld [vmem:[%s7573_s28 + $0x210] sm:$0xff] }
 0x22f   : > { %v7855_v28 = vadd.f32 %v8611_v59, %v1235_v52  ;;  %3695 = vmatmul.mubr.f32.gmra.mrb[82].mxu0 %v3335_v54  ;;  %v1237_v13 = vpop.f32.mrb[27].mxu0  ;;  %5422 = vmatprep.subr.bf16.mxu1 %v8567_v9  ;;  %v2400_v54 = vld [vmem:[%s7497_s24 + $0x188] sm:$0xff] }
 0x230   : > { %v7859_v25 = vpop.f32.mrb[28].mxu1  ;;  %3699 = vmatprep.mubr.f32.mxu0 %v3345_v32  ;;  %5603 = vmatpush1.bf16.msra.mxu0 %v8585_v1  ;;  %v8613_v52 = vld [vmem:[#allocation23_spill] sm:$0xff]  ;;  %v2410_v13 = vld [vmem:[%s7497_s24 + $0x1d8] sm:$0xff] }
 0x231   : > { %8612 = vst [vmem:[#allocation6_spill] sm:$0xff] %v7855_v28  ;;  %v2134_v51 = vpop.f32.mrb[29].mxu1  ;;  %2908 = vmatmul.mubr.f32.gmra.mrb[62].mxu1 %v2391_v58  ;;  %5604 = vmatprep.subr.bf16.mxu0 %v8567_v9  ;;  %v3353_v58 = vld [vmem:[%s7573_s28 + $0x208] sm:$0xff] }
 0x232   : > { %v1240_v46 = vpop.f32.mrb[28].mxu0  ;;  %2912 = vmatprep.mubr.f32.mxu1 %v2401_v11  ;;  %5424 = vmatpush1.bf16.msra.mxu1 %v8613_v52  ;;  %v3363_v51 = vld [vmem:[%s7573_s28 + $0x258] sm:$0xff] }
 0x233   : > { %v7868_v59 = vadd.f32 %v7307_v36, %v1240_v46  ;;  %3700 = vmatmul.mubr.f32.gmra.mrb[84].mxu0 %v3344_v26  ;;  %v1242_v32 = vpop.f32.mrb[29].mxu0  ;;  %5425 = vmatprep.subr.bf16.mxu1 %v8567_v9  ;;  %v2409_v26 = vld [vmem:[%s7497_s24 + $0x1d0] sm:$0xff] }
 0x234   : > { %v7872_v1 = vpop.f32.mrb[30].mxu1  ;;  %3704 = vmatprep.mubr.f32.mxu0 %v3354_v6  ;;  %5606 = vmatpush1.bf16.msra.mxu0 %v8586_v44  ;;  %v8614_v46 = vld [vmem:[#allocation24_spill] sm:$0xff]  ;;  %v8615_v32 = vld [vmem:[#allocation41_spill] sm:$0xff] }
 0x235   : > { %v2139_v11 = vpop.f32.mrb[31].mxu1  ;;  %2913 = vmatmul.mubr.f32.gmra.mrb[64].mxu1 %v2400_v54  ;;  %5607 = vmatprep.subr.bf16.mxu0 %v8567_v9  ;;  %v3362_v54 = vld [vmem:[%s7573_s28 + $0x250] sm:$0xff] }
 0x236   : > { %v1245_v36 = vpop.f32.mrb[30].mxu0  ;;  %2917 = vmatprep.mubr.f32.mxu1 %v2410_v13  ;;  %5427 = vmatpush1.bf16.msra.mxu1 %v8614_v46  ;;  %v3372_v11 = vld [vmem:[%s7573_s28 + $0x2a0] sm:$0xff] }
 0x237   : > { %v7881_v49 = vadd.f32 %v8615_v32, %v1245_v36  ;;  %3705 = vmatmul.mubr.f32.gmra.mrb[86].mxu0 %v3353_v58  ;;  %v1247_v6 = vpop.f32.mrb[31].mxu0  ;;  %5428 = vmatprep.subr.bf16.mxu1 %v8567_v9  ;;  %v2418_v58 = vld [vmem:[%s7497_s24 + $0x218] sm:$0xff] }
 0x238   : > { %v7885_v44 = vpop.f32.mrb[32].mxu1  ;;  %3709 = vmatprep.mubr.f32.mxu0 %v3363_v51  ;;  %5609 = vmatpush1.bf16.msra.mxu0 %v8587_v56  ;;  %v8616_v32 = vld [vmem:[#allocation25_spill] sm:$0xff] }
 0x239   : > { %v2144_v13 = vpop.f32.mrb[33].mxu1  ;;  %2918 = vmatmul.mubr.f32.gmra.mrb[66].mxu1 %v2409_v26  ;;  %5610 = vmatprep.subr.bf16.mxu0 %v8567_v9  ;;  %v3371_v26 = vld [vmem:[%s7573_s28 + $0x298] sm:$0xff] }
 0x23a   : > { %v1250_v36 = vpop.f32.mrb[32].mxu0  ;;  %2922 = vmatprep.mubr.f32.mxu1 %v2419_v43  ;;  %5430 = vmatpush1.bf16.msra.mxu1 %v8616_v32  ;;  %v3381_v13 = vld [vmem:[%s7573_s28 + $0x2e8] sm:$0xff]  ;;  %v2437_v32 = vld [vmem:[%s7497_s24 + $0x2b0] sm:$0xff] }
 0x23b   : > { %v7894_v6 = vadd.f32 %v7317_v60, %v1250_v36  ;;  %3710 = vmatmul.mubr.f32.gmra.mrb[88].mxu0 %v3362_v54  ;;  %v1252_v51 = vpop.f32.mrb[33].mxu0  ;;  %5431 = vmatprep.subr.bf16.mxu1 %v8567_v9  ;;  %v2427_v54 = vld [vmem:[%s7497_s24 + $0x260] sm:$0xff] }
 0x23c   : > { %v7898_v56 = vpop.f32.mrb[34].mxu1  ;;  %3714 = vmatprep.mubr.f32.mxu0 %v3372_v11  ;;  %5612 = vmatpush1.bf16.msra.mxu0 %v8588_v61  ;;  %v8617_v36 = vld [vmem:[#allocation26_spill] sm:$0xff] }
 0x23d   : > { %v2149_v43 = vpop.f32.mrb[35].mxu1  ;;  %2923 = vmatmul.mubr.f32.gmra.mrb[68].mxu1 %v2418_v58  ;;  %5613 = vmatprep.subr.bf16.mxu0 %v8567_v9  ;;  %v3380_v58 = vld [vmem:[%s7573_s28 + $0x2e0] sm:$0xff] }
 0x23e   : > { %v1255_v60 = vpop.f32.mrb[34].mxu0  ;;  %2927 = vmatprep.mubr.f32.mxu1 %v2428_v37  ;;  %5433 = vmatpush1.bf16.msra.mxu1 %v8617_v36  ;;  %v3390_v43 = vld [vmem:[%s7573_s28 + $0x330] sm:$0xff] }
 0x23f   : > { %v7907_v51 = vadd.f32 %v7314_v0, %v1255_v60  ;;  %3715 = vmatmul.mubr.f32.gmra.mrb[90].mxu0 %v3371_v26  ;;  %v1257_v11 = vpop.f32.mrb[35].mxu0  ;;  %5434 = vmatprep.subr.bf16.mxu1 %v8567_v9  ;;  %v2436_v26 = vld [vmem:[%s7497_s24 + $0x2a8] sm:$0xff] }
 0x240   : > { %v7911_v61 = vpop.f32.mrb[36].mxu1  ;;  %3719 = vmatprep.mubr.f32.mxu0 %v3381_v13  ;;  %5615 = vmatpush1.bf16.msra.mxu0 %v8590_v22  ;;  %v2446_v11 = vld [vmem:[%s7497_s24 + $0x2f8] sm:$0xff] }
 0x241   : > { %v2154_v37 = vpop.f32.mrb[37].mxu1  ;;  %2928 = vmatmul.mubr.f32.gmra.mrb[70].mxu1 %v2427_v54  ;;  %5616 = vmatprep.subr.bf16.mxu0 %v8567_v9 }
 0x242   : > { %v4675_v0 = vpop.f32.mrb[36].mxu0  ;;  %2932 = vmatprep.mubr.f32.mxu1 %v2437_v32  ;;  %5436 = vmatpush1.bf16.msra.mxu1 %v7149_v27  ;;  %v3389_v32 = vld [vmem:[%s7573_s28 + $0x328] sm:$0xff] }
 0x243   : > { %v7920_v60 = vadd.f32 %v4675_v0, %v7807_v2  ;;  %3720 = vmatmul.mubr.f32.gmra.mrb[92].mxu0 %v3380_v58  ;;  %v2262_v13 = vpop.f32.mrb[37].mxu0  ;;  %5437 = vmatprep.subr.bf16.mxu1 %v8567_v9  ;;  %v3399_v58 = vld [vmem:[%s7573_s28 + $0x378] sm:$0xff] }
 0x244   : > { %v7924_v22 = vpop.f32.mrb[38].mxu1  ;;  %v7927_v54 = vadd.f32 %v2262_v13, %v7796_v41  ;;  %3724 = vmatprep.mubr.f32.mxu0 %v3390_v43  ;;  %5618 = vmatpush1.bf16.msra.mxu0 %v8592_v35  ;;  %v2445_v41 = vld [vmem:[%s7497_s24 + $0x2f0] sm:$0xff] }
 0x245   : > { %v2159_v37 = vpop.f32.mrb[39].mxu1  ;;  %2933 = vmatmul.mubr.f32.gmra.mrb[72].mxu1 %v2436_v26  ;;  %5619 = vmatprep.subr.bf16.mxu0 %v8567_v9  ;;  %v8619_v43 = vld [vmem:[#allocation28_spill] sm:$0xff]  ;;  %v2455_v26 = vld [vmem:[%s7497_s24 + $0x340] sm:$0xff] }
 0x246   : > { %8618 = vst [vmem:[#allocation7_spill] sm:$0xff] %v7927_v54  ;;  %v4678_v27 = vpop.f32.mrb[38].mxu0  ;;  %2937 = vmatprep.mubr.f32.mxu1 %v2446_v11  ;;  %5439 = vmatpush1.bf16.msra.mxu1 %v8619_v43  ;;  %v3398_v11 = vld [vmem:[%s7573_s28 + $0x370] sm:$0xff] }
 0x247   : > { %v7940_v35 = vadd.f32 %v4678_v27, %v7833_v15  ;;  %3725 = vmatmul.mubr.f32.gmra.mrb[94].mxu0 %v3389_v32  ;;  %v2272_v13 = vpop.f32.mrb[39].mxu0  ;;  %5440 = vmatprep.subr.bf16.mxu1 %v8567_v9  ;;  %v3408_v32 = vld [vmem:[%s7573_s28 + $0x3c0] sm:$0xff] }
 0x248   : > { %v7944_v37 = vpop.f32.mrb[40].mxu1  ;;  %v7947_v2 = vadd.f32 %v2272_v13, %v7820_v29  ;;  %3729 = vmatprep.mubr.f32.mxu0 %v3399_v58  ;;  %5621 = vmatpush1.bf16.msra.mxu0 %v8594_v50  ;;  %v2454_v29 = vld [vmem:[%s7497_s24 + $0x338] sm:$0xff] }
 0x249   : > { %v2164_v15 = vpop.f32.mrb[41].mxu1  ;;  %2938 = vmatmul.mubr.f32.gmra.mrb[74].mxu1 %v2445_v41  ;;  %5622 = vmatprep.subr.bf16.mxu0 %v8567_v9  ;;  %v2464_v41 = vld [vmem:[%s7497_s24 + $0x388] sm:$0xff] }
 0x24a   : > { %v4681_v54 = vpop.f32.mrb[40].mxu0  ;;  %2942 = vmatprep.mubr.f32.mxu1 %v2455_v26  ;;  %5442 = vmatpush1.bf16.msra.mxu1 %v7179_v20  ;;  %v3407_v26 = vld [vmem:[%s7573_s28 + $0x3b8] sm:$0xff] }
 0x24b   : > { %v7960_v50 = vadd.f32 %v4681_v54, %v7859_v25  ;;  %3730 = vmatmul.mubr.f32.gmra.mrb[96].mxu0 %v3398_v11  ;;  %v2282_v58 = vpop.f32.mrb[41].mxu0  ;;  %5443 = vmatprep.subr.bf16.mxu1 %v8567_v9  ;;  %v3417_v11 = vld [vmem:[%s7573_s28 + $0x408] sm:$0xff]  ;;  %v3443_v25 = vld [vmem:[%s7573_s28 + $0x4d8] sm:$0xff] }
 0x24c   : > { %v7964_v13 = vpop.f32.mrb[42].mxu1  ;;  %v7967_v15 = vadd.f32 %v2282_v58, %v7846_v4  ;;  %3734 = vmatprep.mubr.f32.mxu0 %v3408_v32  ;;  %5624 = vmatpush1.bf16.msra.mxu0 %v8596_v63  ;;  %v2463_v4 = vld [vmem:[%s7497_s24 + $0x380] sm:$0xff] }
 0x24d   : > { %v2169_v54 = vpop.f32.mrb[43].mxu1  ;;  %2943 = vmatmul.mubr.f32.gmra.mrb[76].mxu1 %v2454_v29  ;;  %5625 = vmatprep.subr.bf16.mxu0 %v8567_v9  ;;  %v2473_v29 = vld [vmem:[%s7497_s24 + $0x3d0] sm:$0xff] }
 0x24e   : > { %v4684_v0 = vpop.f32.mrb[42].mxu0  ;;  %2947 = vmatprep.mubr.f32.mxu1 %v2464_v41  ;;  %5445 = vmatpush1.bf16.msra.mxu1 %v7199_v48  ;;  %v3416_v41 = vld [vmem:[%s7573_s28 + $0x400] sm:$0xff] }
 0x24f   : > { %v7980_v63 = vadd.f32 %v4684_v0, %v7885_v44  ;;  %3735 = vmatmul.mubr.f32.gmra.mrb[98].mxu0 %v3407_v26  ;;  %v2292_v32 = vpop.f32.mrb[43].mxu0  ;;  %5446 = vmatprep.subr.bf16.mxu1 %v8567_v9  ;;  %v3426_v0 = vld [vmem:[%s7573_s28 + $0x450] sm:$0xff] }
 0x250   : > { %v2172_v58 = vpop.f32.mrb[44].mxu1  ;;  %v7985_v54 = vadd.f32 %v2292_v32, %v7872_v1  ;;  %3739 = vmatprep.mubr.f32.mxu0 %v3417_v11  ;;  %5627 = vmatpush1.bf16.msra.mxu0 %v8598_v38  ;;  %v2472_v1 = vld [vmem:[%s7497_s24 + $0x3c8] sm:$0xff] }
 0x251   : > { %v2174_v44 = vpop.f32.mrb[45].mxu1  ;;  %2948 = vmatmul.mubr.f32.gmra.mrb[78].mxu1 %v2463_v4  ;;  %5628 = vmatprep.subr.bf16.mxu0 %v8567_v9  ;;  %v2482_v4 = vld [vmem:[%s7497_s24 + $0x418] sm:$0xff] }
 0x252   : > { %v4687_v27 = vpop.f32.mrb[44].mxu0  ;;  %2952 = vmatprep.mubr.f32.mxu1 %v2473_v29  ;;  %5448 = vmatpush1.bf16.msra.mxu1 %v7219_v47  ;;  %v3425_v29 = vld [vmem:[%s7573_s28 + $0x448] sm:$0xff] }
 0x253   : > { %v7998_v38 = vadd.f32 %v4687_v27, %v7911_v61  ;;  %3740 = vmatmul.mubr.f32.gmra.mrb[100].mxu0 %v3416_v41  ;;  %v2302_v11 = vpop.f32.mrb[45].mxu0  ;;  %5449 = vmatprep.subr.bf16.mxu1 %v8567_v9  ;;  %v3435_v27 = vld [vmem:[%s7573_s28 + $0x498] sm:$0xff] }
 0x254   : > { %v2177_v32 = vpop.f32.mrb[46].mxu1  ;;  %v8003_v44 = vadd.f32 %v2302_v11, %v7898_v56  ;;  %3744 = vmatprep.mubr.f32.mxu0 %v3426_v0  ;;  %5630 = vmatpush1.bf16.msra.mxu0 %v8600_v55  ;;  %v2481_v56 = vld [vmem:[%s7497_s24 + $0x410] sm:$0xff] }
 0x255   : > { %v2179_v61 = vpop.f32.mrb[47].mxu1  ;;  %2953 = vmatmul.mubr.f32.gmra.mrb[80].mxu1 %v2472_v1  ;;  %5631 = vmatprep.subr.bf16.mxu0 %v8567_v9  ;;  %v2491_v1 = vld [vmem:[%s7497_s24 + $0x460] sm:$0xff] }
 0x256   : > { %v4690_v26 = vpop.f32.mrb[46].mxu0  ;;  %2957 = vmatprep.mubr.f32.mxu1 %v2482_v4  ;;  %5451 = vmatpush1.bf16.msra.mxu1 %v7239_v40  ;;  %v3434_v4 = vld [vmem:[%s7573_s28 + $0x490] sm:$0xff] }
 0x257   : > { %v8016_v55 = vadd.f32 %v4690_v26, %v7944_v37  ;;  %3745 = vmatmul.mubr.f32.gmra.mrb[102].mxu0 %v3425_v29  ;;  %v2312_v0 = vpop.f32.mrb[47].mxu0  ;;  %5452 = vmatprep.subr.bf16.mxu1 %v8567_v9  ;;  %v3444_v26 = vld [vmem:[%s7573_s28 + $0x4e0] sm:$0xff] }
 0x258   : > { %v2182_v11 = vpop.f32.mrb[48].mxu1  ;;  %v8021_v61 = vadd.f32 %v2312_v0, %v7924_v22  ;;  %3749 = vmatprep.mubr.f32.mxu0 %v3435_v27  ;;  %5633 = vmatpush1.bf16.msra.mxu0 %v8602_v31  ;;  %v2490_v22 = vld [vmem:[%s7497_s24 + $0x458] sm:$0xff]  ;;  %v2500_v0 = vld [vmem:[%s7497_s24 + $0x4a8] sm:$0xff] }
 0x259   : > { %8620 = vst [vmem:[#allocation8_spill] sm:$0xff] %v8016_v55  ;;  %v2184_v37 = vpop.f32.mrb[49].mxu1  ;;  %2958 = vmatmul.mubr.f32.gmra.mrb[82].mxu1 %v2481_v56  ;;  %5634 = vmatprep.subr.bf16.mxu0 %v8567_v9  ;;  %v2499_v55 = vld [vmem:[%s7497_s24 + $0x4a0] sm:$0xff] }
 0x25a   : > { %v4693_v41 = vpop.f32.mrb[48].mxu0  ;;  %2962 = vmatprep.mubr.f32.mxu1 %v2491_v1  ;;  %5454 = vmatpush1.bf16.msra.mxu1 %v7259_v16  ;;  %v3292_v1 = vld [vmem:[%s7573_s28 + $0x20] sm:$0xff] }
 0x25b   : > { %v8033_v27 = vadd.f32 %v4693_v41, %v2172_v58  ;;  %3750 = vmatmul.mubr.f32.gmra.mrb[104].mxu0 %v3434_v4  ;;  %v2322_v31 = vpop.f32.mrb[49].mxu0  ;;  %5455 = vmatprep.subr.bf16.mxu1 %v8567_v9  ;;  %v3293_v58 = vld [vmem:[%s7573_s28 + $0x28] sm:$0xff] }
 0x25c   : > { %v2187_v56 = vpop.f32.mrb[50].mxu1  ;;  %v8038_v37 = vadd.f32 %v2322_v31, %v7964_v13  ;;  %3754 = vmatprep.mubr.f32.mxu0 %v3444_v26  ;;  %v2509_v31 = vld [vmem:[%s7497_s24 + $0x4f0] sm:$0xff] }
 0x25d   : > { %8621 = vst [vmem:[#allocation9_spill] sm:$0xff] %v8033_v27  ;;  %v2189_v29 = vpop.f32.mrb[51].mxu1  ;;  %2963 = vmatmul.mubr.f32.gmra.mrb[84].mxu1 %v2490_v22  ;;  %v2508_v27 = vld [vmem:[%s7497_s24 + $0x4e8] sm:$0xff] }
 0x25e   : > { %v4696_v4 = vpop.f32.mrb[50].mxu0  ;;  %2967 = vmatprep.mubr.f32.mxu1 %v2500_v0  ;;  %5457 = vmatpush1.bf16.msra.mxu1 %v8622_v5 }
 0x25f   : > { %v8048_v13 = vadd.f32 %v4696_v4, %v2182_v11  ;;  %3755 = vmatmul.mubr.f32.gmra.mrb[106].mxu0 %v3443_v25  ;;  %v2332_v26 = vpop.f32.mrb[51].mxu0  ;;  %5683 = vmatprep.subr.bf16.mxu1 %v6229_v8  ;;  %v3302_v11 = vld [vmem:[%s7573_s28 + $0x70] sm:$0xff] }
 0x260   : > { %v2192_v29 = vpop.f32.mrb[52].mxu1  ;;  %v8052_v22 = vadd.f32 %v2332_v26, %v2177_v32  ;;  %3824 = vmatprep.mubr.f32.mxu0 %v3293_v58  ;;  %v2358_v58 = vld [vmem:[%s7497_s24 + $0x38] sm:$0xff] }
 0x261   : > { %v2194_v41 = vpop.f32.mrb[53].mxu1  ;;  %2968 = vmatmul.mubr.f32.gmra.mrb[86].mxu1 %v2499_v55  ;;  %v3301_v55 = vld [vmem:[%s7573_s28 + $0x68] sm:$0xff] }
 0x262   : > { %v4699_v4 = vpop.f32.mrb[52].mxu0  ;;  %2972 = vmatprep.mubr.f32.mxu1 %v2509_v31  ;;  %v3311_v31 = vld [vmem:[%s7573_s28 + $0xb8] sm:$0xff] }
 0x263   : > { %v8061_v28 = vadd.f32 %v4699_v4, %v2192_v29  ;;  %3825 = vmatmul.mubr.f32.vlgmr.msra.gmra.mrb[72].mxu0 %v3292_v1  ;;  %v2342_v32 = vpop.f32.mrb[53].mxu0  ;;  %v3320_v4 = vld [vmem:[%s7573_s28 + $0x100] sm:$0xff] }
 0x264   : > { %v8064_v26 = vadd.f32 %v2342_v32, %v2187_v56  ;;  %5636 = vmatpush1.bf16.msra.mxu0 %v8605_v39  ;;  %3829 = vmatprep.mubr.f32.mxu0 %v3302_v11  ;;  %v2357_v39 = vld [vmem:[%s7497_s24 + $0x30] sm:$0xff]  ;;  %v2367_v11 = vld [vmem:[%s7497_s24 + $0x80] sm:$0xff]  ;;  %v2366_v32 = vld [vmem:[%s7497_s24 + $0x78] sm:$0xff] }
 0x265   : > { %8623 = vst [vmem:[#allocation10_spill] sm:$0xff] %v8061_v28  ;;  %2973 = vmatmul.mubr.f32.gmra.mrb[88].mxu1 %v2508_v27  ;;  %5637 = vmatprep.subr.bf16.mxu0 %v8567_v9  ;;  %v3310_v27 = vld [vmem:[%s7573_s28 + $0xb0] sm:$0xff]  ;;  %v2439_v28 = vld [vmem:[%s7497_s24 + $0x2c0] sm:$0xff] }
 0x266   : > { %v8074_v29 = vpop.f32.mrb[54].mxu0  ;;  %3042 = vmatprep.mubr.f32.mxu1 %v2358_v58 }
 0x267   : > { %3830 = vmatmul.mubr.f32.gmra.mrb[74].mxu0 %v3301_v55  ;;  %v8077_v56 = vpop.f32.mrb[55].mxu0  ;;  %v2376_v55 = vld [vmem:[%s7497_s24 + $0xc8] sm:$0xff] }
 0x268   : > { %5639 = vmatpush1.bf16.msra.mxu0 %v8606_v19  ;;  %3834 = vmatprep.mubr.f32.mxu0 %v3311_v31  ;;  %v3319_v19 = vld [vmem:[%s7573_s28 + $0xf8] sm:$0xff]  ;;  %v3329_v31 = vld [vmem:[%s7573_s28 + $0x148] sm:$0xff] }
 0x269   : > { %3043 = vmatmul.mubr.f32.vlgmr.msra.gmra.mrb[54].mxu1 %v2357_v39  ;;  %5640 = vmatprep.subr.bf16.mxu0 %v8567_v9 }
 0x26a   : > { %3047 = vmatprep.mubr.f32.mxu1 %v2367_v11  ;;  %v8085_v58 = vpop.f32.mrb[56].mxu0  ;;  %5685 = vmatpush3.bf16.msra.mxu1 %v6229_v8  ;;  %v2375_v8 = vld [vmem:[%s7497_s24 + $0xc0] sm:$0xff]  ;;  %v2385_v11 = vld [vmem:[%s7497_s24 + $0x110] sm:$0xff] }
 0x26b   : > { %3835 = vmatmul.mubr.f32.gmra.mrb[76].mxu0 %v3310_v27  ;;  %v8089_v41 = vpop.f32.mrb[57].mxu0  ;;  %5687 = vmatprep.subr.bf16.mxu1 %v6240_v12 }
 0x26c   : > { %5642 = vmatpush1.bf16.msra.mxu0 %v8609_v10  ;;  %3839 = vmatprep.mubr.f32.mxu0 %v3320_v4  ;;  %v3328_v10 = vld [vmem:[%s7573_s28 + $0x140] sm:$0xff]  ;;  %v3338_v4 = vld [vmem:[%s7573_s28 + $0x190] sm:$0xff] }
 0x26d   : > { %3048 = vmatmul.mubr.f32.gmra.mrb[56].mxu1 %v2366_v32  ;;  %5643 = vmatprep.subr.bf16.mxu0 %v8567_v9 }
 0x26e   : > { %3052 = vmatprep.mubr.f32.mxu1 %v2376_v55  ;;  %v8097_v39 = vpop.f32.mrb[58].mxu0  ;;  %5689 = vmatpush3.bf16.msra.mxu1 %v6240_v12  ;;  %v2384_v12 = vld [vmem:[%s7497_s24 + $0x108] sm:$0xff]  ;;  %v2394_v55 = vld [vmem:[%s7497_s24 + $0x158] sm:$0xff] }
 0x26f   : > { %3840 = vmatmul.mubr.f32.gmra.mrb[78].mxu0 %v3319_v19  ;;  %v8101_v27 = vpop.f32.mrb[59].mxu0  ;;  %5691 = vmatprep.subr.bf16.mxu1 %v6260_v17 }
 0x270   : > { %3844 = vmatprep.mubr.f32.mxu0 %v3329_v31  ;;  %5645 = vmatpush1.bf16.msra.mxu0 %v8610_v62  ;;  %v3337_v62 = vld [vmem:[%s7573_s28 + $0x188] sm:$0xff]  ;;  %v3347_v31 = vld [vmem:[%s7573_s28 + $0x1d8] sm:$0xff] }
 0x271   : > { %3053 = vmatmul.mubr.f32.gmra.mrb[58].mxu1 %v2375_v8  ;;  %5646 = vmatprep.subr.bf16.mxu0 %v8567_v9 }
 0x272   : > { %3057 = vmatprep.mubr.f32.mxu1 %v2385_v11  ;;  %v8109_v32 = vpop.f32.mrb[60].mxu0  ;;  %5693 = vmatpush3.bf16.msra.mxu1 %v6260_v17  ;;  %v2393_v17 = vld [vmem:[%s7497_s24 + $0x150] sm:$0xff]  ;;  %v2403_v11 = vld [vmem:[%s7497_s24 + $0x1a0] sm:$0xff] }
 0x273   : > { %3845 = vmatmul.mubr.f32.gmra.mrb[80].mxu0 %v3328_v10  ;;  %v8113_v19 = vpop.f32.mrb[61].mxu0  ;;  %5695 = vmatprep.subr.bf16.mxu1 %v6289_v23 }
 0x274   : > { %3849 = vmatprep.mubr.f32.mxu0 %v3338_v4  ;;  %5648 = vmatpush1.bf16.msra.mxu0 %v8613_v52  ;;  %v3346_v52 = vld [vmem:[%s7573_s28 + $0x1d0] sm:$0xff]  ;;  %v3356_v4 = vld [vmem:[%s7573_s28 + $0x220] sm:$0xff] }
 0x275   : > { %3058 = vmatmul.mubr.f32.gmra.mrb[60].mxu1 %v2384_v12  ;;  %5649 = vmatprep.subr.bf16.mxu0 %v8567_v9 }
 0x276   : > { %3062 = vmatprep.mubr.f32.mxu1 %v2394_v55  ;;  %v8121_v8 = vpop.f32.mrb[62].mxu0  ;;  %5697 = vmatpush3.bf16.msra.mxu1 %v6289_v23  ;;  %v2402_v23 = vld [vmem:[%s7497_s24 + $0x198] sm:$0xff]  ;;  %v2412_v55 = vld [vmem:[%s7497_s24 + $0x1e8] sm:$0xff] }
 0x277   : > { %3850 = vmatmul.mubr.f32.gmra.mrb[82].mxu0 %v3337_v62  ;;  %v8125_v10 = vpop.f32.mrb[63].mxu0  ;;  %5699 = vmatprep.subr.bf16.mxu1 %v6310_v30 }
 0x278   : > { %3854 = vmatprep.mubr.f32.mxu0 %v3347_v31  ;;  %5651 = vmatpush1.bf16.msra.mxu0 %v8614_v46  ;;  %v8624_v31 = vld [vmem:[#allocation2_spill] sm:$0xff]  ;;  %v3355_v46 = vld [vmem:[%s7573_s28 + $0x218] sm:$0xff] }
 0x279   : > { %3063 = vmatmul.mubr.f32.gmra.mrb[62].mxu1 %v2393_v17  ;;  %5652 = vmatprep.subr.bf16.mxu0 %v8567_v9  ;;  %v8625_v17 = vld [vmem:[#allocation25_spill] sm:$0xff] }
 0x27a   : > { %3067 = vmatprep.mubr.f32.mxu1 %v2403_v11  ;;  %v8133_v12 = vpop.f32.mrb[64].mxu0  ;;  %5701 = vmatpush3.bf16.msra.mxu1 %v6310_v30  ;;  %v3365_v11 = vld [vmem:[%s7573_s28 + $0x268] sm:$0xff]  ;;  %v2411_v30 = vld [vmem:[%s7497_s24 + $0x1e0] sm:$0xff] }
 0x27b   : > { %3855 = vmatmul.mubr.f32.gmra.mrb[84].mxu0 %v3346_v52  ;;  %v8137_v62 = vpop.f32.mrb[65].mxu0  ;;  %5703 = vmatprep.subr.bf16.mxu1 %v8624_v31  ;;  %v2421_v52 = vld [vmem:[%s7497_s24 + $0x230] sm:$0xff] }
 0x27c   : > { %3859 = vmatprep.mubr.f32.mxu0 %v3356_v4  ;;  %5654 = vmatpush1.bf16.msra.mxu0 %v8625_v17  ;;  %v8626_v4 = vld [vmem:[#allocation3_spill] sm:$0xff] }
 0x27d   : > { %3068 = vmatmul.mubr.f32.gmra.mrb[64].mxu1 %v2402_v23  ;;  %5655 = vmatprep.subr.bf16.mxu0 %v8567_v9  ;;  %v3364_v23 = vld [vmem:[%s7573_s28 + $0x260] sm:$0xff] }
 0x27e   : > { %3072 = vmatprep.mubr.f32.mxu1 %v2412_v55  ;;  %v8145_v1 = vpop.f32.mrb[66].mxu0  ;;  %5705 = vmatpush3.bf16.msra.mxu1 %v8624_v31  ;;  %v3374_v55 = vld [vmem:[%s7573_s28 + $0x2b0] sm:$0xff]  ;;  %v2420_v31 = vld [vmem:[%s7497_s24 + $0x228] sm:$0xff] }
 0x27f   : > { %3860 = vmatmul.mubr.f32.gmra.mrb[86].mxu0 %v3355_v46  ;;  %v8149_v0 = vpop.f32.mrb[67].mxu0  ;;  %5707 = vmatprep.subr.bf16.mxu1 %v8626_v4  ;;  %v2430_v46 = vld [vmem:[%s7497_s24 + $0x278] sm:$0xff] }
 0x280   : > { %3864 = vmatprep.mubr.f32.mxu0 %v3365_v11  ;;  %5657 = vmatpush1.bf16.msra.mxu0 %v8617_v36  ;;  %v8627_v11 = vld [vmem:[#allocation4_spill] sm:$0xff]  ;;  %v3373_v36 = vld [vmem:[%s7573_s28 + $0x2a8] sm:$0xff] }
 0x281   : > { %3073 = vmatmul.mubr.f32.gmra.mrb[66].mxu1 %v2411_v30  ;;  %5658 = vmatprep.subr.bf16.mxu0 %v8567_v9  ;;  %v8628_v30 = vld [vmem:[#allocation27_spill] sm:$0xff] }
 0x282   : > { %3077 = vmatprep.mubr.f32.mxu1 %v2421_v52  ;;  %v8157_v17 = vpop.f32.mrb[68].mxu0  ;;  %5709 = vmatpush3.bf16.msra.mxu1 %v8626_v4  ;;  %v3383_v52 = vld [vmem:[%s7573_s28 + $0x2f8] sm:$0xff]  ;;  %v2429_v4 = vld [vmem:[%s7497_s24 + $0x270] sm:$0xff] }
 0x283   : > { %3865 = vmatmul.mubr.f32.gmra.mrb[88].mxu0 %v3364_v23  ;;  %v8161_v25 = vpop.f32.mrb[69].mxu0  ;;  %5711 = vmatprep.subr.bf16.mxu1 %v8627_v11 }
 0x284   : > { %3869 = vmatprep.mubr.f32.mxu0 %v3374_v55  ;;  %5660 = vmatpush1.bf16.msra.mxu0 %v8628_v30  ;;  %v3382_v30 = vld [vmem:[%s7573_s28 + $0x2f0] sm:$0xff] }
 0x285   : > { %3078 = vmatmul.mubr.f32.gmra.mrb[68].mxu1 %v2420_v31  ;;  %5661 = vmatprep.subr.bf16.mxu0 %v8567_v9  ;;  %v3392_v31 = vld [vmem:[%s7573_s28 + $0x340] sm:$0xff] }
 0x286   : > { %3082 = vmatprep.mubr.f32.mxu1 %v2430_v46  ;;  %v8169_v23 = vpop.f32.mrb[70].mxu0  ;;  %5713 = vmatpush3.bf16.msra.mxu1 %v8627_v11  ;;  %v2438_v46 = vld [vmem:[%s7497_s24 + $0x2b8] sm:$0xff]  ;;  %v2448_v11 = vld [vmem:[%s7497_s24 + $0x308] sm:$0xff] }
 0x287   : > { %3870 = vmatmul.mubr.f32.gmra.mrb[90].mxu0 %v3373_v36  ;;  %v8173_v55 = vpop.f32.mrb[71].mxu0  ;;  %v3391_v36 = vld [vmem:[%s7573_s28 + $0x338] sm:$0xff] }
 0x288   : > { %3874 = vmatprep.mubr.f32.mxu0 %v3383_v52  ;;  %5663 = vmatpush1.bf16.msra.mxu0 %v8619_v43  ;;  %v3401_v52 = vld [vmem:[%s7573_s28 + $0x388] sm:$0xff]  ;;  %v2447_v43 = vld [vmem:[%s7497_s24 + $0x300] sm:$0xff] }
 0x289   : > { %3083 = vmatmul.mubr.f32.gmra.mrb[70].mxu1 %v2429_v4  ;;  %5664 = vmatprep.subr.bf16.mxu0 %v8567_v9  ;;  %v3400_v4 = vld [vmem:[%s7573_s28 + $0x380] sm:$0xff] }
 0x28a   : > { %3087 = vmatprep.mubr.f32.mxu1 %v2439_v28  ;;  %v2457_v28 = vld [vmem:[%s7497_s24 + $0x350] sm:$0xff] }
 0x28b   : > { %3875 = vmatmul.mubr.f32.gmra.mrb[92].mxu0 %v3382_v30  ;;  %v3410_v30 = vld [vmem:[%s7573_s28 + $0x3d0] sm:$0xff] }
 0x28c   : > { %3879 = vmatprep.mubr.f32.mxu0 %v3392_v31  ;;  %5666 = vmatpush1.bf16.msra.mxu0 %v7179_v20  ;;  %v2456_v20 = vld [vmem:[%s7497_s24 + $0x348] sm:$0xff]  ;;  %v2466_v31 = vld [vmem:[%s7497_s24 + $0x398] sm:$0xff] }
 0x28d   : > { %3088 = vmatmul.mubr.f32.gmra.mrb[72].mxu1 %v2438_v46  ;;  %5667 = vmatprep.subr.bf16.mxu0 %v8567_v9  ;;  %v3409_v46 = vld [vmem:[%s7573_s28 + $0x3c8] sm:$0xff] }
 0x28e   : > { %3092 = vmatprep.mubr.f32.mxu1 %v2448_v11  ;;  %v3419_v11 = vld [vmem:[%s7573_s28 + $0x418] sm:$0xff] }
 0x28f   : > { %3880 = vmatmul.mubr.f32.gmra.mrb[94].mxu0 %v3391_v36  ;;  %v2475_v36 = vld [vmem:[%s7497_s24 + $0x3e0] sm:$0xff] }
 0x290   : > { %3884 = vmatprep.mubr.f32.mxu0 %v3401_v52  ;;  %5669 = vmatpush1.bf16.msra.mxu0 %v7199_v48  ;;  %v2465_v48 = vld [vmem:[%s7497_s24 + $0x390] sm:$0xff] }
 0x291   : > { %3093 = vmatmul.mubr.f32.gmra.mrb[74].mxu1 %v2447_v43  ;;  %5670 = vmatprep.subr.bf16.mxu0 %v8567_v9  ;;  %v3418_v52 = vld [vmem:[%s7573_s28 + $0x410] sm:$0xff]  ;;  %v3428_v43 = vld [vmem:[%s7573_s28 + $0x460] sm:$0xff] }
 0x292   : > { %3097 = vmatprep.mubr.f32.mxu1 %v2457_v28  ;;  %v2484_v28 = vld [vmem:[%s7497_s24 + $0x428] sm:$0xff] }
 0x293   : > { %3885 = vmatmul.mubr.f32.gmra.mrb[96].mxu0 %v3400_v4  ;;  %v3427_v4 = vld [vmem:[%s7573_s28 + $0x458] sm:$0xff] }
 0x294   : > { %3889 = vmatprep.mubr.f32.mxu0 %v3410_v30  ;;  %5672 = vmatpush1.bf16.msra.mxu0 %v7219_v47  ;;  %v2474_v47 = vld [vmem:[%s7497_s24 + $0x3d8] sm:$0xff]  ;;  %v3437_v30 = vld [vmem:[%s7573_s28 + $0x4a8] sm:$0xff] }
 0x295   : > { %3098 = vmatmul.mubr.f32.gmra.mrb[76].mxu1 %v2456_v20  ;;  %5673 = vmatprep.subr.bf16.mxu0 %v8567_v9  ;;  %v2493_v20 = vld [vmem:[%s7497_s24 + $0x470] sm:$0xff] }
 0x296   : > { %3102 = vmatprep.mubr.f32.mxu1 %v2466_v31  ;;  %v3436_v31 = vld [vmem:[%s7573_s28 + $0x4a0] sm:$0xff] }
 0x297   : > { %3890 = vmatmul.mubr.f32.gmra.mrb[98].mxu0 %v3409_v46  ;;  %v2492_v46 = vld [vmem:[%s7497_s24 + $0x468] sm:$0xff] }
 0x298   : > { %3894 = vmatprep.mubr.f32.mxu0 %v3419_v11  ;;  %5675 = vmatpush1.bf16.msra.mxu0 %v7239_v40  ;;  %v2483_v40 = vld [vmem:[%s7497_s24 + $0x420] sm:$0xff]  ;;  %v3445_v11 = vld [vmem:[%s7573_s28 + $0x4e8] sm:$0xff] }
 0x299   : > { %3103 = vmatmul.mubr.f32.gmra.mrb[78].mxu1 %v2465_v48  ;;  %5676 = vmatprep.subr.bf16.mxu0 %v8567_v9  ;;  %v3295_v48 = vld [vmem:[%s7573_s28 + $0x38] sm:$0xff] }
 0x29a   : > { %3107 = vmatprep.mubr.f32.mxu1 %v2475_v36  ;;  %v2501_v36 = vld [vmem:[%s7497_s24 + $0x4b0] sm:$0xff] }
 0x29b   : > { %3895 = vmatmul.mubr.f32.gmra.mrb[100].mxu0 %v3418_v52  ;;  %v3294_v52 = vld [vmem:[%s7573_s28 + $0x30] sm:$0xff] }
 0x29c   : > { %3899 = vmatprep.mubr.f32.mxu0 %v3428_v43  ;;  %5678 = vmatpush1.bf16.msra.mxu0 %v7259_v16  ;;  %v3446_v16 = vld [vmem:[%s7573_s28 + $0x4f0] sm:$0xff]  ;;  %v3304_v43 = vld [vmem:[%s7573_s28 + $0x80] sm:$0xff] }
 0x29d   : > { %3108 = vmatmul.mubr.f32.gmra.mrb[80].mxu1 %v2474_v47  ;;  %5679 = vmatprep.subr.bf16.mxu0 %v8567_v9  ;;  %v2502_v9 = vld [vmem:[%s7497_s24 + $0x4b8] sm:$0xff] }
 0x29e   : > { %3112 = vmatprep.mubr.f32.mxu1 %v2484_v28  ;;  %v2510_v47 = vld [vmem:[%s7497_s24 + $0x4f8] sm:$0xff]  ;;  %v3296_v28 = vld [vmem:[%s7573_s28 + $0x40] sm:$0xff] }
 0x29f   : > { %3900 = vmatmul.mubr.f32.gmra.mrb[102].mxu0 %v3427_v4  ;;  %v3303_v4 = vld [vmem:[%s7573_s28 + $0x78] sm:$0xff] }
 0x2a0   : > { %3904 = vmatprep.mubr.f32.mxu0 %v3437_v30  ;;  %5681 = vmatpush1.bf16.msra.mxu0 %v8622_v5  ;;  %v2511_v5 = vld [vmem:[%s7497_s24 + $0x500] sm:$0xff]  ;;  %v3313_v30 = vld [vmem:[%s7573_s28 + $0xc8] sm:$0xff] }
 0x2a1   : > { %3113 = vmatmul.mubr.f32.gmra.mrb[82].mxu1 %v2483_v40  ;;  %v3305_v40 = vld [vmem:[%s7573_s28 + $0x88] sm:$0xff] }
 0x2a2   : > { %3117 = vmatprep.mubr.f32.mxu1 %v2493_v20  ;;  %v3314_v20 = vld [vmem:[%s7573_s28 + $0xd0] sm:$0xff] }
 0x2a3   : > { %3905 = vmatmul.mubr.f32.gmra.mrb[104].mxu0 %v3436_v31  ;;  %v3312_v31 = vld [vmem:[%s7573_s28 + $0xc0] sm:$0xff] }
 0x2a4   : > { %3909 = vmatprep.mubr.f32.mxu0 %v3446_v16  ;;  %v3322_v16 = vld [vmem:[%s7573_s28 + $0x110] sm:$0xff] }
 0x2a5   : > { %3118 = vmatmul.mubr.f32.gmra.mrb[84].mxu1 %v2492_v46  ;;  %v3323_v46 = vld [vmem:[%s7573_s28 + $0x118] sm:$0xff] }
 0x2a6   : > { %3122 = vmatprep.mubr.f32.mxu1 %v2502_v9  ;;  %v3332_v9 = vld [vmem:[%s7573_s28 + $0x160] sm:$0xff] }
 0x2a7   : > { %3910 = vmatmul.mubr.f32.gmra.mrb[106].mxu0 %v3445_v11  ;;  %v3321_v11 = vld [vmem:[%s7573_s28 + $0x108] sm:$0xff] }
 0x2a8   : > { %3979 = vmatprep.mubr.f32.mxu0 %v3295_v48  ;;  %v3331_v48 = vld [vmem:[%s7573_s28 + $0x158] sm:$0xff] }
 0x2a9   : > { %3123 = vmatmul.mubr.f32.gmra.mrb[86].mxu1 %v2501_v36  ;;  %v3341_v36 = vld [vmem:[%s7573_s28 + $0x1a8] sm:$0xff] }
 0x2aa   : > { %3127 = vmatprep.mubr.f32.mxu1 %v2511_v5  ;;  %v3350_v5 = vld [vmem:[%s7573_s28 + $0x1f0] sm:$0xff] }
 0x2ab   : > { %3980 = vmatmul.mubr.f32.vlgmr.msra.gmra.mrb[72].mxu0 %v3294_v52  ;;  %v3330_v52 = vld [vmem:[%s7573_s28 + $0x150] sm:$0xff] }
 0x2ac   : > { %3984 = vmatprep.mubr.f32.mxu0 %v3304_v43  ;;  %v3340_v43 = vld [vmem:[%s7573_s28 + $0x1a0] sm:$0xff] }
 0x2ad   : > { %3128 = vmatmul.mubr.f32.gmra.mrb[88].mxu1 %v2510_v47  ;;  %v3359_v47 = vld [vmem:[%s7573_s28 + $0x238] sm:$0xff] }
 0x2ae   : > { %4791 = vmatprep.mubr.f32.mxu1 %v3296_v28  ;;  %v3368_v28 = vld [vmem:[%s7573_s28 + $0x280] sm:$0xff] }
 0x2af   : > { %3985 = vmatmul.mubr.f32.gmra.mrb[74].mxu0 %v3303_v4  ;;  %v3339_v4 = vld [vmem:[%s7573_s28 + $0x198] sm:$0xff] }
 0x2b0   : > { %3989 = vmatprep.mubr.f32.mxu0 %v3313_v30  ;;  %v3349_v30 = vld [vmem:[%s7573_s28 + $0x1e8] sm:$0xff] }
 0x2b1   : > { %4792 = vmatmul.mubr.f32.vlgmr.msra.gmra.mrb[90].mxu1 %v3305_v40  ;;  %v3377_v40 = vld [vmem:[%s7573_s28 + $0x2c8] sm:$0xff] }
 0x2b2   : > { %4794 = vmatprep.mubr.f32.mxu1 %v3314_v20  ;;  %v3386_v20 = vld [vmem:[%s7573_s28 + $0x310] sm:$0xff] }
 0x2b3   : > { %3990 = vmatmul.mubr.f32.gmra.mrb[76].mxu0 %v3312_v31  ;;  %v3348_v31 = vld [vmem:[%s7573_s28 + $0x1e0] sm:$0xff] }
 0x2b4   : > { %3994 = vmatprep.mubr.f32.mxu0 %v3322_v16  ;;  %v3358_v16 = vld [vmem:[%s7573_s28 + $0x230] sm:$0xff] }
 0x2b5   : > { %4795 = vmatmul.mubr.f32.gmra.mrb[92].mxu1 %v3323_v46  ;;  %v3395_v46 = vld [vmem:[%s7573_s28 + $0x358] sm:$0xff] }
 0x2b6   : > { %4797 = vmatprep.mubr.f32.mxu1 %v3332_v9  ;;  %v3404_v9 = vld [vmem:[%s7573_s28 + $0x3a0] sm:$0xff] }
 0x2b7   : > { %3995 = vmatmul.mubr.f32.gmra.mrb[78].mxu0 %v3321_v11  ;;  %v3357_v11 = vld [vmem:[%s7573_s28 + $0x228] sm:$0xff] }
 0x2b8   : > { %3999 = vmatprep.mubr.f32.mxu0 %v3331_v48  ;;  %v3367_v48 = vld [vmem:[%s7573_s28 + $0x278] sm:$0xff] }
 0x2b9   : > { %4798 = vmatmul.mubr.f32.gmra.mrb[94].mxu1 %v3341_v36  ;;  %v3413_v36 = vld [vmem:[%s7573_s28 + $0x3e8] sm:$0xff] }
 0x2ba   : > { %4800 = vmatprep.mubr.f32.mxu1 %v3350_v5  ;;  %v3422_v5 = vld [vmem:[%s7573_s28 + $0x430] sm:$0xff] }
 0x2bb   : > { %4000 = vmatmul.mubr.f32.gmra.mrb[80].mxu0 %v3330_v52  ;;  %v3366_v52 = vld [vmem:[%s7573_s28 + $0x270] sm:$0xff] }
 0x2bc   : > { %4004 = vmatprep.mubr.f32.mxu0 %v3340_v43  ;;  %v3376_v43 = vld [vmem:[%s7573_s28 + $0x2c0] sm:$0xff] }
 0x2bd   : > { %4801 = vmatmul.mubr.f32.gmra.mrb[96].mxu1 %v3359_v47  ;;  %v3431_v47 = vld [vmem:[%s7573_s28 + $0x478] sm:$0xff] }
 0x2be   : > { %4803 = vmatprep.mubr.f32.mxu1 %v3368_v28  ;;  %v3440_v28 = vld [vmem:[%s7573_s28 + $0x4c0] sm:$0xff] }
 0x2bf   : > { %4005 = vmatmul.mubr.f32.gmra.mrb[82].mxu0 %v3339_v4  ;;  %v3375_v4 = vld [vmem:[%s7573_s28 + $0x2b8] sm:$0xff] }
 0x2c0   : > { %4009 = vmatprep.mubr.f32.mxu0 %v3349_v30  ;;  %v3385_v30 = vld [vmem:[%s7573_s28 + $0x308] sm:$0xff] }
 0x2c1   : > { %4804 = vmatmul.mubr.f32.gmra.mrb[98].mxu1 %v3377_v40  ;;  %v3449_v40 = vld [vmem:[%s7573_s28 + $0x508] sm:$0xff] }
 0x2c2   : > { %4806 = vmatprep.mubr.f32.mxu1 %v3386_v20  ;;  %v3384_v20 = vld [vmem:[%s7573_s28 + $0x300] sm:$0xff] }
 0x2c3   : > { %4010 = vmatmul.mubr.f32.gmra.mrb[84].mxu0 %v3348_v31  ;;  %v3394_v31 = vld [vmem:[%s7573_s28 + $0x350] sm:$0xff] }
 0x2c4   : > { %4014 = vmatprep.mubr.f32.mxu0 %v3358_v16  ;;  %v3393_v16 = vld [vmem:[%s7573_s28 + $0x348] sm:$0xff] }
 0x2c5   : > { %4807 = vmatmul.mubr.f32.gmra.mrb[100].mxu1 %v3395_v46  ;;  %v3403_v46 = vld [vmem:[%s7573_s28 + $0x398] sm:$0xff] }
 0x2c6   : > { %4809 = vmatprep.mubr.f32.mxu1 %v3404_v9  ;;  %v3402_v9 = vld [vmem:[%s7573_s28 + $0x390] sm:$0xff] }
 0x2c7   : > { %4015 = vmatmul.mubr.f32.gmra.mrb[86].mxu0 %v3357_v11  ;;  %v3412_v11 = vld [vmem:[%s7573_s28 + $0x3e0] sm:$0xff] }
 0x2c8   : > { %4019 = vmatprep.mubr.f32.mxu0 %v3367_v48  ;;  %v3411_v48 = vld [vmem:[%s7573_s28 + $0x3d8] sm:$0xff] }
 0x2c9   : > { %4810 = vmatmul.mubr.f32.gmra.mrb[102].mxu1 %v3413_v36  ;;  %v3421_v36 = vld [vmem:[%s7573_s28 + $0x428] sm:$0xff] }
 0x2ca   : > { %4812 = vmatprep.mubr.f32.mxu1 %v3422_v5  ;;  %v3420_v5 = vld [vmem:[%s7573_s28 + $0x420] sm:$0xff] }
 0x2cb   : > { %4020 = vmatmul.mubr.f32.gmra.mrb[88].mxu0 %v3366_v52  ;;  %v3430_v52 = vld [vmem:[%s7573_s28 + $0x470] sm:$0xff] }
 0x2cc   : > { %4024 = vmatprep.mubr.f32.mxu0 %v3376_v43  ;;  %v3429_v43 = vld [vmem:[%s7573_s28 + $0x468] sm:$0xff] }
 0x2cd   : > { %4813 = vmatmul.mubr.f32.gmra.mrb[104].mxu1 %v3431_v47  ;;  %v3439_v47 = vld [vmem:[%s7573_s28 + $0x4b8] sm:$0xff] }
 0x2ce   : > { %4815 = vmatprep.mubr.f32.mxu1 %v3440_v28  ;;  %v3438_v28 = vld [vmem:[%s7573_s28 + $0x4b0] sm:$0xff] }
 0x2cf   : > { %4025 = vmatmul.mubr.f32.gmra.mrb[90].mxu0 %v3375_v4  ;;  %v3448_v4 = vld [vmem:[%s7573_s28 + $0x500] sm:$0xff] }
 0x2d0   : > { %4029 = vmatprep.mubr.f32.mxu0 %v3385_v30  ;;  %v3447_v30 = vld [vmem:[%s7573_s28 + $0x4f8] sm:$0xff] }
 0x2d1   : > { %4816 = vmatmul.mubr.f32.gmra.mrb[106].mxu1 %v3449_v40 }
 0x2d3   : > { %4030 = vmatmul.mubr.f32.gmra.mrb[92].mxu0 %v3384_v20 }
 0x2d4   : > { %4034 = vmatprep.mubr.f32.mxu0 %v3394_v31 }
 0x2d7   : > { %4035 = vmatmul.mubr.f32.gmra.mrb[94].mxu0 %v3393_v16 }
 0x2d8   : > { %4039 = vmatprep.mubr.f32.mxu0 %v3403_v46 }
 0x2db   : > { %4040 = vmatmul.mubr.f32.gmra.mrb[96].mxu0 %v3402_v9 }
 0x2dc   : > { %4044 = vmatprep.mubr.f32.mxu0 %v3412_v11 }
 0x2df   : > { %4045 = vmatmul.mubr.f32.gmra.mrb[98].mxu0 %v3411_v48 }
 0x2e0   : > { %4049 = vmatprep.mubr.f32.mxu0 %v3421_v36 }
 0x2e3   : > { %4050 = vmatmul.mubr.f32.gmra.mrb[100].mxu0 %v3420_v5 }
 0x2e4   : > { %4054 = vmatprep.mubr.f32.mxu0 %v3430_v52 }
 0x2e7   : > { %4055 = vmatmul.mubr.f32.gmra.mrb[102].mxu0 %v3429_v43 }
 0x2e8   : > { %4059 = vmatprep.mubr.f32.mxu0 %v3439_v47 }
 0x2eb   : > { %4060 = vmatmul.mubr.f32.gmra.mrb[104].mxu0 %v3438_v28 }
 0x2ec   : > { %4064 = vmatprep.mubr.f32.mxu0 %v3448_v4 }
 0x2ef   : > { %4065 = vmatmul.mubr.f32.gmra.mrb[106].mxu0 %v3447_v30 }
 0x33c   : > { %v3044_v40 = vpop.f32.mrb[54].mxu1 }
 0x33d   : > { %v8275_v20 = vadd.f32 %v8077_v56, %v3044_v40  ;;  %v3046_v31 = vpop.f32.mrb[55].mxu1 }
 0x340   : > { %v3049_v16 = vpop.f32.mrb[56].mxu1 }
 0x341   : > { %v8278_v46 = vadd.f32 %v8074_v29, %v3049_v16  ;;  %v3051_v9 = vpop.f32.mrb[57].mxu1 }
 0x344   : > { %v3054_v11 = vpop.f32.mrb[58].mxu1 }
 0x345   : > { %v8281_v48 = vadd.f32 %v8089_v41, %v3054_v11  ;;  %v3056_v36 = vpop.f32.mrb[59].mxu1 }
 0x348   : > { %v3059_v5 = vpop.f32.mrb[60].mxu1 }
 0x349   : > { %v8284_v52 = vadd.f32 %v8085_v58, %v3059_v5  ;;  %v3061_v43 = vpop.f32.mrb[61].mxu1 }
 0x34c   : > { %v3064_v47 = vpop.f32.mrb[62].mxu1 }
 0x34d   : > { %v8287_v56 = vadd.f32 %v8101_v27, %v3064_v47  ;;  %v3066_v28 = vpop.f32.mrb[63].mxu1 }
 0x350   : > { %v3069_v4 = vpop.f32.mrb[64].mxu1 }
 0x351   : > { %v8290_v29 = vadd.f32 %v8097_v39, %v3069_v4  ;;  %v3071_v30 = vpop.f32.mrb[65].mxu1 }
 0x354   : > { %v3074_v40 = vpop.f32.mrb[66].mxu1 }
 0x355   : > { %v8293_v41 = vadd.f32 %v8113_v19, %v3074_v40  ;;  %v3076_v31 = vpop.f32.mrb[67].mxu1 }
 0x358   : > { %v3079_v16 = vpop.f32.mrb[68].mxu1 }
 0x359   : > { %v8296_v58 = vadd.f32 %v8109_v32, %v3079_v16  ;;  %v3081_v9 = vpop.f32.mrb[69].mxu1 }
 0x35c   : > { %v3084_v11 = vpop.f32.mrb[70].mxu1 }
 0x35d   : > { %v8299_v27 = vadd.f32 %v8125_v10, %v3084_v11  ;;  %v3086_v36 = vpop.f32.mrb[71].mxu1 }
 0x360   : > { %v3089_v5 = vpop.f32.mrb[72].mxu1 }
 0x361   : > { %v8302_v39 = vadd.f32 %v8121_v8, %v3089_v5  ;;  %v3091_v43 = vpop.f32.mrb[73].mxu1 }
 0x364   : > { %v3094_v47 = vpop.f32.mrb[74].mxu1 }
 0x365   : > { %v8305_v19 = vadd.f32 %v8137_v62, %v3094_v47  ;;  %v3096_v28 = vpop.f32.mrb[75].mxu1 }
 0x368   : > { %v3099_v4 = vpop.f32.mrb[76].mxu1 }
 0x369   : > { %v8308_v32 = vadd.f32 %v8133_v12, %v3099_v4  ;;  %v3101_v30 = vpop.f32.mrb[77].mxu1 }
 0x36c   : > { %v3104_v40 = vpop.f32.mrb[78].mxu1 }
 0x36d   : > { %v8311_v10 = vadd.f32 %v8149_v0, %v3104_v40  ;;  %v3106_v31 = vpop.f32.mrb[79].mxu1 }
 0x370   : > { %v3109_v16 = vpop.f32.mrb[80].mxu1 }
 0x371   : > { %v8314_v8 = vadd.f32 %v8145_v1, %v3109_v16  ;;  %v3111_v9 = vpop.f32.mrb[81].mxu1 }
 0x374   : > { %v3114_v11 = vpop.f32.mrb[82].mxu1 }
 0x375   : > { %v8317_v62 = vadd.f32 %v8161_v25, %v3114_v11  ;;  %v3116_v36 = vpop.f32.mrb[83].mxu1 }
 0x378   : > { %v3119_v5 = vpop.f32.mrb[84].mxu1 }
 0x379   : > { %v8320_v12 = vadd.f32 %v8157_v17, %v3119_v5  ;;  %v3121_v43 = vpop.f32.mrb[85].mxu1 }
 0x37c   : > { %v3124_v47 = vpop.f32.mrb[86].mxu1 }
 0x37d   : > { %v8323_v0 = vadd.f32 %v8173_v55, %v3124_v47  ;;  %v3126_v28 = vpop.f32.mrb[87].mxu1  ;;  %v8332_v47 = vld [vmem:[%s8476_s5] ss:$0 sm:$0xff] }
 0x37e   : > { %v3981_v4 = vpop.f32.mrb[72].mxu0 }
 0x37f   : > { %v3983_v30 = vpop.f32.mrb[73].mxu0 }
 0x380   : > { %v3129_v1 = vpop.f32.mrb[88].mxu1  ;;  %v8629_v30 = vmax.f32 %v7721_v21, %v7920_v60 }
 0x381   : > { %v8326_v40 = vadd.f32 %v8169_v23, %v3129_v1  ;;  %v3131_v25 = vpop.f32.mrb[89].mxu1 }
 0x382   : > { %v3986_v31 = vpop.f32.mrb[74].mxu0 }
 0x383   : > { %v3988_v16 = vpop.f32.mrb[75].mxu0 }
 0x384   : > { %v4793_v9 = vpop.f32.mrb[90].mxu1 }
 0x385   : > { %v4142_v11 = vadd.f32 %v4793_v9, %v3986_v31  ;;  %v4136_v17 = vpop.f32.mrb[91].mxu1 }
 0x386   : > { %v4137_v36 = vadd.f32 %v4136_v17, %v3981_v4  ;;  %v3991_v5 = vpop.f32.mrb[76].mxu0  ;;  %v8630_v4 = vld [vmem:[#allocation7_spill] sm:$0xff] }
 0x387   : > { %v4244_v43 = vmax.f32 %v8278_v46, %v4142_v11  ;;  %v3993_v55 = vpop.f32.mrb[77].mxu0  ;;  %v8631_v31 = vmax.f32 %v7710_v57, %v8630_v4 }
 0x388   : > { %v4243_v28 = vmax.f32 %v8275_v20, %v4137_v36  ;;  %v4796_v23 = vpop.f32.mrb[92].mxu1 }
 0x389   : > { %v4262_v1 = vmax.f32 %v8629_v30, %v4244_v43  ;;  %v4146_v25 = vpop.f32.mrb[93].mxu1 }
 0x38a   : > { %v4261_v16 = vmax.f32 %v8631_v31, %v4243_v28  ;;  %v4147_v46 = vadd.f32 %v4146_v25, %v3991_v5  ;;  %v3996_v9 = vpop.f32.mrb[78].mxu0  ;;  %v8632_v28 = vmax.f32 %v7732_v18, %v7947_v2 }
 0x38b   : > { %v4287_v11 = vadd.f32 %v8332_v47, %v4262_v1  ;;  %v4152_v17 = vadd.f32 %v4796_v23, %v3996_v9  ;;  %v3998_v55 = vpop.f32.mrb[79].mxu0  ;;  %v8633_v1 = vmax.f32 %v7743_v24, %v7940_v35  ;;  %v8634_v24 = vmax.f32 %v7754_v14, %v7967_v15 }
 0x38c   : > { %v4286_v21 = vadd.f32 %v8332_v47, %v4261_v16  ;;  %v4245_v60 = vmax.f32 %v8281_v48, %v4147_v46  ;;  %v4799_v57 = vpop.f32.mrb[94].mxu1  ;;  %v8635_v14 = vmax.f32 %v7765_v33, %v7960_v50 }
 0x38d   : > { %v4305_v20 = vmax.f32 %v4287_v11, 0.0  ;;  %v4246_v36 = vmax.f32 %v8284_v52, %v4152_v17  ;;  %v4156_v5 = vpop.f32.mrb[95].mxu1 }
 0x38e   : > { %v4304_v43 = vmax.f32 %v4286_v21, 0.0  ;;  %v4263_v23 = vmax.f32 %v8632_v28, %v4245_v60  ;;  %v4001_v30 = vpop.f32.mrb[80].mxu0 }
 0x38f   : > { %4324 = vst.msk [vmem:[%s8346_s10 + $0x8] sm:$0xff] %vm4322_vm0, %v4305_v20  ;;  %v4264_v25 = vmax.f32 %v8633_v1, %v4246_v36  ;;  %v4157_v4 = vadd.f32 %v4156_v5, %v4001_v30  ;;  %v4003_v48 = vpop.f32.mrb[81].mxu0 }
 0x390   : > { %4323 = vst.msk [vmem:[%s8346_s10] sm:$0xff] %vm4322_vm0, %v4304_v43  ;;  %v4288_v52 = vadd.f32 %v8332_v47, %v4263_v23  ;;  %v4802_v31 = vpop.f32.mrb[96].mxu1 }
 0x391   : > { %v4289_v16 = vadd.f32 %v8332_v47, %v4264_v25  ;;  %v4247_v18 = vmax.f32 %v8287_v56, %v4157_v4  ;;  %v4166_v2 = vpop.f32.mrb[97].mxu1  ;;  %v8636_v4 = vmax.f32 %v7776_v53, %v7985_v54 }
 0x392   : > { %v4306_v46 = vmax.f32 %v4288_v52, 0.0  ;;  %v4006_v9 = vpop.f32.mrb[82].mxu0 }
 0x393   : > { %v4307_v11 = vmax.f32 %v4289_v16, 0.0  ;;  %v4265_v35 = vmax.f32 %v8634_v24, %v4247_v18  ;;  %v4162_v17 = vadd.f32 %v4799_v57, %v4006_v9  ;;  %v4008_v55 = vpop.f32.mrb[83].mxu0  ;;  %v8637_v9 = vmax.f32 %v7785_v7, %v7980_v63 }
 0x394   : > { %4325 = vst.msk [vmem:[%s8346_s10 + $0x10] sm:$0xff] %vm4322_vm0, %v4306_v46  ;;  %v4805_v21 = vpop.f32.mrb[98].mxu1 }
 0x395   : > { %4326 = vst.msk [vmem:[%s8346_s10 + $0x18] sm:$0xff] %vm4322_vm0, %v4307_v11  ;;  %v4290_v60 = vadd.f32 %v8332_v47, %v4265_v35  ;;  %v4248_v56 = vmax.f32 %v8290_v29, %v4162_v17  ;;  %v4176_v20 = vpop.f32.mrb[99].mxu1 }
 0x396   : > { %v4011_v36 = vpop.f32.mrb[84].mxu0 }
 0x397   : > { %v4308_v5 = vmax.f32 %v4290_v60, 0.0  ;;  %v4266_v15 = vmax.f32 %v8635_v14, %v4248_v56  ;;  %v4167_v43 = vadd.f32 %v4166_v2, %v4011_v36  ;;  %v4013_v57 = vpop.f32.mrb[85].mxu0  ;;  %v8638_v60 = vmax.f32 %v7793_v45, %v8003_v44 }
 0x398   : > { %v4808_v28 = vpop.f32.mrb[100].mxu1 }
 0x399   : > { %4327 = vst.msk [vmem:[%s8346_s10 + $0x20] sm:$0xff] %vm4322_vm0, %v4308_v5  ;;  %v4291_v23 = vadd.f32 %v8332_v47, %v4266_v15  ;;  %v4249_v30 = vmax.f32 %v8293_v41, %v4167_v43  ;;  %v4186_v1 = vpop.f32.mrb[101].mxu1  ;;  %v8639_v43 = vmax.f32 %v7804_v42, %v7998_v38 }
 0x39a   : > { %v4016_v25 = vpop.f32.mrb[86].mxu0 }
 0x39b   : > { %v4309_v29 = vmax.f32 %v4291_v23, 0.0  ;;  %v4267_v48 = vmax.f32 %v8636_v4, %v4249_v30  ;;  %v4172_v52 = vadd.f32 %v4802_v31, %v4016_v25  ;;  %v4018_v33 = vpop.f32.mrb[87].mxu0 }
 0x39c   : > { %v4811_v50 = vpop.f32.mrb[102].mxu1  ;;  %v8641_v33 = vld [vmem:[#allocation5_spill] sm:$0xff] }
 0x39d   : > { %4328 = vst.msk [vmem:[%s8346_s10 + $0x28] sm:$0xff] %vm4322_vm0, %v4309_v29  ;;  %v4292_v16 = vadd.f32 %v8332_v47, %v4267_v48  ;;  %v4250_v18 = vmax.f32 %v8296_v58, %v4172_v52  ;;  %v4196_v2 = vpop.f32.mrb[103].mxu1 }
 0x39e   : > { %v4021_v46 = vpop.f32.mrb[88].mxu0 }
 0x39f   : > { %v4310_v41 = vmax.f32 %v4292_v16, 0.0  ;;  %v4268_v11 = vmax.f32 %v8637_v9, %v4250_v18  ;;  %v4177_v24 = vadd.f32 %v4176_v20, %v4021_v46  ;;  %v4023_v53 = vpop.f32.mrb[89].mxu0  ;;  %v8642_v16 = vld [vmem:[#allocation8_spill] sm:$0xff] }
 0x3a0   : > { %v4814_v54 = vpop.f32.mrb[104].mxu1 }
 0x3a1   : > { %4329 = vst.msk [vmem:[%s8346_s10 + $0x30] sm:$0xff] %vm4322_vm0, %v4310_v41  ;;  %v4293_v31 = vadd.f32 %v8332_v47, %v4268_v11  ;;  %v4251_v35 = vmax.f32 %v8299_v27, %v4177_v24  ;;  %v4206_v17 = vpop.f32.mrb[105].mxu1 }
 0x3a2   : > { %v4026_v58 = vpop.f32.mrb[90].mxu0 }
 0x3a3   : > { %v4311_v55 = vmax.f32 %v4293_v31, 0.0  ;;  %v4269_v56 = vmax.f32 %v8638_v60, %v4251_v35  ;;  %v4182_v36 = vadd.f32 %v4805_v21, %v4026_v58  ;;  %v4028_v7 = vpop.f32.mrb[91].mxu0  ;;  %v8646_v60 = vld [vmem:[#allocation9_spill] sm:$0xff] }
 0x3a4   : > { %v8397_v63 = vpop.f32.mrb[106].mxu1 }
 0x3a5   : > { %4330 = vst.msk [vmem:[%s8346_s10 + $0x38] sm:$0xff] %vm4322_vm0, %v4311_v55  ;;  %v4294_v20 = vadd.f32 %v8332_v47, %v4269_v56  ;;  %v4252_v5 = vmax.f32 %v8302_v39, %v4182_v36  ;;  %v4216_v27 = vpop.f32.mrb[107].mxu1  ;;  %v8640_v39 = vmax.f32 %v7816_v34, %v8021_v61  ;;  %v8645_v55 = vld [vmem:[#allocation6_spill] sm:$0xff] }
 0x3a6   : > { %v4031_v14 = vpop.f32.mrb[92].mxu0 }
 0x3a7   : > { %v4312_v15 = vmax.f32 %v4294_v20, 0.0  ;;  %v4270_v57 = vmax.f32 %v8639_v43, %v4252_v5  ;;  %v4187_v45 = vadd.f32 %v4186_v1, %v4031_v14  ;;  %v4033_v44 = vpop.f32.mrb[93].mxu0 }
 0x3a9   : > { %4331 = vst.msk [vmem:[%s8346_s10 + $0x40] sm:$0xff] %vm4322_vm0, %v4312_v15  ;;  %v4295_v21 = vadd.f32 %v8332_v47, %v4270_v57  ;;  %v4253_v23 = vmax.f32 %v8305_v19, %v4187_v45  ;;  %v8643_v19 = vmax.f32 %v8641_v33, %v8642_v16 }
 0x3aa   : > { %v4036_v30 = vpop.f32.mrb[94].mxu0 }
 0x3ab   : > { %v4313_v25 = vmax.f32 %v4295_v21, 0.0  ;;  %v4271_v29 = vmax.f32 %v8640_v39, %v4253_v23  ;;  %v4192_v4 = vadd.f32 %v4808_v28, %v4036_v30  ;;  %v4038_v48 = vpop.f32.mrb[95].mxu0 }
 0x3ad   : > { %4332 = vst.msk [vmem:[%s8346_s10 + $0x48] sm:$0xff] %vm4322_vm0, %v4313_v25  ;;  %v4296_v42 = vadd.f32 %v8332_v47, %v4271_v29  ;;  %v4254_v38 = vmax.f32 %v8308_v32, %v4192_v4  ;;  %v8644_v32 = vmax.f32 %v7842_v3, %v8038_v37  ;;  %v8651_v4 = vld [vmem:[#allocation10_spill] sm:$0xff] }
 0x3ae   : > { %v4041_v1 = vpop.f32.mrb[96].mxu0  ;;  %v8652_v48 = vmax.f32 %v7907_v51, %v8651_v4 }
 0x3af   : > { %v4314_v52 = vmax.f32 %v4296_v42, 0.0  ;;  %v4272_v18 = vmax.f32 %v8643_v19, %v4254_v38  ;;  %v4197_v46 = vadd.f32 %v4196_v2, %v4041_v1  ;;  %v4043_v41 = vpop.f32.mrb[97].mxu0 }
 0x3b1   : > { %4333 = vst.msk [vmem:[%s8346_s10 + $0x50] sm:$0xff] %vm4322_vm0, %v4314_v52  ;;  %v4297_v34 = vadd.f32 %v8332_v47, %v4272_v18  ;;  %v4255_v61 = vmax.f32 %v8311_v10, %v4197_v46  ;;  %v8647_v10 = vmax.f32 %v8645_v55, %v8646_v60 }
 0x3b2   : > { %v4046_v28 = vpop.f32.mrb[98].mxu0 }
 0x3b3   : > { %v4315_v9 = vmax.f32 %v4297_v34, 0.0  ;;  %v4273_v11 = vmax.f32 %v8644_v32, %v4255_v61  ;;  %v4202_v24 = vadd.f32 %v4811_v50, %v4046_v28  ;;  %v4048_v53 = vpop.f32.mrb[99].mxu0 }
 0x3b5   : > { %4334 = vst.msk [vmem:[%s8346_s10 + $0x58] sm:$0xff] %vm4322_vm0, %v4315_v9  ;;  %v4298_v2 = vadd.f32 %v8332_v47, %v4273_v11  ;;  %v4256_v31 = vmax.f32 %v8314_v8, %v4202_v24  ;;  %v8648_v8 = vmax.f32 %v7868_v59, %v8052_v22 }
 0x3b6   : > { %v4051_v35 = vpop.f32.mrb[100].mxu0 }
 0x3b7   : > { %v4316_v58 = vmax.f32 %v4298_v2, 0.0  ;;  %v4274_v56 = vmax.f32 %v8647_v10, %v4256_v31  ;;  %v4207_v36 = vadd.f32 %v4206_v17, %v4051_v35  ;;  %v4053_v7 = vpop.f32.mrb[101].mxu0 }
 0x3b9   : > { %4335 = vst.msk [vmem:[%s8346_s10 + $0x60] sm:$0xff] %vm4322_vm0, %v4316_v58  ;;  %v4299_v3 = vadd.f32 %v8332_v47, %v4274_v56  ;;  %v4257_v37 = vmax.f32 %v8317_v62, %v4207_v36  ;;  %v8649_v62 = vmax.f32 %v7881_v49, %v8048_v13 }
 0x3ba   : > { %v4056_v50 = vpop.f32.mrb[102].mxu0 }
 0x3bb   : > { %v4317_v20 = vmax.f32 %v4299_v3, 0.0  ;;  %v4275_v5 = vmax.f32 %v8648_v8, %v4257_v37  ;;  %v4212_v14 = vadd.f32 %v4814_v54, %v4056_v50  ;;  %v4058_v15 = vpop.f32.mrb[103].mxu0 }
 0x3bd   : > { %4336 = vst.msk [vmem:[%s8346_s10 + $0x68] sm:$0xff] %vm4322_vm0, %v4317_v20  ;;  %v4300_v17 = vadd.f32 %v8332_v47, %v4275_v5  ;;  %v4258_v43 = vmax.f32 %v8320_v12, %v4212_v14  ;;  %v8650_v12 = vmax.f32 %v7894_v6, %v8064_v26 }
 0x3be   : > { %v4061_v57 = vpop.f32.mrb[104].mxu0 }
 0x3bf   : > { %v4318_v45 = vmax.f32 %v4300_v17, 0.0  ;;  %v4276_v44 = vmax.f32 %v8649_v62, %v4258_v43  ;;  %v4217_v21 = vadd.f32 %v4216_v27, %v4061_v57  ;;  %v4063_v23 = vpop.f32.mrb[105].mxu0 }
 0x3c1   : > { %4337 = vst.msk [vmem:[%s8346_s10 + $0x70] sm:$0xff] %vm4322_vm0, %v4318_v45  ;;  %v4301_v59 = vadd.f32 %v8332_v47, %v4276_v44  ;;  %v4259_v22 = vmax.f32 %v8323_v0, %v4217_v21 }
 0x3c2   : > { %v4066_v54 = vpop.f32.mrb[106].mxu0 }
 0x3c3   : > { %v4319_v30 = vmax.f32 %v4301_v59, 0.0  ;;  %v4277_v25 = vmax.f32 %v8650_v12, %v4259_v22  ;;  %v4222_v39 = vadd.f32 %v8397_v63, %v4066_v54  ;;  %v4068_v49 = vpop.f32.mrb[107].mxu0 }
 0x3c5   : > { %4338 = vst.msk [vmem:[%s8346_s10 + $0x78] sm:$0xff] %vm4322_vm0, %v4319_v30  ;;  %v4302_v13 = vadd.f32 %v8332_v47, %v4277_v25  ;;  %v4260_v27 = vmax.f32 %v8326_v40, %v4222_v39 }
 0x3c7   : > { %v4320_v29 = vmax.f32 %v4302_v13, 0.0  ;;  %v4278_v0 = vmax.f32 %v8652_v48, %v4260_v27 }
 0x3c9   : > { %4339 = vst.msk [vmem:[%s8346_s10 + $0x80] sm:$0xff] %vm4322_vm0, %v4320_v29  ;;  %v4303_v42 = vadd.f32 %v8332_v47, %v4278_v0 }
 0x3cb   : > { %v4321_v6 = vmax.f32 %v4303_v42, 0.0 }
 0x3cd   : > { %4340 = vst.msk [vmem:[%s8346_s10 + $0x88] sm:$0xff] %vm4322_vm0, %v4321_v6 }
 0x3ce PF: > { %s16_s21 = sadd.s32 1, %s6162_s21  }
 0x3cf   : > { %p13_p4 = scmp.ge.s32.totalorder %s16_s21, 4  }
 0x3d1   :  { %15 = sbr.rel (!%p13_p4) target bundleno = 1 (0x1), region = 83 }

// kernel: captcha_forward.5
= control target key start
LH: loop header
LB: loop body
LE: loop exit
PB: predicated region body
PF: predicated region fallthrough
CT: control target
= control target key end

     0   :  { %s6011_s0 = inlined_call_operand.vmem [shape: f32[16,1152], index: 0, kind: input, shape index: {}]   ;;  %s6012_s1 = inlined_call_operand.vmem [shape: f32[1152,64], index: 1, kind: input, shape index: {}]   ;;  %s6013_s2 = inlined_call_operand.vmem [shape: f32[1,64], index: 2, kind: input, shape index: {}]   ;;  %s6014_s3 = inlined_call_operand.vmem [shape: f32[64,192], index: 3, kind: input, shape index: {}]   ;;  %s6015_s4 = inlined_call_operand.vmem [shape: f32[1,192], index: 4, kind: input, shape index: {}]   ;;  %s6016_s5 = inlined_call_operand.vmem [shape: f32[64,192], index: 5, kind: input, shape index: {}]   ;;  %s6017_s6 = inlined_call_operand.vmem [shape: f32[1,192], index: 6, kind: input, shape index: {}]   ;;  %s6018_s7 = inlined_call_operand.vmem [shape: f32[64,192], index: 7, kind: input, shape index: {}]   ;;  %s6019_s8 = inlined_call_operand.vmem [shape: f32[1,192], index: 8, kind: input, shape index: {}]   ;;  %s6020_s9 = inlined_call_operand.vmem [shape: f32[64,192], index: 9, kind: input, shape index: {}]   ;;  %s6021_s10 = inlined_call_operand.vmem [shape: f32[1,192], index: 10, kind: input, shape index: {}]   ;;  %s6022_s11 = inlined_call_operand.vmem [shape: f32[64,128], index: 11, kind: input, shape index: {}]   ;;  %s6023_s12 = inlined_call_operand.vmem [shape: f32[1,128], index: 12, kind: input, shape index: {}]   ;;  %s6024_s13 = inlined_call_operand.hbm [shape: f32[16,128], index: 13, kind: output, shape index: {}]  }
   0x1   :  { %v79_v0 = vld [vmem:[%s6012_s1 + $0x80] sm:$0xff]  ;;  %v80_v1 = vld [vmem:[%s6012_s1 + $0x88] sm:$0xff]  ;;  %v81_v11 = vld [vmem:[%s6012_s1 + $0x90] sm:$0xff] }
   0x2   :  { %v63_v2 = vld [vmem:[%s6012_s1] sm:$0xff]  ;;  %v3747_v3 = vpack.c.bf16 %v80_v1, %v79_v0  ;;  %v64_v4 = vld [vmem:[%s6012_s1 + $0x8] sm:$0xff]  ;;  %v82_v13 = vld [vmem:[%s6012_s1 + $0x98] sm:$0xff] }
   0x3   :  { %v111_v5 = vld [vmem:[%s6012_s1 + $0x180] sm:$0xff]  ;;  %v112_v6 = vld [vmem:[%s6012_s1 + $0x188] sm:$0xff]  ;;  %v3749_v7 = vpack.c.bf16 %v64_v4, %v63_v2  ;;  %v65_v14 = vld [vmem:[%s6012_s1 + $0x10] sm:$0xff]  ;;  %v3751_v16 = vpack.c.bf16 %v82_v13, %v81_v11 }
   0x4   :  { %v3779_v8 = vpack.c.bf16 %v112_v6, %v111_v5  ;;  %v95_v9 = vld [vmem:[%s6012_s1 + $0x100] sm:$0xff]  ;;  %v96_v10 = vld [vmem:[%s6012_s1 + $0x108] sm:$0xff]  ;;  %3748 = vmatprep.subr.bf16.mxu0 %v3747_v3  ;;  %v66_v15 = vld [vmem:[%s6012_s1 + $0x18] sm:$0xff] }
   0x5   :  { %v3781_v12 = vpack.c.bf16 %v96_v10, %v95_v9  ;;  %3750 = vmatpush3.bf16.msra.mxu0 %v3749_v7  ;;  %v3753_v17 = vpack.c.bf16 %v66_v15, %v65_v14  ;;  %v113_v18 = vld [vmem:[%s6012_s1 + $0x190] sm:$0xff]  ;;  %v114_v19 = vld [vmem:[%s6012_s1 + $0x198] sm:$0xff]  ;;  %v83_v23 = vld [vmem:[%s6012_s1 + $0xa0] sm:$0xff] }
   0x6   :  { %3780 = vmatprep.subr.bf16.mxu1 %v3779_v8  ;;  %v97_v20 = vld [vmem:[%s6012_s1 + $0x110] sm:$0xff]  ;;  %v3783_v21 = vpack.c.bf16 %v114_v19, %v113_v18  ;;  %v98_v22 = vld [vmem:[%s6012_s1 + $0x118] sm:$0xff]  ;;  %v84_v24 = vld [vmem:[%s6012_s1 + $0xa8] sm:$0xff]  ;;  %3752 = vmatprep.subr.bf16.mxu0 %v3751_v16 }
   0x7   :  { %3782 = vmatpush3.bf16.msra.mxu1 %v3781_v12  ;;  %v3785_v25 = vpack.c.bf16 %v98_v22, %v97_v20  ;;  %v3755_v26 = vpack.c.bf16 %v84_v24, %v83_v23  ;;  %v67_v27 = vld [vmem:[%s6012_s1 + $0x20] sm:$0xff]  ;;  %v68_v28 = vld [vmem:[%s6012_s1 + $0x28] sm:$0xff]  ;;  %v85_v35 = vld [vmem:[%s6012_s1 + $0xb0] sm:$0xff] }
   0x8   :  { %v115_v29 = vld [vmem:[%s6012_s1 + $0x1a0] sm:$0xff]  ;;  %3784 = vmatprep.subr.bf16.mxu1 %v3783_v21  ;;  %v116_v30 = vld [vmem:[%s6012_s1 + $0x1a8] sm:$0xff]  ;;  %v3757_v33 = vpack.c.bf16 %v68_v28, %v67_v27  ;;  %v86_v36 = vld [vmem:[%s6012_s1 + $0xb8] sm:$0xff] }
   0x9   :  { %v99_v31 = vld [vmem:[%s6012_s1 + $0x120] sm:$0xff]  ;;  %v100_v32 = vld [vmem:[%s6012_s1 + $0x128] sm:$0xff]  ;;  %3754 = vmatpush3.bf16.msra.mxu0 %v3753_v17  ;;  %v3787_v34 = vpack.c.bf16 %v116_v30, %v115_v29  ;;  %v69_v37 = vld [vmem:[%s6012_s1 + $0x30] sm:$0xff]  ;;  %v3759_v39 = vpack.c.bf16 %v86_v36, %v85_v35 }
   0xa   :  { %3756 = vmatprep.subr.bf16.mxu0 %v3755_v26  ;;  %v3789_v38 = vpack.c.bf16 %v100_v32, %v99_v31  ;;  %v70_v40 = vld [vmem:[%s6012_s1 + $0x38] sm:$0xff]  ;;  %v117_v41 = vld [vmem:[%s6012_s1 + $0x1b0] sm:$0xff]  ;;  %v87_v46 = vld [vmem:[%s6012_s1 + $0xc0] sm:$0xff] }
   0xb   :  { %3786 = vmatpush3.bf16.msra.mxu1 %v3785_v25  ;;  %v118_v42 = vld [vmem:[%s6012_s1 + $0x1b8] sm:$0xff]  ;;  %v101_v44 = vld [vmem:[%s6012_s1 + $0x130] sm:$0xff]  ;;  %v88_v47 = vld [vmem:[%s6012_s1 + $0xc8] sm:$0xff]  ;;  %v3761_v48 = vpack.c.bf16 %v70_v40, %v69_v37 }
   0xc   :  { %3788 = vmatprep.subr.bf16.mxu1 %v3787_v34  ;;  %v3791_v43 = vpack.c.bf16 %v118_v42, %v117_v41  ;;  %v102_v45 = vld [vmem:[%s6012_s1 + $0x138] sm:$0xff]  ;;  %v119_v49 = vld [vmem:[%s6012_s1 + $0x1c0] sm:$0xff]  ;;  %v120_v50 = vld [vmem:[%s6012_s1 + $0x1c8] sm:$0xff]  ;;  %v3763_v52 = vpack.c.bf16 %v88_v47, %v87_v46 }
   0xd   :  { %3758 = vmatpush3.bf16.msra.mxu0 %v3757_v33  ;;  %v3793_v51 = vpack.c.bf16 %v102_v45, %v101_v44  ;;  %v71_v53 = vld [vmem:[%s6012_s1 + $0x40] sm:$0xff]  ;;  %v72_v54 = vld [vmem:[%s6012_s1 + $0x48] sm:$0xff]  ;;  %v3795_v56 = vpack.c.bf16 %v120_v50, %v119_v49  ;;  %v89_v58 = vld [vmem:[%s6012_s1 + $0xd0] sm:$0xff] }
   0xe   :  { %3760 = vmatprep.subr.bf16.mxu0 %v3759_v39  ;;  %v103_v55 = vld [vmem:[%s6012_s1 + $0x140] sm:$0xff]  ;;  %v104_v57 = vld [vmem:[%s6012_s1 + $0x148] sm:$0xff]  ;;  %v90_v59 = vld [vmem:[%s6012_s1 + $0xd8] sm:$0xff]  ;;  %v3765_v62 = vpack.c.bf16 %v72_v54, %v71_v53 }
   0xf   :  { %3790 = vmatpush3.bf16.msra.mxu1 %v3789_v38  ;;  %v121_v60 = vld [vmem:[%s6012_s1 + $0x1d0] sm:$0xff]  ;;  %v122_v61 = vld [vmem:[%s6012_s1 + $0x1d8] sm:$0xff]  ;;  %v3797_v63 = vpack.c.bf16 %v104_v57, %v103_v55  ;;  %v3767_v0 = vpack.c.bf16 %v90_v59, %v89_v58  ;;  %v91_v6 = vld [vmem:[%s6012_s1 + $0xe0] sm:$0xff] }
  0x10   :  { %3792 = vmatprep.subr.bf16.mxu1 %v3791_v43  ;;  %v73_v1 = vld [vmem:[%s6012_s1 + $0x50] sm:$0xff]  ;;  %v74_v2 = vld [vmem:[%s6012_s1 + $0x58] sm:$0xff]  ;;  %v3799_v4 = vpack.c.bf16 %v122_v61, %v121_v60  ;;  %v92_v7 = vld [vmem:[%s6012_s1 + $0xe8] sm:$0xff] }
  0x11   :  { %3762 = vmatpush3.bf16.msra.mxu0 %v3761_v48  ;;  %v105_v3 = vld [vmem:[%s6012_s1 + $0x150] sm:$0xff]  ;;  %v106_v5 = vld [vmem:[%s6012_s1 + $0x158] sm:$0xff]  ;;  %v123_v8 = vld [vmem:[%s6012_s1 + $0x1e0] sm:$0xff]  ;;  %v3769_v10 = vpack.c.bf16 %v74_v2, %v73_v1  ;;  %v3771_v14 = vpack.c.bf16 %v92_v7, %v91_v6 }
  0x12   :  { %3764 = vmatprep.subr.bf16.mxu0 %v3763_v52  ;;  %v124_v9 = vld [vmem:[%s6012_s1 + $0x1e8] sm:$0xff]  ;;  %v75_v11 = vld [vmem:[%s6012_s1 + $0x60] sm:$0xff]  ;;  %v3801_v13 = vpack.c.bf16 %v106_v5, %v105_v3  ;;  %v93_v19 = vld [vmem:[%s6012_s1 + $0xf0] sm:$0xff] }
  0x13   :  { %3794 = vmatpush3.bf16.msra.mxu1 %v3793_v51  ;;  %v46_v12 = vld [vmem:[%s6011_s0 + $0x8] sm:$0xff]  ;;  %v107_v16 = vld [vmem:[%s6012_s1 + $0x160] sm:$0xff]  ;;  %v3803_v18 = vpack.c.bf16 %v124_v9, %v123_v8  ;;  %v94_v20 = vld [vmem:[%s6012_s1 + $0xf8] sm:$0xff] }
  0x14   :  { %3796 = vmatprep.subr.bf16.mxu1 %v3795_v56  ;;  %v76_v15 = vld [vmem:[%s6012_s1 + $0x68] sm:$0xff]  ;;  %278 = vmatprep.mubr.f32.mxu0 %v46_v12  ;;  %v48_v21 = vld [vmem:[%s6011_s0 + $0x18] sm:$0xff]  ;;  %v125_v22 = vld [vmem:[%s6012_s1 + $0x1f0] sm:$0xff]  ;;  %v3775_v26 = vpack.c.bf16 %v94_v20, %v93_v19 }
  0x15   :  { %3766 = vmatpush3.bf16.msra.mxu0 %v3765_v62  ;;  %v108_v17 = vld [vmem:[%s6012_s1 + $0x168] sm:$0xff]  ;;  %v126_v23 = vld [vmem:[%s6012_s1 + $0x1f8] sm:$0xff]  ;;  %353 = vmatprep.mubr.f32.mxu1 %v48_v21  ;;  %v3773_v24 = vpack.c.bf16 %v76_v15, %v75_v11  ;;  %v77_v27 = vld [vmem:[%s6012_s1 + $0x70] sm:$0xff] }
  0x16   :  { %3768 = vmatprep.subr.bf16.mxu0 %v3767_v0  ;;  %v3805_v25 = vpack.c.bf16 %v108_v17, %v107_v16  ;;  %v78_v28 = vld [vmem:[%s6012_s1 + $0x78] sm:$0xff]  ;;  %v109_v29 = vld [vmem:[%s6012_s1 + $0x170] sm:$0xff]  ;;  %v3807_v30 = vpack.c.bf16 %v126_v23, %v125_v22  ;;  %v143_v32 = vld [vmem:[%s6012_s1 + $0x280] sm:$0xff] }
  0x17   :  { %3798 = vmatpush3.bf16.msra.mxu1 %v3797_v63  ;;  %v110_v31 = vld [vmem:[%s6012_s1 + $0x178] sm:$0xff]  ;;  %v144_v33 = vld [vmem:[%s6012_s1 + $0x288] sm:$0xff]  ;;  %v175_v34 = vld [vmem:[%s6012_s1 + $0x380] sm:$0xff]  ;;  %v3777_v36 = vpack.c.bf16 %v78_v28, %v77_v27 }
  0x18   :  { %3800 = vmatprep.subr.bf16.mxu1 %v3799_v4  ;;  %v176_v35 = vld [vmem:[%s6012_s1 + $0x388] sm:$0xff]  ;;  %v3809_v37 = vpack.c.bf16 %v110_v31, %v109_v29  ;;  %v3811_v38 = vpack.c.bf16 %v144_v33, %v143_v32  ;;  %v127_v39 = vld [vmem:[%s6012_s1 + $0x200] sm:$0xff]  ;;  %v145_v44 = vld [vmem:[%s6012_s1 + $0x290] sm:$0xff] }
  0x19   :  { %3770 = vmatpush3.bf16.msra.mxu0 %v3769_v10  ;;  %v128_v40 = vld [vmem:[%s6012_s1 + $0x208] sm:$0xff]  ;;  %v159_v41 = vld [vmem:[%s6012_s1 + $0x300] sm:$0xff]  ;;  %v3843_v42 = vpack.c.bf16 %v176_v35, %v175_v34  ;;  %v146_v45 = vld [vmem:[%s6012_s1 + $0x298] sm:$0xff] }
  0x1a   :  { %3772 = vmatprep.subr.bf16.mxu0 %v3771_v14  ;;  %v160_v43 = vld [vmem:[%s6012_s1 + $0x308] sm:$0xff]  ;;  %v177_v46 = vld [vmem:[%s6012_s1 + $0x390] sm:$0xff]  ;;  %v178_v47 = vld [vmem:[%s6012_s1 + $0x398] sm:$0xff]  ;;  %v3813_v49 = vpack.c.bf16 %v128_v40, %v127_v39  ;;  %v3815_v52 = vpack.c.bf16 %v146_v45, %v145_v44 }
  0x1b   :  { %3802 = vmatpush3.bf16.msra.mxu1 %v3801_v13  ;;  %v45_v48 = vld [vmem:[%s6011_s0] sm:$0xff]  ;;  %v47_v50 = vld [vmem:[%s6011_s0 + $0x10] sm:$0xff]  ;;  %v3845_v51 = vpack.c.bf16 %v160_v43, %v159_v41  ;;  %v130_v54 = vld [vmem:[%s6012_s1 + $0x218] sm:$0xff]  ;;  %v3847_v56 = vpack.c.bf16 %v178_v47, %v177_v46 }
  0x1c   :  { %3804 = vmatprep.subr.bf16.mxu1 %v3803_v18  ;;  %v129_v53 = vld [vmem:[%s6012_s1 + $0x210] sm:$0xff]  ;;  %v162_v57 = vld [vmem:[%s6012_s1 + $0x318] sm:$0xff]  ;;  %v147_v58 = vld [vmem:[%s6012_s1 + $0x2a0] sm:$0xff] }
  0x1d   :  { %3774 = vmatpush3.bf16.msra.mxu0 %v3773_v24  ;;  %v161_v55 = vld [vmem:[%s6012_s1 + $0x310] sm:$0xff]  ;;  %v148_v59 = vld [vmem:[%s6012_s1 + $0x2a8] sm:$0xff]  ;;  %v179_v60 = vld [vmem:[%s6012_s1 + $0x3a0] sm:$0xff]  ;;  %v3817_v62 = vpack.c.bf16 %v130_v54, %v129_v53 }
  0x1e   :  { %3776 = vmatprep.subr.bf16.mxu0 %v3775_v26  ;;  %v180_v61 = vld [vmem:[%s6012_s1 + $0x3a8] sm:$0xff]  ;;  %v3849_v63 = vpack.c.bf16 %v162_v57, %v161_v55  ;;  %v3819_v0 = vpack.c.bf16 %v148_v59, %v147_v58  ;;  %v131_v1 = vld [vmem:[%s6012_s1 + $0x220] sm:$0xff]  ;;  %v149_v6 = vld [vmem:[%s6012_s1 + $0x2b0] sm:$0xff] }
  0x1f   :  { %3806 = vmatpush3.bf16.msra.mxu1 %v3805_v25  ;;  %v132_v2 = vld [vmem:[%s6012_s1 + $0x228] sm:$0xff]  ;;  %v163_v3 = vld [vmem:[%s6012_s1 + $0x320] sm:$0xff]  ;;  %v3851_v4 = vpack.c.bf16 %v180_v61, %v179_v60  ;;  %v150_v7 = vld [vmem:[%s6012_s1 + $0x2b8] sm:$0xff] }
  0x20   :  { %3808 = vmatprep.subr.bf16.mxu1 %v3807_v30  ;;  %v164_v5 = vld [vmem:[%s6012_s1 + $0x328] sm:$0xff]  ;;  %v181_v8 = vld [vmem:[%s6012_s1 + $0x3b0] sm:$0xff]  ;;  %v182_v9 = vld [vmem:[%s6012_s1 + $0x3b8] sm:$0xff]  ;;  %v3821_v10 = vpack.c.bf16 %v132_v2, %v131_v1  ;;  %v3823_v15 = vpack.c.bf16 %v150_v7, %v149_v6 }
  0x21   :  { %3778 = vmatpush3.bf16.msra.mxu0 %v3777_v36  ;;  %v133_v11 = vld [vmem:[%s6012_s1 + $0x230] sm:$0xff]  ;;  %v134_v12 = vld [vmem:[%s6012_s1 + $0x238] sm:$0xff]  ;;  %v3853_v14 = vpack.c.bf16 %v164_v5, %v163_v3  ;;  %v54_v18 = vld [vmem:[%s6011_s0 + $0x48] sm:$0xff]  ;;  %v3855_v19 = vpack.c.bf16 %v182_v9, %v181_v8 }
  0x22   :  { %3812 = vmatprep.subr.bf16.mxu0 %v3811_v38  ;;  %v55_v13 = vld [vmem:[%s6011_s0 + $0x50] sm:$0xff]  ;;  %v166_v17 = vld [vmem:[%s6012_s1 + $0x338] sm:$0xff]  ;;  %v151_v20 = vld [vmem:[%s6012_s1 + $0x2c0] sm:$0xff]  ;;  %v3825_v26 = vpack.c.bf16 %v134_v12, %v133_v11 }
  0x23   :  { %3810 = vmatpush3.bf16.msra.mxu1 %v3809_v37  ;;  %v165_v16 = vld [vmem:[%s6012_s1 + $0x330] sm:$0xff]  ;;  %v152_v21 = vld [vmem:[%s6012_s1 + $0x2c8] sm:$0xff]  ;;  %v57_v22 = vld [vmem:[%s6011_s0 + $0x60] sm:$0xff] }
  0x24   :  { %3844 = vmatprep.subr.bf16.mxu1 %v3843_v42  ;;  %279 = vmatmul.mubr.f32.vlgmr.msra.gmra.mrb[0].mxu0 %v45_v48  ;;  %v183_v23 = vld [vmem:[%s6012_s1 + $0x3c0] sm:$0xff]  ;;  %v184_v24 = vld [vmem:[%s6012_s1 + $0x3c8] sm:$0xff]  ;;  %v56_v25 = vld [vmem:[%s6011_s0 + $0x58] sm:$0xff]  ;;  %v3857_v29 = vpack.c.bf16 %v166_v17, %v165_v16  ;;  %v3827_v30 = vpack.c.bf16 %v152_v21, %v151_v20 }
  0x25   :  { %3814 = vmatpush3.bf16.msra.mxu0 %v3813_v49  ;;  %283 = vmatprep.mubr.f32.mxu0 %v55_v13  ;;  %v135_v27 = vld [vmem:[%s6012_s1 + $0x240] sm:$0xff]  ;;  %v50_v28 = vld [vmem:[%s6011_s0 + $0x28] sm:$0xff]  ;;  %v3859_v34 = vpack.c.bf16 %v184_v24, %v183_v23  ;;  %v153_v35 = vld [vmem:[%s6012_s1 + $0x2d0] sm:$0xff] }
  0x26   :  { %354 = vmatmul.mubr.f32.vlgmr.msra.gmra.mrb[0].mxu1 %v47_v50  ;;  %3816 = vmatprep.subr.bf16.mxu0 %v3815_v52  ;;  %v136_v31 = vld [vmem:[%s6012_s1 + $0x248] sm:$0xff]  ;;  %v167_v32 = vld [vmem:[%s6012_s1 + $0x340] sm:$0xff]  ;;  %v154_v36 = vld [vmem:[%s6012_s1 + $0x2d8] sm:$0xff] }
  0x27   :  { %3846 = vmatpush3.bf16.msra.mxu1 %v3845_v51  ;;  %358 = vmatprep.mubr.f32.mxu1 %v57_v22  ;;  %v168_v33 = vld [vmem:[%s6012_s1 + $0x348] sm:$0xff]  ;;  %v52_v37 = vld [vmem:[%s6011_s0 + $0x38] sm:$0xff]  ;;  %v185_v38 = vld [vmem:[%s6012_s1 + $0x3d0] sm:$0xff]  ;;  %v3829_v40 = vpack.c.bf16 %v136_v31, %v135_v27  ;;  %v3831_v42 = vpack.c.bf16 %v154_v36, %v153_v35 }
  0x28   :  { %3848 = vmatprep.subr.bf16.mxu1 %v3847_v56  ;;  %284 = vmatmul.mubr.f32.gmra.mrb[2].mxu0 %v54_v18  ;;  %v186_v39 = vld [vmem:[%s6012_s1 + $0x3d8] sm:$0xff]  ;;  %v3861_v41 = vpack.c.bf16 %v168_v33, %v167_v32  ;;  %v137_v43 = vld [vmem:[%s6012_s1 + $0x250] sm:$0xff]  ;;  %v155_v48 = vld [vmem:[%s6012_s1 + $0x2e0] sm:$0xff] }
  0x29   :  { %3818 = vmatpush3.bf16.msra.mxu0 %v3817_v62  ;;  %428 = vmatprep.mubr.f32.mxu0 %v50_v28  ;;  %v138_v44 = vld [vmem:[%s6012_s1 + $0x258] sm:$0xff]  ;;  %v169_v45 = vld [vmem:[%s6012_s1 + $0x350] sm:$0xff]  ;;  %v3863_v46 = vpack.c.bf16 %v186_v39, %v185_v38  ;;  %v156_v49 = vld [vmem:[%s6012_s1 + $0x2e8] sm:$0xff] }
  0x2a   :  { %3820 = vmatprep.subr.bf16.mxu0 %v3819_v0  ;;  %359 = vmatmul.mubr.f32.gmra.mrb[2].mxu1 %v56_v25  ;;  %v170_v47 = vld [vmem:[%s6012_s1 + $0x358] sm:$0xff]  ;;  %v187_v50 = vld [vmem:[%s6012_s1 + $0x3e0] sm:$0xff]  ;;  %v188_v51 = vld [vmem:[%s6012_s1 + $0x3e8] sm:$0xff]  ;;  %v3833_v52 = vpack.c.bf16 %v138_v44, %v137_v43  ;;  %v3835_v55 = vpack.c.bf16 %v156_v49, %v155_v48 }
  0x2b   :  { %3850 = vmatpush3.bf16.msra.mxu1 %v3849_v63  ;;  %503 = vmatprep.mubr.f32.mxu1 %v52_v37  ;;  %v139_v53 = vld [vmem:[%s6012_s1 + $0x260] sm:$0xff]  ;;  %v3865_v54 = vpack.c.bf16 %v170_v47, %v169_v45  ;;  %v140_v56 = vld [vmem:[%s6012_s1 + $0x268] sm:$0xff]  ;;  %v3867_v59 = vpack.c.bf16 %v188_v51, %v187_v50  ;;  %v157_v60 = vld [vmem:[%s6012_s1 + $0x2f0] sm:$0xff] }
  0x2c   :  { %3852 = vmatprep.subr.bf16.mxu1 %v3851_v4  ;;  %v171_v57 = vld [vmem:[%s6012_s1 + $0x360] sm:$0xff]  ;;  %v172_v58 = vld [vmem:[%s6012_s1 + $0x368] sm:$0xff]  ;;  %v158_v61 = vld [vmem:[%s6012_s1 + $0x2f8] sm:$0xff] }
  0x2d   :  { %3822 = vmatpush3.bf16.msra.mxu0 %v3821_v10 }
  0x2e   :  { %3824 = vmatprep.subr.bf16.mxu0 %v3823_v15 }
  0x2f   :  { %3854 = vmatpush3.bf16.msra.mxu1 %v3853_v14 }
  0x30   :  { %3856 = vmatprep.subr.bf16.mxu1 %v3855_v19 }
  0x31   :  { %3826 = vmatpush3.bf16.msra.mxu0 %v3825_v26 }
  0x32   :  { %3828 = vmatprep.subr.bf16.mxu0 %v3827_v30 }
  0x33   :  { %3858 = vmatpush3.bf16.msra.mxu1 %v3857_v29 }
  0x34   :  { %3860 = vmatprep.subr.bf16.mxu1 %v3859_v34 }
  0x35   :  { %3830 = vmatpush3.bf16.msra.mxu0 %v3829_v40 }
  0x36   :  { %3832 = vmatprep.subr.bf16.mxu0 %v3831_v42 }
  0x37   :  { %3862 = vmatpush3.bf16.msra.mxu1 %v3861_v41 }
  0x38   :  { %3864 = vmatprep.subr.bf16.mxu1 %v3863_v46 }
  0x39   :  { %18 = vsyncpa [#allocation3], 0  ;;  %v189_v62 = vld [vmem:[%s6012_s1 + $0x3f0] sm:$0xff]  ;;  %v190_v63 = vld [vmem:[%s6012_s1 + $0x3f8] sm:$0xff]  ;;  %3834 = vmatpush3.bf16.msra.mxu0 %v3833_v52  ;;  %v3837_v0 = vpack.c.bf16 %v140_v56, %v139_v53  ;;  %v3869_v1 = vpack.c.bf16 %v172_v58, %v171_v57  ;;  %v3839_v2 = vpack.c.bf16 %v158_v61, %v157_v60  ;;  %vm634_vm0 = vcmask 523264   ;;  %s4502_s14 = smov [#allocation2]  }
  0x3a   :  { %3836 = vmatprep.subr.bf16.mxu0 %v3835_v55  ;;  %v141_v3 = vld [vmem:[%s6012_s1 + $0x270] sm:$0xff]  ;;  %v142_v4 = vld [vmem:[%s6012_s1 + $0x278] sm:$0xff]  ;;  %v3871_v6 = vpack.c.bf16 %v190_v63, %v189_v62  ;;  %v191_v8 = vld [vmem:[%s6012_s1 + $0x400] sm:$0xff]  ;;  %vm875_vm1 = vcmask 261120   ;;  %vm1930_vm2 = vcmask 1041408   ;;  %vm1932_vm3 = vcmask 1043456  }
  0x3b   :  { %3866 = vmatpush3.bf16.msra.mxu1 %v3865_v54  ;;  %v173_v5 = vld [vmem:[%s6012_s1 + $0x370] sm:$0xff]  ;;  %v174_v7 = vld [vmem:[%s6012_s1 + $0x378] sm:$0xff]  ;;  %v192_v9 = vld [vmem:[%s6012_s1 + $0x408] sm:$0xff]  ;;  %v3841_v10 = vpack.c.bf16 %v142_v4, %v141_v3  ;;  %vm1934_vm4 = vcmask 1045504  }
  0x3c   :  { %3868 = vmatprep.subr.bf16.mxu1 %v3867_v59  ;;  %v3873_v11 = vpack.c.bf16 %v174_v7, %v173_v5  ;;  %v3875_v12 = vpack.c.bf16 %v192_v9, %v191_v8  ;;  %v193_v13 = vld [vmem:[%s6012_s1 + $0x410] sm:$0xff]  ;;  %v194_v14 = vld [vmem:[%s6012_s1 + $0x418] sm:$0xff]  ;;  %v49_v15 = vld [vmem:[%s6011_s0 + $0x20] sm:$0xff]  ;;  %v4498_v7 = vmov 0.0  }
  0x3d   :  { %3838 = vmatpush3.bf16.msra.mxu0 %v3837_v0  ;;  %v51_v16 = vld [vmem:[%s6011_s0 + $0x30] sm:$0xff]  ;;  %v3879_v17 = vpack.c.bf16 %v194_v14, %v193_v13  ;;  %v195_v19 = vld [vmem:[%s6012_s1 + $0x420] sm:$0xff]  ;;  %v196_v20 = vld [vmem:[%s6012_s1 + $0x428] sm:$0xff] }
  0x3e   :  { %3840 = vmatprep.subr.bf16.mxu0 %v3839_v2  ;;  %v59_v18 = vld [vmem:[%s6011_s0 + $0x70] sm:$0xff]  ;;  %v61_v21 = vld [vmem:[%s6011_s0 + $0x80] sm:$0xff]  ;;  %v58_v22 = vld [vmem:[%s6011_s0 + $0x68] sm:$0xff]  ;;  %v3883_v24 = vpack.c.bf16 %v196_v20, %v195_v19 }
  0x3f   :  { %3870 = vmatpush3.bf16.msra.mxu1 %v3869_v1  ;;  %v60_v23 = vld [vmem:[%s6011_s0 + $0x78] sm:$0xff]  ;;  %v197_v25 = vld [vmem:[%s6012_s1 + $0x430] sm:$0xff]  ;;  %v53_v27 = vld [vmem:[%s6011_s0 + $0x40] sm:$0xff] }
  0x40   :  { %3872 = vmatprep.subr.bf16.mxu1 %v3871_v6  ;;  %v198_v26 = vld [vmem:[%s6012_s1 + $0x438] sm:$0xff]  ;;  %v199_v29 = vld [vmem:[%s6012_s1 + $0x440] sm:$0xff]  ;;  %v200_v30 = vld [vmem:[%s6012_s1 + $0x448] sm:$0xff] }
  0x41   :  { %3842 = vmatpush3.bf16.msra.mxu0 %v3841_v10  ;;  %v3887_v28 = vpack.c.bf16 %v198_v26, %v197_v25  ;;  %v3891_v31 = vpack.c.bf16 %v200_v30, %v199_v29  ;;  %v201_v32 = vld [vmem:[%s6012_s1 + $0x450] sm:$0xff]  ;;  %v202_v33 = vld [vmem:[%s6012_s1 + $0x458] sm:$0xff]  ;;  %v203_v35 = vld [vmem:[%s6012_s1 + $0x460] sm:$0xff] }
  0x42   :  { %3876 = vmatprep.subr.bf16.mxu0 %v3875_v12  ;;  %v3895_v34 = vpack.c.bf16 %v202_v33, %v201_v32  ;;  %v204_v36 = vld [vmem:[%s6012_s1 + $0x468] sm:$0xff]  ;;  %v205_v38 = vld [vmem:[%s6012_s1 + $0x470] sm:$0xff]  ;;  %v206_v39 = vld [vmem:[%s6012_s1 + $0x478] sm:$0xff] }
  0x43   :  { %3874 = vmatpush3.bf16.msra.mxu1 %v3873_v11  ;;  %v3899_v37 = vpack.c.bf16 %v204_v36, %v203_v35  ;;  %v3903_v40 = vpack.c.bf16 %v206_v39, %v205_v38  ;;  %v62_v41 = vld [vmem:[%s6011_s0 + $0x88] sm:$0xff]  ;;  %v592_v43 = vld [vmem:[%s6014_s3 + $0x18] sm:$0xff]  ;;  %v589_v44 = vld [vmem:[%s6014_s3] sm:$0xff]  ;;  %s4501_s0 = smov 32  }
  0x44   :  { %429 = vmatmul.mubr.f32.vlgmr.msra.gmra.mrb[4].mxu0 %v49_v15  ;;  %v590_v42 = vld [vmem:[%s6014_s3 + $0x8] sm:$0xff]  ;;  %v591_v46 = vld [vmem:[%s6014_s3 + $0x10] sm:$0xff]  ;;  %v596_v48 = vld [vmem:[%s6014_s3 + $0x38] sm:$0xff] }
  0x45   :  { %3878 = vmatpush3.bf16.msra.mxu0 %v3875_v12  ;;  %433 = vmatprep.mubr.f32.mxu0 %v59_v18  ;;  %v3907_v45 = vpack.c.bf16 %v592_v43, %v590_v42  ;;  %v594_v47 = vld [vmem:[%s6014_s3 + $0x28] sm:$0xff]  ;;  %v3909_v49 = vpack.c.bf16 %v591_v46, %v589_v44  ;;  %v593_v51 = vld [vmem:[%s6014_s3 + $0x20] sm:$0xff]  ;;  %v595_v52 = vld [vmem:[%s6014_s3 + $0x30] sm:$0xff] }
  0x46   :  { %504 = vmatmul.mubr.f32.vlgmr.msra.gmra.mrb[4].mxu1 %v51_v16  ;;  %3880 = vmatprep.subr.bf16.mxu0 %v3879_v17  ;;  %v3911_v50 = vpack.c.bf16 %v596_v48, %v594_v47  ;;  %v598_v53 = vld [vmem:[%s6014_s3 + $0x48] sm:$0xff]  ;;  %v600_v54 = vld [vmem:[%s6014_s3 + $0x58] sm:$0xff]  ;;  %v3913_v55 = vpack.c.bf16 %v595_v52, %v593_v51  ;;  %v597_v57 = vld [vmem:[%s6014_s3 + $0x40] sm:$0xff] }
  0x47   :  { %508 = vmatprep.mubr.f32.mxu1 %v61_v21  ;;  %3908 = vmatprep.subr.bf16.mxu1 %v3907_v45  ;;  %v3915_v56 = vpack.c.bf16 %v600_v54, %v598_v53  ;;  %v599_v58 = vld [vmem:[%s6014_s3 + $0x50] sm:$0xff]  ;;  %v602_v59 = vld [vmem:[%s6014_s3 + $0x68] sm:$0xff]  ;;  %v604_v60 = vld [vmem:[%s6014_s3 + $0x78] sm:$0xff] }
  0x48   :  { %434 = vmatmul.mubr.f32.gmra.mrb[6].mxu0 %v58_v22  ;;  %3910 = vmatpush1.bf16.msra.mxu1 %v3909_v49  ;;  %v3917_v61 = vpack.c.bf16 %v599_v58, %v597_v57  ;;  %v3919_v62 = vpack.c.bf16 %v604_v60, %v602_v59  ;;  %v601_v63 = vld [vmem:[%s6014_s3 + $0x60] sm:$0xff]  ;;  %v603_v0 = vld [vmem:[%s6014_s3 + $0x70] sm:$0xff]  ;;  %v607_v2 = vld [vmem:[%s6016_s5 + $0x8] sm:$0xff] }
  0x49   :  { %3882 = vmatpush3.bf16.msra.mxu0 %v3879_v17  ;;  %3725 = vmatprep.mubr.f32.mxu0 %v53_v27  ;;  %v3921_v1 = vpack.c.bf16 %v603_v0, %v601_v63  ;;  %v609_v3 = vld [vmem:[%s6016_s5 + $0x18] sm:$0xff]  ;;  %v606_v5 = vld [vmem:[%s6016_s5] sm:$0xff]  ;;  %v608_v6 = vld [vmem:[%s6016_s5 + $0x10] sm:$0xff]  ;;  %v624_v0 = vlaneseq }
  0x4a   :  { %509 = vmatmul.mubr.f32.gmra.mrb[6].mxu1 %v60_v23  ;;  %3884 = vmatprep.subr.bf16.mxu0 %v3883_v24  ;;  %v5115_v4 = vpack.c.bf16 %v609_v3, %v607_v2  ;;  %v5125_v8 = vpack.c.bf16 %v608_v6, %v606_v5  ;;  %v611_v9 = vld [vmem:[%s6016_s5 + $0x28] sm:$0xff]  ;;  %v613_v10 = vld [vmem:[%s6016_s5 + $0x38] sm:$0xff]  ;;  %v610_v12 = vld [vmem:[%s6016_s5 + $0x20] sm:$0xff] }
  0x4b   :  { %3912 = vmatprep.subr.bf16.mxu1 %v3911_v50  ;;  %705 = vmatprep.mubr.f32.mxu1 %v4498_v7  ;;  %v5136_v11 = vpack.c.bf16 %v613_v10, %v611_v9  ;;  %v612_v13 = vld [vmem:[%s6016_s5 + $0x30] sm:$0xff]  ;;  %v615_v15 = vld [vmem:[%s6016_s5 + $0x48] sm:$0xff]  ;;  %v617_v16 = vld [vmem:[%s6016_s5 + $0x58] sm:$0xff] }
  0x4c   :  { %3914 = vmatpush1.bf16.msra.mxu1 %v3913_v55  ;;  %v5144_v14 = vpack.c.bf16 %v612_v13, %v610_v12  ;;  %v5154_v17 = vpack.c.bf16 %v617_v16, %v615_v15  ;;  %v614_v18 = vld [vmem:[%s6016_s5 + $0x40] sm:$0xff]  ;;  %v616_v19 = vld [vmem:[%s6016_s5 + $0x50] sm:$0xff]  ;;  %v619_v21 = vld [vmem:[%s6016_s5 + $0x68] sm:$0xff] }
  0x4d   :  { %3886 = vmatpush3.bf16.msra.mxu0 %v3883_v24  ;;  %3916 = vmatprep.subr.bf16.mxu1 %v3915_v56  ;;  %v5162_v20 = vpack.c.bf16 %v616_v19, %v614_v18  ;;  %v621_v22 = vld [vmem:[%s6016_s5 + $0x78] sm:$0xff]  ;;  %v618_v24 = vld [vmem:[%s6016_s5 + $0x60] sm:$0xff]  ;;  %v620_v25 = vld [vmem:[%s6016_s5 + $0x70] sm:$0xff] }
  0x4e   :  { %3888 = vmatprep.subr.bf16.mxu0 %v3887_v28  ;;  %v5172_v23 = vpack.c.bf16 %v621_v22, %v619_v21  ;;  %v5180_v26 = vpack.c.bf16 %v620_v25, %v618_v24  ;;  %v605_v3 = vld [vmem:[%s6015_s4] sm:$0x3]  ;;  %s4499_s4 = smov 64  }
  0x4f   :  { %v622_v15 = vld [vmem:[%s6017_s6] sm:$0x3]  ;;  %s4500_s6 = smov 96  }
  0x50   :  { %3918 = vmatpush1.bf16.msra.mxu1 %v3917_v61 }
  0x51   :  { %3890 = vmatpush3.bf16.msra.mxu0 %v3887_v28  ;;  %3920 = vmatprep.subr.bf16.mxu1 %v3919_v62  ;;  %v3443_v28 = vld [vmem:[%s6013_s2] ss:$0 sm:$0xff]  ;;  %s3432_s2 = sshll.u32 %s4502_s14, 4  ;;  %s3433_s2 = int_to_ptr.vmem [resolvable:$true] %s3432_s2 }
  0x52   :  { %3892 = vmatprep.subr.bf16.mxu0 %v3891_v31  ;;  %p4479_p1 = scmp.lt.s32.totalorder %s3433_s2, %s3433_s2 }
  0x54   :  { %3922 = vmatpush1.bf16.msra.mxu1 %v3921_v1  ;;  %v625_v1 = vshrl.u32 %v624_v0, 7 }
  0x55   :  { %3894 = vmatpush3.bf16.msra.mxu0 %v3891_v31  ;;  %3924 = vmatprep.subr.bf16.mxu1 %v5115_v4 }
  0x56   :  { %3896 = vmatprep.subr.bf16.mxu0 %v3895_v34  ;;  %v5210_v2 = vsub.s32 1, %v625_v1  ;;  %v5224_v21 = vsub.s32 0, %v625_v1 }
  0x58   :  { %v631_v5 = vrot.slane %v605_v3, %v5210_v2  ;;  %v5222_v16 = vrot.slane %v622_v15, %v5210_v2  ;;  %v5228_v24 = vrot.slane %v622_v15, %v5224_v21 }
  0x59   :  { %3898 = vmatpush3.bf16.msra.mxu0 %v3895_v34 }
  0x5a   :  { %3900 = vmatprep.subr.bf16.mxu0 %v3899_v37 }
  0x5d   :  { %3902 = vmatpush3.bf16.msra.mxu0 %v3899_v37 }
  0x5e   :  { %3904 = vmatprep.subr.bf16.mxu0 %v3903_v40 }
  0x61   :  { %3906 = vmatpush3.bf16.msra.mxu0 %v3903_v40 }
  0x62   :  { %3940 = vmatprep.subr.bf16.mxu0 %v5115_v4 }
  0x64   :  { %3726 = vmatmul.mubr.f32.vlgmr.msra.gmra.mrb[8].mxu0 %v62_v41 }
  0x65   :  { %944 = vmatprep.mubr.f32.mxu0 %v4498_v7  ;;  %3942 = vmatpush1.bf16.msra.mxu0 %v5125_v8 }
  0x66   :  { %3944 = vmatprep.subr.bf16.mxu0 %v5136_v11 }
  0x69   :  { %3946 = vmatpush1.bf16.msra.mxu0 %v5144_v14 }
  0x6a   :  { %3948 = vmatprep.subr.bf16.mxu0 %v5154_v17 }
  0x6d   :  { %3950 = vmatpush1.bf16.msra.mxu0 %v5162_v20 }
  0x6e   :  { %3952 = vmatprep.subr.bf16.mxu0 %v5172_v23 }
  0x71   :  { %3954 = vmatpush1.bf16.msra.mxu0 %v5180_v26 }
  0x72   :  { %3972 = vmatprep.subr.bf16.mxu0 %v5115_v4 }
  0xf7   :  { %v3545_v27 = vpop.f32.mrb[0].mxu0 }
  0xf8   :  { %v3546_v29 = vpop.f32.mrb[1].mxu0 }
  0xf9   :  { %v3583_v30 = vpop.f32.mrb[0].mxu1  ;;  %v3547_v31 = vadd.f32 %v3546_v29, %v3545_v27 }
  0xfa   :  { %v3584_v32 = vpop.f32.mrb[1].mxu1 }
  0xfb   :  { %v3585_v33 = vadd.f32 %v3584_v32, %v3583_v30  ;;  %v281_v34 = vadd.f32 %v3547_v31, %v3443_v28  ;;  %v3548_v36 = vpop.f32.mrb[2].mxu0 }
  0xfc   :  { %v3549_v37 = vpop.f32.mrb[3].mxu0 }
  0xfd   :  { %v356_v35 = vadd.f32 %v3585_v33, %v281_v34  ;;  %v3586_v38 = vpop.f32.mrb[2].mxu1  ;;  %v3550_v39 = vadd.f32 %v3549_v37, %v3548_v36 }
  0xfe   :  { %v3587_v40 = vpop.f32.mrb[3].mxu1 }
  0xff   :  { %v3588_v41 = vadd.f32 %v3587_v40, %v3586_v38  ;;  %v286_v42 = vadd.f32 %v3550_v39, %v3443_v28  ;;  %v627_v28 = vrot.slane %v605_v3, %v5224_v21 }
 0x101   :  { %v361_v43 = vadd.f32 %v3588_v41, %v286_v42 }
 0x117   :  { %v3621_v44 = vpop.f32.mrb[4].mxu0 }
 0x118   :  { %v3622_v45 = vpop.f32.mrb[5].mxu0 }
 0x119   :  { %v3659_v46 = vpop.f32.mrb[4].mxu1  ;;  %v3623_v47 = vadd.f32 %v3622_v45, %v3621_v44 }
 0x11a   :  { %v3660_v48 = vpop.f32.mrb[5].mxu1 }
 0x11b   :  { %v3661_v49 = vadd.f32 %v3660_v48, %v3659_v46  ;;  %v431_v50 = vadd.f32 %v3623_v47, %v356_v35  ;;  %v3624_v51 = vpop.f32.mrb[6].mxu0 }
 0x11c   :  { %v3625_v52 = vpop.f32.mrb[7].mxu0 }
 0x11d   :  { %v3662_v53 = vpop.f32.mrb[6].mxu1  ;;  %v3626_v54 = vadd.f32 %v3625_v52, %v3624_v51  ;;  %v506_v56 = vadd.f32 %v3661_v49, %v431_v50 }
 0x11e   :  { %v3663_v55 = vpop.f32.mrb[7].mxu1 }
 0x11f   :  { %v3664_v57 = vadd.f32 %v3663_v55, %v3662_v53  ;;  %v436_v58 = vadd.f32 %v3626_v54, %v361_v43 }
 0x121   :  { %v511_v59 = vadd.f32 %v3664_v57, %v436_v58 }
 0x137   :  { %v3727_v60 = vpop.f32.mrb[8].mxu0 }
 0x138   :  { %v586_v61 = vadd.f32 %v3727_v60, %v511_v59  ;;  %v580_v62 = vpop.f32.mrb[9].mxu0 }
 0x139   :  { %v581_v63 = vadd.f32 %v580_v62, %v506_v56 }
 0x13b   :  { %3444 = vmatmul.mubr.msk.f32.vlgmr.msra.gmra.mrb[8].mxu1 %vm634_vm0, %v581_v63 }
 0x13c   :  { %3926 = vmatpush1.bf16.msra.mxu1 %v5125_v8  ;;  %711 = vmatprep.mubr.f32.mxu1 %v4498_v7 }
 0x13d   :  { %3928 = vmatprep.subr.bf16.mxu1 %v5136_v11 }
 0x13f   :  { %3445 = vmatmul.mubr.msk.f32.gmra.mrb[10].mxu1 %vm634_vm0, %v586_v61 }
 0x140   :  { %3930 = vmatpush1.bf16.msra.mxu1 %v5144_v14  ;;  %796 = vmatprep.mubr.f32.mxu1 %v4498_v7 }
 0x141   :  { %3932 = vmatprep.subr.bf16.mxu1 %v5154_v17 }
 0x144   :  { %3934 = vmatpush1.bf16.msra.mxu1 %v5162_v20 }
 0x145   :  { %3936 = vmatprep.subr.bf16.mxu1 %v5172_v23 }
 0x148   :  { %3938 = vmatpush1.bf16.msra.mxu1 %v5180_v26 }
 0x149   :  { %3956 = vmatprep.subr.bf16.mxu1 %v5115_v4 }
 0x14b   :  { %797 = vmatmul.mubr.f32.vlgmr.msra.gmra.mrb[12].mxu1 %v4498_v7 }
 0x14c   :  { %3958 = vmatpush1.bf16.msra.mxu1 %v5125_v8  ;;  %1098 = vmatprep.mubr.f32.mxu1 %v4498_v7 }
 0x14d   :  { %3960 = vmatprep.subr.bf16.mxu1 %v5136_v11 }
 0x150   :  { %3962 = vmatpush1.bf16.msra.mxu1 %v5144_v14 }
 0x151   :  { %3964 = vmatprep.subr.bf16.mxu1 %v5154_v17 }
 0x154   :  { %3966 = vmatpush1.bf16.msra.mxu1 %v5162_v20 }
 0x155   :  { %3968 = vmatprep.subr.bf16.mxu1 %v5172_v23 }
 0x158   :  { %3970 = vmatpush1.bf16.msra.mxu1 %v5180_v26 }
 0x159   :  { %3988 = vmatprep.subr.bf16.mxu1 %v5115_v4 }
 0x20e   :  { %v707_v6 = vpop.f32.mrb[8].mxu1 }
 0x20f   :  { %v709_v9 = vpop.f32.mrb[9].mxu1  ;;  %v5237_v32 = vadd.f32 %v707_v6, %v627_v28 }
 0x210   :  { %v5216_v10 = vadd.f32 %v709_v9, %v631_v5 }
 0x212   :  { %v713_v12 = vpop.f32.mrb[10].mxu1 }
 0x213   :  { %v715_v13 = vpop.f32.mrb[11].mxu1  ;;  %v5234_v30 = vadd.f32 %v713_v12, %v627_v28 }
 0x214   :  { %v5242_v46 = vadd.f32 %v715_v13, %v631_v5 }
 0x21e   :  { %v798_v18 = vpop.f32.mrb[12].mxu1 }
 0x21f   :  { %v800_v19 = vpop.f32.mrb[13].mxu1  ;;  %v799_v27 = vadd.f32 %v798_v18, %v5228_v24 }
 0x220   :  { %v801_v22 = vadd.f32 %v800_v19, %v5222_v16 }
 0x221   :  { %v829_v29 = vrot.slane %v799_v27, 2  ;;  %v803_v33 = vadd.f32 %v799_v27, %v5237_v32 }
 0x222   :  { %v839_v25 = vrot.slane %v801_v22, 2 }
 0x223   :  { %v831_v31 = vadd.f32 %v829_v29, %v5234_v30  ;;  %v3446_v35 = vmul.f32 -1.442695, %v803_v33 }
 0x224   :  { %848 = vrot.lane.b32.xlu0 %v839_v25, %s4499_s4  ;;  %v841_v53 = vadd.f32 %v839_v25, %v5242_v46 }
 0x225   :  { %v3447_v34 = vmul.f32 -1.442695, %v831_v31 }
 0x226   :  { %v3448_v54 = vmul.f32 -1.442695, %v841_v53 }
 0x227   :  { %4218 = vpow2.f32 %v3447_v34 }
 0x228   :  { %811 = vrot.lane.b32.xlu0 %v799_v27, %s4499_s4  ;;  %4220 = vpow2.f32 %v3446_v35 }
 0x231   :  { %v4219_v36 = vpop.eup %4218 }
 0x232   :  { %v835_v37 = vadd.f32 1.0, %v4219_v36  ;;  %v4221_v38 = vpop.eup %4220 }
 0x233   :  { %v807_v39 = vadd.f32 1.0, %v4221_v38 }
 0x234   :  { %4222 = vrcp.f32 %v835_v37 }
 0x235   :  { %4224 = vrcp.f32 %v807_v39 }
 0x23e   :  { %v4223_v40 = vpop.eup %4222 }
 0x23f   :  { %v4225_v43 = vpop.eup %4224 }
 0x240   :  { %v821_v63 = vsub.f32 1.0, %v4225_v43  ;;  %v827_v1 = vmul.f32 0.0, %v4225_v43 }
 0x296   :  { %v849_v41 = vpop.permute.xlu0 %848 }
 0x297   :  { %v851_v42 = vmul.f32 %v4223_v40, %v849_v41 }
 0x299   :  { %853 = vrot.lane.b32.xlu1 %v851_v42, %s4499_s4 }
 0x29a   :  { %v812_v44 = vpop.permute.xlu0 %811 }
 0x29b   :  { %v814_v45 = vmul.f32 %v4225_v43, %v812_v44 }
 0x29d   :  { %816 = vrot.lane.b32.xlu1 %v814_v45, %s4499_s4 }
 0x30b   :  { %v854_v47 = vpop.permute.xlu1 %853 }
 0x30c   :  { %v856_v48 = vadd.f32 %v854_v47, %v5242_v46 }
 0x30e   :  { %4226 = vtanh.f32 %v856_v48 }
 0x30f   :  { %v817_v49 = vpop.permute.xlu1 %816 }
 0x310   :  { %v819_v50 = vadd.f32 %v817_v49, %v5237_v32 }
 0x312   :  { %4228 = vtanh.f32 %v819_v50 }
 0x313   :  { %4230 = vpow2.f32 %v3448_v54 }
 0x318   :  { %v4227_v51 = vpop.eup %4226 }
 0x319   :  { %860 = vrot.lane.b32.xlu0 %v4227_v51, %s4500_s6 }
 0x31c   :  { %v4229_v52 = vpop.eup %4228 }
 0x31d   :  { %823 = vrot.lane.b32.xlu1 %v4229_v52, %s4500_s6  ;;  %v4231_v55 = vpop.eup %4230 }
 0x31e   :  { %v845_v56 = vadd.f32 1.0, %v4231_v55 }
 0x320   :  { %4232 = vrcp.f32 %v845_v56 }
 0x32a   :  { %v4233_v57 = vpop.eup %4232 }
 0x32b   :  { %v858_v58 = vsub.f32 1.0, %v4233_v57  ;;  %v864_v60 = vmul.f32 0.0, %v4233_v57 }
 0x38b   :  { %v861_v59 = vpop.permute.xlu0 %860 }
 0x38c   :  { %v863_v61 = vmul.f32 %v861_v59, %v858_v58 }
 0x38e   :  { %v5249_v62 = vadd.f32 %v864_v60, %v863_v61 }
 0x38f   :  { %v824_v0 = vpop.permute.xlu1 %823 }
 0x390   :  { %v826_v3 = vmul.f32 %v824_v0, %v821_v63  ;;  %v871_v5 = vrot.slane %v5249_v62, 6  ;;  %v1016_v61 = vrot.slane %v5249_v62, 2 }
 0x392   :  { %v5252_v6 = vadd.f32 %v827_v1, %v826_v3  ;;  %872 = vrot.lane.b32.xlu1 %v871_v5, %s4501_s0 }
 0x394   :  { %867 = vrot.lane.b32.xlu0 %v5252_v6, %s4500_s6  ;;  %v977_v58 = vrot.slane %v5252_v6, 6 }
 0x404   :  { %v873_v9 = vpop.permute.xlu1 %872 }
 0x406   :  { %v868_v12 = vpop.permute.xlu0 %867 }
 0x407   :  { %v876_v13 = vsel %vm875_vm1, %v868_v12, %v873_v9 }
 0x408   :  { %3449 = vmatmul.mubr.msk.f32.vlgmr.msra.gmra.mrb[10].mxu0 %vm634_vm0, %v876_v13 }
 0x409   :  { %3974 = vmatpush1.bf16.msra.mxu0 %v5125_v8  ;;  %1251 = vmatprep.mubr.f32.mxu0 %v4498_v7 }
 0x40a   :  { %3976 = vmatprep.subr.bf16.mxu0 %v5136_v11 }
 0x40d   :  { %3978 = vmatpush1.bf16.msra.mxu0 %v5144_v14 }
 0x40e   :  { %3980 = vmatprep.subr.bf16.mxu0 %v5154_v17 }
 0x411   :  { %3982 = vmatpush1.bf16.msra.mxu0 %v5162_v20 }
 0x412   :  { %3984 = vmatprep.subr.bf16.mxu0 %v5172_v23 }
 0x415   :  { %3986 = vmatpush1.bf16.msra.mxu0 %v5180_v26 }
 0x416   :  { %4004 = vmatprep.subr.bf16.mxu0 %v5115_v4 }
 0x4db   :  { %v946_v15 = vpop.f32.mrb[10].mxu0 }
 0x4dc   :  { %v947_v18 = vadd.f32 %v946_v15, %v5228_v24  ;;  %v948_v19 = vpop.f32.mrb[11].mxu0 }
 0x4dd   :  { %v949_v22 = vadd.f32 %v948_v19, %v5222_v16 }
 0x4de   :  { %v952_v25 = vrot.slane %v947_v18, 6  ;;  %v981_v28 = vrot.slane %v947_v18, 4 }
 0x4df   :  { %v991_v27 = vrot.slane %v949_v22, 4 }
 0x4e0   :  { %961 = vrot.lane.b32.xlu1 %v952_v25, %s4499_s4  ;;  %v954_v29 = vadd.f32 %v952_v25, %v5237_v32  ;;  %v983_v31 = vadd.f32 %v981_v28, %v5234_v30 }
 0x4e1   :  { %1000 = vrot.lane.b32.xlu0 %v991_v27, %s4499_s4  ;;  %v993_v52 = vadd.f32 %v991_v27, %v5242_v46 }
 0x4e2   :  { %v3450_v33 = vmul.f32 -1.442695, %v954_v29  ;;  %v3451_v34 = vmul.f32 -1.442695, %v983_v31 }
 0x4e3   :  { %v3452_v53 = vmul.f32 -1.442695, %v993_v52 }
 0x4e4   :  { %4234 = vpow2.f32 %v3450_v33 }
 0x4e5   :  { %4236 = vpow2.f32 %v3451_v34 }
 0x4ee   :  { %v4235_v35 = vpop.eup %4234 }
 0x4ef   :  { %v4237_v36 = vpop.eup %4236  ;;  %v958_v37 = vadd.f32 1.0, %v4235_v35 }
 0x4f0   :  { %v987_v38 = vadd.f32 1.0, %v4237_v36 }
 0x4f1   :  { %4238 = vrcp.f32 %v958_v37 }
 0x4f2   :  { %4240 = vrcp.f32 %v987_v38 }
 0x4fb   :  { %v4239_v39 = vpop.eup %4238 }
 0x4fc   :  { %v4241_v41 = vpop.eup %4240  ;;  %v971_v57 = vsub.f32 1.0, %v4239_v39  ;;  %v979_v63 = vmul.f32 %v4239_v39, %v977_v58 }
 0x552   :  { %v962_v40 = vpop.permute.xlu1 %961 }
 0x553   :  { %v964_v42 = vmul.f32 %v4239_v39, %v962_v40  ;;  %v1001_v43 = vpop.permute.xlu0 %1000 }
 0x554   :  { %v1003_v44 = vmul.f32 %v4241_v41, %v1001_v43 }
 0x555   :  { %966 = vrot.lane.b32.xlu1 %v964_v42, %s4499_s4 }
 0x556   :  { %1005 = vrot.lane.b32.xlu0 %v1003_v44, %s4499_s4 }
 0x5c7   :  { %v967_v45 = vpop.permute.xlu1 %966 }
 0x5c8   :  { %v969_v47 = vadd.f32 %v967_v45, %v5237_v32  ;;  %v1006_v48 = vpop.permute.xlu0 %1005 }
 0x5c9   :  { %v1008_v49 = vadd.f32 %v1006_v48, %v5242_v46 }
 0x5ca   :  { %4242 = vtanh.f32 %v969_v47 }
 0x5cb   :  { %4244 = vtanh.f32 %v1008_v49 }
 0x5cc   :  { %4246 = vpow2.f32 %v3452_v53 }
 0x5d4   :  { %v4243_v50 = vpop.eup %4242 }
 0x5d5   :  { %v4245_v51 = vpop.eup %4244  ;;  %973 = vrot.lane.b32.xlu1 %v4243_v50, %s4500_s6 }
 0x5d6   :  { %1012 = vrot.lane.b32.xlu0 %v4245_v51, %s4500_s6  ;;  %v4247_v54 = vpop.eup %4246 }
 0x5d7   :  { %v997_v55 = vadd.f32 1.0, %v4247_v54 }
 0x5d9   :  { %4248 = vrcp.f32 %v997_v55 }
 0x5e3   :  { %v4249_v56 = vpop.eup %4248 }
 0x5e4   :  { %v1010_v60 = vsub.f32 1.0, %v4249_v56  ;;  %v1018_v3 = vmul.f32 %v4249_v56, %v1016_v61 }
 0x647   :  { %v974_v59 = vpop.permute.xlu1 %973 }
 0x648   :  { %v976_v0 = vmul.f32 %v974_v59, %v971_v57  ;;  %v1013_v1 = vpop.permute.xlu0 %1012 }
 0x649   :  { %v1015_v5 = vmul.f32 %v1013_v1, %v1010_v60 }
 0x64a   :  { %v5283_v9 = vadd.f32 %v979_v63, %v976_v0 }
 0x64b   :  { %v5285_v12 = vadd.f32 %v1018_v3, %v1015_v5 }
 0x64c   :  { %1021 = vrot.lane.b32.xlu0 %v5283_v9, %s4500_s6  ;;  %v1131_v63 = vrot.slane %v5283_v9, 6 }
 0x64d   :  { %v1025_v13 = vrot.slane %v5285_v12, 2 }
 0x64f   :  { %1026 = vrot.lane.b32.xlu1 %v1025_v13, %s4501_s0 }
 0x6be   :  { %v1022_v15 = vpop.permute.xlu0 %1021 }
 0x6c1   :  { %v1027_v18 = vpop.permute.xlu1 %1026 }
 0x6c2   :  { %v1029_v19 = vsel %vm875_vm1, %v1022_v15, %v1027_v18 }
 0x6c3   :  { %v1031_v22 = vrot.slane %v1029_v19, 2 }
 0x6c5   :  { %3453 = vmatmul.mubr.msk.f32.vlgmr.msra.gmra.mrb[14].mxu1 %vm634_vm0, %v1031_v22 }
 0x6c6   :  { %3990 = vmatpush1.bf16.msra.mxu1 %v5125_v8  ;;  %1401 = vmatprep.mubr.f32.mxu1 %v4498_v7 }
 0x6c7   :  { %3992 = vmatprep.subr.bf16.mxu1 %v5136_v11 }
 0x6ca   :  { %3994 = vmatpush1.bf16.msra.mxu1 %v5144_v14 }
 0x6cb   :  { %3996 = vmatprep.subr.bf16.mxu1 %v5154_v17 }
 0x6ce   :  { %3998 = vmatpush1.bf16.msra.mxu1 %v5162_v20 }
 0x6cf   :  { %4000 = vmatprep.subr.bf16.mxu1 %v5172_v23 }
 0x6d2   :  { %4002 = vmatpush1.bf16.msra.mxu1 %v5180_v26 }
 0x6d3   :  { %4020 = vmatprep.subr.bf16.mxu1 %v5115_v4 }
 0x798   :  { %v1100_v25 = vpop.f32.mrb[14].mxu1 }
 0x799   :  { %v1101_v27 = vadd.f32 %v1100_v25, %v5228_v24  ;;  %v1102_v28 = vpop.f32.mrb[15].mxu1 }
 0x79a   :  { %v1103_v29 = vadd.f32 %v1102_v28, %v5222_v16 }
 0x79b   :  { %v1106_v31 = vrot.slane %v1101_v27, 4  ;;  %v1135_v34 = vrot.slane %v1101_v27, 6  ;;  %v1931_v27 = vsel %vm1930_vm2, %v5252_v6, %v5283_v9 }
 0x79c   :  { %v1145_v33 = vrot.slane %v1103_v29, 6 }
 0x79d   :  { %1115 = vrot.lane.b32.xlu1 %v1106_v31, %s4499_s4  ;;  %v1108_v35 = vadd.f32 %v1106_v31, %v5237_v32  ;;  %v1137_v36 = vadd.f32 %v1135_v34, %v5234_v30 }
 0x79e   :  { %1154 = vrot.lane.b32.xlu0 %v1145_v33, %s4499_s4  ;;  %v1147_v56 = vadd.f32 %v1145_v33, %v5242_v46 }
 0x79f   :  { %v3454_v37 = vmul.f32 -1.442695, %v1108_v35  ;;  %v3455_v38 = vmul.f32 -1.442695, %v1137_v36 }
 0x7a0   :  { %v3456_v57 = vmul.f32 -1.442695, %v1147_v56 }
 0x7a1   :  { %4250 = vpow2.f32 %v3454_v37 }
 0x7a2   :  { %4252 = vpow2.f32 %v3455_v38 }
 0x7ab   :  { %v4251_v39 = vpop.eup %4250 }
 0x7ac   :  { %v4253_v40 = vpop.eup %4252  ;;  %v1112_v41 = vadd.f32 1.0, %v4251_v39 }
 0x7ad   :  { %v1141_v42 = vadd.f32 1.0, %v4253_v40 }
 0x7ae   :  { %4254 = vrcp.f32 %v1112_v41 }
 0x7af   :  { %4256 = vrcp.f32 %v1141_v42 }
 0x7b8   :  { %v4255_v43 = vpop.eup %4254 }
 0x7b9   :  { %v4257_v45 = vpop.eup %4256  ;;  %v1125_v61 = vsub.f32 1.0, %v4255_v43  ;;  %v1133_v3 = vmul.f32 %v4255_v43, %v1131_v63 }
 0x80f   :  { %v1116_v44 = vpop.permute.xlu1 %1115 }
 0x810   :  { %v1118_v47 = vmul.f32 %v4255_v43, %v1116_v44  ;;  %v1155_v48 = vpop.permute.xlu0 %1154 }
 0x811   :  { %v1157_v49 = vmul.f32 %v4257_v45, %v1155_v48 }
 0x812   :  { %1120 = vrot.lane.b32.xlu1 %v1118_v47, %s4499_s4 }
 0x813   :  { %1159 = vrot.lane.b32.xlu0 %v1157_v49, %s4499_s4 }
 0x884   :  { %v1121_v50 = vpop.permute.xlu1 %1120 }
 0x885   :  { %v1123_v51 = vadd.f32 %v1121_v50, %v5237_v32  ;;  %v1160_v52 = vpop.permute.xlu0 %1159 }
 0x886   :  { %v1162_v53 = vadd.f32 %v1160_v52, %v5242_v46 }
 0x887   :  { %4258 = vtanh.f32 %v1123_v51 }
 0x888   :  { %4260 = vtanh.f32 %v1162_v53 }
 0x889   :  { %4262 = vpow2.f32 %v3456_v57 }
 0x891   :  { %v4259_v54 = vpop.eup %4258 }
 0x892   :  { %v4261_v55 = vpop.eup %4260  ;;  %1127 = vrot.lane.b32.xlu1 %v4259_v54, %s4500_s6 }
 0x893   :  { %1166 = vrot.lane.b32.xlu0 %v4261_v55, %s4500_s6  ;;  %v4263_v58 = vpop.eup %4262 }
 0x894   :  { %v1151_v59 = vadd.f32 1.0, %v4263_v58 }
 0x896   :  { %4264 = vrcp.f32 %v1151_v59 }
 0x8a0   :  { %v4265_v60 = vpop.eup %4264 }
 0x8a1   :  { %v1164_v1 = vsub.f32 1.0, %v4265_v60  ;;  %v1171_v18 = vmul.f32 %v4265_v60, %v1025_v13 }
 0x904   :  { %v1128_v0 = vpop.permute.xlu1 %1127 }
 0x905   :  { %v1130_v5 = vmul.f32 %v1128_v0, %v1125_v61  ;;  %v1167_v15 = vpop.permute.xlu0 %1166 }
 0x906   :  { %v1169_v19 = vmul.f32 %v1167_v15, %v1164_v1 }
 0x907   :  { %v5320_v22 = vadd.f32 %v1133_v3, %v1130_v5 }
 0x908   :  { %v5322_v25 = vadd.f32 %v1171_v18, %v1169_v19 }
 0x909   :  { %1174 = vrot.lane.b32.xlu0 %v5320_v22, %s4500_s6  ;;  %v5331_v28 = vsel %vm1932_vm3, %v1931_v27, %v5320_v22  ;;  %v1284_v15 = vrot.slane %v5320_v22, 6 }
 0x90a   :  { %v1178_v29 = vrot.slane %v5322_v25, 6  ;;  %v1319_v1 = vrot.slane %v5322_v25, 2 }
 0x90c   :  { %1179 = vrot.lane.b32.xlu1 %v1178_v29, %s4501_s0 }
 0x97b   :  { %v1175_v13 = vpop.permute.xlu0 %1174 }
 0x97e   :  { %v1180_v31 = vpop.permute.xlu1 %1179 }
 0x97f   :  { %v1182_v33 = vsel %vm875_vm1, %v1175_v13, %v1180_v31 }
 0x980   :  { %v1184_v34 = vrot.slane %v1182_v33, 4 }
 0x982   :  { %3457 = vmatmul.mubr.msk.f32.vlgmr.msra.gmra.mrb[12].mxu0 %vm634_vm0, %v1184_v34 }
 0x983   :  { %4006 = vmatpush1.bf16.msra.mxu0 %v5125_v8  ;;  %1551 = vmatprep.mubr.f32.mxu0 %v4498_v7 }
 0x984   :  { %4008 = vmatprep.subr.bf16.mxu0 %v5136_v11 }
 0x987   :  { %4010 = vmatpush1.bf16.msra.mxu0 %v5144_v14 }
 0x988   :  { %4012 = vmatprep.subr.bf16.mxu0 %v5154_v17 }
 0x98b   :  { %4014 = vmatpush1.bf16.msra.mxu0 %v5162_v20 }
 0x98c   :  { %4016 = vmatprep.subr.bf16.mxu0 %v5172_v23 }
 0x98f   :  { %4018 = vmatpush1.bf16.msra.mxu0 %v5180_v26 }
 0x990   :  { %4036 = vmatprep.subr.bf16.mxu0 %v5115_v4 }
 0xa55   :  { %v1253_v6 = vpop.f32.mrb[12].mxu0 }
 0xa56   :  { %v1254_v9 = vadd.f32 %v1253_v6, %v5228_v24  ;;  %v1255_v35 = vpop.f32.mrb[13].mxu0 }
 0xa57   :  { %v1256_v36 = vadd.f32 %v1255_v35, %v5222_v16 }
 0xa58   :  { %v1259_v37 = vrot.slane %v1254_v9, 2  ;;  %v1288_v38 = vadd.f32 %v1254_v9, %v5234_v30 }
 0xa59   :  { %1303 = vrot.lane.b32.xlu0 %v1256_v36, %s4499_s4  ;;  %v1295_v58 = vadd.f32 %v1256_v36, %v5242_v46 }
 0xa5a   :  { %1268 = vrot.lane.b32.xlu1 %v1259_v37, %s4499_s4  ;;  %v1261_v39 = vadd.f32 %v1259_v37, %v5237_v32  ;;  %v3459_v40 = vmul.f32 -1.442695, %v1288_v38 }
 0xa5b   :  { %v3460_v59 = vmul.f32 -1.442695, %v1295_v58 }
 0xa5c   :  { %v3458_v41 = vmul.f32 -1.442695, %v1261_v39  ;;  %4266 = vpow2.f32 %v3459_v40 }
 0xa5e   :  { %4268 = vpow2.f32 %v3458_v41 }
 0xa66   :  { %v4267_v4 = vpop.eup %4266 }
 0xa67   :  { %v1292_v43 = vadd.f32 1.0, %v4267_v4 }
 0xa68   :  { %v4269_v42 = vpop.eup %4268 }
 0xa69   :  { %v1265_v44 = vadd.f32 1.0, %v4269_v42  ;;  %4270 = vrcp.f32 %v1292_v43 }
 0xa6b   :  { %4272 = vrcp.f32 %v1265_v44 }
 0xa73   :  { %v4271_v45 = vpop.eup %4270 }
 0xa75   :  { %v4273_v48 = vpop.eup %4272 }
 0xa76   :  { %v1278_v5 = vsub.f32 1.0, %v4273_v48  ;;  %v1286_v29 = vmul.f32 %v4273_v48, %v1284_v15 }
 0xacb   :  { %v1304_v47 = vpop.permute.xlu0 %1303 }
 0xacc   :  { %v1306_v49 = vmul.f32 %v4271_v45, %v1304_v47  ;;  %v1269_v50 = vpop.permute.xlu1 %1268 }
 0xacd   :  { %v1271_v51 = vmul.f32 %v4273_v48, %v1269_v50 }
 0xace   :  { %1308 = vrot.lane.b32.xlu0 %v1306_v49, %s4499_s4 }
 0xacf   :  { %1273 = vrot.lane.b32.xlu1 %v1271_v51, %s4499_s4 }
 0xb40   :  { %v1309_v52 = vpop.permute.xlu0 %1308 }
 0xb41   :  { %v1311_v53 = vadd.f32 %v1309_v52, %v5242_v46  ;;  %v1274_v54 = vpop.permute.xlu1 %1273 }
 0xb42   :  { %v1276_v55 = vadd.f32 %v1274_v54, %v5237_v32 }
 0xb43   :  { %4274 = vtanh.f32 %v1311_v53 }
 0xb44   :  { %4276 = vtanh.f32 %v1276_v55 }
 0xb45   :  { %4278 = vpow2.f32 %v3460_v59 }
 0xb4d   :  { %v4275_v56 = vpop.eup %4274 }
 0xb4e   :  { %v4277_v57 = vpop.eup %4276  ;;  %1315 = vrot.lane.b32.xlu0 %v4275_v56, %s4500_s6 }
 0xb4f   :  { %1280 = vrot.lane.b32.xlu1 %v4277_v57, %s4500_s6  ;;  %v4279_v60 = vpop.eup %4278 }
 0xb50   :  { %v1299_v61 = vadd.f32 1.0, %v4279_v60 }
 0xb52   :  { %4280 = vrcp.f32 %v1299_v61 }
 0xb5c   :  { %v4281_v63 = vpop.eup %4280 }
 0xb5d   :  { %v1313_v0 = vsub.f32 1.0, %v4281_v63  ;;  %v1321_v18 = vmul.f32 %v4281_v63, %v1319_v1 }
 0xbc0   :  { %v1316_v3 = vpop.permute.xlu0 %1315 }
 0xbc1   :  { %v1318_v19 = vmul.f32 %v1316_v3, %v1313_v0  ;;  %v1281_v27 = vpop.permute.xlu1 %1280 }
 0xbc2   :  { %v1283_v13 = vmul.f32 %v1281_v27, %v1278_v5 }
 0xbc3   :  { %v5361_v31 = vadd.f32 %v1321_v18, %v1318_v19 }
 0xbc4   :  { %v5363_v46 = vadd.f32 %v1286_v29, %v1283_v13 }
 0xbc5   :  { %v1328_v33 = vrot.slane %v5361_v31, 2 }
 0xbc6   :  { %1324 = vrot.lane.b32.xlu0 %v5363_v46, %s4500_s6  ;;  %v5371_v34 = vsel %vm1934_vm4, %v5331_v28, %v5363_v46  ;;  %v1432_v15 = vrot.slane %v5363_v46, 6 }
 0xbc7   :  { %1329 = vrot.lane.b32.xlu1 %v1328_v33, %s4501_s0 }
 0xc38   :  { %v1325_v22 = vpop.permute.xlu0 %1324 }
 0xc39   :  { %v1330_v6 = vpop.permute.xlu1 %1329 }
 0xc3a   :  { %v1332_v9 = vsel %vm875_vm1, %v1325_v22, %v1330_v6 }
 0xc3b   :  { %v1334_v35 = vrot.slane %v1332_v9, 6 }
 0xc3d   :  { %3461 = vmatmul.mubr.msk.f32.vlgmr.msra.gmra.mrb[16].mxu1 %vm634_vm0, %v1334_v35 }
 0xc3e   :  { %4022 = vmatpush1.bf16.msra.mxu1 %v5125_v8  ;;  %1705 = vmatprep.mubr.f32.mxu1 %v4498_v7 }
 0xc3f   :  { %4024 = vmatprep.subr.bf16.mxu1 %v5136_v11 }
 0xc42   :  { %4026 = vmatpush1.bf16.msra.mxu1 %v5144_v14 }
 0xc43   :  { %4028 = vmatprep.subr.bf16.mxu1 %v5154_v17 }
 0xc46   :  { %4030 = vmatpush1.bf16.msra.mxu1 %v5162_v20 }
 0xc47   :  { %4032 = vmatprep.subr.bf16.mxu1 %v5172_v23 }
 0xc4a   :  { %4034 = vmatpush1.bf16.msra.mxu1 %v5180_v26 }
 0xd10   :  { %v1403_v28 = vpop.f32.mrb[16].mxu1 }
 0xd11   :  { %v1404_v36 = vadd.f32 %v1403_v28, %v5228_v24  ;;  %v1405_v37 = vpop.f32.mrb[17].mxu1 }
 0xd12   :  { %v1406_v38 = vadd.f32 %v1405_v37, %v5222_v16 }
 0xd13   :  { %1416 = vrot.lane.b32.xlu1 %v1404_v36, %s4499_s4  ;;  %v1436_v40 = vrot.slane %v1404_v36, 2  ;;  %v1408_v41 = vadd.f32 %v1404_v36, %v5234_v30 }
 0xd14   :  { %v1446_v39 = vrot.slane %v1406_v38, 2 }
 0xd15   :  { %v1438_v4 = vadd.f32 %v1436_v40, %v5237_v32  ;;  %v3462_v42 = vmul.f32 -1.442695, %v1408_v41 }
 0xd16   :  { %1455 = vrot.lane.b32.xlu0 %v1446_v39, %s4499_s4  ;;  %v1448_v61 = vadd.f32 %v1446_v39, %v5216_v10 }
 0xd17   :  { %v3463_v43 = vmul.f32 -1.442695, %v1438_v4  ;;  %4282 = vpow2.f32 %v3462_v42 }
 0xd18   :  { %v3464_v63 = vmul.f32 -1.442695, %v1448_v61 }
 0xd19   :  { %4284 = vpow2.f32 %v3463_v43 }
 0xd21   :  { %v4283_v44 = vpop.eup %4282 }
 0xd22   :  { %v1412_v47 = vadd.f32 1.0, %v4283_v44 }
 0xd23   :  { %v4285_v45 = vpop.eup %4284 }
 0xd24   :  { %v1442_v48 = vadd.f32 1.0, %v4285_v45  ;;  %4286 = vrcp.f32 %v1412_v47 }
 0xd26   :  { %4288 = vrcp.f32 %v1442_v48 }
 0xd2e   :  { %v4287_v49 = vpop.eup %4286 }
 0xd2f   :  { %v1426_v5 = vsub.f32 1.0, %v4287_v49  ;;  %v1434_v19 = vmul.f32 %v4287_v49, %v1432_v15 }
 0xd30   :  { %v4289_v52 = vpop.eup %4288 }
 0xd85   :  { %v1417_v50 = vpop.permute.xlu1 %1416 }
 0xd86   :  { %v1419_v51 = vmul.f32 %v4287_v49, %v1417_v50 }
 0xd88   :  { %v1456_v53 = vpop.permute.xlu0 %1455  ;;  %1421 = vrot.lane.b32.xlu1 %v1419_v51, %s4499_s4 }
 0xd89   :  { %v1458_v54 = vmul.f32 %v4289_v52, %v1456_v53 }
 0xd8b   :  { %1460 = vrot.lane.b32.xlu0 %v1458_v54, %s4499_s4 }
 0xdfa   :  { %v1422_v55 = vpop.permute.xlu1 %1421 }
 0xdfb   :  { %v1424_v56 = vadd.f32 %v1422_v55, %v5234_v30 }
 0xdfd   :  { %4290 = vtanh.f32 %v1424_v56  ;;  %v1461_v57 = vpop.permute.xlu0 %1460 }
 0xdfe   :  { %v1463_v58 = vadd.f32 %v1461_v57, %v5216_v10 }
 0xe00   :  { %4292 = vtanh.f32 %v1463_v58 }
 0xe01   :  { %4294 = vpow2.f32 %v3464_v63 }
 0xe07   :  { %v4291_v59 = vpop.eup %4290 }
 0xe08   :  { %1428 = vrot.lane.b32.xlu1 %v4291_v59, %s4500_s6 }
 0xe0a   :  { %v4293_v60 = vpop.eup %4292 }
 0xe0b   :  { %1467 = vrot.lane.b32.xlu0 %v4293_v60, %s4500_s6  ;;  %v4295_v0 = vpop.eup %4294 }
 0xe0c   :  { %v1452_v1 = vadd.f32 1.0, %v4295_v0 }
 0xe0e   :  { %4296 = vrcp.f32 %v1452_v1 }
 0xe18   :  { %v4297_v3 = vpop.eup %4296 }
 0xe19   :  { %v1465_v29 = vsub.f32 1.0, %v4297_v3  ;;  %v1472_v6 = vmul.f32 %v4297_v3, %v1328_v33 }
 0xe7a   :  { %v1429_v18 = vpop.permute.xlu1 %1428 }
 0xe7b   :  { %v1431_v27 = vmul.f32 %v1429_v18, %v1426_v5 }
 0xe7d   :  { %v5400_v13 = vadd.f32 %v1434_v19, %v1431_v27  ;;  %v1468_v22 = vpop.permute.xlu0 %1467 }
 0xe7e   :  { %v1470_v9 = vmul.f32 %v1468_v22, %v1465_v29 }
 0xe7f   :  { %1475 = vrot.lane.b32.xlu0 %v5400_v13, %s4500_s6  ;;  %v1584_v0 = vrot.slane %v5400_v13, 6 }
 0xe80   :  { %v5406_v35 = vadd.f32 %v1472_v6, %v1470_v9 }
 0xe82   :  { %v1479_v28 = vrot.slane %v5406_v35, 6  ;;  %v1623_v5 = vrot.slane %v5406_v35, 2 }
 0xe84   :  { %1480 = vrot.lane.b32.xlu1 %v1479_v28, %s4501_s0 }
 0xef1   :  { %v1476_v46 = vpop.permute.xlu0 %1475 }
 0xef6   :  { %v1481_v36 = vpop.permute.xlu1 %1480 }
 0xef7   :  { %v1483_v37 = vsel %vm875_vm1, %v1476_v46, %v1481_v36 }
 0xef8   :  { %3465 = vmatmul.mubr.msk.f32.vlgmr.msra.gmra.mrb[14].mxu0 %vm634_vm0, %v1483_v37 }
 0xef9   :  { %4038 = vmatpush1.bf16.msra.mxu0 %v5125_v8  ;;  %1858 = vmatprep.mubr.f32.mxu0 %v4498_v7 }
 0xefa   :  { %4040 = vmatprep.subr.bf16.mxu0 %v5136_v11 }
 0xefd   :  { %4042 = vmatpush1.bf16.msra.mxu0 %v5144_v14 }
 0xefe   :  { %4044 = vmatprep.subr.bf16.mxu0 %v5154_v17 }
 0xf01   :  { %4046 = vmatpush1.bf16.msra.mxu0 %v5162_v20 }
 0xf02   :  { %4048 = vmatprep.subr.bf16.mxu0 %v5172_v23 }
 0xf05   :  { %4050 = vmatpush1.bf16.msra.mxu0 %v5180_v26 }
 0xfcb   :  { %v1553_v33 = vpop.f32.mrb[14].mxu0 }
 0xfcc   :  { %v1554_v38 = vadd.f32 %v1553_v33, %v5228_v24  ;;  %v1555_v39 = vpop.f32.mrb[15].mxu0 }
 0xfcd   :  { %v1556_v8 = vadd.f32 %v1555_v39, %v5222_v16 }
 0xfce   :  { %v1559_v40 = vrot.slane %v1554_v38, 6  ;;  %v1588_v11 = vrot.slane %v1554_v38, 4 }
 0xfcf   :  { %v1598_v41 = vrot.slane %v1556_v8, 4 }
 0xfd0   :  { %1568 = vrot.lane.b32.xlu1 %v1559_v40, %s4499_s4  ;;  %v1561_v14 = vadd.f32 %v1559_v40, %v5234_v30  ;;  %v1590_v17 = vadd.f32 %v1588_v11, %v5237_v32 }
 0xfd1   :  { %1607 = vrot.lane.b32.xlu0 %v1598_v41, %s4499_s4  ;;  %v1600_v57 = vadd.f32 %v1598_v41, %v5216_v10 }
 0xfd2   :  { %v3466_v20 = vmul.f32 -1.442695, %v1561_v14  ;;  %v3467_v23 = vmul.f32 -1.442695, %v1590_v17 }
 0xfd3   :  { %v3468_v58 = vmul.f32 -1.442695, %v1600_v57 }
 0xfd4   :  { %4298 = vpow2.f32 %v3466_v20 }
 0xfd5   :  { %4300 = vpow2.f32 %v3467_v23 }
 0xfde   :  { %v4299_v26 = vpop.eup %4298 }
 0xfdf   :  { %v4301_v4 = vpop.eup %4300  ;;  %v1565_v42 = vadd.f32 1.0, %v4299_v26 }
 0xfe0   :  { %v1594_v43 = vadd.f32 1.0, %v4301_v4 }
 0xfe1   :  { %4302 = vrcp.f32 %v1565_v42 }
 0xfe2   :  { %4304 = vrcp.f32 %v1594_v43 }
 0xfeb   :  { %v4303_v44 = vpop.eup %4302 }
 0xfec   :  { %v4305_v47 = vpop.eup %4304  ;;  %v1578_v63 = vsub.f32 1.0, %v4303_v44  ;;  %v1586_v15 = vmul.f32 %v4303_v44, %v1584_v0 }
0x1042   :  { %v1569_v45 = vpop.permute.xlu1 %1568 }
0x1043   :  { %v1571_v48 = vmul.f32 %v4303_v44, %v1569_v45  ;;  %v1608_v49 = vpop.permute.xlu0 %1607 }
0x1044   :  { %v1610_v50 = vmul.f32 %v4305_v47, %v1608_v49 }
0x1045   :  { %1573 = vrot.lane.b32.xlu1 %v1571_v48, %s4499_s4 }
0x1046   :  { %1612 = vrot.lane.b32.xlu0 %v1610_v50, %s4499_s4 }
0x10b7   :  { %v1574_v51 = vpop.permute.xlu1 %1573 }
0x10b8   :  { %v1576_v52 = vadd.f32 %v1574_v51, %v5234_v30  ;;  %v1613_v53 = vpop.permute.xlu0 %1612 }
0x10b9   :  { %v1615_v54 = vadd.f32 %v1613_v53, %v5216_v10 }
0x10ba   :  { %4306 = vtanh.f32 %v1576_v52 }
0x10bb   :  { %4308 = vtanh.f32 %v1615_v54 }
0x10bc   :  { %4310 = vpow2.f32 %v3468_v58 }
0x10c4   :  { %v4307_v55 = vpop.eup %4306 }
0x10c5   :  { %v4309_v56 = vpop.eup %4308  ;;  %1580 = vrot.lane.b32.xlu1 %v4307_v55, %s4500_s6 }
0x10c6   :  { %1619 = vrot.lane.b32.xlu0 %v4309_v56, %s4500_s6  ;;  %v4311_v59 = vpop.eup %4310 }
0x10c7   :  { %v1604_v60 = vadd.f32 1.0, %v4311_v59 }
0x10c9   :  { %4312 = vrcp.f32 %v1604_v60 }
0x10d3   :  { %v4313_v61 = vpop.eup %4312 }
0x10d4   :  { %v1617_v3 = vsub.f32 1.0, %v4313_v61  ;;  %v1625_v27 = vmul.f32 %v4313_v61, %v1623_v5 }
0x1137   :  { %v1581_v1 = vpop.permute.xlu1 %1580 }
0x1138   :  { %v1583_v18 = vmul.f32 %v1581_v1, %v1578_v63  ;;  %v1620_v19 = vpop.permute.xlu0 %1619 }
0x1139   :  { %v1622_v29 = vmul.f32 %v1620_v19, %v1617_v3 }
0x113a   :  { %v5435_v22 = vadd.f32 %v1586_v15, %v1583_v18 }
0x113b   :  { %v5437_v6 = vadd.f32 %v1625_v27, %v1622_v29 }
0x113c   :  { %1628 = vrot.lane.b32.xlu0 %v5435_v22, %s4500_s6  ;;  %v1738_v0 = vrot.slane %v5435_v22, 6 }
0x113d   :  { %v1632_v9 = vrot.slane %v5437_v6, 2 }
0x113f   :  { %1633 = vrot.lane.b32.xlu1 %v1632_v9, %s4501_s0 }
0x11ae   :  { %v1629_v28 = vpop.permute.xlu0 %1628 }
0x11b1   :  { %v1634_v46 = vpop.permute.xlu1 %1633 }
0x11b2   :  { %v1636_v36 = vsel %vm875_vm1, %v1629_v28, %v1634_v46  ;;  %v1936_v46 = vsel %vm1930_vm2, %v5400_v13, %v5435_v22 }
0x11b3   :  { %v1638_v37 = vrot.slane %v1636_v36, 2 }
0x11b5   :  { %3469 = vmatmul.mubr.msk.f32.vlgmr.msra.gmra.mrb[18].mxu1 %vm634_vm0, %v1638_v37 }
0x11b6   :  { %2078 = vmatprep.mubr.f32.mxu1 %v4498_v7 }
0x1288   :  { %v1707_v33 = vpop.f32.mrb[18].mxu1 }
0x1289   :  { %v1708_v38 = vadd.f32 %v1707_v33, %v5228_v24  ;;  %v1709_v39 = vpop.f32.mrb[19].mxu1 }
0x128a   :  { %v1710_v8 = vadd.f32 %v1709_v39, %v5222_v16 }
0x128b   :  { %v1713_v40 = vrot.slane %v1708_v38, 4  ;;  %v1742_v11 = vrot.slane %v1708_v38, 6 }
0x128c   :  { %v1752_v41 = vrot.slane %v1710_v8, 6 }
0x128d   :  { %1722 = vrot.lane.b32.xlu1 %v1713_v40, %s4499_s4  ;;  %v1715_v14 = vadd.f32 %v1713_v40, %v5234_v30  ;;  %v1744_v17 = vadd.f32 %v1742_v11, %v5237_v32 }
0x128e   :  { %1761 = vrot.lane.b32.xlu0 %v1752_v41, %s4499_s4  ;;  %v1754_v57 = vadd.f32 %v1752_v41, %v5216_v10 }
0x128f   :  { %v3470_v20 = vmul.f32 -1.442695, %v1715_v14  ;;  %v3471_v23 = vmul.f32 -1.442695, %v1744_v17 }
0x1290   :  { %v3472_v58 = vmul.f32 -1.442695, %v1754_v57  ;;  %v1987_v57 = vld [vmem:[%s6020_s9 + $0x38] sm:$0xff] }
0x1291   :  { %4314 = vpow2.f32 %v3470_v20 }
0x1292   :  { %4316 = vpow2.f32 %v3471_v23 }
0x129b   :  { %v4315_v26 = vpop.eup %4314 }
0x129c   :  { %v4317_v4 = vpop.eup %4316  ;;  %v1719_v42 = vadd.f32 1.0, %v4315_v26 }
0x129d   :  { %v1748_v43 = vadd.f32 1.0, %v4317_v4 }
0x129e   :  { %4318 = vrcp.f32 %v1719_v42 }
0x129f   :  { %4320 = vrcp.f32 %v1748_v43 }
0x12a8   :  { %v4319_v44 = vpop.eup %4318 }
0x12a9   :  { %v4321_v47 = vpop.eup %4320  ;;  %v1732_v63 = vsub.f32 1.0, %v4319_v44  ;;  %v1740_v5 = vmul.f32 %v4319_v44, %v1738_v0  ;;  %v1989_v0 = vld [vmem:[%s6020_s9 + $0x48] sm:$0xff] }
0x12ff   :  { %v1723_v45 = vpop.permute.xlu1 %1722 }
0x1300   :  { %v1725_v48 = vmul.f32 %v4319_v44, %v1723_v45  ;;  %v1762_v49 = vpop.permute.xlu0 %1761 }
0x1301   :  { %v1764_v50 = vmul.f32 %v4321_v47, %v1762_v49 }
0x1302   :  { %1727 = vrot.lane.b32.xlu1 %v1725_v48, %s4499_s4 }
0x1303   :  { %1766 = vrot.lane.b32.xlu0 %v1764_v50, %s4499_s4 }
0x1374   :  { %v1728_v51 = vpop.permute.xlu1 %1727 }
0x1375   :  { %v1730_v52 = vadd.f32 %v1728_v51, %v5234_v30  ;;  %v1767_v53 = vpop.permute.xlu0 %1766  ;;  %v1981_v51 = vld [vmem:[%s6020_s9 + $0x8] sm:$0xff] }
0x1376   :  { %v1769_v54 = vadd.f32 %v1767_v53, %v5216_v10  ;;  %v1980_v53 = vld [vmem:[%s6020_s9] sm:$0xff] }
0x1377   :  { %4322 = vtanh.f32 %v1730_v52  ;;  %v1983_v52 = vld [vmem:[%s6020_s9 + $0x18] sm:$0xff] }
0x1378   :  { %4324 = vtanh.f32 %v1769_v54 }
0x1379   :  { %4326 = vpow2.f32 %v3472_v58 }
0x1381   :  { %v4323_v55 = vpop.eup %4322 }
0x1382   :  { %v4325_v56 = vpop.eup %4324  ;;  %1734 = vrot.lane.b32.xlu1 %v4323_v55, %s4500_s6  ;;  %v5503_v55 = vpack.c.bf16 %v1983_v52, %v1981_v51 }
0x1383   :  { %1773 = vrot.lane.b32.xlu0 %v4325_v56, %s4500_s6  ;;  %v4327_v59 = vpop.eup %4326  ;;  %v1985_v56 = vld [vmem:[%s6020_s9 + $0x28] sm:$0xff] }
0x1384   :  { %v1758_v60 = vadd.f32 1.0, %v4327_v59  ;;  %4068 = vmatprep.subr.bf16.mxu0 %v5503_v55 }
0x1386   :  { %4328 = vrcp.f32 %v1758_v60  ;;  %v5517_v60 = vpack.c.bf16 %v1987_v57, %v1985_v56 }
0x1390   :  { %v4329_v61 = vpop.eup %4328 }
0x1391   :  { %v1771_v3 = vsub.f32 1.0, %v4329_v61  ;;  %v1778_v19 = vmul.f32 %v4329_v61, %v1632_v9  ;;  %v1984_v61 = vld [vmem:[%s6020_s9 + $0x20] sm:$0xff] }
0x13f4   :  { %v1735_v1 = vpop.permute.xlu1 %1734 }
0x13f5   :  { %v1737_v15 = vmul.f32 %v1735_v1, %v1732_v63  ;;  %v1774_v18 = vpop.permute.xlu0 %1773  ;;  %v1986_v63 = vld [vmem:[%s6020_s9 + $0x30] sm:$0xff]  ;;  %v1991_v1 = vld [vmem:[%s6020_s9 + $0x58] sm:$0xff] }
0x13f6   :  { %v1776_v27 = vmul.f32 %v1774_v18, %v1771_v3  ;;  %v5534_v3 = vpack.c.bf16 %v1986_v63, %v1984_v61  ;;  %v1993_v18 = vld [vmem:[%s6020_s9 + $0x68] sm:$0xff] }
0x13f7   :  { %v5460_v29 = vadd.f32 %v1740_v5, %v1737_v15  ;;  %v1988_v5 = vld [vmem:[%s6020_s9 + $0x40] sm:$0xff]  ;;  %v1990_v15 = vld [vmem:[%s6020_s9 + $0x50] sm:$0xff] }
0x13f8   :  { %v5462_v28 = vadd.f32 %v1778_v19, %v1776_v27  ;;  %v5546_v19 = vpack.c.bf16 %v1991_v1, %v1989_v0  ;;  %v1995_v27 = vld [vmem:[%s6020_s9 + $0x78] sm:$0xff] }
0x13f9   :  { %1781 = vrot.lane.b32.xlu0 %v5460_v29, %s4500_s6  ;;  %v5471_v36 = vsel %vm1932_vm3, %v1936_v46, %v5460_v29  ;;  %v1964_v46 = vld [vmem:[%s6018_s7 + $0x8] sm:$0xff]  ;;  %v1891_v0 = vrot.slane %v5460_v29, 6 }
0x13fa   :  { %v1785_v37 = vrot.slane %v5462_v28, 6 }
0x13fc   :  { %1786 = vrot.lane.b32.xlu1 %v1785_v37, %s4501_s0  ;;  %v1966_v37 = vld [vmem:[%s6018_s7 + $0x18] sm:$0xff] }
0x146b   :  { %v1782_v9 = vpop.permute.xlu0 %1781 }
0x146e   :  { %v1787_v33 = vpop.permute.xlu1 %1786 }
0x146f   :  { %v1789_v38 = vsel %vm875_vm1, %v1782_v9, %v1787_v33  ;;  %v4051_v9 = vpack.c.bf16 %v1966_v37, %v1964_v46  ;;  %v1963_v33 = vld [vmem:[%s6018_s7] sm:$0xff]  ;;  %v1942_v37 = vsel %vm1930_vm2, %v5361_v31, %v5322_v25 }
0x1470   :  { %v1791_v39 = vrot.slane %v1789_v38, 4  ;;  %v1965_v38 = vld [vmem:[%s6018_s7 + $0x10] sm:$0xff]  ;;  %v1996_v25 = vld [vmem:[%s6021_s10] sm:$0x3] }
0x1471   :  { %4052 = vmatprep.subr.bf16.mxu1 %v4051_v9  ;;  %v5658_v31 = vrot.slane %v1996_v25, %v5224_v21 }
0x1472   :  { %3473 = vmatmul.mubr.msk.f32.vlgmr.msra.gmra.mrb[16].mxu0 %vm634_vm0, %v1791_v39  ;;  %v1968_v39 = vld [vmem:[%s6018_s7 + $0x28] sm:$0xff] }
0x1473   :  { %2166 = vmatprep.mubr.f32.mxu0 %v4498_v7 }
0x1545   :  { %v1860_v13 = vpop.f32.mrb[16].mxu0 }
0x1546   :  { %v1861_v22 = vadd.f32 %v1860_v13, %v5228_v24  ;;  %v1862_v8 = vpop.f32.mrb[17].mxu0  ;;  %v4053_v13 = vpack.c.bf16 %v1965_v38, %v1963_v33 }
0x1547   :  { %v5480_v40 = vadd.f32 %v1862_v8, %v5222_v16  ;;  %v1969_v8 = vld [vmem:[%s6018_s7 + $0x30] sm:$0xff] }
0x1548   :  { %v1866_v41 = vrot.slane %v1861_v22, 2  ;;  %v1895_v11 = vadd.f32 %v1861_v22, %v5237_v32  ;;  %v1970_v22 = vld [vmem:[%s6018_s7 + $0x38] sm:$0xff]  ;;  %4054 = vmatpush1.bf16.msra.mxu1 %v4053_v13 }
0x1549   :  { %1910 = vrot.lane.b32.xlu0 %v5480_v40, %s4499_s4  ;;  %v1902_v52 = vadd.f32 %v5480_v40, %v5216_v10 }
0x154a   :  { %1875 = vrot.lane.b32.xlu1 %v1866_v41, %s4499_s4  ;;  %v1868_v14 = vadd.f32 %v1866_v41, %v5234_v30  ;;  %v3475_v17 = vmul.f32 -1.442695, %v1895_v11  ;;  %v5578_v41 = vpack.c.bf16 %v1990_v15, %v1988_v5  ;;  %v4055_v11 = vpack.c.bf16 %v1970_v22, %v1968_v39 }
0x154c   :  { %v3474_v20 = vmul.f32 -1.442695, %v1868_v14  ;;  %4330 = vpow2.f32 %v3475_v17  ;;  %v1972_v14 = vld [vmem:[%s6018_s7 + $0x48] sm:$0xff]  ;;  %v1974_v17 = vld [vmem:[%s6018_s7 + $0x58] sm:$0xff]  ;;  %4056 = vmatprep.subr.bf16.mxu1 %v4055_v11 }
0x154e   :  { %4332 = vpow2.f32 %v3474_v20  ;;  %v5587_v20 = vpack.c.bf16 %v1995_v27, %v1993_v18 }
0x1556   :  { %v4331_v23 = vpop.eup %4330 }
0x1557   :  { %v1899_v26 = vadd.f32 1.0, %v4331_v23  ;;  %v1992_v23 = vld [vmem:[%s6020_s9 + $0x60] sm:$0xff] }
0x1558   :  { %v4333_v24 = vpop.eup %4332 }
0x1559   :  { %v1872_v4 = vadd.f32 1.0, %v4333_v24  ;;  %4334 = vrcp.f32 %v1899_v26  ;;  %v1994_v24 = vld [vmem:[%s6020_s9 + $0x70] sm:$0xff] }
0x155b   :  { %4336 = vrcp.f32 %v1872_v4  ;;  %v4059_v4 = vpack.c.bf16 %v1974_v17, %v1972_v14  ;;  %v1979_v14 = vld [vmem:[%s6019_s8] sm:$0x3] }
0x155c   :  { %v2001_v17 = vrot.slane %v1979_v14, %v5224_v21 }
0x1563   :  { %v4335_v16 = vpop.eup %4334 }
0x1565   :  { %v5487_v43 = vpop.eup %4336 }
0x1566   :  { %v1885_v63 = vsub.f32 1.0, %v5487_v43  ;;  %v1893_v18 = vmul.f32 %v5487_v43, %v1891_v0 }
0x15bb   :  { %v1911_v42 = vpop.permute.xlu0 %1910 }
0x15bc   :  { %v1913_v44 = vmul.f32 %v4335_v16, %v1911_v42  ;;  %v1876_v45 = vpop.permute.xlu1 %1875  ;;  %v1971_v16 = vld [vmem:[%s6018_s7 + $0x40] sm:$0xff]  ;;  %v1973_v42 = vld [vmem:[%s6018_s7 + $0x50] sm:$0xff] }
0x15bd   :  { %v1878_v32 = vmul.f32 %v5487_v43, %v1876_v45  ;;  %v1978_v45 = vld [vmem:[%s6018_s7 + $0x78] sm:$0xff] }
0x15be   :  { %1915 = vrot.lane.b32.xlu0 %v1913_v44, %s4499_s4  ;;  %v1976_v44 = vld [vmem:[%s6018_s7 + $0x68] sm:$0xff] }
0x15bf   :  { %1880 = vrot.lane.b32.xlu1 %v1878_v32, %s4499_s4  ;;  %v5608_v32 = vpack.c.bf16 %v1994_v24, %v1992_v23  ;;  %v2005_v23 = vrot.slane %v1979_v14, %v5210_v2 }
0x1630   :  { %v1916_v47 = vpop.permute.xlu0 %1915 }
0x1631   :  { %v1918_v48 = vadd.f32 %v1916_v47, %v5216_v10  ;;  %v1881_v49 = vpop.permute.xlu1 %1880  ;;  %v4061_v47 = vpack.c.bf16 %v1973_v42, %v1971_v16 }
0x1632   :  { %v1883_v50 = vadd.f32 %v1881_v49, %v5234_v30  ;;  %v1982_v30 = vld [vmem:[%s6020_s9 + $0x10] sm:$0xff]  ;;  %v1975_v49 = vld [vmem:[%s6018_s7 + $0x60] sm:$0xff] }
0x1633   :  { %4338 = vtanh.f32 %v1918_v48  ;;  %v5515_v59 = vpack.c.bf16 %v1982_v30, %v1980_v53  ;;  %v4063_v48 = vpack.c.bf16 %v1978_v45, %v1976_v44  ;;  %v3476_v53 = vmul.f32 -1.442695, %v1902_v52 }
0x1634   :  { %4340 = vtanh.f32 %v1883_v50  ;;  %v1977_v50 = vld [vmem:[%s6018_s7 + $0x70] sm:$0xff] }
0x1635   :  { %4070 = vmatpush1.bf16.msra.mxu0 %v5515_v59  ;;  %v4065_v51 = vpack.c.bf16 %v1977_v50, %v1975_v49  ;;  %4342 = vpow2.f32 %v3476_v53 }
0x1636   :  { %4072 = vmatprep.subr.bf16.mxu0 %v5517_v60 }
0x1639   :  { %4074 = vmatpush1.bf16.msra.mxu0 %v5534_v3 }
0x163a   :  { %4076 = vmatprep.subr.bf16.mxu0 %v5546_v19 }
0x163d   :  { %v4339_v54 = vpop.eup %4338  ;;  %4078 = vmatpush1.bf16.msra.mxu0 %v5578_v41 }
0x163e   :  { %v4341_v58 = vpop.eup %4340  ;;  %1922 = vrot.lane.b32.xlu0 %v4339_v54, %s4500_s6  ;;  %4080 = vmatprep.subr.bf16.mxu0 %v5587_v20 }
0x163f   :  { %1887 = vrot.lane.b32.xlu1 %v4341_v58, %s4500_s6  ;;  %v4343_v54 = vpop.eup %4342  ;;  %v1926_v58 = vrot.slane %v5462_v28, 2 }
0x1640   :  { %v1906_v30 = vadd.f32 1.0, %v4343_v54 }
0x1641   :  { %4082 = vmatpush1.bf16.msra.mxu0 %v5608_v32 }
0x1642   :  { %1947 = vrot.lane.b32.xlu0 %v5371_v34, %s4500_s6  ;;  %v1967_v34 = vld [vmem:[%s6018_s7 + $0x20] sm:$0xff]  ;;  %4100 = vmatprep.subr.bf16.mxu0 %v5503_v55  ;;  %4344 = vrcp.f32 %v1906_v30 }
0x1643   :  { %v4057_v26 = vpack.c.bf16 %v1969_v8, %v1967_v34 }
0x1644   :  { %2167 = vmatmul.mubr.f32.vlgmr.msra.gmra.mrb[18].mxu0 %v4498_v7 }
0x1645   :  { %4058 = vmatpush1.bf16.msra.mxu1 %v4057_v26  ;;  %4102 = vmatpush1.bf16.msra.mxu0 %v5515_v59 }
0x1646   :  { %4060 = vmatprep.subr.bf16.mxu1 %v4059_v4  ;;  %2467 = vmatprep.mubr.f32.mxu0 %v4498_v7 }
0x1647   :  { %4104 = vmatprep.subr.bf16.mxu0 %v5517_v60 }
0x1649   :  { %4062 = vmatpush1.bf16.msra.mxu1 %v4061_v47  ;;  %4106 = vmatpush1.bf16.msra.mxu0 %v5534_v3 }
0x164a   :  { %4064 = vmatprep.subr.bf16.mxu1 %v4063_v48  ;;  %4108 = vmatprep.subr.bf16.mxu0 %v5546_v19 }
0x164c   :  { %v4345_v56 = vpop.eup %4344 }
0x164d   :  { %4066 = vmatpush1.bf16.msra.mxu1 %v4065_v51  ;;  %4110 = vmatpush1.bf16.msra.mxu0 %v5578_v41  ;;  %v1920_v57 = vsub.f32 1.0, %v4345_v56  ;;  %v1928_v1 = vmul.f32 %v4345_v56, %v1926_v58 }
0x164e   :  { %4084 = vmatprep.subr.bf16.mxu1 %v5503_v55  ;;  %4112 = vmatprep.subr.bf16.mxu0 %v5587_v20 }
0x1651   :  { %4114 = vmatpush1.bf16.msra.mxu0 %v5608_v32 }
0x1652   :  { %4132 = vmatprep.subr.bf16.mxu0 %v5503_v55 }
0x16b0   :  { %v1923_v61 = vpop.permute.xlu0 %1922 }
0x16b1   :  { %v1925_v5 = vmul.f32 %v1923_v61, %v1920_v57  ;;  %v1888_v15 = vpop.permute.xlu1 %1887 }
0x16b2   :  { %v1890_v10 = vmul.f32 %v1888_v15, %v1885_v63 }
0x16b3   :  { %v1929_v40 = vadd.f32 %v1928_v1, %v1925_v5 }
0x16b4   :  { %v1894_v27 = vadd.f32 %v1893_v18, %v1890_v10  ;;  %v1948_v39 = vpop.permute.xlu0 %1947 }
0x16b5   :  { %v1939_v46 = vsel %vm1930_vm2, %v1929_v40, %v5462_v28  ;;  %v1943_v28 = vsel %vm1932_vm3, %v1942_v37, %v5285_v12 }
0x16b6   :  { %v1938_v9 = vsel %vm1934_vm4, %v5471_v36, %v1894_v27  ;;  %v1940_v29 = vsel %vm1932_vm3, %v1939_v46, %v5437_v6  ;;  %v1944_v33 = vsel %vm1934_vm4, %v1943_v28, %v5249_v62  ;;  %v5661_v6 = vrot.slane %v1996_v25, %v5210_v2 }
0x16b7   :  { %1949 = vrot.lane.b32.xlu0 %v1938_v9, %s4500_s6  ;;  %v1941_v43 = vsel %vm1934_vm4, %v1940_v29, %v5406_v35 }
0x16b8   :  { %1955 = vrot.lane.b32.xlu1 %v1941_v43, %s4501_s0 }
0x16bc   :  { %1957 = vrot.lane.b32.xlu1 %v1944_v33, %s4501_s0 }
0x1717   :  { %v2168_v35 = vpop.f32.mrb[18].mxu0 }
0x1718   :  { %v2169_v36 = vadd.f32 %v2168_v35, %v5658_v31  ;;  %v2170_v38 = vpop.f32.mrb[19].mxu0 }
0x1719   :  { %v5665_v12 = vadd.f32 %v2170_v38, %v5661_v6 }
0x171a   :  { %2181 = vrot.lane.b32.xlu1 %v2169_v36, %s4499_s4  ;;  %v2199_v45 = vrot.slane %v2169_v36, 2 }
0x171b   :  { %v2209_v62 = vrot.slane %v5665_v12, 2 }
0x171d   :  { %2218 = vrot.lane.b32.xlu0 %v2209_v62, %s4499_s4 }
0x1729   :  { %v1950_v34 = vpop.permute.xlu0 %1949 }
0x172a   :  { %v1956_v13 = vpop.permute.xlu1 %1955 }
0x172b   :  { %v1961_v22 = vsel %vm875_vm1, %v1948_v39, %v1956_v13 }
0x172c   :  { %3477 = vmatmul.mubr.msk.f32.vlgmr.msra.gmra.mrb[20].mxu1 %vm634_vm0, %v1961_v22 }
0x172d   :  { %2084 = vmatprep.mubr.f32.mxu1 %v4498_v7  ;;  %4086 = vmatpush1.bf16.msra.mxu1 %v5515_v59 }
0x172e   :  { %v1958_v8 = vpop.permute.xlu1 %1957  ;;  %4088 = vmatprep.subr.bf16.mxu1 %v5517_v60 }
0x172f   :  { %v1962_v11 = vsel %vm875_vm1, %v1950_v34, %v1958_v8 }
0x1730   :  { %3478 = vmatmul.mubr.msk.f32.gmra.mrb[22].mxu1 %vm634_vm0, %v1962_v11 }
0x1731   :  { %4090 = vmatpush1.bf16.msra.mxu1 %v5534_v3  ;;  %2313 = vmatprep.mubr.f32.mxu1 %v4498_v7 }
0x1732   :  { %4092 = vmatprep.subr.bf16.mxu1 %v5546_v19 }
0x1735   :  { %4094 = vmatpush1.bf16.msra.mxu1 %v5578_v41 }
0x1736   :  { %4096 = vmatprep.subr.bf16.mxu1 %v5587_v20 }
0x1739   :  { %4098 = vmatpush1.bf16.msra.mxu1 %v5608_v32 }
0x173a   :  { %4116 = vmatprep.subr.bf16.mxu1 %v5503_v55 }
0x178c   :  { %v2182_v54 = vpop.permute.xlu1 %2181 }
0x178f   :  { %v2219_v57 = vpop.permute.xlu0 %2218 }
0x17ff   :  { %v2080_v24 = vpop.f32.mrb[20].mxu1 }
0x1800   :  { %v5689_v26 = vadd.f32 %v2080_v24, %v2001_v17  ;;  %v2082_v4 = vpop.f32.mrb[21].mxu1 }
0x1801   :  { %v5691_v16 = vadd.f32 %v2082_v4, %v2005_v23 }
0x1802   :  { %v2173_v42 = vadd.f32 %v2169_v36, %v5689_v26 }
0x1803   :  { %v2086_v44 = vpop.f32.mrb[22].mxu1 }
0x1804   :  { %v5694_v47 = vadd.f32 %v2086_v44, %v2001_v17  ;;  %v2088_v48 = vpop.f32.mrb[23].mxu1  ;;  %v3479_v49 = vmul.f32 -1.442695, %v2173_v42 }
0x1805   :  { %v5700_v1 = vadd.f32 %v2088_v48, %v2005_v23 }
0x1806   :  { %4346 = vpow2.f32 %v3479_v49  ;;  %v2201_v50 = vadd.f32 %v2199_v45, %v5694_v47 }
0x1807   :  { %v2211_v40 = vadd.f32 %v2209_v62, %v5700_v1 }
0x1808   :  { %v3480_v21 = vmul.f32 -1.442695, %v2201_v50 }
0x1809   :  { %v3481_v27 = vmul.f32 -1.442695, %v2211_v40 }
0x180a   :  { %4348 = vpow2.f32 %v3480_v21 }
0x1810   :  { %v4347_v2 = vpop.eup %4346 }
0x1811   :  { %v2177_v51 = vadd.f32 1.0, %v4347_v2 }
0x1813   :  { %4350 = vrcp.f32 %v2177_v51 }
0x1814   :  { %v4349_v52 = vpop.eup %4348 }
0x1815   :  { %v2205_v53 = vadd.f32 1.0, %v4349_v52 }
0x1817   :  { %4352 = vrcp.f32 %v2205_v53 }
0x181d   :  { %v4351_v30 = vpop.eup %4350 }
0x181e   :  { %v2184_v56 = vmul.f32 %v4351_v30, %v2182_v54  ;;  %v2191_v9 = vsub.f32 1.0, %v4351_v30  ;;  %v2197_v28 = vmul.f32 0.0, %v4351_v30 }
0x1820   :  { %2186 = vrot.lane.b32.xlu1 %v2184_v56, %s4499_s4 }
0x1821   :  { %v4353_v58 = vpop.eup %4352 }
0x1822   :  { %v2221_v61 = vmul.f32 %v4353_v58, %v2219_v57 }
0x1824   :  { %2223 = vrot.lane.b32.xlu0 %v2221_v61, %s4499_s4 }
0x1892   :  { %v2187_v63 = vpop.permute.xlu1 %2186 }
0x1893   :  { %v2189_v0 = vadd.f32 %v2187_v63, %v5689_v26 }
0x1895   :  { %4354 = vtanh.f32 %v2189_v0 }
0x1896   :  { %v2224_v5 = vpop.permute.xlu0 %2223 }
0x1897   :  { %v2226_v15 = vadd.f32 %v2224_v5, %v5700_v1 }
0x1899   :  { %4356 = vtanh.f32 %v2226_v15 }
0x189a   :  { %4358 = vpow2.f32 %v3481_v27 }
0x189f   :  { %v4355_v18 = vpop.eup %4354 }
0x18a0   :  { %2193 = vrot.lane.b32.xlu1 %v4355_v18, %s4500_s6 }
0x18a3   :  { %v4357_v10 = vpop.eup %4356 }
0x18a4   :  { %2230 = vrot.lane.b32.xlu0 %v4357_v10, %s4500_s6  ;;  %v4359_v46 = vpop.eup %4358 }
0x18a5   :  { %v2215_v37 = vadd.f32 1.0, %v4359_v46 }
0x18a7   :  { %4360 = vrcp.f32 %v2215_v37 }
0x18b1   :  { %v4361_v29 = vpop.eup %4360 }
0x18b2   :  { %v2228_v35 = vsub.f32 1.0, %v4361_v29  ;;  %v2234_v38 = vmul.f32 0.0, %v4361_v29 }
0x1912   :  { %v2194_v43 = vpop.permute.xlu1 %2193 }
0x1913   :  { %v2196_v33 = vmul.f32 %v2194_v43, %v2191_v9 }
0x1915   :  { %v5706_v25 = vadd.f32 %v2197_v28, %v2196_v33 }
0x1916   :  { %v2231_v36 = vpop.permute.xlu0 %2230 }
0x1917   :  { %v2233_v12 = vmul.f32 %v2231_v36, %v2228_v35  ;;  %2237 = vrot.lane.b32.xlu0 %v5706_v25, %s4500_s6  ;;  %v2346_v37 = vrot.slane %v5706_v25, 6 }
0x1919   :  { %v5710_v62 = vadd.f32 %v2234_v38, %v2233_v12 }
0x191b   :  { %v2241_v39 = vrot.slane %v5710_v62, 6  ;;  %v2385_v43 = vrot.slane %v5710_v62, 2 }
0x191d   :  { %2242 = vrot.lane.b32.xlu1 %v2241_v39, %s4501_s0 }
0x1989   :  { %v2238_v13 = vpop.permute.xlu0 %2237 }
0x198f   :  { %v2243_v22 = vpop.permute.xlu1 %2242 }
0x1990   :  { %v2245_v34 = vsel %vm875_vm1, %v2238_v13, %v2243_v22 }
0x1991   :  { %3482 = vmatmul.mubr.msk.f32.vlgmr.msra.gmra.mrb[24].mxu1 %vm634_vm0, %v2245_v34 }
0x1992   :  { %4118 = vmatpush1.bf16.msra.mxu1 %v5515_v59  ;;  %2620 = vmatprep.mubr.f32.mxu1 %v4498_v7 }
0x1993   :  { %4120 = vmatprep.subr.bf16.mxu1 %v5517_v60 }
0x1996   :  { %4122 = vmatpush1.bf16.msra.mxu1 %v5534_v3 }
0x1997   :  { %4124 = vmatprep.subr.bf16.mxu1 %v5546_v19 }
0x199a   :  { %4126 = vmatpush1.bf16.msra.mxu1 %v5578_v41 }
0x199b   :  { %4128 = vmatprep.subr.bf16.mxu1 %v5587_v20 }
0x199e   :  { %4130 = vmatpush1.bf16.msra.mxu1 %v5608_v32 }
0x199f   :  { %4148 = vmatprep.subr.bf16.mxu1 %v5503_v55 }
0x1a64   :  { %v2315_v8 = vpop.f32.mrb[24].mxu1 }
0x1a65   :  { %v2316_v11 = vadd.f32 %v2315_v8, %v5658_v31  ;;  %v2317_v14 = vpop.f32.mrb[25].mxu1 }
0x1a66   :  { %v2318_v17 = vadd.f32 %v2317_v14, %v5661_v6 }
0x1a67   :  { %v2321_v23 = vrot.slane %v2316_v11, 6  ;;  %v2350_v4 = vrot.slane %v2316_v11, 4 }
0x1a68   :  { %v2360_v24 = vrot.slane %v2318_v17, 4 }
0x1a69   :  { %2330 = vrot.lane.b32.xlu1 %v2321_v23, %s4499_s4  ;;  %v2323_v42 = vadd.f32 %v2321_v23, %v5689_v26  ;;  %v2352_v44 = vadd.f32 %v2350_v4, %v5694_v47 }
0x1a6a   :  { %2369 = vrot.lane.b32.xlu0 %v2360_v24, %s4499_s4  ;;  %v2362_v15 = vadd.f32 %v2360_v24, %v5700_v1 }
0x1a6b   :  { %v3483_v45 = vmul.f32 -1.442695, %v2323_v42  ;;  %v3484_v48 = vmul.f32 -1.442695, %v2352_v44 }
0x1a6c   :  { %v3485_v18 = vmul.f32 -1.442695, %v2362_v15 }
0x1a6d   :  { %4362 = vpow2.f32 %v3483_v45 }
0x1a6e   :  { %4364 = vpow2.f32 %v3484_v48 }
0x1a77   :  { %v4363_v49 = vpop.eup %4362 }
0x1a78   :  { %v4365_v50 = vpop.eup %4364  ;;  %v2327_v21 = vadd.f32 1.0, %v4363_v49 }
0x1a79   :  { %v2356_v2 = vadd.f32 1.0, %v4365_v50 }
0x1a7a   :  { %4366 = vrcp.f32 %v2327_v21 }
0x1a7b   :  { %4368 = vrcp.f32 %v2356_v2 }
0x1a84   :  { %v4367_v51 = vpop.eup %4366 }
0x1a85   :  { %v4369_v53 = vpop.eup %4368  ;;  %v2340_v46 = vsub.f32 1.0, %v4367_v51  ;;  %v2348_v28 = vmul.f32 %v4367_v51, %v2346_v37 }
0x1adb   :  { %v2331_v52 = vpop.permute.xlu1 %2330 }
0x1adc   :  { %v2333_v54 = vmul.f32 %v4367_v51, %v2331_v52  ;;  %v2370_v30 = vpop.permute.xlu0 %2369 }
0x1add   :  { %v2372_v56 = vmul.f32 %v4369_v53, %v2370_v30 }
0x1ade   :  { %2335 = vrot.lane.b32.xlu1 %v2333_v54, %s4499_s4 }
0x1adf   :  { %2374 = vrot.lane.b32.xlu0 %v2372_v56, %s4499_s4 }
0x1b50   :  { %v2336_v57 = vpop.permute.xlu1 %2335 }
0x1b51   :  { %v2338_v58 = vadd.f32 %v2336_v57, %v5689_v26  ;;  %v2375_v61 = vpop.permute.xlu0 %2374 }
0x1b52   :  { %v2377_v63 = vadd.f32 %v2375_v61, %v5700_v1 }
0x1b53   :  { %4370 = vtanh.f32 %v2338_v58 }
0x1b54   :  { %4372 = vtanh.f32 %v2377_v63 }
0x1b55   :  { %4374 = vpow2.f32 %v3485_v18 }
0x1b5d   :  { %v4371_v0 = vpop.eup %4370 }
0x1b5e   :  { %v4373_v5 = vpop.eup %4372  ;;  %2342 = vrot.lane.b32.xlu1 %v4371_v0, %s4500_s6 }
0x1b5f   :  { %2381 = vrot.lane.b32.xlu0 %v4373_v5, %s4500_s6  ;;  %v4375_v10 = vpop.eup %4374 }
0x1b60   :  { %v2366_v40 = vadd.f32 1.0, %v4375_v10 }
0x1b62   :  { %4376 = vrcp.f32 %v2366_v40 }
0x1b6c   :  { %v4377_v27 = vpop.eup %4376 }
0x1b6d   :  { %v2379_v29 = vsub.f32 1.0, %v4377_v27  ;;  %v2387_v36 = vmul.f32 %v4377_v27, %v2385_v43 }
0x1bd0   :  { %v2343_v9 = vpop.permute.xlu1 %2342 }
0x1bd1   :  { %v2345_v33 = vmul.f32 %v2343_v9, %v2340_v46  ;;  %v2382_v35 = vpop.permute.xlu0 %2381 }
0x1bd2   :  { %v2384_v38 = vmul.f32 %v2382_v35, %v2379_v29 }
0x1bd3   :  { %v5740_v12 = vadd.f32 %v2348_v28, %v2345_v33 }
0x1bd4   :  { %v5742_v39 = vadd.f32 %v2387_v36, %v2384_v38 }
0x1bd5   :  { %2390 = vrot.lane.b32.xlu0 %v5740_v12, %s4500_s6  ;;  %v2500_v29 = vrot.slane %v5740_v12, 6 }
0x1bd6   :  { %v2394_v13 = vrot.slane %v5742_v39, 2 }
0x1bd8   :  { %2395 = vrot.lane.b32.xlu1 %v2394_v13, %s4501_s0 }
0x1c47   :  { %v2391_v22 = vpop.permute.xlu0 %2390 }
0x1c4a   :  { %v2396_v34 = vpop.permute.xlu1 %2395 }
0x1c4b   :  { %v2398_v8 = vsel %vm875_vm1, %v2391_v22, %v2396_v34 }
0x1c4c   :  { %v2400_v11 = vrot.slane %v2398_v8, 2  ;;  %v3299_v8 = vsel %vm1930_vm2, %v5706_v25, %v5740_v12 }
0x1c4e   :  { %3486 = vmatmul.mubr.msk.f32.vlgmr.msra.gmra.mrb[20].mxu0 %vm634_vm0, %v2400_v11 }
0x1c4f   :  { %4134 = vmatpush1.bf16.msra.mxu0 %v5515_v59  ;;  %2770 = vmatprep.mubr.f32.mxu0 %v4498_v7 }
0x1c50   :  { %4136 = vmatprep.subr.bf16.mxu0 %v5517_v60 }
0x1c53   :  { %4138 = vmatpush1.bf16.msra.mxu0 %v5534_v3 }
0x1c54   :  { %4140 = vmatprep.subr.bf16.mxu0 %v5546_v19 }
0x1c57   :  { %4142 = vmatpush1.bf16.msra.mxu0 %v5578_v41 }
0x1c58   :  { %4144 = vmatprep.subr.bf16.mxu0 %v5587_v20 }
0x1c5b   :  { %4146 = vmatpush1.bf16.msra.mxu0 %v5608_v32 }
0x1c5c   :  { %4164 = vmatprep.subr.bf16.mxu0 %v5503_v55 }
0x1d21   :  { %v2469_v14 = vpop.f32.mrb[20].mxu0 }
0x1d22   :  { %v2470_v17 = vadd.f32 %v2469_v14, %v5658_v31  ;;  %v2471_v23 = vpop.f32.mrb[21].mxu0 }
0x1d23   :  { %v2472_v24 = vadd.f32 %v2471_v23, %v5661_v6 }
0x1d24   :  { %v2475_v4 = vrot.slane %v2470_v17, 4  ;;  %v2504_v44 = vrot.slane %v2470_v17, 6 }
0x1d25   :  { %v2514_v42 = vrot.slane %v2472_v24, 6 }
0x1d26   :  { %2484 = vrot.lane.b32.xlu1 %v2475_v4, %s4499_s4  ;;  %v2477_v45 = vadd.f32 %v2475_v4, %v5689_v26  ;;  %v2506_v48 = vadd.f32 %v2504_v44, %v5694_v47 }
0x1d27   :  { %2523 = vrot.lane.b32.xlu0 %v2514_v42, %s4499_s4  ;;  %v2516_v10 = vadd.f32 %v2514_v42, %v5700_v1 }
0x1d28   :  { %v3487_v49 = vmul.f32 -1.442695, %v2477_v45  ;;  %v3488_v50 = vmul.f32 -1.442695, %v2506_v48 }
0x1d29   :  { %v3489_v40 = vmul.f32 -1.442695, %v2516_v10 }
0x1d2a   :  { %4378 = vpow2.f32 %v3487_v49 }
0x1d2b   :  { %4380 = vpow2.f32 %v3488_v50 }
0x1d34   :  { %v4379_v21 = vpop.eup %4378 }
0x1d35   :  { %v4381_v2 = vpop.eup %4380  ;;  %v2481_v51 = vadd.f32 1.0, %v4379_v21 }
0x1d36   :  { %v2510_v52 = vadd.f32 1.0, %v4381_v2 }
0x1d37   :  { %4382 = vrcp.f32 %v2481_v51 }
0x1d38   :  { %4384 = vrcp.f32 %v2510_v52 }
0x1d41   :  { %v4383_v53 = vpop.eup %4382 }
0x1d42   :  { %v4385_v30 = vpop.eup %4384  ;;  %v2494_v9 = vsub.f32 1.0, %v4383_v53  ;;  %v2502_v33 = vmul.f32 %v4383_v53, %v2500_v29 }
0x1d98   :  { %v2485_v54 = vpop.permute.xlu1 %2484 }
0x1d99   :  { %v2487_v56 = vmul.f32 %v4383_v53, %v2485_v54  ;;  %v2524_v57 = vpop.permute.xlu0 %2523 }
0x1d9a   :  { %v2526_v58 = vmul.f32 %v4385_v30, %v2524_v57 }
0x1d9b   :  { %2489 = vrot.lane.b32.xlu1 %v2487_v56, %s4499_s4 }
0x1d9c   :  { %2528 = vrot.lane.b32.xlu0 %v2526_v58, %s4499_s4 }
0x1e0d   :  { %v2490_v61 = vpop.permute.xlu1 %2489 }
0x1e0e   :  { %v2492_v63 = vadd.f32 %v2490_v61, %v5689_v26  ;;  %v2529_v0 = vpop.permute.xlu0 %2528 }
0x1e0f   :  { %v2531_v5 = vadd.f32 %v2529_v0, %v5700_v1 }
0x1e10   :  { %4386 = vtanh.f32 %v2492_v63 }
0x1e11   :  { %4388 = vtanh.f32 %v2531_v5 }
0x1e12   :  { %4390 = vpow2.f32 %v3489_v40 }
0x1e1a   :  { %v4387_v15 = vpop.eup %4386 }
0x1e1b   :  { %v4389_v18 = vpop.eup %4388  ;;  %2496 = vrot.lane.b32.xlu1 %v4387_v15, %s4500_s6 }
0x1e1c   :  { %2535 = vrot.lane.b32.xlu0 %v4389_v18, %s4500_s6  ;;  %v4391_v27 = vpop.eup %4390 }
0x1e1d   :  { %v2520_v46 = vadd.f32 1.0, %v4391_v27 }
0x1e1f   :  { %4392 = vrcp.f32 %v2520_v46 }
0x1e29   :  { %v4393_v37 = vpop.eup %4392 }
0x1e2a   :  { %v2533_v28 = vsub.f32 1.0, %v4393_v37  ;;  %v2540_v38 = vmul.f32 %v4393_v37, %v2394_v13 }
0x1e8d   :  { %v2497_v43 = vpop.permute.xlu1 %2496 }
0x1e8e   :  { %v2499_v35 = vmul.f32 %v2497_v43, %v2494_v9  ;;  %v2536_v36 = vpop.permute.xlu0 %2535 }
0x1e8f   :  { %v2538_v22 = vmul.f32 %v2536_v36, %v2533_v28 }
0x1e90   :  { %v5777_v34 = vadd.f32 %v2502_v33, %v2499_v35 }
0x1e91   :  { %v5782_v11 = vadd.f32 %v2540_v38, %v2538_v22 }
0x1e92   :  { %2543 = vrot.lane.b32.xlu0 %v5777_v34, %s4500_s6  ;;  %v5788_v14 = vsel %vm1932_vm3, %v3299_v8, %v5777_v34  ;;  %v2653_v33 = vrot.slane %v5777_v34, 6 }
0x1e93   :  { %v2547_v17 = vrot.slane %v5782_v11, 6  ;;  %v2688_v29 = vrot.slane %v5782_v11, 2 }
0x1e95   :  { %2548 = vrot.lane.b32.xlu1 %v2547_v17, %s4501_s0 }
0x1f04   :  { %v2544_v13 = vpop.permute.xlu0 %2543 }
0x1f07   :  { %v2549_v23 = vpop.permute.xlu1 %2548 }
0x1f08   :  { %v2551_v24 = vsel %vm875_vm1, %v2544_v13, %v2549_v23 }
0x1f09   :  { %v2553_v4 = vrot.slane %v2551_v24, 4 }
0x1f0b   :  { %3490 = vmatmul.mubr.msk.f32.vlgmr.msra.gmra.mrb[26].mxu1 %vm634_vm0, %v2553_v4 }
0x1f0c   :  { %4150 = vmatpush1.bf16.msra.mxu1 %v5515_v59  ;;  %2920 = vmatprep.mubr.f32.mxu1 %v4498_v7 }
0x1f0d   :  { %4152 = vmatprep.subr.bf16.mxu1 %v5517_v60 }
0x1f10   :  { %4154 = vmatpush1.bf16.msra.mxu1 %v5534_v3 }
0x1f11   :  { %4156 = vmatprep.subr.bf16.mxu1 %v5546_v19 }
0x1f14   :  { %4158 = vmatpush1.bf16.msra.mxu1 %v5578_v41 }
0x1f15   :  { %4160 = vmatprep.subr.bf16.mxu1 %v5587_v20 }
0x1f18   :  { %4162 = vmatpush1.bf16.msra.mxu1 %v5608_v32 }
0x1f19   :  { %4180 = vmatprep.subr.bf16.mxu1 %v5503_v55 }
0x1fde   :  { %v2622_v25 = vpop.f32.mrb[26].mxu1 }
0x1fdf   :  { %v2623_v12 = vadd.f32 %v2622_v25, %v5658_v31  ;;  %v2624_v42 = vpop.f32.mrb[27].mxu1 }
0x1fe0   :  { %v2625_v44 = vadd.f32 %v2624_v42, %v5661_v6 }
0x1fe1   :  { %v2628_v45 = vrot.slane %v2623_v12, 2  ;;  %v2657_v48 = vadd.f32 %v2623_v12, %v5694_v47 }
0x1fe2   :  { %2672 = vrot.lane.b32.xlu0 %v2625_v44, %s4499_s4  ;;  %v2664_v10 = vadd.f32 %v2625_v44, %v5700_v1 }
0x1fe3   :  { %2637 = vrot.lane.b32.xlu1 %v2628_v45, %s4499_s4  ;;  %v2630_v49 = vadd.f32 %v2628_v45, %v5689_v26  ;;  %v3492_v50 = vmul.f32 -1.442695, %v2657_v48 }
0x1fe4   :  { %v3493_v40 = vmul.f32 -1.442695, %v2664_v10 }
0x1fe5   :  { %v3491_v21 = vmul.f32 -1.442695, %v2630_v49  ;;  %4394 = vpow2.f32 %v3492_v50 }
0x1fe7   :  { %4396 = vpow2.f32 %v3491_v21 }
0x1fef   :  { %v4395_v55 = vpop.eup %4394 }
0x1ff0   :  { %v2661_v51 = vadd.f32 1.0, %v4395_v55 }
0x1ff1   :  { %v4397_v2 = vpop.eup %4396 }
0x1ff2   :  { %v2634_v52 = vadd.f32 1.0, %v4397_v2  ;;  %4398 = vrcp.f32 %v2661_v51 }
0x1ff4   :  { %4400 = vrcp.f32 %v2634_v52 }
0x1ffc   :  { %v4399_v53 = vpop.eup %4398 }
0x1ffe   :  { %v4401_v30 = vpop.eup %4400 }
0x1fff   :  { %v2647_v28 = vsub.f32 1.0, %v4401_v30  ;;  %v2655_v22 = vmul.f32 %v4401_v30, %v2653_v33 }
0x2054   :  { %v2673_v54 = vpop.permute.xlu0 %2672 }
0x2055   :  { %v2675_v56 = vmul.f32 %v4399_v53, %v2673_v54  ;;  %v2638_v57 = vpop.permute.xlu1 %2637 }
0x2056   :  { %v2640_v58 = vmul.f32 %v4401_v30, %v2638_v57 }
0x2057   :  { %2677 = vrot.lane.b32.xlu0 %v2675_v56, %s4499_s4 }
0x2058   :  { %2642 = vrot.lane.b32.xlu1 %v2640_v58, %s4499_s4 }
0x20c9   :  { %v2678_v61 = vpop.permute.xlu0 %2677 }
0x20ca   :  { %v2680_v63 = vadd.f32 %v2678_v61, %v5700_v1  ;;  %v2643_v0 = vpop.permute.xlu1 %2642 }
0x20cb   :  { %v2645_v5 = vadd.f32 %v2643_v0, %v5689_v26 }
0x20cc   :  { %4402 = vtanh.f32 %v2680_v63 }
0x20cd   :  { %4404 = vtanh.f32 %v2645_v5 }
0x20ce   :  { %4406 = vpow2.f32 %v3493_v40 }
0x20d6   :  { %v4403_v15 = vpop.eup %4402 }
0x20d7   :  { %v4405_v18 = vpop.eup %4404  ;;  %2684 = vrot.lane.b32.xlu0 %v4403_v15, %s4500_s6 }
0x20d8   :  { %2649 = vrot.lane.b32.xlu1 %v4405_v18, %s4500_s6  ;;  %v4407_v27 = vpop.eup %4406 }
0x20d9   :  { %v2668_v46 = vadd.f32 1.0, %v4407_v27 }
0x20db   :  { %4408 = vrcp.f32 %v2668_v46 }
0x20e5   :  { %v4409_v37 = vpop.eup %4408 }
0x20e6   :  { %v2682_v9 = vsub.f32 1.0, %v4409_v37  ;;  %v2690_v35 = vmul.f32 %v4409_v37, %v2688_v29 }
0x2149   :  { %v2685_v43 = vpop.permute.xlu0 %2684 }
0x214a   :  { %v2687_v36 = vmul.f32 %v2685_v43, %v2682_v9  ;;  %v2650_v38 = vpop.permute.xlu1 %2649 }
0x214b   :  { %v2652_v8 = vmul.f32 %v2650_v38, %v2647_v28 }
0x214c   :  { %v5818_v17 = vadd.f32 %v2690_v35, %v2687_v36 }
0x214d   :  { %v5820_v1 = vadd.f32 %v2655_v22, %v2652_v8 }
0x214e   :  { %v2697_v13 = vrot.slane %v5818_v17, 2 }
0x214f   :  { %2693 = vrot.lane.b32.xlu0 %v5820_v1, %s4500_s6  ;;  %v5828_v23 = vsel %vm1934_vm4, %v5788_v14, %v5820_v1  ;;  %v2801_v43 = vrot.slane %v5820_v1, 6 }
0x2150   :  { %2698 = vrot.lane.b32.xlu1 %v2697_v13, %s4501_s0 }
0x21c1   :  { %v2694_v34 = vpop.permute.xlu0 %2693 }
0x21c2   :  { %v2699_v24 = vpop.permute.xlu1 %2698 }
0x21c3   :  { %v2701_v4 = vsel %vm875_vm1, %v2694_v34, %v2699_v24 }
0x21c4   :  { %v2703_v25 = vrot.slane %v2701_v4, 6 }
0x21c6   :  { %3494 = vmatmul.mubr.msk.f32.vlgmr.msra.gmra.mrb[22].mxu0 %vm634_vm0, %v2703_v25 }
0x21c7   :  { %4166 = vmatpush1.bf16.msra.mxu0 %v5515_v59  ;;  %3074 = vmatprep.mubr.f32.mxu0 %v4498_v7 }
0x21c8   :  { %4168 = vmatprep.subr.bf16.mxu0 %v5517_v60 }
0x21cb   :  { %4170 = vmatpush1.bf16.msra.mxu0 %v5534_v3 }
0x21cc   :  { %4172 = vmatprep.subr.bf16.mxu0 %v5546_v19 }
0x21cf   :  { %4174 = vmatpush1.bf16.msra.mxu0 %v5578_v41 }
0x21d0   :  { %4176 = vmatprep.subr.bf16.mxu0 %v5587_v20 }
0x21d3   :  { %4178 = vmatpush1.bf16.msra.mxu0 %v5608_v32 }
0x2299   :  { %v2772_v14 = vpop.f32.mrb[22].mxu0 }
0x229a   :  { %v2773_v12 = vadd.f32 %v2772_v14, %v5658_v31  ;;  %v2774_v42 = vpop.f32.mrb[23].mxu0 }
0x229b   :  { %v2775_v44 = vadd.f32 %v2774_v42, %v5661_v6 }
0x229c   :  { %2785 = vrot.lane.b32.xlu1 %v2773_v12, %s4499_s4  ;;  %v2805_v48 = vrot.slane %v2773_v12, 2  ;;  %v2777_v49 = vadd.f32 %v2773_v12, %v5694_v47 }
0x229d   :  { %v2815_v45 = vrot.slane %v2775_v44, 2 }
0x229e   :  { %v2807_v50 = vadd.f32 %v2805_v48, %v5689_v26  ;;  %v3495_v21 = vmul.f32 -1.442695, %v2777_v49 }
0x229f   :  { %2824 = vrot.lane.b32.xlu0 %v2815_v45, %s4499_s4  ;;  %v2817_v40 = vadd.f32 %v2815_v45, %v5691_v16 }
0x22a0   :  { %v3496_v55 = vmul.f32 -1.442695, %v2807_v50  ;;  %4410 = vpow2.f32 %v3495_v21 }
0x22a1   :  { %v3497_v27 = vmul.f32 -1.442695, %v2817_v40 }
0x22a2   :  { %4412 = vpow2.f32 %v3496_v55 }
0x22aa   :  { %v4411_v2 = vpop.eup %4410 }
0x22ab   :  { %v2781_v52 = vadd.f32 1.0, %v4411_v2 }
0x22ac   :  { %v4413_v51 = vpop.eup %4412 }
0x22ad   :  { %v2811_v53 = vadd.f32 1.0, %v4413_v51  ;;  %4414 = vrcp.f32 %v2781_v52 }
0x22af   :  { %4416 = vrcp.f32 %v2811_v53 }
0x22b7   :  { %v4415_v54 = vpop.eup %4414 }
0x22b8   :  { %v2795_v29 = vsub.f32 1.0, %v4415_v54  ;;  %v2803_v33 = vmul.f32 %v4415_v54, %v2801_v43 }
0x22b9   :  { %v4417_v57 = vpop.eup %4416 }
0x230e   :  { %v2786_v30 = vpop.permute.xlu1 %2785 }
0x230f   :  { %v2788_v56 = vmul.f32 %v4415_v54, %v2786_v30 }
0x2311   :  { %v2825_v58 = vpop.permute.xlu0 %2824  ;;  %2790 = vrot.lane.b32.xlu1 %v2788_v56, %s4499_s4 }
0x2312   :  { %v2827_v61 = vmul.f32 %v4417_v57, %v2825_v58 }
0x2314   :  { %2829 = vrot.lane.b32.xlu0 %v2827_v61, %s4499_s4 }
0x2383   :  { %v2791_v63 = vpop.permute.xlu1 %2790 }
0x2384   :  { %v2793_v0 = vadd.f32 %v2791_v63, %v5694_v47 }
0x2386   :  { %4418 = vtanh.f32 %v2793_v0  ;;  %v2830_v5 = vpop.permute.xlu0 %2829 }
0x2387   :  { %v2832_v15 = vadd.f32 %v2830_v5, %v5691_v16 }
0x2389   :  { %4420 = vtanh.f32 %v2832_v15 }
0x238a   :  { %4422 = vpow2.f32 %v3497_v27 }
0x2390   :  { %v4419_v18 = vpop.eup %4418 }
0x2391   :  { %2797 = vrot.lane.b32.xlu1 %v4419_v18, %s4500_s6 }
0x2393   :  { %v4421_v10 = vpop.eup %4420 }
0x2394   :  { %2836 = vrot.lane.b32.xlu0 %v4421_v10, %s4500_s6  ;;  %v4423_v46 = vpop.eup %4422 }
0x2395   :  { %v2821_v37 = vadd.f32 1.0, %v4423_v46 }
0x2397   :  { %4424 = vrcp.f32 %v2821_v37 }
0x23a1   :  { %v4425_v9 = vpop.eup %4424 }
0x23a2   :  { %v2834_v36 = vsub.f32 1.0, %v4425_v9  ;;  %v2841_v8 = vmul.f32 %v4425_v9, %v2697_v13 }
0x2403   :  { %v2798_v28 = vpop.permute.xlu1 %2797 }
0x2404   :  { %v2800_v35 = vmul.f32 %v2798_v28, %v2795_v29 }
0x2406   :  { %v5857_v38 = vadd.f32 %v2803_v33, %v2800_v35  ;;  %v2837_v22 = vpop.permute.xlu0 %2836 }
0x2407   :  { %v2839_v34 = vmul.f32 %v2837_v22, %v2834_v36 }
0x2408   :  { %2844 = vrot.lane.b32.xlu0 %v5857_v38, %s4500_s6  ;;  %v2953_v10 = vrot.slane %v5857_v38, 6 }
0x2409   :  { %v5863_v24 = vadd.f32 %v2841_v8, %v2839_v34 }
0x240b   :  { %v2848_v4 = vrot.slane %v5863_v24, 6  ;;  %v2992_v46 = vrot.slane %v5863_v24, 2 }
0x240d   :  { %2849 = vrot.lane.b32.xlu1 %v2848_v4, %s4501_s0 }
0x247a   :  { %v2845_v1 = vpop.permute.xlu0 %2844 }
0x247f   :  { %v2850_v25 = vpop.permute.xlu1 %2849 }
0x2480   :  { %v2852_v14 = vsel %vm875_vm1, %v2845_v1, %v2850_v25 }
0x2481   :  { %3498 = vmatmul.mubr.msk.f32.vlgmr.msra.gmra.mrb[28].mxu1 %vm634_vm0, %v2852_v14 }
0x2482   :  { %4182 = vmatpush1.bf16.msra.mxu1 %v5515_v59  ;;  %3227 = vmatprep.mubr.f32.mxu1 %v4498_v7 }
0x2483   :  { %4184 = vmatprep.subr.bf16.mxu1 %v5517_v60 }
0x2486   :  { %4186 = vmatpush1.bf16.msra.mxu1 %v5534_v3 }
0x2487   :  { %4188 = vmatprep.subr.bf16.mxu1 %v5546_v19 }
0x248a   :  { %4190 = vmatpush1.bf16.msra.mxu1 %v5578_v41 }
0x248b   :  { %4192 = vmatprep.subr.bf16.mxu1 %v5587_v20 }
0x248e   :  { %4194 = vmatpush1.bf16.msra.mxu1 %v5608_v32 }
0x2554   :  { %v2922_v13 = vpop.f32.mrb[28].mxu1 }
0x2555   :  { %v2923_v12 = vadd.f32 %v2922_v13, %v5658_v31  ;;  %v2924_v42 = vpop.f32.mrb[29].mxu1 }
0x2556   :  { %v2925_v59 = vadd.f32 %v2924_v42, %v5661_v6 }
0x2557   :  { %v2928_v44 = vrot.slane %v2923_v12, 6  ;;  %v2957_v60 = vrot.slane %v2923_v12, 4 }
0x2558   :  { %v2967_v7 = vrot.slane %v2925_v59, 4 }
0x2559   :  { %2937 = vrot.lane.b32.xlu1 %v2928_v44, %s4499_s4  ;;  %v2930_v3 = vadd.f32 %v2928_v44, %v5694_v47  ;;  %v2959_v19 = vadd.f32 %v2957_v60, %v5689_v26 }
0x255a   :  { %2976 = vrot.lane.b32.xlu0 %v2967_v7, %s4499_s4  ;;  %v2969_v61 = vadd.f32 %v2967_v7, %v5691_v16 }
0x255b   :  { %v3499_v41 = vmul.f32 -1.442695, %v2930_v3  ;;  %v3500_v20 = vmul.f32 -1.442695, %v2959_v19 }
0x255c   :  { %v3501_v63 = vmul.f32 -1.442695, %v2969_v61 }
0x255d   :  { %4426 = vpow2.f32 %v3499_v41 }
0x255e   :  { %4428 = vpow2.f32 %v3500_v20 }
0x2567   :  { %v4427_v32 = vpop.eup %4426 }
0x2568   :  { %v4429_v45 = vpop.eup %4428  ;;  %v2934_v48 = vadd.f32 1.0, %v4427_v32 }
0x2569   :  { %v2963_v49 = vadd.f32 1.0, %v4429_v45 }
0x256a   :  { %4430 = vrcp.f32 %v2934_v48 }
0x256b   :  { %4432 = vrcp.f32 %v2963_v49 }
0x2574   :  { %v4431_v50 = vpop.eup %4430 }
0x2575   :  { %v4433_v55 = vpop.eup %4432  ;;  %v2947_v18 = vsub.f32 1.0, %v4431_v50  ;;  %v2955_v37 = vmul.f32 %v4431_v50, %v2953_v10 }
0x25cb   :  { %v2938_v21 = vpop.permute.xlu1 %2937 }
0x25cc   :  { %v2940_v2 = vmul.f32 %v4431_v50, %v2938_v21  ;;  %v2977_v51 = vpop.permute.xlu0 %2976 }
0x25cd   :  { %v2979_v52 = vmul.f32 %v4433_v55, %v2977_v51 }
0x25ce   :  { %2942 = vrot.lane.b32.xlu1 %v2940_v2, %s4499_s4 }
0x25cf   :  { %2981 = vrot.lane.b32.xlu0 %v2979_v52, %s4499_s4 }
0x2640   :  { %v2943_v53 = vpop.permute.xlu1 %2942 }
0x2641   :  { %v2945_v54 = vadd.f32 %v2943_v53, %v5694_v47  ;;  %v2982_v30 = vpop.permute.xlu0 %2981 }
0x2642   :  { %v2984_v56 = vadd.f32 %v2982_v30, %v5691_v16 }
0x2643   :  { %4434 = vtanh.f32 %v2945_v54 }
0x2644   :  { %4436 = vtanh.f32 %v2984_v56 }
0x2645   :  { %4438 = vpow2.f32 %v3501_v63 }
0x264d   :  { %v4435_v57 = vpop.eup %4434 }
0x264e   :  { %v4437_v58 = vpop.eup %4436  ;;  %2949 = vrot.lane.b32.xlu1 %v4435_v57, %s4500_s6 }
0x264f   :  { %2988 = vrot.lane.b32.xlu0 %v4437_v58, %s4500_s6  ;;  %v4439_v0 = vpop.eup %4438 }
0x2650   :  { %v2973_v5 = vadd.f32 1.0, %v4439_v0 }
0x2652   :  { %4440 = vrcp.f32 %v2973_v5 }
0x265c   :  { %v4441_v15 = vpop.eup %4440 }
0x265d   :  { %v2986_v27 = vsub.f32 1.0, %v4441_v15  ;;  %v2994_v43 = vmul.f32 %v4441_v15, %v2992_v46 }
0x26c0   :  { %v2950_v40 = vpop.permute.xlu1 %2949 }
0x26c1   :  { %v2952_v9 = vmul.f32 %v2950_v40, %v2947_v18  ;;  %v2989_v29 = vpop.permute.xlu0 %2988 }
0x26c2   :  { %v2991_v28 = vmul.f32 %v2989_v29, %v2986_v27 }
0x26c3   :  { %v5892_v33 = vadd.f32 %v2955_v37, %v2952_v9 }
0x26c4   :  { %v5894_v35 = vadd.f32 %v2994_v43, %v2991_v28 }
0x26c5   :  { %2997 = vrot.lane.b32.xlu0 %v5892_v33, %s4500_s6  ;;  %v3107_v5 = vrot.slane %v5892_v33, 6  ;;  %v3302_v29 = vsel %vm1930_vm2, %v5857_v38, %v5892_v33 }
0x26c6   :  { %v3001_v36 = vrot.slane %v5894_v35, 2 }
0x26c8   :  { %3002 = vrot.lane.b32.xlu1 %v3001_v36, %s4501_s0 }
0x2737   :  { %v2998_v22 = vpop.permute.xlu0 %2997 }
0x273a   :  { %v3003_v8 = vpop.permute.xlu1 %3002 }
0x273b   :  { %v3005_v34 = vsel %vm875_vm1, %v2998_v22, %v3003_v8 }
0x273c   :  { %v3007_v4 = vrot.slane %v3005_v34, 2 }
0x273e   :  { %3502 = vmatmul.mubr.msk.f32.vlgmr.msra.gmra.mrb[24].mxu0 %vm634_vm0, %v3007_v4 }
0x2811   :  { %v3076_v1 = vpop.f32.mrb[24].mxu0 }
0x2812   :  { %v3077_v25 = vadd.f32 %v3076_v1, %v5658_v31  ;;  %v3078_v14 = vpop.f32.mrb[25].mxu0 }
0x2813   :  { %v3079_v13 = vadd.f32 %v3078_v14, %v5661_v6 }
0x2814   :  { %v3082_v12 = vrot.slane %v3077_v25, 4  ;;  %v3111_v59 = vrot.slane %v3077_v25, 6 }
0x2815   :  { %v3121_v42 = vrot.slane %v3079_v13, 6 }
0x2816   :  { %3091 = vrot.lane.b32.xlu1 %v3082_v12, %s4499_s4  ;;  %v3084_v44 = vadd.f32 %v3082_v12, %v5694_v47  ;;  %v3113_v7 = vadd.f32 %v3111_v59, %v5689_v26 }
0x2817   :  { %3130 = vrot.lane.b32.xlu0 %v3121_v42, %s4499_s4  ;;  %v3123_v56 = vadd.f32 %v3121_v42, %v5691_v16 }
0x2818   :  { %v3503_v60 = vmul.f32 -1.442695, %v3084_v44  ;;  %v3504_v3 = vmul.f32 -1.442695, %v3113_v7 }
0x2819   :  { %v3505_v57 = vmul.f32 -1.442695, %v3123_v56 }
0x281a   :  { %4442 = vpow2.f32 %v3503_v60 }
0x281b   :  { %4444 = vpow2.f32 %v3504_v3 }
0x2824   :  { %v4443_v19 = vpop.eup %4442 }
0x2825   :  { %v4445_v41 = vpop.eup %4444  ;;  %v3088_v20 = vadd.f32 1.0, %v4443_v19 }
0x2826   :  { %v3117_v32 = vadd.f32 1.0, %v4445_v41 }
0x2827   :  { %4446 = vrcp.f32 %v3088_v20 }
0x2828   :  { %4448 = vrcp.f32 %v3117_v32 }
0x2831   :  { %v4447_v45 = vpop.eup %4446 }
0x2832   :  { %v4449_v49 = vpop.eup %4448  ;;  %v3101_v0 = vsub.f32 1.0, %v4447_v45  ;;  %v3109_v10 = vmul.f32 %v4447_v45, %v3107_v5  ;;  %v3336_v5 = vld [vmem:[%s6022_s11 + $0x38] sm:$0xff] }
0x2888   :  { %v3092_v48 = vpop.permute.xlu1 %3091 }
0x2889   :  { %v3094_v50 = vmul.f32 %v4447_v45, %v3092_v48  ;;  %v3131_v21 = vpop.permute.xlu0 %3130 }
0x288a   :  { %v3133_v55 = vmul.f32 %v4449_v49, %v3131_v21  ;;  %v3330_v21 = vld [vmem:[%s6022_s11 + $0x8] sm:$0xff] }
0x288b   :  { %3096 = vrot.lane.b32.xlu1 %v3094_v50, %s4499_s4  ;;  %v3329_v50 = vld [vmem:[%s6022_s11] sm:$0xff] }
0x288c   :  { %3135 = vrot.lane.b32.xlu0 %v3133_v55, %s4499_s4  ;;  %v3331_v55 = vld [vmem:[%s6022_s11 + $0x10] sm:$0xff] }
0x28fd   :  { %v3097_v2 = vpop.permute.xlu1 %3096 }
0x28fe   :  { %v3099_v51 = vadd.f32 %v3097_v2, %v5694_v47  ;;  %v3136_v52 = vpop.permute.xlu0 %3135 }
0x28ff   :  { %v3138_v53 = vadd.f32 %v3136_v52, %v5691_v16 }
0x2900   :  { %4450 = vtanh.f32 %v3099_v51  ;;  %v4195_v51 = vpack.c.bf16 %v3330_v21, %v3329_v50 }
0x2901   :  { %4452 = vtanh.f32 %v3138_v53 }
0x2902   :  { %4454 = vpow2.f32 %v3505_v57  ;;  %4196 = vmatprep.subr.bf16.mxu0 %v4195_v51 }
0x2903   :  { %4198 = vmatpush3.bf16.msra.mxu0 %v4195_v51 }
0x290a   :  { %v4451_v54 = vpop.eup %4450 }
0x290b   :  { %v4453_v30 = vpop.eup %4452  ;;  %3103 = vrot.lane.b32.xlu1 %v4451_v54, %s4500_s6  ;;  %v3333_v54 = vld [vmem:[%s6022_s11 + $0x20] sm:$0xff] }
0x290c   :  { %3142 = vrot.lane.b32.xlu0 %v4453_v30, %s4500_s6  ;;  %v4455_v58 = vpop.eup %4454  ;;  %v3334_v30 = vld [vmem:[%s6022_s11 + $0x28] sm:$0xff] }
0x290d   :  { %v3127_v61 = vadd.f32 1.0, %v4455_v58  ;;  %v4203_v56 = vpack.c.bf16 %v3334_v30, %v3333_v54 }
0x290f   :  { %4456 = vrcp.f32 %v3127_v61 }
0x2919   :  { %v4457_v63 = vpop.eup %4456 }
0x291a   :  { %v3140_v18 = vsub.f32 1.0, %v4457_v63  ;;  %v3147_v46 = vmul.f32 %v4457_v63, %v3001_v36 }
0x297d   :  { %v3104_v15 = vpop.permute.xlu1 %3103 }
0x297e   :  { %v3106_v40 = vmul.f32 %v3104_v15, %v3101_v0  ;;  %v3143_v27 = vpop.permute.xlu0 %3142  ;;  %v3335_v0 = vld [vmem:[%s6022_s11 + $0x30] sm:$0xff] }
0x297f   :  { %v3145_v37 = vmul.f32 %v3143_v27, %v3140_v18  ;;  %v4207_v15 = vpack.c.bf16 %v3336_v5, %v3335_v0 }
0x2980   :  { %v5916_v9 = vadd.f32 %v3109_v10, %v3106_v40 }
0x2981   :  { %v5921_v43 = vadd.f32 %v3147_v46, %v3145_v37 }
0x2982   :  { %3150 = vrot.lane.b32.xlu0 %v5916_v9, %s4500_s6  ;;  %v5927_v28 = vsel %vm1932_vm3, %v3302_v29, %v5916_v9  ;;  %v3260_v27 = vrot.slane %v5916_v9, 6 }
0x2983   :  { %v3154_v22 = vrot.slane %v5921_v43, 6 }
0x2985   :  { %3155 = vrot.lane.b32.xlu1 %v3154_v22, %s4501_s0 }
0x29f4   :  { %v3151_v36 = vpop.permute.xlu0 %3150 }
0x29f7   :  { %v3156_v8 = vpop.permute.xlu1 %3155 }
0x29f8   :  { %v3158_v34 = vsel %vm875_vm1, %v3151_v36, %v3156_v8 }
0x29f9   :  { %v3160_v4 = vrot.slane %v3158_v34, 4 }
0x29fb   :  { %3506 = vmatmul.mubr.msk.f32.vlgmr.msra.gmra.mrb[30].mxu1 %vm634_vm0, %v3160_v4  ;;  %v3308_v4 = vsel %vm1930_vm2, %v5818_v17, %v5782_v11 }
0x2ace   :  { %v3229_v38 = vpop.f32.mrb[30].mxu1 }
0x2acf   :  { %v3230_v33 = vadd.f32 %v3229_v38, %v5658_v31  ;;  %v3231_v1 = vpop.f32.mrb[31].mxu1 }
0x2ad0   :  { %v3232_v25 = vadd.f32 %v3231_v1, %v5661_v6 }
0x2ad1   :  { %v3235_v14 = vrot.slane %v3230_v33, 2  ;;  %v3264_v13 = vadd.f32 %v3230_v33, %v5689_v26 }
0x2ad2   :  { %3279 = vrot.lane.b32.xlu0 %v3232_v25, %s4499_s4  ;;  %v3271_v57 = vadd.f32 %v3232_v25, %v5691_v16  ;;  %v3309_v25 = vsel %vm1932_vm3, %v3308_v4, %v5742_v39  ;;  %v3510_v39 = vld [vmem:[%s6023_s12] ss:$0 sm:$0xff] }
0x2ad3   :  { %3244 = vrot.lane.b32.xlu1 %v3235_v14, %s4499_s4  ;;  %v3237_v12 = vadd.f32 %v3235_v14, %v5694_v47  ;;  %v3508_v42 = vmul.f32 -1.442695, %v3264_v13  ;;  %v3310_v11 = vsel %vm1934_vm4, %v3309_v25, %v5710_v62 }
0x2ad4   :  { %v3509_v58 = vmul.f32 -1.442695, %v3271_v57 }
0x2ad5   :  { %v3507_v59 = vmul.f32 -1.442695, %v3237_v12  ;;  %4458 = vpow2.f32 %v3508_v42 }
0x2ad7   :  { %4460 = vpow2.f32 %v3507_v59 }
0x2adf   :  { %v4459_v44 = vpop.eup %4458 }
0x2ae0   :  { %v3268_v60 = vadd.f32 1.0, %v4459_v44 }
0x2ae1   :  { %v4461_v7 = vpop.eup %4460 }
0x2ae2   :  { %v3241_v31 = vadd.f32 1.0, %v4461_v7  ;;  %4462 = vrcp.f32 %v3268_v60 }
0x2ae4   :  { %4464 = vrcp.f32 %v3241_v31 }
0x2aec   :  { %v4463_v6 = vpop.eup %4462 }
0x2aee   :  { %v4465_v19 = vpop.eup %4464 }
0x2aef   :  { %v3254_v40 = vsub.f32 1.0, %v4465_v19  ;;  %v3262_v22 = vmul.f32 %v4465_v19, %v3260_v27 }
0x2b44   :  { %v3280_v3 = vpop.permute.xlu0 %3279 }
0x2b45   :  { %v3282_v41 = vmul.f32 %v4463_v6, %v3280_v3  ;;  %v3245_v20 = vpop.permute.xlu1 %3244 }
0x2b46   :  { %v3247_v32 = vmul.f32 %v4465_v19, %v3245_v20 }
0x2b47   :  { %3284 = vrot.lane.b32.xlu0 %v3282_v41, %s4499_s4 }
0x2b48   :  { %3249 = vrot.lane.b32.xlu1 %v3247_v32, %s4499_s4 }
0x2bb9   :  { %v3285_v26 = vpop.permute.xlu0 %3284 }
0x2bba   :  { %v3287_v45 = vadd.f32 %v3285_v26, %v5691_v16  ;;  %v3250_v48 = vpop.permute.xlu1 %3249  ;;  %v3295_v16 = vrot.slane %v5921_v43, 2 }
0x2bbb   :  { %v3252_v49 = vadd.f32 %v3250_v48, %v5694_v47  ;;  %v3332_v47 = vld [vmem:[%s6022_s11 + $0x18] sm:$0xff] }
0x2bbc   :  { %4466 = vtanh.f32 %v3287_v45  ;;  %v4199_v53 = vpack.c.bf16 %v3332_v47, %v3331_v55 }
0x2bbd   :  { %4468 = vtanh.f32 %v3252_v49 }
0x2bbe   :  { %4200 = vmatprep.subr.bf16.mxu0 %v4199_v53  ;;  %4470 = vpow2.f32 %v3509_v58 }
0x2bbf   :  { %4202 = vmatpush3.bf16.msra.mxu0 %v4199_v53 }
0x2bc0   :  { %4204 = vmatprep.subr.bf16.mxu0 %v4203_v56 }
0x2bc3   :  { %4206 = vmatpush3.bf16.msra.mxu0 %v4203_v56 }
0x2bc4   :  { %4208 = vmatprep.subr.bf16.mxu0 %v4207_v15 }
0x2bc6   :  { %v4467_v2 = vpop.eup %4466 }
0x2bc7   :  { %v4469_v52 = vpop.eup %4468  ;;  %3291 = vrot.lane.b32.xlu0 %v4467_v2, %s4500_s6  ;;  %4210 = vmatpush3.bf16.msra.mxu0 %v4207_v15 }
0x2bc8   :  { %3256 = vrot.lane.b32.xlu1 %v4469_v52, %s4500_s6  ;;  %v4471_v61 = vpop.eup %4470 }
0x2bc9   :  { %v3275_v63 = vadd.f32 1.0, %v4471_v61 }
0x2bcb   :  { %3313 = vrot.lane.b32.xlu0 %v5828_v23, %s4500_s6  ;;  %4472 = vrcp.f32 %v3275_v63 }
0x2bd5   :  { %v4473_v23 = vpop.eup %4472 }
0x2bd6   :  { %v3289_v18 = vsub.f32 1.0, %v4473_v23  ;;  %v3297_v46 = vmul.f32 %v4473_v23, %v3295_v16 }
0x2c39   :  { %v3292_v10 = vpop.permute.xlu0 %3291 }
0x2c3a   :  { %v3294_v37 = vmul.f32 %v3292_v10, %v3289_v18  ;;  %v3257_v29 = vpop.permute.xlu1 %3256 }
0x2c3b   :  { %v3259_v36 = vmul.f32 %v3257_v29, %v3254_v40 }
0x2c3c   :  { %v3298_v8 = vadd.f32 %v3297_v46, %v3294_v37 }
0x2c3d   :  { %v3263_v34 = vadd.f32 %v3262_v22, %v3259_v36  ;;  %v3314_v17 = vpop.permute.xlu0 %3313 }
0x2c3e   :  { %v3305_v38 = vsel %vm1930_vm2, %v3298_v8, %v5921_v43 }
0x2c3f   :  { %v3304_v33 = vsel %vm1934_vm4, %v5927_v28, %v3263_v34  ;;  %v3306_v9 = vsel %vm1932_vm3, %v3305_v38, %v5894_v35 }
0x2c40   :  { %3315 = vrot.lane.b32.xlu0 %v3304_v33, %s4500_s6  ;;  %v3307_v1 = vsel %vm1934_vm4, %v3306_v9, %v5863_v24 }
0x2c41   :  { %3321 = vrot.lane.b32.xlu1 %v3307_v1, %s4501_s0 }
0x2c45   :  { %3323 = vrot.lane.b32.xlu1 %v3310_v11, %s4501_s0  ;;  %s4474_s0 = scalar_lea.vmem %s3433_s2, 256 }
0x2c46   :  { %p4475_p0 = scmp.ne.s32.totalorder %s3433_s2, %s4474_s0  ;;  %p4480_p2 = scmp.lt.s32.totalorder %s4474_s0, %s4474_s0 }
0x2c48   :  { %p4481_p3 = por %p4480_p2, %p4479_p1 }
0x2c4a   :  { %p4482_p4 = pnand %p4481_p3, %p4475_p0 }
0x2cb2   :  { %v3316_v35 = vpop.permute.xlu0 %3315 }
0x2cb3   :  { %v3322_v43 = vpop.permute.xlu1 %3321 }
0x2cb4   :  { %v3327_v28 = vsel %vm875_vm1, %v3314_v17, %v3322_v43 }
0x2cb5   :  { %3744 = vmatprep.mubr.msk.f32.mxu0 %vm634_vm0, %v3327_v28 }
0x2cb7   :  { %v3324_v14 = vpop.permute.xlu1 %3323 }
0x2cb8   :  { %v3328_v24 = vsel %vm875_vm1, %v3316_v35, %v3324_v14 }
0x2cb9   :  { %3745 = vmatmul.mubr.msk.f32.vlgmr.msra.gmra.mrb[26].mxu0 %vm634_vm0, %v3328_v24 }
0x2d8c   :  { %v3746_v62 = vpop.f32.mrb[26].mxu0 }
0x2d8d   :  { %v3422_v13 = vadd.f32 %v3746_v62, %v3510_v39  ;;  %v3416_v12 = vpop.f32.mrb[27].mxu0 }
0x2d8e   :  { %v3417_v42 = vadd.f32 %v3510_v39, %v3416_v12 }
0x2d8f   :  { %3426 = vst [vmem:[#allocation2 + $0x8] sm:$0xff] %v3422_v13 }
0x2d90   :  { %3425 = vst [vmem:[#allocation2] sm:$0xff] %v3417_v42 }
0x2d91   :  { %4485 = shalt.err (!%p4482_p4)
}
0x2d92   :  { %s4486_s12 = scalar_lea.hbm %s6024_s13, 256 }
0x2d93   :  { %p4487_p5 = scmp.ne.s32.totalorder %s6024_s13, %s4486_s12  ;;  %p4490_p6 = scmp.lt.u32.totalorder %s4486_s12, %s6024_s13 }
0x2d95   :  { %p4492_p7 = pnand %p4490_p6, %p4487_p5 }
0x2d97   :  { %4495 = shalt.err (!%p4492_p7)
}
0x2d98   :  { %s4503_s10 = smov 128   ;;  %s4504_s18 = smov 8  }
0x2d99   :  { %3438 = dma.vmem_to_hbm [thread:$0]  %s3433_s2, 256, %s6024_s13, [#allocation3], %s4503_s10, %s4503_s10, %s4504_s18  }
0x2d9a   :  { %4496 = dma.done.wait [#allocation3], 256  }
0x2d9b   :  { %4497 = vsyncadd [#allocation3], 4294967040 }
0x2d9c   :  { %3442 = vsyncpa [#allocation3], 1 }

</bundles_post_ra>
